<compile_context>
chip_gen: v6e
topology: v6e:2x2x1
jax: 0.10.0
libtpu: 0.0.40
codegen_flags: <defaults>
</compile_context>

<pallas_src>
import math
import numpy as np
import jax
import jax.numpy as jnp
from jax import lax
from jax.experimental import pallas as pl
from jax.experimental.pallas import tpu as pltpu

NEG_SLOPE = 0.2      # LeakyReLU(0.2)
BLOCK_B = 128        # samples per grid step (multiple of 128: lane-dense output + MXU fill)


def _leaky(v):
    # max(v, a*v) == LeakyReLU(a) for 0 < a < 1; two VPU ops instead of cmp+select.
    return jnp.maximum(v, NEG_SLOPE * v)


def cgan_disc_kernel(x_ref, w1_ref, b1_ref, w2m_ref, w2h_ref, b2_ref,
                     wfc1_ref, bfc1_ref, wfc2_ref, bfc2_ref, out_ref):
    B = x_ref.shape[0] // 8           # samples in this block (static)
    f32 = jnp.float32
    bf16 = jnp.bfloat16

    # ---- conv1 (3->32, kw=3, pad 1): lane-dense banded GEMM ------------------
    # rows = (width-group g8 in 0..7, sample n); lanes = (pool-parity, m, co):
    # lane = parity*128 + m*32 + co encodes output width w = 8*g8 + 2*m + parity.
    h1 = _leaky(jnp.dot(x_ref[...], w1_ref[...], preferred_element_type=f32)
                + b1_ref[...])                                  # (8B, 256) f32

    # ---- MaxPool(1,2) #1: max of the two 128-lane parity halves --------------
    p1 = jnp.maximum(h1[:, :128], h1[:, 128:]).astype(bf16)     # (8B, 128), lanes (m, ci)

    # ---- conv2 (32->64, kw=3, pad 1): interior K=128 + halo K=64 matmuls -----
    # Output lanes = (parity2, m2, co2): width u_out = 4*g8 + 2*m2 + parity2.
    z32 = jnp.zeros((B, 32), bf16)
    prev_tail = jnp.concatenate([z32, p1[:7 * B, 96:128]], axis=0)   # p1 at width 4*g8-1
    next_head = jnp.concatenate([p1[B:, 0:32], z32], axis=0)         # p1 at width 4*g8+4
    halo = jnp.concatenate([prev_tail, next_head], axis=1)           # (8B, 64) bf16
    y2 = _leaky(jnp.dot(p1, w2m_ref[...], preferred_element_type=f32)
                + jnp.dot(halo, w2h_ref[...], preferred_element_type=f32)
                + b2_ref[...])                                   # (8B, 256) f32

    # ---- MaxPool(1,2) #2: again a max of lane halves -------------------------
    p2 = jnp.maximum(y2[:, :128], y2[:, 128:]).astype(bf16)      # (8B, 128), lanes (m2, co2)

    # ---- Flatten + Linear(1024 -> 128): one K=1024 matmul --------------------
    # lane-concatenate the 8 width-group row blocks (128-lane aligned pieces).
    flat = jnp.concatenate([p2[g * B:(g + 1) * B, :] for g in range(8)],
                           axis=1)                               # (B, 1024) bf16
    h3 = _leaky(jnp.dot(flat, wfc1_ref[...], preferred_element_type=f32)
                + bfc1_ref[...])                                 # (B, 128) f32

    # ---- Linear(128 -> 1), emitted lane-dense as a (1, B) row ----------------
    out_ref[...] = lax.dot_general(
        wfc2_ref[...], h3, (((1,), (1,)), ((), ())),
        preferred_element_type=f32) + bfc2_ref[...]


def _banded_conv1_weight(W1):
    """(32,3,1,3) -> (30, 256) block-banded weight; lanes = (parity, m, co)."""
    w = jnp.transpose(W1[:, :, 0, :], (2, 1, 0))                 # (k, ci, co) = (3,3,32)
    bands = jnp.stack([jnp.pad(w, ((j, 7 - j), (0, 0), (0, 0))) for j in range(8)],
                      axis=0)                                    # (j, dw, ci, co) = (8,10,3,32)
    return (bands.reshape(4, 2, 10, 3, 32)                       # (m, parity, dw, ci, co)
                 .transpose(2, 3, 1, 0, 4)                       # (dw, ci, parity, m, co)
                 .reshape(30, 256).astype(jnp.bfloat16))


def _banded_conv2_weight(W2):
    """(64,32,1,3) -> interior (128,256) + halo (64,256); lanes = (parity2, m2, co)."""
    w = jnp.transpose(W2[:, :, 0, :], (2, 1, 0))                 # (k, ci, co) = (3,32,64)
    bands = jnp.stack([jnp.pad(w, ((j, 3 - j), (0, 0), (0, 0))) for j in range(4)],
                      axis=0)                                    # (j2, dw2, ci, co) = (4,6,32,64)
    full = (bands.reshape(2, 2, 6, 32, 64)                       # (m2, parity2, dw2, ci, co)
                 .transpose(2, 3, 1, 0, 4)                       # (dw2, ci, parity2, m2, co)
                 .reshape(192, 256))
    w2_mid = full[32:160]                                        # dw2 in {1,2,3,4}
    w2_halo = jnp.concatenate([full[0:32], full[160:192]], axis=0)  # dw2 in {0,5}
    return w2_mid.astype(jnp.bfloat16), w2_halo.astype(jnp.bfloat16)


def cgan_discriminator_pallas(x, params, block_b=BLOCK_B):
    W1, b1, W2, b2, Wfc1, bfc1, Wfc2, bfc2 = params
    N = x.shape[0]
    assert x.shape[1:] == (3, 1, 64), "CNN branch expects NCHW input (N, 3, 1, 64)"
    B = block_b
    G = max(2, -(-N // B))             # >= 2 blocks so v7x can use both TensorCores
    Np = G * B

    # -------- glue: layout plumbing + parameter repacking (no compute) --------
    xs = x[:, :, 0, :].astype(jnp.float32)                       # (N, 3, 64)
    xs = jnp.pad(xs, ((0, Np - N), (0, 0), (0, 0)))              # pad batch to G*B
    xw = jnp.transpose(xs, (0, 2, 1))                            # (Np, 64, 3)
    xp = jnp.pad(xw, ((0, 0), (1, 1), (0, 0)))                   # width halo for conv1
    # windows: win[n, g8, dw, ci] = x[n, ci, 8*g8 + dw - 1]   (dw in 0..9, zero at edges)
    win = jnp.stack([xp[:, 8 * g:8 * g + 10, :] for g in range(8)], axis=1)  # (Np,8,10,3)
    xk = (win.reshape(G, B, 8, 30)
             .transpose(0, 2, 1, 3)                              # rows per block = (g8, n)
             .reshape(G, 8 * B, 30)
             .astype(jnp.bfloat16))

    w1b = _banded_conv1_weight(W1)                               # (30, 256) bf16
    w2m, w2h = _banded_conv2_weight(W2)                          # (128,256), (64,256) bf16
    b1b = jnp.tile(b1, 8).reshape(1, 256).astype(jnp.float32)
    b2b = jnp.tile(b2, 4).reshape(1, 256).astype(jnp.float32)
    # torch Flatten is channel-major: flat[c*16 + w], w = 2*g8 + m2
    wfc1f = (jnp.transpose(Wfc1.reshape(128, 64, 8, 2), (2, 3, 1, 0))
                 .reshape(1024, 128).astype(jnp.bfloat16))       # rows = g8*128 + m2*64 + c
    bfc1r = bfc1.reshape(1, 128).astype(jnp.float32)
    wfc2r = Wfc2.astype(jnp.float32)                             # (1, 128)
    bfc2r = bfc2.reshape(1, 1).astype(jnp.float32)

    out = pl.pallas_call(
        cgan_disc_kernel,
        out_shape=jax.ShapeDtypeStruct((G, 1, B), jnp.float32),
        grid=(G,),
        in_specs=[
            pl.BlockSpec((None, 8 * B, 30), lambda g: (g, 0, 0)),   # banded conv1 operand
            pl.BlockSpec((30, 256), lambda g: (0, 0)),              # conv1 weight (banded)
            pl.BlockSpec((1, 256), lambda g: (0, 0)),               # conv1 bias
            pl.BlockSpec((128, 256), lambda g: (0, 0)),             # conv2 interior weight
            pl.BlockSpec((64, 256), lambda g: (0, 0)),              # conv2 halo weight
            pl.BlockSpec((1, 256), lambda g: (0, 0)),               # conv2 bias
            pl.BlockSpec((1024, 128), lambda g: (0, 0)),            # fc1 weight (flat K=1024)
            pl.BlockSpec((1, 128), lambda g: (0, 0)),               # fc1 bias
            pl.BlockSpec((1, 128), lambda g: (0, 0)),               # fc2 weight
            pl.BlockSpec((1, 1), lambda g: (0, 0)),                 # fc2 bias
        ],
        out_specs=pl.BlockSpec((None, 1, B), lambda g: (g, 0, 0)),  # lane-dense (1, B) slab
        compiler_params=pltpu.CompilerParams(
            dimension_semantics=("parallel",),
            vmem_limit_bytes=32 * 1024 * 1024),
    )(xk, w1b, b1b, w2m, w2h, b2b, wfc1f, bfc1r, wfc2r, bfc2r)
    return out.reshape(G * B)[:N].reshape(N, 1)


def cgan_discriminator_ref(x, params):
    """Pure-JAX reference matching the PyTorch forward exactly (f32)."""
    W1, b1, W2, b2, Wfc1, bfc1, Wfc2, bfc2 = params
    dn = ('NCHW', 'OIHW', 'NCHW')
    h = jax.lax.conv_general_dilated(x, W1, (1, 1), ((0, 0), (1, 1)), dimension_numbers=dn)
    h = _leaky(h + b1[None, :, None, None])
    n, c, hh, w = h.shape
    h = h.reshape(n, c, hh, w // 2, 2).max(axis=-1)               # MaxPool (1,2)
    h = jax.lax.conv_general_dilated(h, W2, (1, 1), ((0, 0), (1, 1)), dimension_numbers=dn)
    h = _leaky(h + b2[None, :, None, None])
    n, c, hh, w = h.shape
    h = h.reshape(n, c, hh, w // 2, 2).max(axis=-1)               # MaxPool (1,2)
    flat = h.reshape(n, -1)                                       # Flatten (C-major)
    h = _leaky(flat @ Wfc1.T + bfc1)
    return h @ Wfc2.T + bfc2


if __name__ == "__main__":
    key = jax.random.PRNGKey(0)
    ks = jax.random.split(key, 9)

    def uinit(k, shape, fan_in):
        bound = 1.0 / math.sqrt(fan_in)
        return jax.random.uniform(k, shape, jnp.float32, -bound, bound)

    # deterministic synthetic parameters (PyTorch-default-style uniform init)
    params = (
        uinit(ks[0], (32, 3, 1, 3), 9),   uinit(ks[1], (32,), 9),      # conv1
        uinit(ks[2], (64, 32, 1, 3), 96), uinit(ks[3], (64,), 96),     # conv2
        uinit(ks[4], (128, 1024), 1024),  uinit(ks[5], (128,), 1024),  # fc1
        uinit(ks[6], (1, 128), 128),      uinit(ks[7], (1,), 128),     # fc2
    )
    x = jax.random.normal(ks[8], (2, 3, 1, 64), dtype=jnp.float32)    # NCHW

    out = jax.block_until_ready(cgan_discriminator_pallas(x, params))
    ref = jax.block_until_ready(cgan_discriminator_ref(x, params))
    np.testing.assert_allclose(np.asarray(out), np.asarray(ref),
                               rtol=5e-2, atol=1e-2)
    print("KERNEL_OK")
</pallas_src>

<mosaic_0001>
module attributes {stable_mosaic.version = 11 : i64} {
  func.func @cgan_disc_kernel(%arg0: i32, %arg1: memref<1x1024x30xbf16, #tpu.memory_space<vmem>>, %arg2: memref<30x256xbf16, #tpu.memory_space<vmem>>, %arg3: memref<1x256xf32, #tpu.memory_space<vmem>>, %arg4: memref<128x256xbf16, #tpu.memory_space<vmem>>, %arg5: memref<64x256xbf16, #tpu.memory_space<vmem>>, %arg6: memref<1x256xf32, #tpu.memory_space<vmem>>, %arg7: memref<1024x128xbf16, #tpu.memory_space<vmem>>, %arg8: memref<1x128xf32, #tpu.memory_space<vmem>>, %arg9: memref<1x128xf32, #tpu.memory_space<vmem>>, %arg10: memref<1x1xf32, #tpu.memory_space<vmem>>, %arg11: memref<1x1x128xf32, #tpu.memory_space<vmem>>) attributes {dimension_semantics = [#tpu.dimension_semantics<parallel>], iteration_bounds = array<i64: 2>, scalar_prefetch = 0 : i64, scratch_operands = 0 : i64, tpu.core_type = #tpu.core_type<tc>, window_params = [{transform_indices = @transform_0, window_bounds = array<i64: 1, 1024, 30>}, {pipeline_mode = #tpu.pipeline_mode<synchronous>, transform_indices = @transform_1, window_bounds = array<i64: 30, 256>}, {pipeline_mode = #tpu.pipeline_mode<synchronous>, transform_indices = @transform_2, window_bounds = array<i64: 1, 256>}, {pipeline_mode = #tpu.pipeline_mode<synchronous>, transform_indices = @transform_3, window_bounds = array<i64: 128, 256>}, {pipeline_mode = #tpu.pipeline_mode<synchronous>, transform_indices = @transform_4, window_bounds = array<i64: 64, 256>}, {pipeline_mode = #tpu.pipeline_mode<synchronous>, transform_indices = @transform_5, window_bounds = array<i64: 1, 256>}, {pipeline_mode = #tpu.pipeline_mode<synchronous>, transform_indices = @transform_6, window_bounds = array<i64: 1024, 128>}, {pipeline_mode = #tpu.pipeline_mode<synchronous>, transform_indices = @transform_7, window_bounds = array<i64: 1, 128>}, {pipeline_mode = #tpu.pipeline_mode<synchronous>, transform_indices = @transform_8, window_bounds = array<i64: 1, 128>}, {pipeline_mode = #tpu.pipeline_mode<synchronous>, transform_indices = @transform_9, window_bounds = array<i64: 1, 1>}, {transform_indices = @transform_10, window_bounds = array<i64: 1, 1, 128>}]} {
    %c0 = arith.constant 0 : index
    %c0_0 = arith.constant 0 : index
    %c0_1 = arith.constant 0 : index
    %0 = vector.load %arg1[%c0, %c0_0, %c0_1] : memref<1x1024x30xbf16, #tpu.memory_space<vmem>>, vector<1x1024x30xbf16>
    %1 = vector.shape_cast %0 : vector<1x1024x30xbf16> to vector<1024x30xbf16>
    %c0_2 = arith.constant 0 : index
    %c0_3 = arith.constant 0 : index
    %2 = vector.load %arg2[%c0_2, %c0_3] : memref<30x256xbf16, #tpu.memory_space<vmem>>, vector<30x256xbf16>
    %cst = arith.constant dense<0.000000e+00> : vector<1024x256xf32>
    %3 = tpu.matmul %1, %2, %cst {dimension_numbers = #tpu.dot_dimension_numbers<[1], [0], [0], [1], [0, 0, 1, 1], [], []>} : vector<1024x30xbf16>, vector<30x256xbf16>, vector<1024x256xf32> -> vector<1024x256xf32>
    %c0_4 = arith.constant 0 : index
    %c0_5 = arith.constant 0 : index
    %4 = vector.load %arg3[%c0_4, %c0_5] : memref<1x256xf32, #tpu.memory_space<vmem>>, vector<1x256xf32>
    %5 = vector.broadcast %4 : vector<1x256xf32> to vector<1024x256xf32>
    %6 = arith.addf %3, %5 : vector<1024x256xf32>
    %cst_6 = arith.constant 2.000000e-01 : f32
    %7 = vector.broadcast %cst_6 : f32 to vector<1024x256xf32>
    %8 = arith.mulf %7, %6 : vector<1024x256xf32>
    %9 = arith.maximumf %6, %8 : vector<1024x256xf32>
    %10 = vector.extract_strided_slice %9 {offsets = [0, 0], sizes = [1024, 128], strides = [1, 1]} : vector<1024x256xf32> to vector<1024x128xf32>
    %11 = vector.extract_strided_slice %9 {offsets = [0, 128], sizes = [1024, 128], strides = [1, 1]} : vector<1024x256xf32> to vector<1024x128xf32>
    %12 = arith.maximumf %10, %11 : vector<1024x128xf32>
    %13 = arith.truncf %12 : vector<1024x128xf32> to vector<1024x128xbf16>
    %cst_7 = arith.constant 0.000000e+00 : bf16
    %14 = vector.broadcast %cst_7 : bf16 to vector<128x32xbf16>
    %15 = vector.extract_strided_slice %13 {offsets = [0, 96], sizes = [896, 32], strides = [1, 1]} : vector<1024x128xbf16> to vector<896x32xbf16>
    %16 = tpu.concatenate %14, %15 in 0 : vector<128x32xbf16>, vector<896x32xbf16> -> vector<1024x32xbf16>
    %17 = vector.extract_strided_slice %13 {offsets = [128, 0], sizes = [896, 32], strides = [1, 1]} : vector<1024x128xbf16> to vector<896x32xbf16>
    %18 = tpu.concatenate %17, %14 in 0 : vector<896x32xbf16>, vector<128x32xbf16> -> vector<1024x32xbf16>
    %19 = tpu.concatenate %16, %18 in 1 : vector<1024x32xbf16>, vector<1024x32xbf16> -> vector<1024x64xbf16>
    %c0_8 = arith.constant 0 : index
    %c0_9 = arith.constant 0 : index
    %20 = vector.load %arg4[%c0_8, %c0_9] : memref<128x256xbf16, #tpu.memory_space<vmem>>, vector<128x256xbf16>
    %cst_10 = arith.constant dense<0.000000e+00> : vector<1024x256xf32>
    %21 = tpu.matmul %13, %20, %cst_10 {dimension_numbers = #tpu.dot_dimension_numbers<[1], [0], [0], [1], [0, 0, 1, 1], [], []>} : vector<1024x128xbf16>, vector<128x256xbf16>, vector<1024x256xf32> -> vector<1024x256xf32>
    %c0_11 = arith.constant 0 : index
    %c0_12 = arith.constant 0 : index
    %22 = vector.load %arg5[%c0_11, %c0_12] : memref<64x256xbf16, #tpu.memory_space<vmem>>, vector<64x256xbf16>
    %cst_13 = arith.constant dense<0.000000e+00> : vector<1024x256xf32>
    %23 = tpu.matmul %19, %22, %cst_13 {dimension_numbers = #tpu.dot_dimension_numbers<[1], [0], [0], [1], [0, 0, 1, 1], [], []>} : vector<1024x64xbf16>, vector<64x256xbf16>, vector<1024x256xf32> -> vector<1024x256xf32>
    %24 = arith.addf %21, %23 : vector<1024x256xf32>
    %c0_14 = arith.constant 0 : index
    %c0_15 = arith.constant 0 : index
    %25 = vector.load %arg6[%c0_14, %c0_15] : memref<1x256xf32, #tpu.memory_space<vmem>>, vector<1x256xf32>
    %26 = vector.broadcast %25 : vector<1x256xf32> to vector<1024x256xf32>
    %27 = arith.addf %24, %26 : vector<1024x256xf32>
    %cst_16 = arith.constant 2.000000e-01 : f32
    %28 = vector.broadcast %cst_16 : f32 to vector<1024x256xf32>
    %29 = arith.mulf %28, %27 : vector<1024x256xf32>
    %30 = arith.maximumf %27, %29 : vector<1024x256xf32>
    %31 = vector.extract_strided_slice %30 {offsets = [0, 0], sizes = [1024, 128], strides = [1, 1]} : vector<1024x256xf32> to vector<1024x128xf32>
    %32 = vector.extract_strided_slice %30 {offsets = [0, 128], sizes = [1024, 128], strides = [1, 1]} : vector<1024x256xf32> to vector<1024x128xf32>
    %33 = arith.maximumf %31, %32 : vector<1024x128xf32>
    %34 = arith.truncf %33 : vector<1024x128xf32> to vector<1024x128xbf16>
    %35 = vector.extract_strided_slice %34 {offsets = [0, 0], sizes = [128, 128], strides = [1, 1]} : vector<1024x128xbf16> to vector<128x128xbf16>
    %36 = vector.extract_strided_slice %34 {offsets = [128, 0], sizes = [128, 128], strides = [1, 1]} : vector<1024x128xbf16> to vector<128x128xbf16>
    %37 = vector.extract_strided_slice %34 {offsets = [256, 0], sizes = [128, 128], strides = [1, 1]} : vector<1024x128xbf16> to vector<128x128xbf16>
    %38 = vector.extract_strided_slice %34 {offsets = [384, 0], sizes = [128, 128], strides = [1, 1]} : vector<1024x128xbf16> to vector<128x128xbf16>
    %39 = vector.extract_strided_slice %34 {offsets = [512, 0], sizes = [128, 128], strides = [1, 1]} : vector<1024x128xbf16> to vector<128x128xbf16>
    %40 = vector.extract_strided_slice %34 {offsets = [640, 0], sizes = [128, 128], strides = [1, 1]} : vector<1024x128xbf16> to vector<128x128xbf16>
    %41 = vector.extract_strided_slice %34 {offsets = [768, 0], sizes = [128, 128], strides = [1, 1]} : vector<1024x128xbf16> to vector<128x128xbf16>
    %42 = vector.extract_strided_slice %34 {offsets = [896, 0], sizes = [128, 128], strides = [1, 1]} : vector<1024x128xbf16> to vector<128x128xbf16>
    %43 = tpu.concatenate %35, %36, %37, %38, %39, %40, %41, %42 in 1 : vector<128x128xbf16>, vector<128x128xbf16>, vector<128x128xbf16>, vector<128x128xbf16>, vector<128x128xbf16>, vector<128x128xbf16>, vector<128x128xbf16>, vector<128x128xbf16> -> vector<128x1024xbf16>
    %c0_17 = arith.constant 0 : index
    %c0_18 = arith.constant 0 : index
    %44 = vector.load %arg7[%c0_17, %c0_18] : memref<1024x128xbf16, #tpu.memory_space<vmem>>, vector<1024x128xbf16>
    %cst_19 = arith.constant dense<0.000000e+00> : vector<128x128xf32>
    %45 = tpu.matmul %43, %44, %cst_19 {dimension_numbers = #tpu.dot_dimension_numbers<[1], [0], [0], [1], [0, 0, 1, 1], [], []>} : vector<128x1024xbf16>, vector<1024x128xbf16>, vector<128x128xf32> -> vector<128x128xf32>
    %c0_20 = arith.constant 0 : index
    %c0_21 = arith.constant 0 : index
    %46 = vector.load %arg8[%c0_20, %c0_21] : memref<1x128xf32, #tpu.memory_space<vmem>>, vector<1x128xf32>
    %47 = vector.broadcast %46 : vector<1x128xf32> to vector<128x128xf32>
    %48 = arith.addf %45, %47 : vector<128x128xf32>
    %cst_22 = arith.constant 2.000000e-01 : f32
    %49 = vector.broadcast %cst_22 : f32 to vector<128x128xf32>
    %50 = arith.mulf %49, %48 : vector<128x128xf32>
    %51 = arith.maximumf %48, %50 : vector<128x128xf32>
    %c0_23 = arith.constant 0 : index
    %c0_24 = arith.constant 0 : index
    %52 = vector.load %arg9[%c0_23, %c0_24] : memref<1x128xf32, #tpu.memory_space<vmem>>, vector<1x128xf32>
    %cst_25 = arith.constant dense<0.000000e+00> : vector<1x128xf32>
    %53 = tpu.matmul %52, %51, %cst_25 {dimension_numbers = #tpu.dot_dimension_numbers<[1], [1], [0], [0], [0, 0, 1, 0], [], []>} : vector<1x128xf32>, vector<128x128xf32>, vector<1x128xf32> -> vector<1x128xf32>
    %c0_26 = arith.constant 0 : index
    %c0_27 = arith.constant 0 : index
    %54 = vector.load %arg10[%c0_26, %c0_27] : memref<1x1xf32, #tpu.memory_space<vmem>>, vector<1x1xf32>
    %55 = vector.broadcast %54 : vector<1x1xf32> to vector<1x128xf32>
    %56 = arith.addf %53, %55 : vector<1x128xf32>
    %c0_28 = arith.constant 0 : index
    %c0_29 = arith.constant 0 : index
    %c0_30 = arith.constant 0 : index
    %57 = vector.load %arg11[%c0_28, %c0_29, %c0_30] : memref<1x1x128xf32, #tpu.memory_space<vmem>>, vector<1x1x128xf32>
    %58 = vector.shape_cast %57 : vector<1x1x128xf32> to vector<1x128xf32>
    %59 = vector.shape_cast %56 : vector<1x128xf32> to vector<1x1x128xf32>
    tpu.vector_store %arg11[%c0_28, %c0_29, %c0_30], %59 {strides = array<i32>} : memref<1x1x128xf32, #tpu.memory_space<vmem>>, vector<1x1x128xf32>,
    return
  }
  func.func @transform_0(%arg0: i32) -> (i32, i32, i32) {
    %c0_i32 = arith.constant 0 : i32
    %c0_i32_0 = arith.constant 0 : i32
    %c0_i32_1 = arith.constant 0 : i32
    return %arg0, %c0_i32, %c0_i32_0 : i32, i32, i32
  }
  func.func @transform_1(%arg0: i32) -> (i32, i32) {
    %c0_i32 = arith.constant 0 : i32
    %c0_i32_0 = arith.constant 0 : i32
    %c0_i32_1 = arith.constant 0 : i32
    return %c0_i32, %c0_i32_0 : i32, i32
  }
  func.func @transform_2(%arg0: i32) -> (i32, i32) {
    %c0_i32 = arith.constant 0 : i32
    %c0_i32_0 = arith.constant 0 : i32
    %c0_i32_1 = arith.constant 0 : i32
    return %c0_i32, %c0_i32_0 : i32, i32
  }
  func.func @transform_3(%arg0: i32) -> (i32, i32) {
    %c0_i32 = arith.constant 0 : i32
    %c0_i32_0 = arith.constant 0 : i32
    %c0_i32_1 = arith.constant 0 : i32
    return %c0_i32, %c0_i32_0 : i32, i32
  }
  func.func @transform_4(%arg0: i32) -> (i32, i32) {
    %c0_i32 = arith.constant 0 : i32
    %c0_i32_0 = arith.constant 0 : i32
    %c0_i32_1 = arith.constant 0 : i32
    return %c0_i32, %c0_i32_0 : i32, i32
  }
  func.func @transform_5(%arg0: i32) -> (i32, i32) {
    %c0_i32 = arith.constant 0 : i32
    %c0_i32_0 = arith.constant 0 : i32
    %c0_i32_1 = arith.constant 0 : i32
    return %c0_i32, %c0_i32_0 : i32, i32
  }
  func.func @transform_6(%arg0: i32) -> (i32, i32) {
    %c0_i32 = arith.constant 0 : i32
    %c0_i32_0 = arith.constant 0 : i32
    %c0_i32_1 = arith.constant 0 : i32
    return %c0_i32, %c0_i32_0 : i32, i32
  }
  func.func @transform_7(%arg0: i32) -> (i32, i32) {
    %c0_i32 = arith.constant 0 : i32
    %c0_i32_0 = arith.constant 0 : i32
    %c0_i32_1 = arith.constant 0 : i32
    return %c0_i32, %c0_i32_0 : i32, i32
  }
  func.func @transform_8(%arg0: i32) -> (i32, i32) {
    %c0_i32 = arith.constant 0 : i32
    %c0_i32_0 = arith.constant 0 : i32
    %c0_i32_1 = arith.constant 0 : i32
    return %c0_i32, %c0_i32_0 : i32, i32
  }
  func.func @transform_9(%arg0: i32) -> (i32, i32) {
    %c0_i32 = arith.constant 0 : i32
    %c0_i32_0 = arith.constant 0 : i32
    %c0_i32_1 = arith.constant 0 : i32
    return %c0_i32, %c0_i32_0 : i32, i32
  }
  func.func @transform_10(%arg0: i32) -> (i32, i32, i32) {
    %c0_i32 = arith.constant 0 : i32
    %c0_i32_0 = arith.constant 0 : i32
    %c0_i32_1 = arith.constant 0 : i32
    return %arg0, %c0_i32, %c0_i32_0 : i32, i32, i32
  }
}

</mosaic_0001>

<bundles_post_ra>
// kernel: tpu_custom_call.1
= control target key start
LH: loop header
LB: loop body
LE: loop exit
PB: predicated region body
PF: predicated region fallthrough
CT: control target
= control target key end

     0   :  { %s10333_s0 = inlined_call_operand.vmem [shape: bf16[2,1024,30], index: 0, kind: input, shape index: {}]   ;;  %s10334_s1 = inlined_call_operand.vmem [shape: bf16[30,256], index: 1, kind: input, shape index: {}]   ;;  %s10335_s2 = inlined_call_operand.vmem [shape: f32[1,256], index: 2, kind: input, shape index: {}]   ;;  %s10336_s3 = inlined_call_operand.vmem [shape: bf16[128,256], index: 3, kind: input, shape index: {}]   ;;  %s10337_s4 = inlined_call_operand.vmem [shape: bf16[64,256], index: 4, kind: input, shape index: {}]   ;;  %s10338_s5 = inlined_call_operand.vmem [shape: f32[1,256], index: 5, kind: input, shape index: {}]   ;;  %s10339_s6 = inlined_call_operand.vmem [shape: bf16[1024,128], index: 6, kind: input, shape index: {}]   ;;  %s10340_s7 = inlined_call_operand.vmem [shape: f32[1,128], index: 7, kind: input, shape index: {}]   ;;  %s10341_s8 = inlined_call_operand.vmem [shape: f32[1,128], index: 8, kind: input, shape index: {}]   ;;  %s10342_s9 = inlined_call_operand.<no memory space> [shape: f32[1,1], index: 9, kind: input, shape index: {}]   ;;  %s10343_s10 = inlined_call_operand.hbm [shape: f32[2,1,128], index: 10, kind: output, shape index: {}]  }
   0x1   :  { %v15_v0 = vstv %s10342_s9 }
   0x2   :  { %16 = vst [vmem:[#allocation2] sm:$0x1] %v15_v0 }
   0x3   :  { %17 = vsyncpa [#allocation4], 0 }
   0x4   :  { %19 = vsyncpa [#allocation4 + $0x1], 0  ;;  %s7373_s15 = smov 0   ;;  %s7375_s16 = smov 0  }
   0x5   :  { %s7377_s17 = smov 0   ;;  %s7379_s18 = smov 0  }
   0x6 LB: > { %s7394_s9 = sadd.s32 4294967295, %s7308_s18   ;;  %s6425_s19 = sadd.s32 4294967294, %s7308_s18   ;;  %s7308_s18 = sphi %s7379_s18, %s10718_s18   ;;  %s7304_s17 = sphi %s7377_s17, %s10717_s17   ;;  %s7300_s16 = sphi %s7375_s16, %s10716_s16   ;;  %s7296_s15 = sphi %s7373_s15, %s10715_s15  }
   0x7   : > { %s7398_s20 = sadd.s32 1, %s7308_s18   ;;  %s247_s21 = sadd.s32 1, %s7304_s17 }
   0x8   : > { %s244_s22 = ssub.s32 %s7308_s18, %s7398_s20  ;;  %p257_p0 = scmp.ne.s32.totalorder %s7304_s17, %s7300_s16 }
   0x9   : > { %p245_p1 = scmp.eq.s32.totalorder %s244_s22, 0  ;;  %p258_p2 = scmp.eq.s32.totalorder %s7394_s9, 1 }
   0xa   : > { %p263_p3 = scmp.ne.s32.totalorder %s7300_s16, %s7296_s15  ;;  %p264_p4 = scmp.eq.s32.totalorder %s6425_s19, 1 }
   0xb   : > { %s7409_s23 = scalar_select %p245_p1, %s7304_s17, %s247_s21  }
   0xc   : > { %p7411_p5 = por %p258_p2, %p257_p0  ;;  %p7415_p6 = por %p264_p4, %p263_p3 }
   0xd   : > { %p6428_p7 = scmp.ge.s32.totalorder %s7308_s18, 1  ;;  %p317_p8 = scmp.lt.s32.totalorder %s7308_s18, 3 }
   0xf   : > { %p318_p9 = pnand %p6428_p7, %p317_p8 }
  0x11   : > { %321 = sbr.rel (%p318_p9) target bundleno = 1662 (0x67e), region = 60 }
  0x16   : > { %v7078_v1 = vld [vmem:[%s10334_s1 + $0x14] ss:$8 sps:$4 sm:$0x7f]   ;;  %vm1035_vm0 = vcmask 1046528   ;;  %v7081_v3 = vld [vmem:[%s10334_s1 + $0x4] ss:$8 sps:$4 sm:$0xff]   ;;  %v494_v50 = vlaneseq }
  0x17   : > { %v7080_v2 = vld [vmem:[%s10334_s1 + $0x10] ss:$8 sps:$4 sm:$0x7f]   ;;  %6499 = vmatprep.subr.msk.bf16.mxu0 %vm1035_vm0, %v7078_v1  ;;  %p354_p10 = scmp.lt.s32.totalorder %s7394_s9, 1  ;;  %7029 = vmatprep.subr.msk.bf16.mxu1 %vm1035_vm0, %v7078_v1  ;;  %v10345_v5 = vmov 0   ;;  %vm842_vm1 = vcmask 244736  }
  0x18   : > { %v1037_v4 = vsel %vm1035_vm0, %v7080_v2, 0  ;;  %1074 = vmatprep.mubr.bf16.mxu0 %v10345_v5  ;;  %1564 = vmatprep.mubr.bf16.mxu1 %v10345_v5  ;;  %v7083_v6 = vld [vmem:[%s10334_s1] ss:$8 sps:$4 sm:$0xff]   ;;  %v7092_v7 = vld [vmem:[%s10336_s3 + $0x74] ss:$8 sps:$4 sm:$0xff]   ;;  %v7581_v55 = vshrl.u32 %v494_v50, 7 }
  0x19   : > { %1055 = vmatpush1.bf16.msra.mxu0 %v1037_v4  ;;  %s355_s14 = scalar_select %p354_p10, %s7394_s9, 1  ;;  %7031 = vmatpush1.bf16.msra.mxu1 %v1037_v4  ;;  %v7090_v8 = vld [vmem:[%s10336_s3 + $0x70] ss:$8 sps:$4 sm:$0xff]   ;;  %v7101_v10 = vld [vmem:[%s10336_s3 + $0x64] ss:$8 sps:$4 sm:$0xff]   ;;  %vm2614_vm2 = vcmask 261120  }
  0x1a   : > { %1056 = vmatprep.subr.bf16.mxu0 %v7081_v3  ;;  %7030 = vmatprep.subr.bf16.mxu1 %v7081_v3  ;;  %v7099_v11 = vld [vmem:[%s10336_s3 + $0x60] ss:$8 sps:$4 sm:$0xff]   ;;  %v7108_v14 = vld [vmem:[%s10336_s3 + $0x50] ss:$8 sps:$4 sm:$0xff]   ;;  %v7110_v15 = vld [vmem:[%s10336_s3 + $0x54] ss:$8 sps:$4 sm:$0xff]  }
  0x1b   : > { %s6720_s22 = sshll.u32 %s355_s14, 9  ;;  %7076 = vset.pattern.permute.xlu1 %v10345_v5  ;;  %7077 = vset.pattern.permute.xlu0 %v10345_v5  ;;  %v7117_v21 = vld [vmem:[%s10336_s3 + $0x40] ss:$8 sps:$4 sm:$0xff]   ;;  %v7119_v22 = vld [vmem:[%s10336_s3 + $0x44] ss:$8 sps:$4 sm:$0xff]   ;;  %v7588_v56 = vsub.s32 0, %v7581_v55 }
  0x1c   : > { %s7448_s30 = scalar_lea.vmem %s10333_s0, %s6720_s22  ;;  %v7126_v30 = vld [vmem:[%s10336_s3 + $0x30] ss:$8 sps:$4 sm:$0xff]   ;;  %v7128_v31 = vld [vmem:[%s10336_s3 + $0x34] ss:$8 sps:$4 sm:$0xff]   ;;  %v7142_v46 = vld [vmem:[%s10336_s3 + $0x20] ss:$8 sps:$4 sm:$0xff]  }
  0x1d   : > { %1057 = vmatpush1.bf16.msra.mxu0 %v7083_v6  ;;  %v7084_v9 = vld [vmem:[%s7448_s30] sm:$0xff]   ;;  %7032 = vmatpush1.bf16.msra.mxu1 %v7083_v6  ;;  %v7085_v12 = vld [vmem:[%s7448_s30 + $0x8] sm:$0xff]   ;;  %v7086_v13 = vld [vmem:[%s7448_s30 + $0x10] sm:$0xff]   ;;  %10450 = vst [vmem:[#allocation6_spill] sm:$0xff] %v7588_v56  ;;  %v10344_v58 = vsub.s32 1, %v7581_v55  ;;  %s7311_s19 = smov 32  }
  0x1e   : > { %3691 = vmatprep.subr.bf16.mxu0 %v7092_v7  ;;  %v7087_v16 = vld [vmem:[%s7448_s30 + $0x18] sm:$0xff]   ;;  %v7088_v17 = vld [vmem:[%s7448_s30 + $0x20] sm:$0xff]   ;;  %v7089_v18 = vld [vmem:[%s7448_s30 + $0x28] sm:$0xff]   ;;  %vm2809_vm3 = vcmask 523264   ;;  %vm7313_vm4 = vmmov 0   ;;  %s6717_s22 = sshll.u32 %s7394_s9, 4 }
  0x1f   : > { %v7093_v19 = vld [vmem:[%s7448_s30 + $0x30] sm:$0xff]   ;;  %v7094_v20 = vld [vmem:[%s7448_s30 + $0x38] sm:$0xff]   ;;  %v7095_v23 = vld [vmem:[%s7448_s30 + $0x40] sm:$0xff]   ;;  %s10298_s11 = scalar_lea.hbm %s10343_s10, %s6717_s22  ;;  %s7314_s14 = smov [#allocation3]  }
  0x20   : > { %6500 = vmatmul.mubr.msk.bf16.vlgmr.msra.gmra.mxu0 %vm842_vm1, %v7084_v9  ;;  %v7096_v24 = vld [vmem:[%s7448_s30 + $0x48] sm:$0xff]   ;;  %v7097_v25 = vld [vmem:[%s7448_s30 + $0x50] sm:$0xff]   ;;  %v7098_v26 = vld [vmem:[%s7448_s30 + $0x58] sm:$0xff]   ;;  %s7252_s9 = sshll.u32 %s7314_s14, 4  ;;  %s7253_s9 = int_to_ptr.vmem [resolvable:$false] %s7252_s9 }
  0x21   : > { %1084 = vmatprep.mubr.bf16.mxu0 %v10345_v5  ;;  %3692 = vmatpush1.bf16.msra.mxu0 %v7090_v8  ;;  %v7102_v27 = vld [vmem:[%s7448_s30 + $0x60] sm:$0xff]   ;;  %v7103_v28 = vld [vmem:[%s7448_s30 + $0x68] sm:$0xff]   ;;  %v7104_v29 = vld [vmem:[%s7448_s30 + $0x70] sm:$0xff]  }
  0x22   : > { %3693 = vmatprep.subr.bf16.mxu0 %v7101_v10  ;;  %v7105_v32 = vld [vmem:[%s7448_s30 + $0x78] sm:$0xff]   ;;  %v7106_v33 = vld [vmem:[%s7448_s30 + $0x80] sm:$0xff]   ;;  %v7132_v34 = vld [vmem:[%s7448_s30 + $0x188] sm:$0xff]  }
  0x23   : > { %v7107_v35 = vld [vmem:[%s7448_s30 + $0x88] sm:$0xff]   ;;  %6549 = vmatmul.mubr.msk.bf16.vlgmr.msra.gmra.mxu1 %vm842_vm1, %v7132_v34  ;;  %v7134_v36 = vld [vmem:[%s7448_s30 + $0x190] sm:$0xff]   ;;  %v7139_v40 = vld [vmem:[%s7448_s30 + $0x198] sm:$0xff]  }
  0x24   : > { %1574 = vmatprep.mubr.bf16.mxu1 %v10345_v5  ;;  %v7111_v37 = vld [vmem:[%s7448_s30 + $0x90] sm:$0xff]   ;;  %v7112_v41 = vld [vmem:[%s7448_s30 + $0x98] sm:$0xff]   ;;  %v7141_v42 = vld [vmem:[%s7448_s30 + $0x1a0] sm:$0xff]  }
  0x25   : > { %3694 = vmatpush1.bf16.msra.mxu0 %v7099_v11  ;;  %v7135_v38 = vld [vmem:[%s10337_s4 + $0x30] ss:$8 sps:$4 sm:$0xff]   ;;  %v7137_v39 = vld [vmem:[%s10337_s4 + $0x34] ss:$8 sps:$4 sm:$0xff]   ;;  %v7113_v43 = vld [vmem:[%s7448_s30 + $0xa0] sm:$0xff]  }
  0x26   : > { %3695 = vmatprep.subr.bf16.mxu0 %v7110_v15  ;;  %2946 = vmatprep.subr.bf16.mxu1 %v7137_v39  ;;  %v7146_v44 = vld [vmem:[%s7448_s30 + $0x1a8] sm:$0xff]   ;;  %v7151_v48 = vld [vmem:[%s7448_s30 + $0x1b0] sm:$0xff]   ;;  %v7153_v53 = vld [vmem:[%s7448_s30 + $0x1b8] sm:$0xff]  }
  0x27   : > { %2947 = vmatpush1.bf16.msra.mxu1 %v7135_v38  ;;  %v7114_v45 = vld [vmem:[%s7448_s30 + $0xa8] sm:$0xff]   ;;  %v7115_v49 = vld [vmem:[%s7448_s30 + $0xb0] sm:$0xff]   ;;  %v7116_v54 = vld [vmem:[%s7448_s30 + $0xb8] sm:$0xff]  }
  0x28   : > { %6501 = vmatmul.mubr.msk.bf16.gmra.mxu0 %vm842_vm1, %v7085_v12  ;;  %v7144_v47 = vld [vmem:[%s10336_s3 + $0x24] ss:$8 sps:$4 sm:$0xff]   ;;  %v7148_v51 = vld [vmem:[%s10337_s4 + $0x20] ss:$8 sps:$4 sm:$0xff]  }
  0x29   : > { %1094 = vmatprep.mubr.bf16.mxu0 %v10345_v5  ;;  %3696 = vmatpush1.bf16.msra.mxu0 %v7108_v14  ;;  %v7150_v52 = vld [vmem:[%s10337_s4 + $0x24] ss:$8 sps:$4 sm:$0xff]   ;;  %v492_v57 = vld [vmem:[%s10335_s2] sm:$0x3] }
  0x2a   : > { %3697 = vmatprep.subr.bf16.mxu0 %v7119_v22  ;;  %2948 = vmatprep.subr.bf16.mxu1 %v7150_v52  ;;  %v7155_v59 = vld [vmem:[%s7448_s30 + $0x1c0] sm:$0xff]   ;;  %v7597_v61 = vrot.slane %v492_v57, %v7588_v56  ;;  %v7603_v62 = vrot.slane %v492_v57, %v10344_v58  ;;  %v7157_v4 = vld [vmem:[%s7448_s30 + $0x1c8] sm:$0xff]  }
  0x2b   : > { %6550 = vmatmul.mubr.msk.bf16.gmra.mxu1 %vm842_vm1, %v7134_v36  ;;  %v7120_v60 = vld [vmem:[%s7448_s30 + $0xc0] sm:$0xff]   ;;  %v7121_v7 = vld [vmem:[%s7448_s30 + $0xc8] sm:$0xff]  }
  0x2c   : > { %1584 = vmatprep.mubr.bf16.mxu1 %v10345_v5  ;;  %2949 = vmatpush1.bf16.msra.mxu1 %v7148_v51 }
  0x2d   : > { %3698 = vmatpush1.bf16.msra.mxu0 %v7117_v21 }
  0x2e   : > { %3699 = vmatprep.subr.bf16.mxu0 %v7128_v31  ;;  %v7161_v31 = vld [vmem:[%s10337_s4 + $0x14] ss:$8 sps:$4 sm:$0xff]  }
  0x2f   : > { %2950 = vmatprep.subr.bf16.mxu1 %v7161_v31 }
  0x30   : > { %6502 = vmatmul.mubr.msk.bf16.gmra.mxu0 %vm842_vm1, %v7086_v13 }
  0x31   : > { %1104 = vmatprep.mubr.bf16.mxu0 %v10345_v5  ;;  %3700 = vmatpush1.bf16.msra.mxu0 %v7126_v30  ;;  %v7159_v30 = vld [vmem:[%s10337_s4 + $0x10] ss:$8 sps:$4 sm:$0xff]  }
  0x32   : > { %3701 = vmatprep.subr.bf16.mxu0 %v7144_v47  ;;  %2951 = vmatpush1.bf16.msra.mxu1 %v7159_v30  ;;  %v7167_v47 = vld [vmem:[%s7448_s30 + $0x1d8] sm:$0xff]  }
  0x33   : > { %6551 = vmatmul.mubr.msk.bf16.gmra.mxu1 %vm842_vm1, %v7139_v40 }
  0x34   : > { %1594 = vmatprep.mubr.bf16.mxu1 %v10345_v5 }
  0x35   : > { %3702 = vmatpush1.bf16.msra.mxu0 %v7142_v46 }
  0x38   : > { %6503 = vmatmul.mubr.msk.bf16.gmra.mxu0 %vm842_vm1, %v7087_v16 }
  0x39   : > { %1114 = vmatprep.mubr.bf16.mxu0 %v10345_v5 }
  0x3b   : > { %6552 = vmatmul.mubr.msk.bf16.gmra.mxu1 %vm842_vm1, %v7141_v42 }
  0x3c   : > { %1604 = vmatprep.mubr.bf16.mxu1 %v10345_v5 }
  0x40   : > { %6504 = vmatmul.mubr.msk.bf16.gmra.mxu0 %vm842_vm1, %v7088_v17 }
  0x41   : > { %1124 = vmatprep.mubr.bf16.mxu0 %v10345_v5 }
  0x43   : > { %6553 = vmatmul.mubr.msk.bf16.gmra.mxu1 %vm842_vm1, %v7146_v44 }
  0x44   : > { %1614 = vmatprep.mubr.bf16.mxu1 %v10345_v5 }
  0x48   : > { %6505 = vmatmul.mubr.msk.bf16.gmra.mxu0 %vm842_vm1, %v7089_v18 }
  0x49   : > { %1134 = vmatprep.mubr.bf16.mxu0 %v10345_v5 }
  0x4b   : > { %6554 = vmatmul.mubr.msk.bf16.gmra.mxu1 %vm842_vm1, %v7151_v48 }
  0x4c   : > { %1624 = vmatprep.mubr.bf16.mxu1 %v10345_v5 }
  0x50   : > { %6506 = vmatmul.mubr.msk.bf16.gmra.mxu0 %vm842_vm1, %v7093_v19 }
  0x51   : > { %1144 = vmatprep.mubr.bf16.mxu0 %v10345_v5 }
  0x53   : > { %6555 = vmatmul.mubr.msk.bf16.gmra.mxu1 %vm842_vm1, %v7153_v53  ;;  %v7163_v53 = vld [vmem:[%s10336_s3 + $0x10] ss:$8 sps:$4 sm:$0xff]  }
  0x54   : > { %1634 = vmatprep.mubr.bf16.mxu1 %v10345_v5 }
  0x58   : > { %6507 = vmatmul.mubr.msk.bf16.gmra.mxu0 %vm842_vm1, %v7094_v20 }
  0x59   : > { %1154 = vmatprep.mubr.bf16.mxu0 %v10345_v5 }
  0x5b   : > { %6556 = vmatmul.mubr.msk.bf16.gmra.mxu1 %vm842_vm1, %v7155_v59 }
  0x5c   : > { %1644 = vmatprep.mubr.bf16.mxu1 %v10345_v5 }
  0x60   : > { %6508 = vmatmul.mubr.msk.bf16.gmra.mxu0 %vm842_vm1, %v7095_v23 }
  0x61   : > { %1164 = vmatprep.mubr.bf16.mxu0 %v10345_v5 }
  0x63   : > { %6557 = vmatmul.mubr.msk.bf16.gmra.mxu1 %vm842_vm1, %v7157_v4 }
  0x64   : > { %1654 = vmatprep.mubr.bf16.mxu1 %v10345_v5 }
  0x68   : > { %6509 = vmatmul.mubr.msk.bf16.gmra.mxu0 %vm842_vm1, %v7096_v24  ;;  %v7162_v24 = vld [vmem:[%s7448_s30 + $0x1d0] sm:$0xff]  }
  0x69   : > { %1174 = vmatprep.mubr.bf16.mxu0 %v10345_v5 }
  0x6b   : > { %6558 = vmatmul.mubr.msk.bf16.gmra.mxu1 %vm842_vm1, %v7162_v24 }
  0x6c   : > { %1664 = vmatprep.mubr.bf16.mxu1 %v10345_v5 }
  0x70   : > { %6510 = vmatmul.mubr.msk.bf16.gmra.mxu0 %vm842_vm1, %v7097_v25 }
  0x71   : > { %1184 = vmatprep.mubr.bf16.mxu0 %v10345_v5 }
  0x73   : > { %6559 = vmatmul.mubr.msk.bf16.gmra.mxu1 %vm842_vm1, %v7167_v47 }
  0x74   : > { %1674 = vmatprep.mubr.bf16.mxu1 %v10345_v5 }
  0x78   : > { %6511 = vmatmul.mubr.msk.bf16.gmra.mxu0 %vm842_vm1, %v7098_v26  ;;  %v7122_v26 = vld [vmem:[%s7448_s30 + $0xd0] sm:$0xff]  }
  0x79   : > { %1194 = vmatprep.mubr.bf16.mxu0 %v10345_v5 }
  0x80   : > { %6512 = vmatmul.mubr.msk.bf16.gmra.mxu0 %vm842_vm1, %v7102_v27 }
  0x81   : > { %1204 = vmatprep.mubr.bf16.mxu0 %v10345_v5 }
  0x88   : > { %6513 = vmatmul.mubr.msk.bf16.gmra.mxu0 %vm842_vm1, %v7103_v28 }
  0x89   : > { %1214 = vmatprep.mubr.bf16.mxu0 %v10345_v5 }
  0x90   : > { %6514 = vmatmul.mubr.msk.bf16.gmra.mxu0 %vm842_vm1, %v7104_v29 }
  0x91   : > { %1224 = vmatprep.mubr.bf16.mxu0 %v10345_v5 }
  0x98   : > { %6515 = vmatmul.mubr.msk.bf16.gmra.mxu0 %vm842_vm1, %v7105_v32 }
  0x99   : > { %1234 = vmatprep.mubr.bf16.mxu0 %v10345_v5 }
  0xa0   : > { %6516 = vmatmul.mubr.msk.bf16.gmra.mxu0 %vm842_vm1, %v7106_v33 }
  0xa1   : > { %1244 = vmatprep.mubr.bf16.mxu0 %v10345_v5 }
  0xa8   : > { %6517 = vmatmul.mubr.msk.bf16.gmra.mxu0 %vm842_vm1, %v7107_v35 }
  0xa9   : > { %1254 = vmatprep.mubr.bf16.mxu0 %v10345_v5 }
  0xb0   : > { %6518 = vmatmul.mubr.msk.bf16.gmra.mxu0 %vm842_vm1, %v7111_v37 }
  0xb1   : > { %1264 = vmatprep.mubr.bf16.mxu0 %v10345_v5 }
  0xb8   : > { %6519 = vmatmul.mubr.msk.bf16.gmra.mxu0 %vm842_vm1, %v7112_v41 }
  0xb9   : > { %1274 = vmatprep.mubr.bf16.mxu0 %v10345_v5 }
  0xc0   : > { %6520 = vmatmul.mubr.msk.bf16.gmra.mxu0 %vm842_vm1, %v7113_v43 }
  0xc1   : > { %1284 = vmatprep.mubr.bf16.mxu0 %v10345_v5 }
  0xc8   : > { %6521 = vmatmul.mubr.msk.bf16.gmra.mxu0 %vm842_vm1, %v7114_v45 }
  0xc9   : > { %1294 = vmatprep.mubr.bf16.mxu0 %v10345_v5 }
  0xd0   : > { %6522 = vmatmul.mubr.msk.bf16.gmra.mxu0 %vm842_vm1, %v7115_v49  ;;  %v7123_v49 = vld [vmem:[%s7448_s30 + $0xd8] sm:$0xff]  }
  0xd1   : > { %1304 = vmatprep.mubr.bf16.mxu0 %v10345_v5 }
  0xd8   : > { %6523 = vmatmul.mubr.msk.bf16.gmra.mxu0 %vm842_vm1, %v7116_v54  ;;  %v7165_v54 = vld [vmem:[%s10336_s3 + $0x14] ss:$8 sps:$4 sm:$0xff]  }
  0xd9   : > { %1314 = vmatprep.mubr.bf16.mxu0 %v10345_v5  ;;  %3703 = vmatprep.subr.bf16.mxu0 %v7165_v54 }
  0xda   : > { %3704 = vmatpush1.bf16.msra.mxu0 %v7163_v53 }
  0xe0   : > { %v1076_v63 = vpop.f32.mrf.mxu0  ;;  %6524 = vmatmul.mubr.msk.bf16.gmra.mxu0 %vm842_vm1, %v7120_v60 }
  0xe1   : > { %v1077_v0 = vadd.f32 %v1076_v63, %v7597_v61  ;;  %1324 = vmatprep.mubr.bf16.mxu0 %v10345_v5 }
  0xe2   : > { %v1078_v1 = vpop.f32.mrf.mxu0 }
  0xe3   : > { %v1715_v2 = vmul.f32 0.2, %v1077_v0  ;;  %v1079_v3 = vadd.f32 %v1078_v1, %v7603_v62 }
  0xe4   : > { %v1080_v6 = vpop.f32.mrf.mxu0 }
  0xe5   : > { %v1716_v8 = vmul.f32 0.2, %v1079_v3  ;;  %v1081_v9 = vadd.f32 %v1080_v6, %v7597_v61  ;;  %v1971_v11 = vmax.f32 %v1077_v0, %v1715_v2 }
  0xe6   : > { %v1082_v10 = vpop.f32.mrf.mxu0 }
  0xe7   : > { %v1972_v12 = vmax.f32 %v1079_v3, %v1716_v8  ;;  %v1717_v13 = vmul.f32 0.2, %v1081_v9  ;;  %v1083_v14 = vadd.f32 %v1082_v10, %v7603_v62 }
  0xe8   : > { %v1086_v15 = vpop.f32.mrf.mxu0  ;;  %6525 = vmatmul.mubr.msk.bf16.gmra.mxu0 %vm842_vm1, %v7121_v7 }
  0xe9   : > { %v2227_v16 = vmax.f32 %v1971_v11, %v1972_v12  ;;  %v1718_v17 = vmul.f32 0.2, %v1083_v14  ;;  %v1087_v18 = vadd.f32 %v1086_v15, %v7597_v61  ;;  %1334 = vmatprep.mubr.bf16.mxu0 %v10345_v5  ;;  %v1973_v20 = vmax.f32 %v1081_v9, %v1717_v13  ;;  %v7169_v12 = vld [vmem:[%s7448_s30 + $0x1e0] sm:$0xff]  }
  0xea   : > { %v1088_v19 = vpop.f32.mrf.mxu0  ;;  %6560 = vmatmul.mubr.msk.bf16.gmra.mxu1 %vm842_vm1, %v7169_v12 }
  0xeb   : > { %v1974_v21 = vmax.f32 %v1083_v14, %v1718_v17  ;;  %v1719_v22 = vmul.f32 0.2, %v1087_v18  ;;  %v1089_v23 = vadd.f32 %v1088_v19, %v7603_v62  ;;  %v7124_v14 = vld [vmem:[%s7448_s30 + $0xe0] sm:$0xff]   ;;  %1684 = vmatprep.mubr.bf16.mxu1 %v10345_v5 }
  0xec   : > { %v1090_v25 = vpop.f32.mrf.mxu0 }
  0xed   : > { %v2228_v27 = vmax.f32 %v1973_v20, %v1974_v21  ;;  %v1720_v28 = vmul.f32 0.2, %v1089_v23  ;;  %v1091_v29 = vadd.f32 %v1090_v25, %v7597_v61  ;;  %v1975_v32 = vmax.f32 %v1087_v18, %v1719_v22 }
  0xee   : > { %v1092_v33 = vpop.f32.mrf.mxu0 }
  0xef   : > { %v1976_v34 = vmax.f32 %v1089_v23, %v1720_v28  ;;  %v1721_v35 = vmul.f32 0.2, %v1091_v29  ;;  %v1093_v36 = vadd.f32 %v1092_v33, %v7603_v62  ;;  %v7631_v37 = vpack.c.bf16 %v2228_v27, %v2227_v16  ;;  %v7171_v33 = vld [vmem:[%s7448_s30 + $0x1e8] sm:$0xff]  }
  0xf0   : > { %v1096_v38 = vpop.f32.mrf.mxu0  ;;  %6526 = vmatmul.mubr.msk.bf16.gmra.mxu0 %vm842_vm1, %v7122_v26 }
  0xf1   : > { %v2229_v39 = vmax.f32 %v1975_v32, %v1976_v34  ;;  %v1722_v40 = vmul.f32 0.2, %v1093_v36  ;;  %v1097_v41 = vadd.f32 %v1096_v38, %v7597_v61  ;;  %1344 = vmatprep.mubr.bf16.mxu0 %v10345_v5  ;;  %v1977_v43 = vmax.f32 %v1091_v29, %v1721_v35  ;;  %v7125_v35 = vld [vmem:[%s7448_s30 + $0xe8] sm:$0xff]  }
  0xf2   : > { %v1098_v42 = vpop.f32.mrf.mxu0  ;;  %6561 = vmatmul.mubr.msk.bf16.gmra.mxu1 %vm842_vm1, %v7171_v33 }
  0xf3   : > { %v1978_v44 = vmax.f32 %v1093_v36, %v1722_v40  ;;  %v1723_v45 = vmul.f32 0.2, %v1097_v41  ;;  %v1099_v46 = vadd.f32 %v1098_v42, %v7603_v62  ;;  %1694 = vmatprep.mubr.bf16.mxu1 %v10345_v5 }
  0xf4   : > { %v1100_v48 = vpop.f32.mrf.mxu0 }
  0xf5   : > { %v2230_v50 = vmax.f32 %v1977_v43, %v1978_v44  ;;  %v1724_v51 = vmul.f32 0.2, %v1099_v46  ;;  %v1101_v52 = vadd.f32 %v1100_v48, %v7597_v61  ;;  %v1979_v57 = vmax.f32 %v1097_v41, %v1723_v45 }
  0xf6   : > { %v1102_v59 = vpop.f32.mrf.mxu0 }
  0xf7   : > { %v1980_v60 = vmax.f32 %v1099_v46, %v1724_v51  ;;  %v1725_v63 = vmul.f32 0.2, %v1101_v52  ;;  %v1103_v0 = vadd.f32 %v1102_v59, %v7603_v62  ;;  %v7649_v1 = vpack.c.bf16 %v2230_v50, %v2229_v39 }
  0xf8   : > { %v1106_v2 = vpop.f32.mrf.mxu0  ;;  %6527 = vmatmul.mubr.msk.bf16.gmra.mxu0 %vm842_vm1, %v7123_v49 }
  0xf9   : > { %v2231_v3 = vmax.f32 %v1979_v57, %v1980_v60  ;;  %v1726_v4 = vmul.f32 0.2, %v1103_v0  ;;  %v1107_v6 = vadd.f32 %v1106_v2, %v7597_v61  ;;  %1354 = vmatprep.mubr.bf16.mxu0 %v10345_v5  ;;  %v1981_v8 = vmax.f32 %v1101_v52, %v1725_v63  ;;  %v7176_v57 = vld [vmem:[%s7448_s30 + $0x1f0] sm:$0xff]  }
  0xfa   : > { %v1108_v7 = vpop.f32.mrf.mxu0  ;;  %v7129_v60 = vld [vmem:[%s7448_s30 + $0xf0] sm:$0xff]   ;;  %6562 = vmatmul.mubr.msk.bf16.gmra.mxu1 %vm842_vm1, %v7176_v57 }
  0xfb   : > { %v1982_v9 = vmax.f32 %v1103_v0, %v1726_v4  ;;  %v1727_v10 = vmul.f32 0.2, %v1107_v6  ;;  %v1109_v11 = vadd.f32 %v1108_v7, %v7603_v62  ;;  %v7174_v4 = vld [vmem:[%s10337_s4 + $0x4] ss:$8 sps:$4 sm:$0xff]   ;;  %1704 = vmatprep.mubr.bf16.mxu1 %v10345_v5 }
  0xfc   : > { %v1110_v13 = vpop.f32.mrf.mxu0  ;;  %2952 = vmatprep.subr.bf16.mxu1 %v7174_v4 }
  0xfd   : > { %v2232_v15 = vmax.f32 %v1981_v8, %v1982_v9  ;;  %v1728_v16 = vmul.f32 0.2, %v1109_v11  ;;  %v1111_v17 = vadd.f32 %v1110_v13, %v7597_v61  ;;  %v1983_v18 = vmax.f32 %v1107_v6, %v1727_v10 }
  0xfe   : > { %v1112_v19 = vpop.f32.mrf.mxu0 }
  0xff   : > { %v1984_v20 = vmax.f32 %v1109_v11, %v1728_v16  ;;  %v1729_v21 = vmul.f32 0.2, %v1111_v17  ;;  %v1113_v22 = vadd.f32 %v1112_v19, %v7603_v62  ;;  %v7661_v23 = vpack.c.bf16 %v2232_v15, %v2231_v3  ;;  %v7172_v3 = vld [vmem:[%s10337_s4] ss:$8 sps:$4 sm:$0xff]  }
 0x100   : > { %v1116_v24 = vpop.f32.mrf.mxu0  ;;  %6528 = vmatmul.mubr.msk.bf16.gmra.mxu0 %vm842_vm1, %v7124_v14  ;;  %2953 = vmatpush1.bf16.msra.mxu1 %v7172_v3  ;;  %v7183_v3 = vld [vmem:[%s10336_s3 + $0x4] ss:$8 sps:$4 sm:$0xff]  }
 0x101   : > { %v2233_v25 = vmax.f32 %v1983_v18, %v1984_v20  ;;  %v1730_v26 = vmul.f32 0.2, %v1113_v22  ;;  %v1117_v27 = vadd.f32 %v1116_v24, %v7597_v61  ;;  %1364 = vmatprep.mubr.bf16.mxu0 %v10345_v5  ;;  %v1985_v29 = vmax.f32 %v1111_v17, %v1729_v21  ;;  %v7178_v21 = vld [vmem:[%s7448_s30 + $0x1f8] sm:$0xff]   ;;  %3705 = vmatprep.subr.bf16.mxu0 %v7183_v3 }
 0x102   : > { %v1118_v28 = vpop.f32.mrf.mxu0  ;;  %v7130_v24 = vld [vmem:[%s7448_s30 + $0xf8] sm:$0xff]   ;;  %6563 = vmatmul.mubr.msk.bf16.gmra.mxu1 %vm842_vm1, %v7178_v21 }
 0x103   : > { %v1986_v30 = vmax.f32 %v1113_v22, %v1730_v26  ;;  %v1731_v31 = vmul.f32 0.2, %v1117_v27  ;;  %v1119_v32 = vadd.f32 %v1118_v28, %v7603_v62  ;;  %2970 = vmatprep.mubr.bf16.mxu1 %v10345_v5 }
 0x104   : > { %v1120_v34 = vpop.f32.mrf.mxu0 }
 0x105   : > { %v2234_v36 = vmax.f32 %v1985_v29, %v1986_v30  ;;  %v1732_v38 = vmul.f32 0.2, %v1119_v32  ;;  %v1121_v39 = vadd.f32 %v1120_v34, %v7597_v61  ;;  %v1987_v40 = vmax.f32 %v1117_v27, %v1731_v31 }
 0x106   : > { %v1122_v41 = vpop.f32.mrf.mxu0 }
 0x107   : > { %v1988_v42 = vmax.f32 %v1119_v32, %v1732_v38  ;;  %v1733_v43 = vmul.f32 0.2, %v1121_v39  ;;  %v1123_v44 = vadd.f32 %v1122_v41, %v7603_v62  ;;  %v7673_v45 = vpack.c.bf16 %v2234_v36, %v2233_v25 }
 0x108   : > { %v1126_v46 = vpop.f32.mrf.mxu0  ;;  %6529 = vmatmul.mubr.msk.bf16.gmra.mxu0 %vm842_vm1, %v7125_v35 }
 0x109   : > { %v2235_v47 = vmax.f32 %v1987_v40, %v1988_v42  ;;  %v1734_v48 = vmul.f32 0.2, %v1123_v44  ;;  %v1127_v49 = vadd.f32 %v1126_v46, %v7597_v61  ;;  %1374 = vmatprep.mubr.bf16.mxu0 %v10345_v5  ;;  %v1989_v51 = vmax.f32 %v1121_v39, %v1733_v43  ;;  %v7131_v46 = vld [vmem:[%s7448_s30 + $0x100] sm:$0xff]  }
 0x10a   : > { %v1128_v50 = vpop.f32.mrf.mxu0 }
 0x10b   : > { %v1990_v52 = vmax.f32 %v1123_v44, %v1734_v48  ;;  %v1735_v53 = vmul.f32 0.2, %v1127_v49  ;;  %v1129_v54 = vadd.f32 %v1128_v50, %v7603_v62 }
 0x10c   : > { %v1130_v59 = vpop.f32.mrf.mxu0 }
 0x10d   : > { %v2236_v63 = vmax.f32 %v1989_v51, %v1990_v52  ;;  %v1736_v0 = vmul.f32 0.2, %v1129_v54  ;;  %v1131_v2 = vadd.f32 %v1130_v59, %v7597_v61  ;;  %v1991_v6 = vmax.f32 %v1127_v49, %v1735_v53 }
 0x10e   : > { %v1132_v7 = vpop.f32.mrf.mxu0 }
 0x10f   : > { %v1992_v8 = vmax.f32 %v1129_v54, %v1736_v0  ;;  %v1737_v9 = vmul.f32 0.2, %v1131_v2  ;;  %v1133_v10 = vadd.f32 %v1132_v7, %v7603_v62  ;;  %v7691_v11 = vpack.c.bf16 %v2236_v63, %v2235_v47 }
 0x110   : > { %v1136_v12 = vpop.f32.mrf.mxu0  ;;  %6530 = vmatmul.mubr.msk.bf16.gmra.mxu0 %vm842_vm1, %v7129_v60 }
 0x111   : > { %v2237_v13 = vmax.f32 %v1991_v6, %v1992_v8  ;;  %v1738_v14 = vmul.f32 0.2, %v1133_v10  ;;  %v1137_v15 = vadd.f32 %v1136_v12, %v7597_v61  ;;  %1384 = vmatprep.mubr.bf16.mxu0 %v10345_v5  ;;  %v1993_v17 = vmax.f32 %v1131_v2, %v1737_v9  ;;  %v7181_v8 = vld [vmem:[%s10336_s3] ss:$8 sps:$4 sm:$0xff]  }
 0x112   : > { %v1138_v16 = vpop.f32.mrf.mxu0  ;;  %3706 = vmatpush1.bf16.msra.mxu0 %v7181_v8 }
 0x113   : > { %v1994_v18 = vmax.f32 %v1133_v10, %v1738_v14  ;;  %v1739_v19 = vmul.f32 0.2, %v1137_v15  ;;  %v1139_v20 = vadd.f32 %v1138_v16, %v7603_v62  ;;  %v7133_v10 = vld [vmem:[%s7448_s30 + $0x108] sm:$0xff]  }
 0x114   : > { %v1140_v22 = vpop.f32.mrf.mxu0 }
 0x115   : > { %v2238_v25 = vmax.f32 %v1993_v17, %v1994_v18  ;;  %v1740_v26 = vmul.f32 0.2, %v1139_v20  ;;  %v1141_v27 = vadd.f32 %v1140_v22, %v7597_v61  ;;  %v1995_v28 = vmax.f32 %v1137_v15, %v1739_v19 }
 0x116   : > { %v1142_v29 = vpop.f32.mrf.mxu0 }
 0x117   : > { %v1996_v30 = vmax.f32 %v1139_v20, %v1740_v26  ;;  %v1741_v31 = vmul.f32 0.2, %v1141_v27  ;;  %v1143_v32 = vadd.f32 %v1142_v29, %v7603_v62  ;;  %v7703_v33 = vpack.c.bf16 %v2238_v25, %v2237_v13 }
 0x118   : > { %v1146_v34 = vpop.f32.mrf.mxu0  ;;  %6531 = vmatmul.mubr.msk.bf16.gmra.mxu0 %vm842_vm1, %v7130_v24  ;;  %v7184_v24 = vld [vmem:[%s10339_s6 + $0x78] sm:$0xff]  }
 0x119   : > { %v2239_v35 = vmax.f32 %v1995_v28, %v1996_v30  ;;  %v1742_v36 = vmul.f32 0.2, %v1143_v32  ;;  %v1147_v38 = vadd.f32 %v1146_v34, %v7597_v61  ;;  %1394 = vmatprep.mubr.bf16.mxu0 %v10345_v5  ;;  %v1997_v40 = vmax.f32 %v1141_v27, %v1741_v31  ;;  %6721 = vmatprep.subr.bf16.mxu1 %v7184_v24 }
 0x11a   : > { %v1148_v39 = vpop.f32.mrf.mxu0 }
 0x11b   : > { %v1998_v41 = vmax.f32 %v1143_v32, %v1742_v36  ;;  %v1743_v42 = vmul.f32 0.2, %v1147_v38  ;;  %v1149_v43 = vadd.f32 %v1148_v39, %v7603_v62  ;;  %v7138_v32 = vld [vmem:[%s7448_s30 + $0x110] sm:$0xff]  }
 0x11c   : > { %v1150_v44 = vpop.f32.mrf.mxu0 }
 0x11d   : > { %v2240_v47 = vmax.f32 %v1997_v40, %v1998_v41  ;;  %v1744_v48 = vmul.f32 0.2, %v1149_v43  ;;  %v1151_v49 = vadd.f32 %v1150_v44, %v7597_v61  ;;  %v1999_v50 = vmax.f32 %v1147_v38, %v1743_v42 }
 0x11e   : > { %v1152_v51 = vpop.f32.mrf.mxu0 }
 0x11f   : > { %v2000_v52 = vmax.f32 %v1149_v43, %v1744_v48  ;;  %v1745_v53 = vmul.f32 0.2, %v1151_v49  ;;  %v1153_v54 = vadd.f32 %v1152_v51, %v7603_v62  ;;  %v7712_v57 = vpack.c.bf16 %v2240_v47, %v2239_v35 }
 0x120   : > { %v1156_v59 = vpop.f32.mrf.mxu0  ;;  %6532 = vmatmul.mubr.msk.bf16.gmra.mxu0 %vm842_vm1, %v7131_v46 }
 0x121   : > { %v2241_v60 = vmax.f32 %v1999_v50, %v2000_v52  ;;  %v1746_v63 = vmul.f32 0.2, %v1153_v54  ;;  %1404 = vmatprep.mubr.bf16.mxu0 %v10345_v5  ;;  %v1157_v0 = vadd.f32 %v1156_v59, %v7597_v61  ;;  %v2001_v4 = vmax.f32 %v1151_v49, %v1745_v53  ;;  %v7140_v59 = vld [vmem:[%s7448_s30 + $0x118] sm:$0xff]  }
 0x122   : > { %v1158_v2 = vpop.f32.mrf.mxu0 }
 0x123   : > { %v2002_v6 = vmax.f32 %v1153_v54, %v1746_v63  ;;  %v1159_v7 = vadd.f32 %v1158_v2, %v7603_v62  ;;  %v1747_v15 = vmul.f32 0.2, %v1157_v0 }
 0x124   : > { %v1160_v9 = vpop.f32.mrf.mxu0 }
 0x125   : > { %v2242_v12 = vmax.f32 %v2001_v4, %v2002_v6  ;;  %v1748_v13 = vmul.f32 0.2, %v1159_v7  ;;  %v1161_v14 = vadd.f32 %v1160_v9, %v7597_v61  ;;  %v2003_v25 = vmax.f32 %v1157_v0, %v1747_v15 }
 0x126   : > { %v1162_v16 = vpop.f32.mrf.mxu0 }
 0x127   : > { %v1749_v17 = vmul.f32 0.2, %v1161_v14  ;;  %v1163_v18 = vadd.f32 %v1162_v16, %v7603_v62  ;;  %v7727_v19 = vpack.c.bf16 %v2242_v12, %v2241_v60  ;;  %v2004_v21 = vmax.f32 %v1159_v7, %v1748_v13 }
 0x128   : > { %v1166_v20 = vpop.f32.mrf.mxu0  ;;  %6533 = vmatmul.mubr.msk.bf16.gmra.mxu0 %vm842_vm1, %v7133_v10 }
 0x129   : > { %v1750_v22 = vmul.f32 0.2, %v1163_v18  ;;  %1414 = vmatprep.mubr.bf16.mxu0 %v10345_v5  ;;  %v2005_v27 = vmax.f32 %v1161_v14, %v1749_v17  ;;  %v1167_v29 = vadd.f32 %v1166_v20, %v7597_v61  ;;  %v2243_v36 = vmax.f32 %v2003_v25, %v2004_v21  ;;  %v7145_v21 = vld [vmem:[%s7448_s30 + $0x120] sm:$0xff]  }
 0x12a   : > { %v1168_v26 = vpop.f32.mrf.mxu0 }
 0x12b   : > { %v2006_v28 = vmax.f32 %v1163_v18, %v1750_v22  ;;  %v1169_v30 = vadd.f32 %v1168_v26, %v7603_v62  ;;  %v1751_v40 = vmul.f32 0.2, %v1167_v29 }
 0x12c   : > { %v1170_v31 = vpop.f32.mrf.mxu0 }
 0x12d   : > { %v1752_v34 = vmul.f32 0.2, %v1169_v30  ;;  %v1171_v35 = vadd.f32 %v1170_v31, %v7597_v61  ;;  %v2244_v38 = vmax.f32 %v2005_v27, %v2006_v28  ;;  %v2007_v50 = vmax.f32 %v1167_v29, %v1751_v40 }
 0x12e   : > { %v1172_v39 = vpop.f32.mrf.mxu0 }
 0x12f   : > { %v1753_v41 = vmul.f32 0.2, %v1171_v35  ;;  %v1173_v42 = vadd.f32 %v1172_v39, %v7603_v62  ;;  %v7739_v43 = vpack.c.bf16 %v2244_v38, %v2243_v36  ;;  %v2008_v46 = vmax.f32 %v1169_v30, %v1752_v34 }
 0x130   : > { %v1176_v44 = vpop.f32.mrf.mxu0  ;;  %6534 = vmatmul.mubr.msk.bf16.gmra.mxu0 %vm842_vm1, %v7138_v32 }
 0x131   : > { %v1754_v47 = vmul.f32 0.2, %v1173_v42  ;;  %2491 = vrot.lane.b32.xlu0 %v7739_v43, %s7311_s19  ;;  %1424 = vmatprep.mubr.bf16.mxu0 %v10345_v5  ;;  %v1177_v48 = vadd.f32 %v1176_v44, %v7597_v61  ;;  %v2009_v51 = vmax.f32 %v1171_v35, %v1753_v41  ;;  %v2245_v60 = vmax.f32 %v2007_v50, %v2008_v46  ;;  %v7147_v46 = vld [vmem:[%s7448_s30 + $0x128] sm:$0xff]  }
 0x132   : > { %v1178_v49 = vpop.f32.mrf.mxu0 }
 0x133   : > { %v2010_v52 = vmax.f32 %v1173_v42, %v1754_v47  ;;  %v1179_v53 = vadd.f32 %v1178_v49, %v7603_v62  ;;  %v1755_v3 = vmul.f32 0.2, %v1177_v48 }
 0x134   : > { %v1180_v54 = vpop.f32.mrf.mxu0 }
 0x135   : > { %v2246_v63 = vmax.f32 %v2009_v51, %v2010_v52  ;;  %v1756_v0 = vmul.f32 0.2, %v1179_v53  ;;  %v1181_v2 = vadd.f32 %v1180_v54, %v7597_v61  ;;  %v2011_v13 = vmax.f32 %v1177_v48, %v1755_v3 }
 0x136   : > { %v1182_v4 = vpop.f32.mrf.mxu0 }
 0x137   : > { %v1757_v6 = vmul.f32 0.2, %v1181_v2  ;;  %v1183_v7 = vadd.f32 %v1182_v4, %v7603_v62  ;;  %v7750_v8 = vpack.c.bf16 %v2246_v63, %v2245_v60  ;;  %v2012_v10 = vmax.f32 %v1179_v53, %v1756_v0 }
 0x138   : > { %v1186_v9 = vpop.f32.mrf.mxu0  ;;  %6535 = vmatmul.mubr.msk.bf16.gmra.mxu0 %vm842_vm1, %v7140_v59 }
 0x139   : > { %v1758_v12 = vmul.f32 0.2, %v1183_v7  ;;  %2493 = vrot.lane.b32.xlu0 %v7750_v8, %s7311_s19  ;;  %1434 = vmatprep.mubr.bf16.mxu0 %v10345_v5  ;;  %v2013_v15 = vmax.f32 %v1181_v2, %v1757_v6  ;;  %v1187_v17 = vadd.f32 %v1186_v9, %v7597_v61  ;;  %v2247_v25 = vmax.f32 %v2011_v13, %v2012_v10 }
 0x13a   : > { %v1188_v14 = vpop.f32.mrf.mxu0 }
 0x13b   : > { %v2014_v16 = vmax.f32 %v1183_v7, %v1758_v12  ;;  %v1189_v18 = vadd.f32 %v1188_v14, %v7603_v62  ;;  %v1759_v28 = vmul.f32 0.2, %v1187_v17  ;;  %v7152_v12 = vld [vmem:[%s7448_s30 + $0x130] sm:$0xff]  }
 0x13c   : > { %v1190_v20 = vpop.f32.mrf.mxu0 }
 0x13d   : > { %v1760_v22 = vmul.f32 0.2, %v1189_v18  ;;  %v1191_v24 = vadd.f32 %v1190_v20, %v7597_v61  ;;  %v2248_v26 = vmax.f32 %v2013_v15, %v2014_v16  ;;  %v2015_v39 = vmax.f32 %v1187_v17, %v1759_v28 }
 0x13e   : > { %v1192_v27 = vpop.f32.mrf.mxu0 }
 0x13f   : > { %v1761_v29 = vmul.f32 0.2, %v1191_v24  ;;  %v1193_v30 = vadd.f32 %v1192_v27, %v7603_v62  ;;  %v7761_v31 = vpack.c.bf16 %v2248_v26, %v2247_v25  ;;  %v2016_v34 = vmax.f32 %v1189_v18, %v1760_v22 }
 0x140   : > { %v1196_v32 = vpop.f32.mrf.mxu0  ;;  %6536 = vmatmul.mubr.msk.bf16.gmra.mxu0 %vm842_vm1, %v7145_v21 }
 0x141   : > { %v1762_v35 = vmul.f32 0.2, %v1193_v30  ;;  %2495 = vrot.lane.b32.xlu1 %v7761_v31, %s7311_s19  ;;  %1444 = vmatprep.mubr.bf16.mxu0 %v10345_v5  ;;  %v1197_v36 = vadd.f32 %v1196_v32, %v7597_v61  ;;  %v2017_v40 = vmax.f32 %v1191_v24, %v1761_v29  ;;  %v2249_v47 = vmax.f32 %v2015_v39, %v2016_v34 }
 0x142   : > { %v1198_v38 = vpop.f32.mrf.mxu0 }
 0x143   : > { %v2018_v41 = vmax.f32 %v1193_v30, %v1762_v35  ;;  %v1199_v42 = vadd.f32 %v1198_v38, %v7603_v62  ;;  %v1763_v51 = vmul.f32 0.2, %v1197_v36 }
 0x144   : > { %v1200_v44 = vpop.f32.mrf.mxu0 }
 0x145   : > { %v2250_v48 = vmax.f32 %v2017_v40, %v2018_v41  ;;  %v1764_v49 = vmul.f32 0.2, %v1199_v42  ;;  %v1201_v50 = vadd.f32 %v1200_v44, %v7597_v61  ;;  %v2019_v2 = vmax.f32 %v1197_v36, %v1763_v51  ;;  %v7154_v36 = vld [vmem:[%s7448_s30 + $0x138] sm:$0xff]  }
 0x146   : > { %v1202_v52 = vpop.f32.mrf.mxu0 }
 0x147   : > { %v1765_v53 = vmul.f32 0.2, %v1201_v50  ;;  %v1203_v54 = vadd.f32 %v1202_v52, %v7603_v62  ;;  %v7772_v59 = vpack.c.bf16 %v2250_v48, %v2249_v47  ;;  %v2020_v63 = vmax.f32 %v1199_v42, %v1764_v49 }
 0x148   : > { %v1206_v60 = vpop.f32.mrf.mxu0  ;;  %6537 = vmatmul.mubr.msk.bf16.gmra.mxu0 %vm842_vm1, %v7147_v46 }
 0x149   : > { %v1766_v0 = vmul.f32 0.2, %v1203_v54  ;;  %2497 = vrot.lane.b32.xlu1 %v7772_v59, %s7311_s19  ;;  %1454 = vmatprep.mubr.bf16.mxu0 %v10345_v5  ;;  %v2021_v4 = vmax.f32 %v1201_v50, %v1765_v53  ;;  %v1207_v7 = vadd.f32 %v1206_v60, %v7597_v61  ;;  %v2251_v13 = vmax.f32 %v2019_v2, %v2020_v63 }
 0x14a   : > { %v1208_v3 = vpop.f32.mrf.mxu0 }
 0x14b   : > { %v2022_v6 = vmax.f32 %v1203_v54, %v1766_v0  ;;  %v1209_v9 = vadd.f32 %v1208_v3, %v7603_v62  ;;  %v1767_v18 = vmul.f32 0.2, %v1207_v7  ;;  %v7156_v3 = vld [vmem:[%s7448_s30 + $0x140] sm:$0xff]  }
 0x14c   : > { %v1210_v10 = vpop.f32.mrf.mxu0 }
 0x14d   : > { %v2252_v14 = vmax.f32 %v2021_v4, %v2022_v6  ;;  %v1768_v15 = vmul.f32 0.2, %v1209_v9  ;;  %v1211_v16 = vadd.f32 %v1210_v10, %v7597_v61  ;;  %v2023_v29 = vmax.f32 %v1207_v7, %v1767_v18 }
 0x14e   : > { %v1212_v17 = vpop.f32.mrf.mxu0 }
 0x14f   : > { %v1769_v20 = vmul.f32 0.2, %v1211_v16  ;;  %v1213_v21 = vadd.f32 %v1212_v17, %v7603_v62  ;;  %v7783_v22 = vpack.c.bf16 %v2252_v14, %v2251_v13  ;;  %v2024_v25 = vmax.f32 %v1209_v9, %v1768_v15 }
 0x150   : > { %v1216_v24 = vpop.f32.mrf.mxu0  ;;  %6538 = vmatmul.mubr.msk.bf16.gmra.mxu0 %vm842_vm1, %v7152_v12 }
 0x151   : > { %v1770_v26 = vmul.f32 0.2, %v1213_v21  ;;  %2499 = vrot.lane.b32.xlu0 %v7783_v22, %s7311_s19  ;;  %1464 = vmatprep.mubr.bf16.mxu0 %v10345_v5  ;;  %v1217_v27 = vadd.f32 %v1216_v24, %v7597_v61  ;;  %v2025_v30 = vmax.f32 %v1211_v16, %v1769_v20  ;;  %v2253_v38 = vmax.f32 %v2023_v29, %v2024_v25  ;;  %v7158_v29 = vld [vmem:[%s7448_s30 + $0x148] sm:$0xff]  }
 0x152   : > { %v1218_v28 = vpop.f32.mrf.mxu0 }
 0x153   : > { %v2026_v32 = vmax.f32 %v1213_v21, %v1770_v26  ;;  %v1219_v34 = vadd.f32 %v1218_v28, %v7603_v62  ;;  %v1771_v42 = vmul.f32 0.2, %v1217_v27 }
 0x154   : > { %v1220_v35 = vpop.f32.mrf.mxu0 }
 0x155   : > { %v2254_v39 = vmax.f32 %v2025_v30, %v2026_v32  ;;  %v1772_v40 = vmul.f32 0.2, %v1219_v34  ;;  %v1221_v41 = vadd.f32 %v1220_v35, %v7597_v61  ;;  %v2027_v52 = vmax.f32 %v1217_v27, %v1771_v42 }
 0x156   : > { %v1222_v44 = vpop.f32.mrf.mxu0 }
 0x157   : > { %v1773_v46 = vmul.f32 0.2, %v1221_v41  ;;  %v1223_v47 = vadd.f32 %v1222_v44, %v7603_v62  ;;  %v7794_v48 = vpack.c.bf16 %v2254_v39, %v2253_v38  ;;  %v2028_v50 = vmax.f32 %v1219_v34, %v1772_v40 }
 0x158   : > { %v1226_v49 = vpop.f32.mrf.mxu0  ;;  %6539 = vmatmul.mubr.msk.bf16.gmra.mxu0 %vm842_vm1, %v7154_v36  ;;  %v1566_v36 = vpop.f32.mrf.mxu1 }
 0x159   : > { %v1774_v51 = vmul.f32 0.2, %v1223_v47  ;;  %2501 = vrot.lane.b32.xlu1 %v7794_v48, %s7311_s19  ;;  %1474 = vmatprep.mubr.bf16.mxu0 %v10345_v5  ;;  %v2029_v54 = vmax.f32 %v1221_v41, %v1773_v46  ;;  %v1227_v63 = vadd.f32 %v1226_v49, %v7597_v61  ;;  %v2255_v4 = vmax.f32 %v2027_v52, %v2028_v50 }
 0x15a   : > { %v1228_v53 = vpop.f32.mrf.mxu0  ;;  %v1568_v44 = vpop.f32.mrf.mxu1 }
 0x15b   : > { %v2030_v60 = vmax.f32 %v1223_v47, %v1774_v51  ;;  %v1229_v0 = vadd.f32 %v1228_v53, %v7603_v62  ;;  %v1775_v12 = vmul.f32 0.2, %v1227_v63 }
 0x15c   : > { %v1230_v2 = vpop.f32.mrf.mxu0  ;;  %v1570_v51 = vpop.f32.mrf.mxu1 }
 0x15d   : > { %v2256_v6 = vmax.f32 %v2029_v54, %v2030_v60  ;;  %v1776_v7 = vmul.f32 0.2, %v1229_v0  ;;  %v1231_v9 = vadd.f32 %v1230_v2, %v7597_v61  ;;  %v2031_v24 = vmax.f32 %v1227_v63, %v1775_v12 }
 0x15e   : > { %v1232_v10 = vpop.f32.mrf.mxu0  ;;  %v1567_v54 = vadd.f32 %v1566_v36, %v7597_v61 }
 0x15f   : > { %v1777_v13 = vmul.f32 0.2, %v1231_v9  ;;  %v1233_v14 = vadd.f32 %v1232_v10, %v7603_v62  ;;  %v7805_v15 = vpack.c.bf16 %v2256_v6, %v2255_v4  ;;  %v2032_v17 = vmax.f32 %v1229_v0, %v1776_v7  ;;  %v7166_v6 = vld [vmem:[%s7448_s30 + $0x150] sm:$0xff]  }
 0x160   : > { %v1236_v16 = vpop.f32.mrf.mxu0  ;;  %6540 = vmatmul.mubr.msk.bf16.gmra.mxu0 %vm842_vm1, %v7156_v3  ;;  %v1572_v3 = vpop.f32.mrf.mxu1  ;;  %v1911_v7 = vmul.f32 0.2, %v1567_v54  ;;  %v1571_v10 = vadd.f32 %v1570_v51, %v7597_v61 }
 0x161   : > { %v1778_v18 = vmul.f32 0.2, %v1233_v14  ;;  %2503 = vrot.lane.b32.xlu0 %v7805_v15, %s7311_s19  ;;  %1484 = vmatprep.mubr.bf16.mxu0 %v10345_v5  ;;  %v1237_v20 = vadd.f32 %v1236_v16, %v7597_v61  ;;  %v2033_v25 = vmax.f32 %v1231_v9, %v1777_v13  ;;  %v2257_v30 = vmax.f32 %v2031_v24, %v2032_v17 }
 0x162   : > { %v1238_v21 = vpop.f32.mrf.mxu0  ;;  %v1569_v9 = vadd.f32 %v1568_v44, %v7603_v62  ;;  %v1573_v12 = vadd.f32 %v1572_v3, %v7603_v62 }
 0x163   : > { %v2034_v26 = vmax.f32 %v1233_v14, %v1778_v18  ;;  %v1239_v27 = vadd.f32 %v1238_v21, %v7603_v62  ;;  %v1779_v38 = vmul.f32 0.2, %v1237_v20  ;;  %v1576_v18 = vpop.f32.mrf.mxu1  ;;  %v2167_v21 = vmax.f32 %v1567_v54, %v1911_v7 }
 0x164   : > { %v1240_v28 = vpop.f32.mrf.mxu0  ;;  %v1912_v24 = vmul.f32 0.2, %v1569_v9  ;;  %v1577_v51 = vadd.f32 %v1576_v18, %v7597_v61 }
 0x165   : > { %v2258_v32 = vmax.f32 %v2033_v25, %v2034_v26  ;;  %v1780_v34 = vmul.f32 0.2, %v1239_v27  ;;  %v1241_v35 = vadd.f32 %v1240_v28, %v7597_v61  ;;  %2475 = vrot.lane.b32.xlu0 %v7631_v37, %s7311_s19  ;;  %v2035_v52 = vmax.f32 %v1237_v20, %v1779_v38 }
 0x166   : > { %v1242_v39 = vpop.f32.mrf.mxu0  ;;  %v1913_v25 = vmul.f32 0.2, %v1571_v10  ;;  %v1914_v26 = vmul.f32 0.2, %v1573_v12  ;;  %v2168_v36 = vmax.f32 %v1569_v9, %v1912_v24  ;;  %v1915_v3 = vmul.f32 0.2, %v1577_v51 }
 0x167   : > { %v1781_v40 = vmul.f32 0.2, %v1241_v35  ;;  %v1243_v41 = vadd.f32 %v1242_v39, %v7603_v62  ;;  %v7818_v42 = vpack.c.bf16 %v2258_v32, %v2257_v30  ;;  %v2036_v47 = vmax.f32 %v1239_v27, %v1780_v34  ;;  %v1578_v32 = vpop.f32.mrf.mxu1 }
 0x168   : > { %v1246_v46 = vpop.f32.mrf.mxu0  ;;  %6541 = vmatmul.mubr.msk.bf16.gmra.mxu0 %vm842_vm1, %v7158_v29  ;;  %v2169_v38 = vmax.f32 %v1571_v10, %v1913_v25  ;;  %v2170_v39 = vmax.f32 %v1573_v12, %v1914_v26 }
 0x169   : > { %v1782_v49 = vmul.f32 0.2, %v1243_v41  ;;  %v1247_v50 = vadd.f32 %v1246_v46, %v7597_v61  ;;  %2505 = vrot.lane.b32.xlu1 %v7818_v42, %s7311_s19  ;;  %2477 = vrot.lane.b32.xlu0 %v7649_v1, %s7311_s19  ;;  %v2037_v60 = vmax.f32 %v1241_v35, %v1781_v40  ;;  %v2259_v13 = vmax.f32 %v2035_v52, %v2036_v47  ;;  %v1580_v44 = vpop.f32.mrf.mxu1 }
 0x16a   : > { %v1248_v53 = vpop.f32.mrf.mxu0  ;;  %1494 = vmatprep.mubr.bf16.mxu0 %v10345_v5 }
 0x16b   : > { %v2038_v63 = vmax.f32 %v1243_v41, %v1782_v49  ;;  %v1783_v0 = vmul.f32 0.2, %v1247_v50  ;;  %v1249_v2 = vadd.f32 %v1248_v53, %v7603_v62 }
 0x16c   : > { %v1250_v4 = vpop.f32.mrf.mxu0 }
 0x16d   : > { %v2260_v14 = vmax.f32 %v2037_v60, %v2038_v63  ;;  %v1784_v16 = vmul.f32 0.2, %v1249_v2  ;;  %v1251_v17 = vadd.f32 %v1250_v4, %v7597_v61  ;;  %2479 = vrot.lane.b32.xlu0 %v7661_v23, %s7311_s19  ;;  %v2039_v34 = vmax.f32 %v1247_v50, %v1783_v0  ;;  %v1582_v63 = vpop.f32.mrf.mxu1 }
 0x16e   : > { %v1252_v20 = vpop.f32.mrf.mxu0  ;;  %v2325_v50 = vmax.f32 %v2167_v21, %v2168_v36  ;;  %v2326_v60 = vmax.f32 %v2169_v38, %v2170_v39  ;;  %v1579_v4 = vadd.f32 %v1578_v32, %v7603_v62  ;;  %v1583_v7 = vadd.f32 %v1582_v63, %v7603_v62  ;;  %v7170_v63 = vld [vmem:[%s7448_s30 + $0x160] sm:$0xff]  }
 0x16f   : > { %v2040_v27 = vmax.f32 %v1249_v2, %v1784_v16  ;;  %v1785_v28 = vmul.f32 0.2, %v1251_v17  ;;  %v1253_v29 = vadd.f32 %v1252_v20, %v7603_v62  ;;  %v7837_v30 = vpack.c.bf16 %v2260_v14, %v2259_v13  ;;  %v7168_v2 = vld [vmem:[%s7448_s30 + $0x158] sm:$0xff]   ;;  %v1586_v14 = vpop.f32.mrf.mxu1 }
 0x170   : > { %v1256_v35 = vpop.f32.mrf.mxu0  ;;  %6542 = vmatmul.mubr.msk.bf16.gmra.mxu0 %vm842_vm1, %v7166_v6  ;;  %v1581_v6 = vadd.f32 %v1580_v44, %v7597_v61  ;;  %v1916_v18 = vmul.f32 0.2, %v1579_v4  ;;  %v1918_v21 = vmul.f32 0.2, %v1583_v7  ;;  %v7859_v36 = vpack.c.bf16 %v2326_v60, %v2325_v50 }
 0x171   : > { %v1786_v40 = vmul.f32 0.2, %v1253_v29  ;;  %v1257_v41 = vadd.f32 %v1256_v35, %v7597_v61  ;;  %2507 = vrot.lane.b32.xlu1 %v7837_v30, %s7311_s19  ;;  %2481 = vrot.lane.b32.xlu0 %v7673_v45, %s7311_s19  ;;  %v2261_v46 = vmax.f32 %v2039_v34, %v2040_v27  ;;  %v2041_v47 = vmax.f32 %v1251_v17, %v1785_v28  ;;  %v1588_v28 = vpop.f32.mrf.mxu1 }
 0x172   : > { %v1258_v49 = vpop.f32.mrf.mxu0  ;;  %1504 = vmatprep.mubr.bf16.mxu0 %v10345_v5  ;;  %v2171_v17 = vmax.f32 %v1577_v51, %v1915_v3  ;;  %v1917_v20 = vmul.f32 0.2, %v1581_v6  ;;  %v2172_v32 = vmax.f32 %v1579_v4, %v1916_v18  ;;  %v2174_v35 = vmax.f32 %v1583_v7, %v1918_v21 }
 0x173   : > { %v2042_v52 = vmax.f32 %v1253_v29, %v1786_v40  ;;  %v1787_v53 = vmul.f32 0.2, %v1257_v41  ;;  %v1259_v54 = vadd.f32 %v1258_v49, %v7603_v62  ;;  %v1590_v40 = vpop.f32.mrf.mxu1  ;;  %v1587_v49 = vadd.f32 %v1586_v14, %v7597_v61 }
 0x174   : > { %v1260_v0 = vpop.f32.mrf.mxu0  ;;  %v2173_v34 = vmax.f32 %v1581_v6, %v1917_v20  ;;  %v1591_v3 = vadd.f32 %v1590_v40, %v7597_v61 }
 0x175   : > { %v2262_v9 = vmax.f32 %v2041_v47, %v2042_v52  ;;  %v2043_v10 = vmax.f32 %v1257_v41, %v1787_v53  ;;  %v1788_v12 = vmul.f32 0.2, %v1259_v54  ;;  %v1261_v13 = vadd.f32 %v1260_v0, %v7597_v61  ;;  %2483 = vrot.lane.b32.xlu0 %v7691_v11, %s7311_s19 }
 0x176   : > { %v1262_v16 = vpop.f32.mrf.mxu0  ;;  %v2327_v47 = vmax.f32 %v2171_v17, %v2172_v32  ;;  %v2328_v53 = vmax.f32 %v2173_v34, %v2174_v35  ;;  %v1919_v0 = vmul.f32 0.2, %v1587_v49  ;;  %v1921_v17 = vmul.f32 0.2, %v1591_v3 }
 0x177   : > { %v2044_v24 = vmax.f32 %v1259_v54, %v1788_v12  ;;  %v1789_v25 = vmul.f32 0.2, %v1261_v13  ;;  %v1263_v26 = vadd.f32 %v1262_v16, %v7603_v62  ;;  %v7856_v27 = vpack.c.bf16 %v2262_v9, %v2261_v46  ;;  %v1592_v54 = vpop.f32.mrf.mxu1 }
 0x178   : > { %v1266_v29 = vpop.f32.mrf.mxu0  ;;  %6543 = vmatmul.mubr.msk.bf16.gmra.mxu0 %vm842_vm1, %v7168_v2  ;;  %v1589_v2 = vadd.f32 %v1588_v28, %v7603_v62  ;;  %v1593_v4 = vadd.f32 %v1592_v54, %v7603_v62  ;;  %v2175_v14 = vmax.f32 %v1587_v49, %v1919_v0  ;;  %v2177_v32 = vmax.f32 %v1591_v3, %v1921_v17 }
 0x179   : > { %v1790_v38 = vmul.f32 0.2, %v1263_v26  ;;  %v1267_v39 = vadd.f32 %v1266_v29, %v7597_v61  ;;  %2509 = vrot.lane.b32.xlu1 %v7856_v27, %s7311_s19  ;;  %2485 = vrot.lane.b32.xlu0 %v7703_v33, %s7311_s19  ;;  %v2263_v41 = vmax.f32 %v2043_v10, %v2044_v24  ;;  %v2045_v44 = vmax.f32 %v1261_v13, %v1789_v25  ;;  %v1596_v12 = vpop.f32.mrf.mxu1 }
 0x17a   : > { %v1268_v46 = vpop.f32.mrf.mxu0  ;;  %1514 = vmatprep.mubr.bf16.mxu0 %v10345_v5  ;;  %v1920_v16 = vmul.f32 0.2, %v1589_v2  ;;  %v1922_v18 = vmul.f32 0.2, %v1593_v4  ;;  %v7880_v35 = vpack.c.bf16 %v2328_v53, %v2327_v47  ;;  %v1597_v47 = vadd.f32 %v1596_v12, %v7597_v61 }
 0x17b   : > { %v2046_v50 = vmax.f32 %v1263_v26, %v1790_v38  ;;  %v1791_v51 = vmul.f32 0.2, %v1267_v39  ;;  %v1269_v52 = vadd.f32 %v1268_v46, %v7603_v62  ;;  %v1598_v26 = vpop.f32.mrf.mxu1 }
 0x17c   : > { %v1270_v60 = vpop.f32.mrf.mxu0  ;;  %v2176_v29 = vmax.f32 %v1589_v2, %v1920_v16  ;;  %v2178_v34 = vmax.f32 %v1593_v4, %v1922_v18  ;;  %10451 = vst [vmem:[#allocation7_spill] sm:$0xff] %v7880_v35  ;;  %v1923_v0 = vmul.f32 0.2, %v1597_v47  ;;  %v1599_v2 = vadd.f32 %v1598_v26, %v7603_v62 }
 0x17d   : > { %v2264_v6 = vmax.f32 %v2045_v44, %v2046_v50  ;;  %v2047_v7 = vmax.f32 %v1267_v39, %v1791_v51  ;;  %v1792_v9 = vmul.f32 0.2, %v1269_v52  ;;  %v1271_v10 = vadd.f32 %v1270_v60, %v7597_v61  ;;  %2487 = vrot.lane.b32.xlu0 %v7712_v57, %s7311_s19  ;;  %v1600_v40 = vpop.f32.mrf.mxu1 }
 0x17e   : > { %v1272_v13 = vpop.f32.mrf.mxu0  ;;  %v2329_v49 = vmax.f32 %v2175_v14, %v2176_v29  ;;  %v2330_v53 = vmax.f32 %v2177_v32, %v2178_v34  ;;  %v1601_v3 = vadd.f32 %v1600_v40, %v7597_v61  ;;  %v2179_v14 = vmax.f32 %v1597_v47, %v1923_v0 }
 0x17f   : > { %v2048_v20 = vmax.f32 %v1269_v52, %v1792_v9  ;;  %v1793_v21 = vmul.f32 0.2, %v1271_v10  ;;  %v1273_v24 = vadd.f32 %v1272_v13, %v7603_v62  ;;  %v7877_v25 = vpack.c.bf16 %v2264_v6, %v2263_v41  ;;  %v1602_v54 = vpop.f32.mrf.mxu1 }
 0x180   : > { %v1276_v28 = vpop.f32.mrf.mxu0  ;;  %6544 = vmatmul.mubr.msk.bf16.gmra.mxu0 %vm842_vm1, %v7170_v63  ;;  %v7175_v63 = vld [vmem:[%s7448_s30 + $0x168] sm:$0xff]   ;;  %v1603_v4 = vadd.f32 %v1602_v54, %v7603_v62  ;;  %v1924_v16 = vmul.f32 0.2, %v1599_v2  ;;  %v1925_v17 = vmul.f32 0.2, %v1601_v3 }
 0x181   : > { %v1794_v38 = vmul.f32 0.2, %v1273_v24  ;;  %v1277_v39 = vadd.f32 %v1276_v28, %v7597_v61  ;;  %2511 = vrot.lane.b32.xlu1 %v7877_v25, %s7311_s19  ;;  %2489 = vrot.lane.b32.xlu0 %v7727_v19, %s7311_s19  ;;  %v2265_v41 = vmax.f32 %v2047_v7, %v2048_v20  ;;  %v2049_v44 = vmax.f32 %v1271_v10, %v1793_v21  ;;  %v1606_v12 = vpop.f32.mrf.mxu1 }
 0x182   : > { %v1278_v46 = vpop.f32.mrf.mxu0  ;;  %1524 = vmatprep.mubr.bf16.mxu0 %v10345_v5  ;;  %v1926_v18 = vmul.f32 0.2, %v1603_v4  ;;  %v2180_v32 = vmax.f32 %v1599_v2, %v1924_v16  ;;  %v2181_v34 = vmax.f32 %v1601_v3, %v1925_v17  ;;  %v7177_v2 = vld [vmem:[%s7448_s30 + $0x170] sm:$0xff]  }
 0x183   : > { %v2050_v50 = vmax.f32 %v1273_v24, %v1794_v38  ;;  %v1795_v51 = vmul.f32 0.2, %v1277_v39  ;;  %v1279_v52 = vadd.f32 %v1278_v46, %v7603_v62  ;;  %v1608_v28 = vpop.f32.mrf.mxu1 }
 0x184   : > { %v1280_v60 = vpop.f32.mrf.mxu0  ;;  %v2182_v38 = vmax.f32 %v1603_v4, %v1926_v18  ;;  %v1609_v4 = vadd.f32 %v1608_v28, %v7603_v62 }
 0x185   : > { %v2266_v6 = vmax.f32 %v2049_v44, %v2050_v50  ;;  %v2051_v7 = vmax.f32 %v1277_v39, %v1795_v51  ;;  %v1796_v9 = vmul.f32 0.2, %v1279_v52  ;;  %v1281_v10 = vadd.f32 %v1280_v60, %v7597_v61 }
 0x186   : > { %v1282_v13 = vpop.f32.mrf.mxu0  ;;  %v7899_v39 = vpack.c.bf16 %v2330_v53, %v2329_v49  ;;  %v2331_v51 = vmax.f32 %v2179_v14, %v2180_v32  ;;  %v2332_v53 = vmax.f32 %v2181_v34, %v2182_v38  ;;  %v1928_v18 = vmul.f32 0.2, %v1609_v4 }
 0x187   : > { %v2052_v20 = vmax.f32 %v1279_v52, %v1796_v9  ;;  %v1797_v21 = vmul.f32 0.2, %v1281_v10  ;;  %v1283_v24 = vadd.f32 %v1282_v13, %v7603_v62  ;;  %v7896_v26 = vpack.c.bf16 %v2266_v6, %v2265_v41  ;;  %v1610_v41 = vpop.f32.mrf.mxu1 }
 0x188   : > { %v1286_v29 = vpop.f32.mrf.mxu0  ;;  %6545 = vmatmul.mubr.msk.bf16.gmra.mxu0 %vm842_vm1, %v7175_v63  ;;  %v1607_v52 = vadd.f32 %v1606_v12, %v7597_v61  ;;  %v1611_v6 = vadd.f32 %v1610_v41, %v7597_v61 }
 0x189   : > { %v1798_v40 = vmul.f32 0.2, %v1283_v24  ;;  %v1287_v44 = vadd.f32 %v1286_v29, %v7597_v61  ;;  %2513 = vrot.lane.b32.xlu1 %v7896_v26, %s7311_s19  ;;  %1534 = vmatprep.mubr.bf16.mxu0 %v10345_v5  ;;  %v2267_v46 = vmax.f32 %v2051_v7, %v2052_v20  ;;  %v2053_v47 = vmax.f32 %v1281_v10, %v1797_v21  ;;  %v1612_v63 = vpop.f32.mrf.mxu1 }
 0x18a   : > { %v1288_v50 = vpop.f32.mrf.mxu0  ;;  %v1927_v3 = vmul.f32 0.2, %v1607_v52  ;;  %v1613_v7 = vadd.f32 %v1612_v63, %v7603_v62  ;;  %v1929_v20 = vmul.f32 0.2, %v1611_v6 }
 0x18b   : > { %v2054_v54 = vmax.f32 %v1283_v24, %v1798_v40  ;;  %v1799_v60 = vmul.f32 0.2, %v1287_v44  ;;  %v1289_v49 = vadd.f32 %v1288_v50, %v7603_v62  ;;  %v1616_v14 = vpop.f32.mrf.mxu1  ;;  %v2184_v40 = vmax.f32 %v1609_v4, %v1928_v18 }
 0x18c   : > { %v1290_v0 = vpop.f32.mrf.mxu0  ;;  %v2183_v17 = vmax.f32 %v1607_v52, %v1927_v3  ;;  %v1930_v21 = vmul.f32 0.2, %v1613_v7 }
 0x18d   : > { %v2268_v9 = vmax.f32 %v2053_v47, %v2054_v54  ;;  %v2055_v10 = vmax.f32 %v1287_v44, %v1799_v60  ;;  %v1800_v13 = vmul.f32 0.2, %v1289_v49  ;;  %v1291_v12 = vadd.f32 %v1290_v0, %v7597_v61  ;;  %v1618_v34 = vpop.f32.mrf.mxu1 }
 0x18e   : > { %v1292_v16 = vpop.f32.mrf.mxu0  ;;  %v2185_v44 = vmax.f32 %v1611_v6, %v1929_v20  ;;  %v2186_v41 = vmax.f32 %v1613_v7, %v1930_v21  ;;  %v7916_v47 = vpack.c.bf16 %v2332_v53, %v2331_v51  ;;  %v2333_v63 = vmax.f32 %v2183_v17, %v2184_v40  ;;  %v7179_v7 = vld [vmem:[%s7448_s30 + $0x178] sm:$0xff]  }
 0x18f   : > { %v2056_v24 = vmax.f32 %v1289_v49, %v1800_v13  ;;  %v1801_v29 = vmul.f32 0.2, %v1291_v12  ;;  %v1293_v32 = vadd.f32 %v1292_v16, %v7603_v62  ;;  %v7913_v28 = vpack.c.bf16 %v2268_v9, %v2267_v46  ;;  %v1620_v46 = vpop.f32.mrf.mxu1 }
 0x190   : > { %v1296_v38 = vpop.f32.mrf.mxu0  ;;  %6546 = vmatmul.mubr.msk.bf16.gmra.mxu0 %vm842_vm1, %v7177_v2  ;;  %10452 = vst [vmem:[#allocation8_spill] sm:$0xff] %v7916_v47  ;;  %v1617_v0 = vadd.f32 %v1616_v14, %v7597_v61  ;;  %v2334_v53 = vmax.f32 %v2185_v44, %v2186_v41  ;;  %v1619_v13 = vadd.f32 %v1618_v34, %v7603_v62 }
 0x191   : > { %v1802_v50 = vmul.f32 0.2, %v1293_v32  ;;  %v1297_v52 = vadd.f32 %v1296_v38, %v7597_v61  ;;  %2515 = vrot.lane.b32.xlu1 %v7913_v28, %s7311_s19  ;;  %1544 = vmatprep.mubr.bf16.mxu0 %v10345_v5  ;;  %v2269_v54 = vmax.f32 %v2055_v10, %v2056_v24  ;;  %v2057_v60 = vmax.f32 %v1291_v12, %v1801_v29  ;;  %v1622_v4 = vpop.f32.mrf.mxu1 }
 0x192   : > { %v1298_v49 = vpop.f32.mrf.mxu0  ;;  %v1931_v9 = vmul.f32 0.2, %v1617_v0  ;;  %v1621_v16 = vadd.f32 %v1620_v46, %v7597_v61  ;;  %v1623_v10 = vadd.f32 %v1622_v4, %v7603_v62  ;;  %v1932_v29 = vmul.f32 0.2, %v1619_v13 }
 0x193   : > { %v2058_v2 = vmax.f32 %v1293_v32, %v1802_v50  ;;  %v1803_v3 = vmul.f32 0.2, %v1297_v52  ;;  %v1299_v51 = vadd.f32 %v1298_v49, %v7603_v62  ;;  %v1626_v20 = vpop.f32.mrf.mxu1 }
 0x194   : > { %v1300_v6 = vpop.f32.mrf.mxu0  ;;  %v2187_v24 = vmax.f32 %v1617_v0, %v1931_v9  ;;  %v1933_v32 = vmul.f32 0.2, %v1621_v16  ;;  %v1934_v38 = vmul.f32 0.2, %v1623_v10 }
 0x195   : > { %v2270_v12 = vmax.f32 %v2057_v60, %v2058_v2  ;;  %v2059_v18 = vmax.f32 %v1297_v52, %v1803_v3  ;;  %v1804_v17 = vmul.f32 0.2, %v1299_v51  ;;  %v1301_v14 = vadd.f32 %v1300_v6, %v7597_v61  ;;  %v1628_v50 = vpop.f32.mrf.mxu1 }
 0x196   : > { %v1302_v21 = vpop.f32.mrf.mxu0  ;;  %v2188_v52 = vmax.f32 %v1619_v13, %v1932_v29  ;;  %v2189_v60 = vmax.f32 %v1621_v16, %v1933_v32  ;;  %v2190_v49 = vmax.f32 %v1623_v10, %v1934_v38  ;;  %v7933_v2 = vpack.c.bf16 %v2334_v53, %v2333_v63 }
 0x197   : > { %v2060_v40 = vmax.f32 %v1299_v51, %v1804_v17  ;;  %v1805_v44 = vmul.f32 0.2, %v1301_v14  ;;  %v1303_v41 = vadd.f32 %v1302_v21, %v7603_v62  ;;  %v7930_v34 = vpack.c.bf16 %v2270_v12, %v2269_v54  ;;  %v1630_v54 = vpop.f32.mrf.mxu1  ;;  %v7180_v17 = vld [vmem:[%s7448_s30 + $0x180] sm:$0xff]   ;;  %s7254_s30 = scalar_lea.vmem %s7253_s9, 32 }
 0x198   : > { %v1306_v46 = vpop.f32.mrf.mxu0  ;;  %6547 = vmatmul.mubr.msk.bf16.gmra.mxu0 %vm842_vm1, %v7179_v7  ;;  %v2335_v9 = vmax.f32 %v2187_v24, %v2188_v52  ;;  %v1627_v7 = vadd.f32 %v1626_v20, %v7597_v61  ;;  %v2336_v53 = vmax.f32 %v2189_v60, %v2190_v49  ;;  %v1629_v29 = vadd.f32 %v1628_v50, %v7603_v62 }
 0x199   : > { %v1806_v3 = vmul.f32 0.2, %v1303_v41  ;;  %v1307_v0 = vadd.f32 %v1306_v46, %v7597_v61  ;;  %2517 = vrot.lane.b32.xlu1 %v7930_v34, %s7311_s19  ;;  %1554 = vmatprep.mubr.bf16.mxu0 %v10345_v5  ;;  %v2271_v51 = vmax.f32 %v2059_v18, %v2060_v40  ;;  %v2061_v4 = vmax.f32 %v1301_v14, %v1805_v44  ;;  %v1632_v10 = vpop.f32.mrf.mxu1 }
 0x19a   : > { %v1308_v6 = vpop.f32.mrf.mxu0  ;;  %v1935_v21 = vmul.f32 0.2, %v1627_v7  ;;  %v1631_v32 = vadd.f32 %v1630_v54, %v7597_v61  ;;  %v1633_v18 = vadd.f32 %v1632_v10, %v7603_v62  ;;  %v1936_v46 = vmul.f32 0.2, %v1629_v29 }
 0x19b   : > { %v2062_v13 = vmax.f32 %v1303_v41, %v1806_v3  ;;  %v1807_v16 = vmul.f32 0.2, %v1307_v0  ;;  %v1309_v63 = vadd.f32 %v1308_v6, %v7603_v62  ;;  %v1636_v40 = vpop.f32.mrf.mxu1 }
 0x19c   : > { %v1310_v12 = vpop.f32.mrf.mxu0  ;;  %v2191_v41 = vmax.f32 %v1627_v7, %v1935_v21  ;;  %v1937_v52 = vmul.f32 0.2, %v1631_v32  ;;  %v1938_v60 = vmul.f32 0.2, %v1633_v18 }
 0x19d   : > { %v2272_v14 = vmax.f32 %v2061_v4, %v2062_v13  ;;  %v2063_v38 = vmax.f32 %v1307_v0, %v1807_v16  ;;  %v1808_v24 = vmul.f32 0.2, %v1309_v63  ;;  %v1311_v20 = vadd.f32 %v1310_v12, %v7597_v61  ;;  %v1638_v54 = vpop.f32.mrf.mxu1 }
 0x19e   : > { %v1312_v44 = vpop.f32.mrf.mxu0  ;;  %v2192_v0 = vmax.f32 %v1629_v29, %v1936_v46  ;;  %v2193_v4 = vmax.f32 %v1631_v32, %v1937_v52  ;;  %v2194_v13 = vmax.f32 %v1633_v18, %v1938_v60  ;;  %v7950_v16 = vpack.c.bf16 %v2336_v53, %v2335_v9  ;;  %v7186_v18 = vld [vmem:[%s10339_s6 + $0x70] sm:$0xff]  }
 0x19f   : > { %v2064_v49 = vmax.f32 %v1309_v63, %v1808_v24  ;;  %v1809_v3 = vmul.f32 0.2, %v1311_v20  ;;  %v1313_v6 = vadd.f32 %v1312_v44, %v7603_v62  ;;  %v7947_v50 = vpack.c.bf16 %v2272_v14, %v2271_v51  ;;  %v1640_v51 = vpop.f32.mrf.mxu1 }
 0x1a0   : > { %v1316_v58 = vpop.f32.mrf.mxu0  ;;  %6548 = vmatmul.mubr.msk.bf16.gmra.mxu0 %vm842_vm1, %v7180_v17  ;;  %10453 = vst [vmem:[#allocation9_spill] sm:$0xff] %v7950_v16  ;;  %v7185_v17 = vld [vmem:[%s10339_s6 + $0x38] sm:$0xff]   ;;  %v2337_v21 = vmax.f32 %v2191_v41, %v2192_v0  ;;  %v1637_v9 = vadd.f32 %v1636_v40, %v7597_v61  ;;  %v2338_v14 = vmax.f32 %v2193_v4, %v2194_v13  ;;  %v7187_v0 = vld [vmem:[%s10339_s6 + $0x30] sm:$0xff]  }
 0x1a1   : > { %v1810_v10 = vmul.f32 0.2, %v1313_v6  ;;  %v1317_v7 = vadd.f32 %v1316_v58, %v7597_v61  ;;  %2519 = vrot.lane.b32.xlu1 %v7947_v50, %s7311_s19  ;;  %3723 = vmatprep.mubr.bf16.mxu0 %v10345_v5  ;;  %v2273_v63 = vmax.f32 %v2063_v38, %v2064_v49  ;;  %v2065_v53 = vmax.f32 %v1311_v20, %v1809_v3  ;;  %v1642_v38 = vpop.f32.mrf.mxu1 }
 0x1a2   : > { %v1318_v12 = vpop.f32.mrf.mxu0  ;;  %v1939_v46 = vmul.f32 0.2, %v1637_v9  ;;  %v1639_v41 = vadd.f32 %v1638_v54, %v7603_v62  ;;  %v1641_v20 = vadd.f32 %v1640_v51, %v7597_v61  ;;  %v7981_v47 = vpack.c.bf16 %v2338_v14, %v2337_v21 }
 0x1a3   : > { %v2066_v29 = vmax.f32 %v1313_v6, %v1810_v10  ;;  %v1319_v58 = vadd.f32 %v1318_v12, %v7603_v62  ;;  %v7961_v32 = vpop.permute.xlu0 %2491  ;;  %v1811_v52 = vmul.f32 0.2, %v1317_v7  ;;  %v1646_v3 = vpop.f32.mrf.mxu1  ;;  %v1643_v10 = vadd.f32 %v1642_v38, %v7603_v62 }
 0x1a4   : > { %v2617_v24 = vsel %vm2614_vm2, 0, %v7961_v32  ;;  %v1320_v44 = vpop.f32.mrf.mxu0  ;;  %v2195_v4 = vmax.f32 %v1637_v9, %v1939_v46  ;;  %v1940_v54 = vmul.f32 0.2, %v1639_v41  ;;  %v1941_v13 = vmul.f32 0.2, %v1641_v20  ;;  %10454 = vst [vmem:[#allocation10_spill] sm:$0xff] %v7981_v47 }
 0x1a5   : > { %v2274_v40 = vmax.f32 %v2065_v53, %v2066_v29  ;;  %v1812_v60 = vmul.f32 0.2, %v1319_v58  ;;  %v1321_v49 = vadd.f32 %v1320_v44, %v7597_v61  ;;  %6572 = vmatmul.mubr.msk.bf16.vlgmr.msra.gmra.mxu1 %vm2809_vm3, %v2617_v24  ;;  %v1648_v24 = vpop.f32.mrf.mxu1  ;;  %v1942_v16 = vmul.f32 0.2, %v1643_v10 }
 0x1a6   : > { %v1322_v6 = vpop.f32.mrf.mxu0  ;;  %6722 = vmatpush3.bf16.msra.mxu1 %v7185_v17  ;;  %2980 = vmatprep.mubr.bf16.mxu1 %v10345_v5  ;;  %v2196_v44 = vmax.f32 %v1639_v41, %v1940_v54  ;;  %v2197_v5 = vmax.f32 %v1641_v20, %v1941_v13  ;;  %v2067_v9 = vmax.f32 %v1317_v7, %v1811_v52 }
 0x1a7   : > { %v2068_v51 = vmax.f32 %v1319_v58, %v1812_v60  ;;  %v1813_v12 = vmul.f32 0.2, %v1321_v49  ;;  %v1323_v53 = vadd.f32 %v1322_v6, %v7603_v62  ;;  %v7978_v29 = vpack.c.bf16 %v2274_v40, %v2273_v63  ;;  %6723 = vmatprep.subr.bf16.mxu1 %v7186_v18  ;;  %v7188_v63 = vld [vmem:[%s10339_s6 + $0x68] sm:$0xff]   ;;  %v1650_v18 = vpop.f32.mrf.mxu1 }
 0x1a8   : > { %v1326_v17 = vpop.f32.mrf.mxu0  ;;  %3724 = vmatmul.mubr.bf16.vlgmr.msra.gmra.mxu0 %v7631_v37  ;;  %v10455_v58 = vmov 0   ;;  %v2339_v41 = vmax.f32 %v2195_v4, %v2196_v44  ;;  %v2198_v20 = vmax.f32 %v1643_v10, %v1942_v16  ;;  %v1647_v21 = vadd.f32 %v1646_v3, %v7597_v61  ;;  %v7189_v10 = vld [vmem:[%s10339_s6 + $0x28] sm:$0xff]  }
 0x1a9   : > { %v1814_v46 = vmul.f32 0.2, %v1323_v53  ;;  %v1327_v38 = vadd.f32 %v1326_v17, %v7597_v61  ;;  %2521 = vrot.lane.b32.xlu1 %v7978_v29, %s7311_s19  ;;  %3733 = vmatprep.mubr.bf16.mxu0 %v10455_v58  ;;  %v2275_v7 = vmax.f32 %v2067_v9, %v2068_v51  ;;  %v2069_v14 = vmax.f32 %v1321_v49, %v1813_v12  ;;  %v1652_v6 = vpop.f32.mrf.mxu1 }
 0x1aa   : > { %v1328_v37 = vpop.f32.mrf.mxu0  ;;  %6724 = vmatpush3.bf16.msra.mxu1 %v7187_v0  ;;  %v2340_v17 = vmax.f32 %v2197_v5, %v2198_v20  ;;  %v1943_v47 = vmul.f32 0.2, %v1647_v21  ;;  %v1649_v0 = vadd.f32 %v1648_v24, %v7603_v62  ;;  %v1651_v44 = vadd.f32 %v1650_v18, %v7597_v61 }
 0x1ab   : > { %v2070_v40 = vmax.f32 %v1323_v53, %v1814_v46  ;;  %v1329_v52 = vadd.f32 %v1328_v37, %v7603_v62  ;;  %v7992_v60 = vpop.permute.xlu0 %2493  ;;  %6725 = vmatprep.subr.bf16.mxu1 %v7188_v63  ;;  %v1815_v4 = vmul.f32 0.2, %v1327_v38  ;;  %v1656_v51 = vpop.f32.mrf.mxu1  ;;  %v1653_v24 = vadd.f32 %v1652_v6, %v7603_v62 }
 0x1ac   : > { %v2619_v54 = vsel %vm2614_vm2, 0, %v7992_v60  ;;  %v1330_v13 = vpop.f32.mrf.mxu0  ;;  %v2199_v53 = vmax.f32 %v1647_v21, %v1943_v47  ;;  %v1944_v5 = vmul.f32 0.2, %v1649_v0  ;;  %v8009_v47 = vpack.c.bf16 %v2340_v17, %v2339_v41 }
 0x1ad   : > { %v2276_v16 = vmax.f32 %v2069_v14, %v2070_v40  ;;  %v1816_v3 = vmul.f32 0.2, %v1329_v52  ;;  %v1331_v49 = vadd.f32 %v1330_v13, %v7597_v61  ;;  %6573 = vmatmul.mubr.msk.bf16.gmra.mxu1 %vm2809_vm3, %v2619_v54  ;;  %v1658_v20 = vpop.f32.mrf.mxu1  ;;  %v1945_v54 = vmul.f32 0.2, %v1651_v44 }
 0x1ae   : > { %v1332_v12 = vpop.f32.mrf.mxu0  ;;  %2990 = vmatprep.mubr.bf16.mxu1 %v10455_v58  ;;  %6726 = vmatpush3.bf16.msra.mxu1 %v7189_v10  ;;  %v2200_v40 = vmax.f32 %v1649_v0, %v1944_v5  ;;  %v1946_v13 = vmul.f32 0.2, %v1653_v24  ;;  %10456 = vst [vmem:[#allocation11_spill] sm:$0xff] %v8009_v47  ;;  %v2071_v21 = vmax.f32 %v1327_v38, %v1815_v4 }
 0x1af   : > { %v2072_v9 = vmax.f32 %v1329_v52, %v1816_v3  ;;  %v1817_v46 = vmul.f32 0.2, %v1331_v49  ;;  %v1333_v63 = vadd.f32 %v1332_v12, %v7603_v62  ;;  %v8006_v37 = vpack.c.bf16 %v2276_v16, %v2275_v7  ;;  %v1660_v7 = vpop.f32.mrf.mxu1 }
 0x1b0   : > { %v1336_v14 = vpop.f32.mrf.mxu0  ;;  %3734 = vmatmul.mubr.bf16.gmra.mxu0 %v7649_v1  ;;  %v2341_v16 = vmax.f32 %v2199_v53, %v2200_v40  ;;  %v2201_v3 = vmax.f32 %v1651_v44, %v1945_v54  ;;  %v2202_v10 = vmax.f32 %v1653_v24, %v1946_v13  ;;  %v1657_v1 = vadd.f32 %v1656_v51, %v7597_v61 }
 0x1b1   : > { %v1818_v18 = vmul.f32 0.2, %v1333_v63  ;;  %v1337_v6 = vadd.f32 %v1336_v14, %v7597_v61  ;;  %2523 = vrot.lane.b32.xlu0 %v8006_v37, %s7311_s19  ;;  %3743 = vmatprep.mubr.bf16.mxu0 %v10455_v58  ;;  %v2277_v0 = vmax.f32 %v2071_v21, %v2072_v9  ;;  %v2073_v12 = vmax.f32 %v1331_v49, %v1817_v46  ;;  %v1662_v4 = vpop.f32.mrf.mxu1 }
 0x1b2   : > { %v1338_v52 = vpop.f32.mrf.mxu0  ;;  %v2342_v47 = vmax.f32 %v2201_v3, %v2202_v10  ;;  %v1947_v35 = vmul.f32 0.2, %v1657_v1  ;;  %v1659_v53 = vadd.f32 %v1658_v20, %v7603_v62  ;;  %v1663_v54 = vadd.f32 %v1662_v4, %v7603_v62 }
 0x1b3   : > { %v2074_v41 = vmax.f32 %v1333_v63, %v1818_v18  ;;  %v1339_v38 = vadd.f32 %v1338_v52, %v7603_v62  ;;  %v8017_v17 = vpop.permute.xlu1 %2495  ;;  %v1819_v24 = vmul.f32 0.2, %v1337_v6  ;;  %v1661_v63 = vadd.f32 %v1660_v7, %v7597_v61 }
 0x1b4   : > { %v2621_v5 = vsel %vm2614_vm2, 0, %v8017_v17  ;;  %v1340_v14 = vpop.f32.mrf.mxu0  ;;  %v2203_v9 = vmax.f32 %v1657_v1, %v1947_v35  ;;  %v1948_v46 = vmul.f32 0.2, %v1659_v53  ;;  %v1950_v10 = vmul.f32 0.2, %v1663_v54 }
 0x1b5   : > { %v2278_v44 = vmax.f32 %v2073_v12, %v2074_v41  ;;  %v1820_v40 = vmul.f32 0.2, %v1339_v38  ;;  %v1341_v51 = vadd.f32 %v1340_v14, %v7597_v61  ;;  %6574 = vmatmul.mubr.msk.bf16.gmra.mxu1 %vm2809_vm3, %v2621_v5  ;;  %v1949_v3 = vmul.f32 0.2, %v1661_v63 }
 0x1b6   : > { %v1342_v49 = vpop.f32.mrf.mxu0  ;;  %3000 = vmatprep.mubr.bf16.mxu1 %v10455_v58  ;;  %v2204_v52 = vmax.f32 %v1659_v53, %v1948_v46  ;;  %v8031_v12 = vpack.c.bf16 %v2342_v47, %v2341_v16  ;;  %v2075_v7 = vmax.f32 %v1337_v6, %v1819_v24  ;;  %v2206_v5 = vmax.f32 %v1663_v54, %v1950_v10 }
 0x1b7   : > { %v1821_v13 = vmul.f32 0.2, %v1341_v51  ;;  %v1343_v21 = vadd.f32 %v1342_v49, %v7603_v62  ;;  %v8028_v20 = vpack.c.bf16 %v2278_v44, %v2277_v0  ;;  %v2076_v41 = vmax.f32 %v1339_v38, %v1820_v40 }
 0x1b8   : > { %v1346_v18 = vpop.f32.mrf.mxu0  ;;  %3744 = vmatmul.mubr.bf16.gmra.mxu0 %v7661_v23  ;;  %v2343_v4 = vmax.f32 %v2203_v9, %v2204_v52  ;;  %v2205_v0 = vmax.f32 %v1661_v63, %v1949_v3 }
 0x1b9   : > { %v1822_v35 = vmul.f32 0.2, %v1343_v21  ;;  %2525 = vrot.lane.b32.xlu1 %v8028_v20, %s7311_s19  ;;  %3753 = vmatprep.mubr.bf16.mxu0 %v10455_v58  ;;  %v2077_v14 = vmax.f32 %v1341_v51, %v1821_v13  ;;  %v1347_v23 = vadd.f32 %v1346_v18, %v7597_v61  ;;  %v2279_v49 = vmax.f32 %v2075_v7, %v2076_v41 }
 0x1ba   : > { %v1348_v1 = vpop.f32.mrf.mxu0  ;;  %v2344_v40 = vmax.f32 %v2205_v0, %v2206_v5 }
 0x1bb   : > { %v2078_v44 = vmax.f32 %v1343_v21, %v1822_v35  ;;  %v1349_v53 = vadd.f32 %v1348_v1, %v7603_v62  ;;  %v8038_v47 = vpop.permute.xlu1 %2497  ;;  %v1823_v9 = vmul.f32 0.2, %v1347_v23 }
 0x1bc   : > { %v2623_v16 = vsel %vm2614_vm2, 0, %v8038_v47  ;;  %v1350_v38 = vpop.f32.mrf.mxu0  ;;  %v8049_v18 = vpack.c.bf16 %v2344_v40, %v2343_v4 }
 0x1bd   : > { %v2280_v46 = vmax.f32 %v2077_v14, %v2078_v44  ;;  %v1824_v6 = vmul.f32 0.2, %v1349_v53  ;;  %v1351_v24 = vadd.f32 %v1350_v38, %v7597_v61  ;;  %6575 = vmatmul.mubr.msk.bf16.gmra.mxu1 %vm2809_vm3, %v2623_v16  ;;  %v2079_v35 = vmax.f32 %v1347_v23, %v1823_v9 }
 0x1be   : > { %v1352_v51 = vpop.f32.mrf.mxu0  ;;  %3010 = vmatprep.mubr.bf16.mxu1 %v10455_v58 }
 0x1bf   : > { %v1825_v63 = vmul.f32 0.2, %v1351_v24  ;;  %v1353_v54 = vadd.f32 %v1352_v51, %v7603_v62  ;;  %v8046_v13 = vpack.c.bf16 %v2280_v46, %v2279_v49  ;;  %v2080_v52 = vmax.f32 %v1349_v53, %v1824_v6 }
 0x1c0   : > { %v1356_v21 = vpop.f32.mrf.mxu0  ;;  %3754 = vmatmul.mubr.bf16.gmra.mxu0 %v7673_v45 }
 0x1c1   : > { %v1826_v3 = vmul.f32 0.2, %v1353_v54  ;;  %2527 = vrot.lane.b32.xlu0 %v8046_v13, %s7311_s19  ;;  %3763 = vmatprep.mubr.bf16.mxu0 %v10455_v58  ;;  %v1357_v10 = vadd.f32 %v1356_v21, %v7597_v61  ;;  %v2081_v7 = vmax.f32 %v1351_v24, %v1825_v63  ;;  %v2281_v14 = vmax.f32 %v2079_v35, %v2080_v52 }
 0x1c2   : > { %v1358_v41 = vpop.f32.mrf.mxu0 }
 0x1c3   : > { %v2082_v1 = vmax.f32 %v1353_v54, %v1826_v3  ;;  %v1359_v0 = vadd.f32 %v1358_v41, %v7603_v62  ;;  %v8056_v5 = vpop.permute.xlu0 %2499  ;;  %v1827_v38 = vmul.f32 0.2, %v1357_v10 }
 0x1c4   : > { %v2625_v45 = vsel %vm2614_vm2, 0, %v8056_v5  ;;  %v1360_v4 = vpop.f32.mrf.mxu0 }
 0x1c5   : > { %v2282_v44 = vmax.f32 %v2081_v7, %v2082_v1  ;;  %v1828_v53 = vmul.f32 0.2, %v1359_v0  ;;  %v1361_v16 = vadd.f32 %v1360_v4, %v7597_v61  ;;  %6576 = vmatmul.mubr.msk.bf16.gmra.mxu1 %vm2809_vm3, %v2625_v45  ;;  %v2083_v9 = vmax.f32 %v1357_v10, %v1827_v38 }
 0x1c6   : > { %v1362_v40 = vpop.f32.mrf.mxu0  ;;  %3020 = vmatprep.mubr.bf16.mxu1 %v10455_v58 }
 0x1c7   : > { %v1829_v23 = vmul.f32 0.2, %v1361_v16  ;;  %v1363_v49 = vadd.f32 %v1362_v40, %v7603_v62  ;;  %v8064_v46 = vpack.c.bf16 %v2282_v44, %v2281_v14  ;;  %v2084_v24 = vmax.f32 %v1359_v0, %v1828_v53 }
 0x1c8   : > { %v1366_v6 = vpop.f32.mrf.mxu0  ;;  %3764 = vmatmul.mubr.bf16.gmra.mxu0 %v7691_v11 }
 0x1c9   : > { %v1830_v51 = vmul.f32 0.2, %v1363_v49  ;;  %2529 = vrot.lane.b32.xlu1 %v8064_v46, %s7311_s19  ;;  %3773 = vmatprep.mubr.bf16.mxu0 %v10455_v58  ;;  %v2085_v54 = vmax.f32 %v1361_v16, %v1829_v23  ;;  %v1367_v52 = vadd.f32 %v1366_v6, %v7597_v61  ;;  %v2283_v7 = vmax.f32 %v2083_v9, %v2084_v24 }
 0x1ca   : > { %v1368_v63 = vpop.f32.mrf.mxu0 }
 0x1cb   : > { %v2086_v21 = vmax.f32 %v1363_v49, %v1830_v51  ;;  %v1369_v3 = vadd.f32 %v1368_v63, %v7603_v62  ;;  %v8072_v41 = vpop.permute.xlu1 %2501  ;;  %v1831_v4 = vmul.f32 0.2, %v1367_v52 }
 0x1cc   : > { %v2627_v11 = vsel %vm2614_vm2, 0, %v8072_v41  ;;  %v1370_v35 = vpop.f32.mrf.mxu0 }
 0x1cd   : > { %v2284_v1 = vmax.f32 %v2085_v54, %v2086_v21  ;;  %v1832_v0 = vmul.f32 0.2, %v1369_v3  ;;  %v1371_v45 = vadd.f32 %v1370_v35, %v7597_v61  ;;  %6577 = vmatmul.mubr.msk.bf16.gmra.mxu1 %vm2809_vm3, %v2627_v11  ;;  %v2087_v6 = vmax.f32 %v1367_v52, %v1831_v4 }
 0x1ce   : > { %v1372_v10 = vpop.f32.mrf.mxu0  ;;  %3030 = vmatprep.mubr.bf16.mxu1 %v10455_v58 }
 0x1cf   : > { %v1833_v14 = vmul.f32 0.2, %v1371_v45  ;;  %v1373_v44 = vadd.f32 %v1372_v10, %v7603_v62  ;;  %v8080_v53 = vpack.c.bf16 %v2284_v1, %v2283_v7  ;;  %v2088_v38 = vmax.f32 %v1369_v3, %v1832_v0 }
 0x1d0   : > { %v1376_v16 = vpop.f32.mrf.mxu0  ;;  %3774 = vmatmul.mubr.bf16.gmra.mxu0 %v7703_v33 }
 0x1d1   : > { %10457 = vst [vmem:[#allocation12_spill] sm:$0xff] %v8080_v53  ;;  %v1834_v40 = vmul.f32 0.2, %v1373_v44  ;;  %2531 = vrot.lane.b32.xlu0 %v8080_v53, %s7311_s19  ;;  %3783 = vmatprep.mubr.bf16.mxu0 %v10455_v58  ;;  %v1377_v23 = vadd.f32 %v1376_v16, %v7597_v61  ;;  %v2089_v24 = vmax.f32 %v1371_v45, %v1833_v14 }
 0x1d2   : > { %v1378_v49 = vpop.f32.mrf.mxu0  ;;  %v2285_v21 = vmax.f32 %v2087_v6, %v2088_v38 }
 0x1d3   : > { %v2090_v51 = vmax.f32 %v1373_v44, %v1834_v40  ;;  %v1379_v9 = vadd.f32 %v1378_v49, %v7603_v62  ;;  %v8088_v63 = vpop.permute.xlu0 %2503  ;;  %v1835_v7 = vmul.f32 0.2, %v1377_v23 }
 0x1d4   : > { %v2629_v33 = vsel %vm2614_vm2, 0, %v8088_v63  ;;  %v1380_v54 = vpop.f32.mrf.mxu0 }
 0x1d5   : > { %v2286_v3 = vmax.f32 %v2089_v24, %v2090_v51  ;;  %v1836_v11 = vmul.f32 0.2, %v1379_v9  ;;  %v1381_v35 = vadd.f32 %v1380_v54, %v7597_v61  ;;  %6578 = vmatmul.mubr.msk.bf16.gmra.mxu1 %vm2809_vm3, %v2629_v33  ;;  %v2091_v44 = vmax.f32 %v1377_v23, %v1835_v7 }
 0x1d6   : > { %v1382_v1 = vpop.f32.mrf.mxu0  ;;  %3040 = vmatprep.mubr.bf16.mxu1 %v10455_v58 }
 0x1d7   : > { %v1837_v52 = vmul.f32 0.2, %v1381_v35  ;;  %v1383_v0 = vadd.f32 %v1382_v1, %v7603_v62  ;;  %v8096_v45 = vpack.c.bf16 %v2286_v3, %v2285_v21  ;;  %v2092_v4 = vmax.f32 %v1379_v9, %v1836_v11 }
 0x1d8   : > { %v1386_v10 = vpop.f32.mrf.mxu0  ;;  %3784 = vmatmul.mubr.bf16.gmra.mxu0 %v7712_v57 }
 0x1d9   : > { %10458 = vst [vmem:[#allocation13_spill] sm:$0xff] %v8096_v45  ;;  %v1838_v14 = vmul.f32 0.2, %v1383_v0  ;;  %2533 = vrot.lane.b32.xlu1 %v8096_v45, %s7311_s19  ;;  %3793 = vmatprep.mubr.bf16.mxu0 %v10455_v58  ;;  %v2093_v38 = vmax.f32 %v1381_v35, %v1837_v52  ;;  %v1387_v49 = vadd.f32 %v1386_v10, %v7597_v61 }
 0x1da   : > { %v1388_v16 = vpop.f32.mrf.mxu0  ;;  %v2287_v9 = vmax.f32 %v2091_v44, %v2092_v4 }
 0x1db   : > { %v2094_v40 = vmax.f32 %v1383_v0, %v1838_v14  ;;  %v1389_v6 = vadd.f32 %v1388_v16, %v7603_v62  ;;  %v8104_v24 = vpop.permute.xlu1 %2505  ;;  %v1839_v3 = vmul.f32 0.2, %v1387_v49  ;;  %v2476_v14 = vpop.permute.xlu0 %2475 }
 0x1dc   : > { %v2631_v57 = vsel %vm2614_vm2, 0, %v8104_v24  ;;  %v1390_v51 = vpop.f32.mrf.mxu0 }
 0x1dd   : > { %v2288_v33 = vmax.f32 %v2093_v38, %v2094_v40  ;;  %v1840_v54 = vmul.f32 0.2, %v1389_v6  ;;  %v1391_v21 = vadd.f32 %v1390_v51, %v7597_v61  ;;  %6579 = vmatmul.mubr.msk.bf16.gmra.mxu1 %vm2809_vm3, %v2631_v57  ;;  %v2095_v44 = vmax.f32 %v1387_v49, %v1839_v3 }
 0x1de   : > { %v1392_v23 = vpop.f32.mrf.mxu0  ;;  %3050 = vmatprep.mubr.bf16.mxu1 %v10455_v58 }
 0x1df   : > { %v1841_v11 = vmul.f32 0.2, %v1391_v21  ;;  %v1393_v35 = vadd.f32 %v1392_v23, %v7603_v62  ;;  %v8112_v7 = vpack.c.bf16 %v2288_v33, %v2287_v9  ;;  %v2096_v52 = vmax.f32 %v1389_v6, %v1840_v54 }
 0x1e0   : > { %v1396_v1 = vpop.f32.mrf.mxu0  ;;  %3794 = vmatmul.mubr.bf16.gmra.mxu0 %v7727_v19 }
 0x1e1   : > { %10459 = vst [vmem:[#allocation14_spill] sm:$0xff] %v8112_v7  ;;  %v1842_v0 = vmul.f32 0.2, %v1393_v35  ;;  %2535 = vrot.lane.b32.xlu0 %v8112_v7, %s7311_s19  ;;  %3803 = vmatprep.mubr.bf16.mxu0 %v10455_v58  ;;  %v1397_v10 = vadd.f32 %v1396_v1, %v7597_v61  ;;  %v2097_v16 = vmax.f32 %v1391_v21, %v1841_v11 }
 0x1e2   : > { %v1398_v4 = vpop.f32.mrf.mxu0  ;;  %v2289_v51 = vmax.f32 %v2095_v44, %v2096_v52  ;;  %v2478_v44 = vpop.permute.xlu0 %2477 }
 0x1e3   : > { %v2098_v38 = vmax.f32 %v1393_v35, %v1842_v0  ;;  %v1399_v40 = vadd.f32 %v1398_v4, %v7603_v62  ;;  %v8120_v57 = vpop.permute.xlu1 %2507  ;;  %v1843_v23 = vmul.f32 0.2, %v1397_v10  ;;  %v7190_v0 = vld [vmem:[%s10339_s6 + $0x60] sm:$0xff]  }
 0x1e4   : > { %v2634_v19 = vsel %vm2614_vm2, %v2476_v14, %v8120_v57  ;;  %v1400_v6 = vpop.f32.mrf.mxu0  ;;  %6727 = vmatprep.subr.bf16.mxu1 %v7190_v0 }
 0x1e5   : > { %v2290_v9 = vmax.f32 %v2097_v16, %v2098_v38  ;;  %v1844_v33 = vmul.f32 0.2, %v1399_v40  ;;  %v1401_v54 = vadd.f32 %v1400_v6, %v7597_v61  ;;  %6580 = vmatmul.mubr.msk.bf16.gmra.mxu1 %vm2809_vm3, %v2634_v19  ;;  %v2099_v4 = vmax.f32 %v1397_v10, %v1843_v23 }
 0x1e6   : > { %v1402_v1 = vpop.f32.mrf.mxu0  ;;  %3060 = vmatprep.mubr.bf16.mxu1 %v10455_v58 }
 0x1e7   : > { %v1845_v49 = vmul.f32 0.2, %v1401_v54  ;;  %v1403_v21 = vadd.f32 %v1402_v1, %v7603_v62  ;;  %v8128_v3 = vpack.c.bf16 %v2290_v9, %v2289_v51  ;;  %v2100_v35 = vmax.f32 %v1399_v40, %v1844_v33 }
 0x1e8   : > { %v1406_v11 = vpop.f32.mrf.mxu0  ;;  %3804 = vmatmul.mubr.bf16.gmra.mxu0 %v7739_v43 }
 0x1e9   : > { %10460 = vst [vmem:[#allocation15_spill] sm:$0xff] %v8128_v3  ;;  %v1846_v52 = vmul.f32 0.2, %v1403_v21  ;;  %2537 = vrot.lane.b32.xlu1 %v8128_v3, %s7311_s19  ;;  %3813 = vmatprep.mubr.bf16.mxu0 %v10455_v58  ;;  %v2101_v16 = vmax.f32 %v1401_v54, %v1845_v49  ;;  %v1407_v19 = vadd.f32 %v1406_v11, %v7597_v61  ;;  %v7191_v54 = vld [vmem:[%s10339_s6 + $0x20] sm:$0xff]  }
 0x1ea   : > { %v1408_v14 = vpop.f32.mrf.mxu0  ;;  %v2291_v9 = vmax.f32 %v2099_v4, %v2100_v35  ;;  %6728 = vmatpush3.bf16.msra.mxu1 %v7191_v54 }
 0x1eb   : > { %v2102_v38 = vmax.f32 %v1403_v21, %v1846_v52  ;;  %v1409_v43 = vadd.f32 %v1408_v14, %v7603_v62  ;;  %v8139_v40 = vpop.permute.xlu1 %2509  ;;  %v1847_v49 = vmul.f32 0.2, %v1407_v19 }
 0x1ec   : > { %v2637_v6 = vsel %vm2614_vm2, %v2478_v44, %v8139_v40  ;;  %v1410_v51 = vpop.f32.mrf.mxu0 }
 0x1ed   : > { %v2292_v33 = vmax.f32 %v2101_v16, %v2102_v38  ;;  %v1848_v1 = vmul.f32 0.2, %v1409_v43  ;;  %v1411_v10 = vadd.f32 %v1410_v51, %v7597_v61  ;;  %6581 = vmatmul.mubr.msk.bf16.gmra.mxu1 %vm2809_vm3, %v2637_v6  ;;  %v2480_v16 = vpop.permute.xlu0 %2479  ;;  %v2103_v38 = vmax.f32 %v1407_v19, %v1847_v49 }
 0x1ee   : > { %v1412_v23 = vpop.f32.mrf.mxu0  ;;  %3070 = vmatprep.mubr.bf16.mxu1 %v10455_v58 }
 0x1ef   : > { %v1849_v21 = vmul.f32 0.2, %v1411_v10  ;;  %v1413_v11 = vadd.f32 %v1412_v23, %v7603_v62  ;;  %v8150_v52 = vpack.c.bf16 %v2292_v33, %v2291_v9  ;;  %v2104_v0 = vmax.f32 %v1409_v43, %v1848_v1 }
 0x1f0   : > { %v1416_v35 = vpop.f32.mrf.mxu0  ;;  %3814 = vmatmul.mubr.bf16.gmra.mxu0 %v7750_v8 }
 0x1f1   : > { %10461 = vst [vmem:[#allocation16_spill] sm:$0xff] %v8150_v52  ;;  %v1850_v4 = vmul.f32 0.2, %v1413_v11  ;;  %2539 = vrot.lane.b32.xlu0 %v8150_v52, %s7311_s19  ;;  %3823 = vmatprep.mubr.bf16.mxu0 %v10455_v58  ;;  %v1417_v14 = vadd.f32 %v1416_v35, %v7597_v61  ;;  %v2105_v6 = vmax.f32 %v1411_v10, %v1849_v21 }
 0x1f2   : > { %v1418_v44 = vpop.f32.mrf.mxu0  ;;  %v2293_v1 = vmax.f32 %v2103_v38, %v2104_v0 }
 0x1f3   : > { %v2106_v51 = vmax.f32 %v1413_v11, %v1850_v4  ;;  %v1419_v9 = vadd.f32 %v1418_v44, %v7603_v62  ;;  %v8158_v33 = vpop.permute.xlu1 %2511  ;;  %v1851_v35 = vmul.f32 0.2, %v1417_v14 }
 0x1f4   : > { %v2640_v8 = vsel %vm2614_vm2, %v2480_v16, %v8158_v33  ;;  %v1420_v43 = vpop.f32.mrf.mxu0  ;;  %v2482_v16 = vpop.permute.xlu0 %2481 }
 0x1f5   : > { %v2294_v54 = vmax.f32 %v2105_v6, %v2106_v51  ;;  %v1852_v23 = vmul.f32 0.2, %v1419_v9  ;;  %v1421_v52 = vadd.f32 %v1420_v43, %v7597_v61  ;;  %6582 = vmatmul.mubr.msk.bf16.gmra.mxu1 %vm2809_vm3, %v2640_v8  ;;  %v2107_v4 = vmax.f32 %v1417_v14, %v1851_v35 }
 0x1f6   : > { %v1422_v3 = vpop.f32.mrf.mxu0  ;;  %3080 = vmatprep.mubr.bf16.mxu1 %v10455_v58 }
 0x1f7   : > { %v1853_v19 = vmul.f32 0.2, %v1421_v52  ;;  %v1423_v10 = vadd.f32 %v1422_v3, %v7603_v62  ;;  %v8166_v49 = vpack.c.bf16 %v2294_v54, %v2293_v1  ;;  %v2108_v11 = vmax.f32 %v1419_v9, %v1852_v23 }
 0x1f8   : > { %v1426_v21 = vpop.f32.mrf.mxu0  ;;  %3824 = vmatmul.mubr.bf16.gmra.mxu0 %v7761_v31 }
 0x1f9   : > { %10462 = vst [vmem:[#allocation17_spill] sm:$0xff] %v8166_v49  ;;  %v1854_v0 = vmul.f32 0.2, %v1423_v10  ;;  %2541 = vrot.lane.b32.xlu1 %v8166_v49, %s7311_s19  ;;  %3833 = vmatprep.mubr.bf16.mxu0 %v10455_v58  ;;  %v2109_v38 = vmax.f32 %v1421_v52, %v1853_v19  ;;  %v1427_v51 = vadd.f32 %v1426_v21, %v7597_v61 }
 0x1fa   : > { %v1428_v44 = vpop.f32.mrf.mxu0  ;;  %v2295_v43 = vmax.f32 %v2107_v4, %v2108_v11 }
 0x1fb   : > { %v2110_v6 = vmax.f32 %v1423_v10, %v1854_v0  ;;  %v1429_v3 = vadd.f32 %v1428_v44, %v7603_v62  ;;  %v8174_v8 = vpop.permute.xlu1 %2513  ;;  %v1855_v52 = vmul.f32 0.2, %v1427_v51 }
 0x1fc   : > { %v2643_v31 = vsel %vm2614_vm2, %v2482_v16, %v8174_v8  ;;  %v1430_v9 = vpop.f32.mrf.mxu0  ;;  %v2484_v16 = vpop.permute.xlu0 %2483 }
 0x1fd   : > { %v2296_v1 = vmax.f32 %v2109_v38, %v2110_v6  ;;  %v1856_v54 = vmul.f32 0.2, %v1429_v3  ;;  %v1431_v23 = vadd.f32 %v1430_v9, %v7597_v61  ;;  %6583 = vmatmul.mubr.msk.bf16.gmra.mxu1 %vm2809_vm3, %v2643_v31  ;;  %v2111_v38 = vmax.f32 %v1427_v51, %v1855_v52 }
 0x1fe   : > { %v1432_v14 = vpop.f32.mrf.mxu0  ;;  %3090 = vmatprep.mubr.bf16.mxu1 %v10455_v58 }
 0x1ff   : > { %v1857_v35 = vmul.f32 0.2, %v1431_v23  ;;  %v1433_v19 = vadd.f32 %v1432_v14, %v7603_v62  ;;  %v8182_v10 = vpack.c.bf16 %v2296_v1, %v2295_v43  ;;  %v2112_v0 = vmax.f32 %v1429_v3, %v1856_v54 }
 0x200   : > { %v1436_v21 = vpop.f32.mrf.mxu0  ;;  %3834 = vmatmul.mubr.bf16.gmra.mxu0 %v7772_v59 }
 0x201   : > { %10463 = vst [vmem:[#allocation18_spill] sm:$0xff] %v8182_v10  ;;  %v1858_v11 = vmul.f32 0.2, %v1433_v19  ;;  %2543 = vrot.lane.b32.xlu0 %v8182_v10, %s7311_s19  ;;  %3843 = vmatprep.mubr.bf16.mxu0 %v10455_v58  ;;  %v1437_v4 = vadd.f32 %v1436_v21, %v7597_v61  ;;  %v2113_v6 = vmax.f32 %v1431_v23, %v1857_v35 }
 0x202   : > { %v1438_v44 = vpop.f32.mrf.mxu0  ;;  %v2297_v1 = vmax.f32 %v2111_v38, %v2112_v0 }
 0x203   : > { %v2114_v31 = vmax.f32 %v1433_v19, %v1858_v11  ;;  %v1439_v9 = vadd.f32 %v1438_v44, %v7603_v62  ;;  %v8190_v43 = vpop.permute.xlu1 %2515  ;;  %v1859_v21 = vmul.f32 0.2, %v1437_v4 }
 0x204   : > { %v2646_v59 = vsel %vm2614_vm2, %v2484_v16, %v8190_v43  ;;  %v1440_v3 = vpop.f32.mrf.mxu0  ;;  %v2486_v16 = vpop.permute.xlu0 %2485 }
 0x205   : > { %v2298_v54 = vmax.f32 %v2113_v6, %v2114_v31  ;;  %v1860_v14 = vmul.f32 0.2, %v1439_v9  ;;  %v1441_v10 = vadd.f32 %v1440_v3, %v7597_v61  ;;  %6584 = vmatmul.mubr.msk.bf16.gmra.mxu1 %vm2809_vm3, %v2646_v59  ;;  %v2115_v11 = vmax.f32 %v1437_v4, %v1859_v21 }
 0x206   : > { %v1442_v49 = vpop.f32.mrf.mxu0  ;;  %3100 = vmatprep.mubr.bf16.mxu1 %v10455_v58 }
 0x207   : > { %v1861_v51 = vmul.f32 0.2, %v1441_v10  ;;  %v1443_v23 = vadd.f32 %v1442_v49, %v7603_v62  ;;  %v8198_v52 = vpack.c.bf16 %v2298_v54, %v2297_v1  ;;  %v2116_v19 = vmax.f32 %v1439_v9, %v1860_v14 }
 0x208   : > { %v1446_v35 = vpop.f32.mrf.mxu0  ;;  %3844 = vmatmul.mubr.bf16.gmra.mxu0 %v7783_v22 }
 0x209   : > { %10464 = vst [vmem:[#allocation19_spill] sm:$0xff] %v8198_v52  ;;  %v1862_v0 = vmul.f32 0.2, %v1443_v23  ;;  %2545 = vrot.lane.b32.xlu1 %v8198_v52, %s7311_s19  ;;  %3853 = vmatprep.mubr.bf16.mxu0 %v10455_v58  ;;  %v2117_v38 = vmax.f32 %v1441_v10, %v1861_v51  ;;  %v1447_v31 = vadd.f32 %v1446_v35, %v7597_v61 }
 0x20a   : > { %v1448_v44 = vpop.f32.mrf.mxu0  ;;  %v2299_v3 = vmax.f32 %v2115_v11, %v2116_v19 }
 0x20b   : > { %v2118_v6 = vmax.f32 %v1443_v23, %v1862_v0  ;;  %v1449_v49 = vadd.f32 %v1448_v44, %v7603_v62  ;;  %v8206_v59 = vpop.permute.xlu1 %2517  ;;  %v1863_v10 = vmul.f32 0.2, %v1447_v31 }
 0x20c   : > { %10465 = vst [vmem:[#allocation20_spill] sm:$0xff] %v8206_v59  ;;  %v2649_v22 = vsel %vm2614_vm2, %v2486_v16, %v8206_v59  ;;  %v1450_v9 = vpop.f32.mrf.mxu0  ;;  %v2488_v16 = vpop.permute.xlu0 %2487 }
 0x20d   : > { %v2300_v1 = vmax.f32 %v2117_v38, %v2118_v6  ;;  %v1864_v54 = vmul.f32 0.2, %v1449_v49  ;;  %v1451_v14 = vadd.f32 %v1450_v9, %v7597_v61  ;;  %6585 = vmatmul.mubr.msk.bf16.gmra.mxu1 %vm2809_vm3, %v2649_v22  ;;  %v2119_v38 = vmax.f32 %v1447_v31, %v1863_v10  ;;  %v8229_v31 = vpop.f32.mrf.mxu1 }
 0x20e   : > { %v1452_v4 = vpop.f32.mrf.mxu0  ;;  %3110 = vmatprep.mubr.bf16.mxu1 %v10455_v58 }
 0x20f   : > { %v1865_v21 = vmul.f32 0.2, %v1451_v14  ;;  %v1453_v51 = vadd.f32 %v1452_v4, %v7603_v62  ;;  %v8214_v23 = vpack.c.bf16 %v2300_v1, %v2299_v3  ;;  %v2120_v0 = vmax.f32 %v1449_v49, %v1864_v54 }
 0x210   : > { %v1456_v35 = vpop.f32.mrf.mxu0  ;;  %3854 = vmatmul.mubr.bf16.gmra.mxu0 %v7794_v48 }
 0x211   : > { %10466 = vst [vmem:[#allocation21_spill] sm:$0xff] %v8214_v23  ;;  %v1866_v19 = vmul.f32 0.2, %v1453_v51  ;;  %2547 = vrot.lane.b32.xlu0 %v8214_v23, %s7311_s19  ;;  %3863 = vmatprep.mubr.bf16.mxu0 %v10455_v58  ;;  %v1457_v11 = vadd.f32 %v1456_v35, %v7597_v61  ;;  %v2121_v6 = vmax.f32 %v1451_v14, %v1865_v21 }
 0x212   : > { %v1458_v44 = vpop.f32.mrf.mxu0  ;;  %v2301_v1 = vmax.f32 %v2119_v38, %v2120_v0  ;;  %v8238_v38 = vpop.f32.mrf.mxu1 }
 0x213   : > { %v2122_v22 = vmax.f32 %v1453_v51, %v1866_v19  ;;  %v1459_v9 = vadd.f32 %v1458_v44, %v7603_v62  ;;  %v8222_v3 = vpop.permute.xlu1 %2519  ;;  %v1867_v35 = vmul.f32 0.2, %v1457_v11 }
 0x214   : > { %10467 = vst [vmem:[#allocation22_spill] sm:$0xff] %v8222_v3  ;;  %v2652_v48 = vsel %vm2614_vm2, %v2488_v16, %v8222_v3  ;;  %v1460_v49 = vpop.f32.mrf.mxu0 }
 0x215   : > { %v2302_v54 = vmax.f32 %v2121_v6, %v2122_v22  ;;  %v1868_v4 = vmul.f32 0.2, %v1459_v9  ;;  %v1461_v23 = vadd.f32 %v1460_v49, %v7597_v61  ;;  %6586 = vmatmul.mubr.msk.bf16.gmra.mxu1 %vm2809_vm3, %v2652_v48  ;;  %v2123_v44 = vmax.f32 %v1457_v11, %v1867_v35  ;;  %v2490_v6 = vpop.permute.xlu0 %2489 }
 0x216   : > { %v1462_v52 = vpop.f32.mrf.mxu0  ;;  %3120 = vmatprep.mubr.bf16.mxu1 %v10455_v58 }
 0x217   : > { %v1869_v14 = vmul.f32 0.2, %v1461_v23  ;;  %v1463_v10 = vadd.f32 %v1462_v52, %v7603_v62  ;;  %v8232_v21 = vpack.c.bf16 %v2302_v54, %v2301_v1  ;;  %v2124_v0 = vmax.f32 %v1459_v9, %v1868_v4 }
 0x218   : > { %v1466_v51 = vpop.f32.mrf.mxu0  ;;  %3864 = vmatmul.mubr.bf16.gmra.mxu0 %v7805_v15 }
 0x219   : > { %10468 = vst [vmem:[#allocation23_spill] sm:$0xff] %v8232_v21  ;;  %v1870_v19 = vmul.f32 0.2, %v1463_v10  ;;  %2549 = vrot.lane.b32.xlu1 %v8232_v21, %s7311_s19  ;;  %3873 = vmatprep.mubr.bf16.mxu0 %v10455_v58  ;;  %v2125_v22 = vmax.f32 %v1461_v23, %v1869_v14  ;;  %v1467_v52 = vadd.f32 %v1466_v51, %v7597_v61 }
 0x21a   : > { %v1468_v16 = vpop.f32.mrf.mxu0  ;;  %v2303_v54 = vmax.f32 %v2123_v44, %v2124_v0 }
 0x21b   : > { %v2126_v48 = vmax.f32 %v1463_v10, %v1870_v19  ;;  %v1469_v49 = vadd.f32 %v1468_v16, %v7603_v62  ;;  %v8242_v1 = vpop.permute.xlu1 %2521  ;;  %v1871_v23 = vmul.f32 0.2, %v1467_v52  ;;  %v8252_v19 = vpop.f32.mrf.mxu1 }
 0x21c   : > { %10469 = vst [vmem:[#allocation24_spill] sm:$0xff] %v8242_v1  ;;  %v2655_v15 = vsel %vm2614_vm2, %v2490_v6, %v8242_v1  ;;  %v1470_v9 = vpop.f32.mrf.mxu0 }
 0x21d   : > { %v2304_v4 = vmax.f32 %v2125_v22, %v2126_v48  ;;  %v1872_v21 = vmul.f32 0.2, %v1469_v49  ;;  %v1471_v11 = vadd.f32 %v1470_v9, %v7597_v61  ;;  %6587 = vmatmul.mubr.msk.bf16.gmra.mxu1 %vm2809_vm3, %v2655_v15  ;;  %v2127_v48 = vmax.f32 %v1467_v52, %v1871_v23 }
 0x21e   : > { %v1472_v35 = vpop.f32.mrf.mxu0  ;;  %3130 = vmatprep.mubr.bf16.mxu1 %v10455_v58 }
 0x21f   : > { %v1873_v14 = vmul.f32 0.2, %v1471_v11  ;;  %v1473_v10 = vadd.f32 %v1472_v35, %v7603_v62  ;;  %v8250_v51 = vpack.c.bf16 %v2304_v4, %v2303_v54  ;;  %v2128_v0 = vmax.f32 %v1469_v49, %v1872_v21  ;;  %v8262_v35 = vpop.f32.mrf.mxu1 }
 0x220   : > { %v1476_v16 = vpop.f32.mrf.mxu0  ;;  %3874 = vmatmul.mubr.bf16.gmra.mxu0 %v7818_v42 }
 0x221   : > { %10470 = vst [vmem:[#allocation25_spill] sm:$0xff] %v8250_v51  ;;  %v1874_v44 = vmul.f32 0.2, %v1473_v10  ;;  %2551 = vrot.lane.b32.xlu0 %v8250_v51, %s7311_s19  ;;  %3883 = vmatprep.mubr.bf16.mxu0 %v10455_v58  ;;  %v1477_v6 = vadd.f32 %v1476_v16, %v7597_v61  ;;  %v2129_v15 = vmax.f32 %v1471_v11, %v1873_v14 }
 0x222   : > { %v1478_v22 = vpop.f32.mrf.mxu0  ;;  %v2305_v49 = vmax.f32 %v2127_v48, %v2128_v0 }
 0x223   : > { %v2130_v9 = vmax.f32 %v1473_v10, %v1874_v44  ;;  %v1479_v54 = vadd.f32 %v1478_v22, %v7603_v62  ;;  %v8260_v4 = vpop.permute.xlu0 %2523  ;;  %v1875_v52 = vmul.f32 0.2, %v1477_v6  ;;  %v8273_v44 = vpop.f32.mrf.mxu1 }
 0x224   : > { %10471 = vst [vmem:[#allocation26_spill] sm:$0xff] %v8260_v4  ;;  %v2657_v42 = vsel %vm2614_vm2, %v7961_v32, %v8260_v4  ;;  %v1480_v21 = vpop.f32.mrf.mxu0 }
 0x225   : > { %v2306_v51 = vmax.f32 %v2129_v15, %v2130_v9  ;;  %v1876_v1 = vmul.f32 0.2, %v1479_v54  ;;  %v1481_v16 = vadd.f32 %v1480_v21, %v7597_v61  ;;  %6588 = vmatmul.mubr.msk.bf16.gmra.mxu1 %vm2809_vm3, %v2657_v42  ;;  %v2131_v48 = vmax.f32 %v1477_v6, %v1875_v52  ;;  %v7192_v6 = vld [vmem:[%s10339_s6 + $0x58] sm:$0xff]  }
 0x226   : > { %v1482_v11 = vpop.f32.mrf.mxu0  ;;  %3140 = vmatprep.mubr.bf16.mxu1 %v10455_v58  ;;  %6729 = vmatprep.subr.bf16.mxu1 %v7192_v6 }
 0x227   : > { %v1877_v23 = vmul.f32 0.2, %v1481_v16  ;;  %v1483_v14 = vadd.f32 %v1482_v11, %v7603_v62  ;;  %v8271_v10 = vpack.c.bf16 %v2306_v51, %v2305_v49  ;;  %v2132_v0 = vmax.f32 %v1479_v54, %v1876_v1  ;;  %v8283_v11 = vpop.f32.mrf.mxu1 }
 0x228   : > { %v1486_v32 = vpop.f32.mrf.mxu0  ;;  %3884 = vmatmul.mubr.bf16.gmra.mxu0 %v7837_v30 }
 0x229   : > { %10472 = vst [vmem:[#allocation27_spill] sm:$0xff] %v8271_v10  ;;  %v1878_v22 = vmul.f32 0.2, %v1483_v14  ;;  %2553 = vrot.lane.b32.xlu1 %v8271_v10, %s7311_s19  ;;  %3893 = vmatprep.mubr.bf16.mxu0 %v10455_v58  ;;  %v2133_v9 = vmax.f32 %v1481_v16, %v1877_v23  ;;  %v1487_v21 = vadd.f32 %v1486_v32, %v7597_v61  ;;  %v8297_v10 = vpop.f32.mrf.mxu1 }
 0x22a   : > { %v1488_v15 = vpop.f32.mrf.mxu0  ;;  %v2307_v54 = vmax.f32 %v2131_v48, %v2132_v0  ;;  %v7193_v0 = vld [vmem:[%s10339_s6 + $0x18] sm:$0xff]  }
 0x22b   : > { %v2134_v42 = vmax.f32 %v1483_v14, %v1878_v22  ;;  %v1489_v51 = vadd.f32 %v1488_v15, %v7603_v62  ;;  %v8281_v49 = vpop.permute.xlu1 %2525  ;;  %v1879_v32 = vmul.f32 0.2, %v1487_v21  ;;  %6730 = vmatpush3.bf16.msra.mxu1 %v7193_v0  ;;  %v8310_v4 = vpop.f32.mrf.mxu1 }
 0x22c   : > { %10473 = vst [vmem:[#allocation28_spill] sm:$0xff] %v8281_v49  ;;  %v2659_v30 = vsel %vm2614_vm2, %v7992_v60, %v8281_v49  ;;  %v1490_v1 = vpop.f32.mrf.mxu0 }
 0x22d   : > { %v2308_v16 = vmax.f32 %v2133_v9, %v2134_v42  ;;  %v1880_v52 = vmul.f32 0.2, %v1489_v51  ;;  %v1491_v23 = vadd.f32 %v1490_v1, %v7597_v61  ;;  %6589 = vmatmul.mubr.msk.bf16.gmra.mxu1 %vm2809_vm3, %v2659_v30  ;;  %v2135_v6 = vmax.f32 %v1487_v21, %v1879_v32  ;;  %v8321_v0 = vpop.f32.mrf.mxu1 }
 0x22e   : > { %v1492_v14 = vpop.f32.mrf.mxu0  ;;  %3150 = vmatprep.mubr.bf16.mxu1 %v10455_v58 }
 0x22f   : > { %v1881_v22 = vmul.f32 0.2, %v1491_v23  ;;  %v1493_v60 = vadd.f32 %v1492_v14, %v7603_v62  ;;  %v8295_v15 = vpack.c.bf16 %v2308_v16, %v2307_v54  ;;  %v2136_v9 = vmax.f32 %v1489_v51, %v1880_v52 }
 0x230   : > { %v1496_v48 = vpop.f32.mrf.mxu0  ;;  %3894 = vmatmul.mubr.bf16.gmra.mxu0 %v7856_v27 }
 0x231   : > { %10474 = vst [vmem:[#allocation29_spill] sm:$0xff] %v8295_v15  ;;  %v1882_v42 = vmul.f32 0.2, %v1493_v60  ;;  %2555 = vrot.lane.b32.xlu0 %v8295_v15, %s7311_s19  ;;  %3903 = vmatprep.mubr.bf16.mxu0 %v10455_v58  ;;  %v1497_v30 = vadd.f32 %v1496_v48, %v7597_v61  ;;  %v2137_v54 = vmax.f32 %v1491_v23, %v1881_v22 }
 0x232   : > { %v1498_v1 = vpop.f32.mrf.mxu0  ;;  %v2309_v52 = vmax.f32 %v2135_v6, %v2136_v9 }
 0x233   : > { %v2138_v16 = vmax.f32 %v1493_v60, %v1882_v42  ;;  %v1499_v14 = vadd.f32 %v1498_v1, %v7603_v62  ;;  %v8308_v49 = vpop.permute.xlu0 %2527  ;;  %v1883_v21 = vmul.f32 0.2, %v1497_v30 }
 0x234   : > { %10475 = vst [vmem:[#allocation30_spill] sm:$0xff] %v8308_v49  ;;  %v2661_v27 = vsel %vm2614_vm2, %v8017_v17, %v8308_v49  ;;  %v1500_v51 = vpop.f32.mrf.mxu0 }
 0x235   : > { %v2310_v15 = vmax.f32 %v2137_v54, %v2138_v16  ;;  %v1884_v7 = vmul.f32 0.2, %v1499_v14  ;;  %v1501_v48 = vadd.f32 %v1500_v51, %v7597_v61  ;;  %6590 = vmatmul.mubr.msk.bf16.gmra.mxu1 %vm2809_vm3, %v2661_v27  ;;  %v2139_v1 = vmax.f32 %v1497_v30, %v1883_v21 }
 0x236   : > { %v1502_v23 = vpop.f32.mrf.mxu0  ;;  %3160 = vmatprep.mubr.bf16.mxu1 %v10455_v58 }
 0x237   : > { %v1885_v32 = vmul.f32 0.2, %v1501_v48  ;;  %v1503_v22 = vadd.f32 %v1502_v23, %v7603_v62  ;;  %v8319_v60 = vpack.c.bf16 %v2310_v15, %v2309_v52  ;;  %v2140_v9 = vmax.f32 %v1499_v14, %v1884_v7  ;;  %v8331_v52 = vpop.f32.mrf.mxu1 }
 0x238   : > { %v1506_v17 = vpop.f32.mrf.mxu0  ;;  %3904 = vmatmul.mubr.bf16.gmra.mxu0 %v7877_v25 }
 0x239   : > { %10476 = vst [vmem:[#allocation31_spill] sm:$0xff] %v8319_v60  ;;  %v1886_v42 = vmul.f32 0.2, %v1503_v22  ;;  %2557 = vrot.lane.b32.xlu1 %v8319_v60, %s7311_s19  ;;  %3913 = vmatprep.mubr.bf16.mxu0 %v10455_v58  ;;  %v2141_v54 = vmax.f32 %v1501_v48, %v1885_v32  ;;  %v1507_v27 = vadd.f32 %v1506_v17, %v7597_v61 }
 0x23a   : > { %v1508_v6 = vpop.f32.mrf.mxu0  ;;  %v2311_v14 = vmax.f32 %v2139_v1, %v2140_v9 }
 0x23b   : > { %v2142_v16 = vmax.f32 %v1503_v22, %v1886_v42  ;;  %v1509_v15 = vadd.f32 %v1508_v6, %v7603_v62  ;;  %v8329_v51 = vpop.permute.xlu1 %2529  ;;  %v1887_v21 = vmul.f32 0.2, %v1507_v27  ;;  %v8342_v42 = vpop.f32.mrf.mxu1 }
 0x23c   : > { %10477 = vst [vmem:[#allocation32_spill] sm:$0xff] %v8329_v51  ;;  %v2663_v25 = vsel %vm2614_vm2, %v8038_v47, %v8329_v51  ;;  %v1510_v7 = vpop.f32.mrf.mxu0 }
 0x23d   : > { %v2312_v23 = vmax.f32 %v2141_v54, %v2142_v16  ;;  %v1888_v60 = vmul.f32 0.2, %v1509_v15  ;;  %v1511_v30 = vadd.f32 %v1510_v7, %v7597_v61  ;;  %6591 = vmatmul.mubr.msk.bf16.gmra.mxu1 %vm2809_vm3, %v2663_v25  ;;  %v2143_v16 = vmax.f32 %v1507_v27, %v1887_v21 }
 0x23e   : > { %v1512_v48 = vpop.f32.mrf.mxu0  ;;  %3170 = vmatprep.mubr.bf16.mxu1 %v10455_v58 }
 0x23f   : > { %v1889_v32 = vmul.f32 0.2, %v1511_v30  ;;  %v1513_v22 = vadd.f32 %v1512_v48, %v7603_v62  ;;  %v8340_v17 = vpack.c.bf16 %v2312_v23, %v2311_v14  ;;  %v2144_v9 = vmax.f32 %v1509_v15, %v1888_v60  ;;  %v8352_v48 = vpop.f32.mrf.mxu1 }
 0x240   : > { %v1516_v47 = vpop.f32.mrf.mxu0  ;;  %3914 = vmatmul.mubr.bf16.gmra.mxu0 %v7896_v26 }
 0x241   : > { %10478 = vst [vmem:[#allocation33_spill] sm:$0xff] %v8340_v17  ;;  %v1890_v1 = vmul.f32 0.2, %v1513_v22  ;;  %2559 = vrot.lane.b32.xlu0 %v8340_v17, %s7311_s19  ;;  %3923 = vmatprep.mubr.bf16.mxu0 %v10455_v58  ;;  %v1517_v6 = vadd.f32 %v1516_v47, %v7597_v61  ;;  %v2145_v25 = vmax.f32 %v1511_v30, %v1889_v32 }
 0x242   : > { %v1518_v54 = vpop.f32.mrf.mxu0  ;;  %v2313_v15 = vmax.f32 %v2143_v16, %v2144_v9 }
 0x243   : > { %v2146_v7 = vmax.f32 %v1513_v22, %v1890_v1  ;;  %v1519_v14 = vadd.f32 %v1518_v54, %v7603_v62  ;;  %v8350_v23 = vpop.permute.xlu0 %2531  ;;  %v1891_v27 = vmul.f32 0.2, %v1517_v6  ;;  %v8363_v1 = vpop.f32.mrf.mxu1 }
 0x244   : > { %10479 = vst [vmem:[#allocation34_spill] sm:$0xff] %v8350_v23  ;;  %v2665_v26 = vsel %vm2614_vm2, %v8056_v5, %v8350_v23  ;;  %v1520_v60 = vpop.f32.mrf.mxu0 }
 0x245   : > { %v2314_v17 = vmax.f32 %v2145_v25, %v2146_v7  ;;  %v1892_v51 = vmul.f32 0.2, %v1519_v14  ;;  %v1521_v47 = vadd.f32 %v1520_v60, %v7597_v61  ;;  %6592 = vmatmul.mubr.msk.bf16.gmra.mxu1 %vm2809_vm3, %v2665_v26  ;;  %v2147_v16 = vmax.f32 %v1517_v6, %v1891_v27 }
 0x246   : > { %v1522_v30 = vpop.f32.mrf.mxu0  ;;  %3180 = vmatprep.mubr.bf16.mxu1 %v10455_v58 }
 0x247   : > { %v1893_v21 = vmul.f32 0.2, %v1521_v47  ;;  %v1523_v32 = vadd.f32 %v1522_v30, %v7603_v62  ;;  %v8361_v22 = vpack.c.bf16 %v2314_v17, %v2313_v15  ;;  %v2148_v9 = vmax.f32 %v1519_v14, %v1892_v51  ;;  %v8373_v30 = vpop.f32.mrf.mxu1 }
 0x248   : > { %v1526_v5 = vpop.f32.mrf.mxu0  ;;  %3924 = vmatmul.mubr.bf16.gmra.mxu0 %v7913_v28 }
 0x249   : > { %10480 = vst [vmem:[#allocation35_spill] sm:$0xff] %v8361_v22  ;;  %v1894_v54 = vmul.f32 0.2, %v1523_v32  ;;  %2561 = vrot.lane.b32.xlu1 %v8361_v22, %s7311_s19  ;;  %3933 = vmatprep.mubr.bf16.mxu0 %v10455_v58  ;;  %v2149_v7 = vmax.f32 %v1521_v47, %v1893_v21  ;;  %v1527_v60 = vadd.f32 %v1526_v5, %v7597_v61  ;;  %v8382_v5 = vpop.f32.mrf.mxu1 }
 0x24a   : > { %v1528_v25 = vpop.f32.mrf.mxu0  ;;  %v2315_v14 = vmax.f32 %v2147_v16, %v2148_v9 }
 0x24b   : > { %v2150_v26 = vmax.f32 %v1523_v32, %v1894_v54  ;;  %v1529_v17 = vadd.f32 %v1528_v25, %v7603_v62  ;;  %v8371_v15 = vpop.permute.xlu1 %2533  ;;  %v1895_v27 = vmul.f32 0.2, %v1527_v60 }
 0x24c   : > { %10481 = vst [vmem:[#allocation36_spill] sm:$0xff] %v8371_v15  ;;  %v2667_v28 = vsel %vm2614_vm2, %v8072_v41, %v8371_v15  ;;  %v1530_v51 = vpop.f32.mrf.mxu0 }
 0x24d   : > { %v2316_v22 = vmax.f32 %v2149_v7, %v2150_v26  ;;  %v1896_v23 = vmul.f32 0.2, %v1529_v17  ;;  %v1531_v6 = vadd.f32 %v1530_v51, %v7597_v61  ;;  %6593 = vmatmul.mubr.msk.bf16.gmra.mxu1 %vm2809_vm3, %v2667_v28  ;;  %v2151_v26 = vmax.f32 %v1527_v60, %v1895_v27 }
 0x24e   : > { %v1532_v47 = vpop.f32.mrf.mxu0  ;;  %3190 = vmatprep.mubr.bf16.mxu1 %v10455_v58 }
 0x24f   : > { %v1897_v21 = vmul.f32 0.2, %v1531_v6  ;;  %v1533_v32 = vadd.f32 %v1532_v47, %v7603_v62  ;;  %v8384_v54 = vpack.c.bf16 %v2316_v22, %v2315_v14  ;;  %v2152_v9 = vmax.f32 %v1529_v17, %v1896_v23  ;;  %v8392_v22 = vpop.f32.mrf.mxu1 }
 0x250   : > { %v1536_v41 = vpop.f32.mrf.mxu0  ;;  %3934 = vmatmul.mubr.bf16.gmra.mxu0 %v7930_v34  ;;  %v8398_v34 = vadd.f32 %v8229_v31, %v7597_v61  ;;  %v8402_v23 = vadd.f32 %v8238_v38, %v7603_v62  ;;  %v1671_v31 = vadd.f32 %v8252_v19, %v7597_v61 }
 0x251   : > { %10482 = vst [vmem:[#allocation37_spill] sm:$0xff] %v8384_v54  ;;  %v1898_v16 = vmul.f32 0.2, %v1533_v32  ;;  %2563 = vrot.lane.b32.xlu0 %v8384_v54, %s7311_s19  ;;  %3943 = vmatprep.mubr.bf16.mxu0 %v10455_v58  ;;  %v1537_v25 = vadd.f32 %v1536_v41, %v7597_v61  ;;  %v2153_v28 = vmax.f32 %v1531_v6, %v1897_v21 }
 0x252   : > { %v1538_v7 = vpop.f32.mrf.mxu0  ;;  %v2317_v6 = vmax.f32 %v2151_v26, %v2152_v9  ;;  %v1673_v41 = vadd.f32 %v8262_v35, %v7603_v62 }
 0x253   : > { %v2154_v51 = vmax.f32 %v1533_v32, %v1898_v16  ;;  %v1539_v47 = vadd.f32 %v1538_v7, %v7603_v62  ;;  %v8394_v14 = vpop.permute.xlu0 %2535  ;;  %v1899_v38 = vmul.f32 0.2, %v1537_v25 }
 0x254   : > { %10483 = vst [vmem:[#allocation38_spill] sm:$0xff] %v8394_v14  ;;  %v2669_v60 = vsel %vm2614_vm2, %v8088_v63, %v8394_v14  ;;  %v1540_v17 = vpop.f32.mrf.mxu0  ;;  %v8414_v63 = vpop.f32.mrf.mxu1  ;;  %v1954_v54 = vmul.f32 0.2, %v1673_v41 }
 0x255   : > { %v2318_v27 = vmax.f32 %v2153_v28, %v2154_v51  ;;  %v1900_v21 = vmul.f32 0.2, %v1539_v47  ;;  %v1541_v32 = vadd.f32 %v1540_v17, %v7597_v61  ;;  %6594 = vmatmul.mubr.msk.bf16.gmra.mxu1 %vm2809_vm3, %v2669_v60  ;;  %v1951_v28 = vmul.f32 0.2, %v8398_v34 }
 0x256   : > { %v1542_v16 = vpop.f32.mrf.mxu0  ;;  %3200 = vmatprep.mubr.bf16.mxu1 %v10455_v58  ;;  %v1952_v51 = vmul.f32 0.2, %v8402_v23  ;;  %v1953_v17 = vmul.f32 0.2, %v1671_v31  ;;  %v8429_v49 = vpop.f32.mrf.mxu1 }
 0x257   : > { %v1901_v7 = vmul.f32 0.2, %v1541_v32  ;;  %v1543_v9 = vadd.f32 %v1542_v16, %v7603_v62  ;;  %v8417_v26 = vpack.c.bf16 %v2318_v27, %v2317_v6  ;;  %v2156_v19 = vmax.f32 %v1539_v47, %v1900_v21 }
 0x258   : > { %v1546_v60 = vpop.f32.mrf.mxu0  ;;  %3944 = vmatmul.mubr.bf16.gmra.mxu0 %v7947_v50  ;;  %v8427_v6 = vadd.f32 %v8273_v44, %v7597_v61  ;;  %v2155_v27 = vmax.f32 %v1537_v25, %v1899_v38  ;;  %v2208_v3 = vmax.f32 %v8402_v23, %v1952_v51 }
 0x259   : > { %10484 = vst [vmem:[#allocation39_spill] sm:$0xff] %v8417_v26  ;;  %v1902_v35 = vmul.f32 0.2, %v1543_v9  ;;  %2565 = vrot.lane.b32.xlu1 %v8417_v26, %s7311_s19  ;;  %3953 = vmatprep.mubr.bf16.mxu0 %v10455_v58  ;;  %v2157_v14 = vmax.f32 %v1541_v32, %v1901_v7  ;;  %v1547_v50 = vadd.f32 %v1546_v60, %v7597_v61 }
 0x25a   : > { %v1548_v16 = vpop.f32.mrf.mxu0  ;;  %v2207_v26 = vmax.f32 %v8398_v34, %v1951_v28  ;;  %v2319_v38 = vmax.f32 %v2155_v27, %v2156_v19  ;;  %v2209_v60 = vmax.f32 %v1671_v31, %v1953_v17  ;;  %v8447_v34 = vadd.f32 %v8283_v11, %v7603_v62  ;;  %v8450_v28 = vpop.f32.mrf.mxu1 }
 0x25b   : > { %v2158_v15 = vmax.f32 %v1543_v9, %v1902_v35  ;;  %v1549_v47 = vadd.f32 %v1548_v16, %v7603_v62  ;;  %v8433_v21 = vpop.permute.xlu1 %2537  ;;  %v2210_v35 = vmax.f32 %v1673_v41, %v1954_v54  ;;  %v8443_v16 = vmul.f32 0.2, %v8427_v6 }
 0x25c   : > { %10485 = vst [vmem:[#allocation40_spill] sm:$0xff] %v8433_v21  ;;  %v2671_v44 = vsel %vm2614_vm2, %v8104_v24, %v8433_v21  ;;  %v1550_v25 = vpop.f32.mrf.mxu0  ;;  %v1903_v24 = vmul.f32 0.2, %v1547_v50  ;;  %v8457_v54 = vadd.f32 %v8297_v10, %v7597_v61  ;;  %v8462_v11 = vadd.f32 %v8310_v4, %v7603_v62 }
 0x25d   : > { %v2320_v32 = vmax.f32 %v2157_v14, %v2158_v15  ;;  %v1904_v7 = vmul.f32 0.2, %v1549_v47  ;;  %v1551_v9 = vadd.f32 %v1550_v25, %v7597_v61  ;;  %6595 = vmatmul.mubr.msk.bf16.gmra.mxu1 %vm2809_vm3, %v2671_v44  ;;  %v8467_v17 = vmax.f32 %v2207_v26, %v2208_v3  ;;  %v8476_v25 = vpop.f32.mrf.mxu1 }
 0x25e   : > { %v1552_v23 = vpop.f32.mrf.mxu0  ;;  %3210 = vmatprep.mubr.bf16.mxu1 %v10455_v58  ;;  %v8469_v27 = vmax.f32 %v2209_v60, %v2210_v35  ;;  %v2159_v4 = vmax.f32 %v1547_v50, %v1903_v24  ;;  %v8484_v3 = vmul.f32 0.2, %v8457_v54  ;;  %v8488_v26 = vadd.f32 %v8321_v0, %v7597_v61  ;;  %v4364_v35 = vld [vmem:[%s10338_s5] sm:$0x3] }
 0x25f   : > { %v1905_v15 = vmul.f32 0.2, %v1551_v9  ;;  %v1553_v14 = vadd.f32 %v1552_v23, %v7603_v62  ;;  %v8453_v51 = vpack.c.bf16 %v2320_v32, %v2319_v38  ;;  %v2160_v41 = vmax.f32 %v1549_v47, %v1904_v7 }
 0x260   : > { %v1556_v31 = vpop.f32.mrf.mxu0  ;;  %3954 = vmatmul.mubr.bf16.gmra.mxu0 %v7978_v29  ;;  %v8474_v29 = vmul.f32 0.2, %v8447_v34  ;;  %v8498_v23 = vmul.f32 0.2, %v8462_v11 }
 0x261   : > { %10486 = vst [vmem:[#allocation41_spill] sm:$0xff] %v8453_v51  ;;  %v1906_v19 = vmul.f32 0.2, %v1553_v14  ;;  %2567 = vrot.lane.b32.xlu0 %v8453_v51, %s7311_s19  ;;  %3963 = vmatprep.mubr.bf16.mxu0 %v10455_v58  ;;  %v2161_v47 = vmax.f32 %v1551_v9, %v1905_v15  ;;  %v1557_v60 = vadd.f32 %v1556_v31, %v7597_v61 }
 0x262   : > { %v1558_v44 = vpop.f32.mrf.mxu0  ;;  %v2321_v24 = vmax.f32 %v2159_v4, %v2160_v41  ;;  %v8504_v31 = vadd.f32 %v8331_v52, %v7603_v62  ;;  %v8518_v52 = vrot.slane %v4364_v35, %v7588_v56 }
 0x263   : > { %v2162_v38 = vmax.f32 %v1553_v14, %v1906_v19  ;;  %v8479_v32 = vadd.f32 %v1558_v44, %v7603_v62  ;;  %v8481_v7 = vpop.permute.xlu0 %2539  ;;  %v8512_v19 = vadd.f32 %v8352_v48, %v7603_v62  ;;  %v1907_v10 = vmul.f32 0.2, %v1557_v60 }
 0x264   : > { %10487 = vst [vmem:[#allocation42_spill] sm:$0xff] %v8481_v7  ;;  %v2673_v50 = vsel %vm2614_vm2, %v8120_v57, %v8481_v7  ;;  %v1560_v9 = vpop.f32.mrf.mxu0  ;;  %v8508_v57 = vadd.f32 %v8342_v42, %v7597_v61  ;;  %v1960_v48 = vmul.f32 0.2, %v8504_v31 }
 0x265   : > { %v2322_v15 = vmax.f32 %v2161_v47, %v2162_v38  ;;  %v1561_v14 = vadd.f32 %v1560_v9, %v7597_v61  ;;  %v2972_v0 = vpop.f32.mrf.mxu1  ;;  %6596 = vmatmul.mubr.msk.bf16.gmra.mxu1 %vm2809_vm3, %v2673_v50  ;;  %v1908_v41 = vmul.f32 0.2, %v8479_v32  ;;  %v8527_v9 = vmul.f32 0.2, %v8488_v26 }
 0x266   : > { %v1562_v44 = vpop.f32.mrf.mxu0  ;;  %3220 = vmatprep.mubr.bf16.mxu1 %v10455_v58  ;;  %v1961_v21 = vmul.f32 0.2, %v8508_v57  ;;  %v2163_v53 = vmax.f32 %v1557_v60, %v1907_v10  ;;  %v2216_v10 = vmax.f32 %v8504_v31, %v1960_v48  ;;  %v8575_v31 = vadd.f32 %v8373_v30, %v7603_v62 }
 0x267   : > { %v1909_v4 = vmul.f32 0.2, %v1561_v14  ;;  %v1563_v47 = vadd.f32 %v1562_v44, %v7603_v62  ;;  %v2974_v38 = vpop.f32.mrf.mxu1  ;;  %v8520_v50 = vpack.c.bf16 %v2322_v15, %v2321_v24  ;;  %v2214_v44 = vmax.f32 %v8462_v11, %v8498_v23 }
 0x268   : > { %v3725_v51 = vpop.f32.mrf.mxu0  ;;  %3964 = vmatmul.mubr.bf16.gmra.mxu0 %v8006_v37  ;;  %v10489_v15 = vsub.s32 1, %v7581_v55  ;;  %v1962_v37 = vmul.f32 0.2, %v8512_v19  ;;  %v2164_v11 = vmax.f32 %v8479_v32, %v1908_v41  ;;  %v10490_v30 = vmax.f32 %v8447_v34, %v8474_v29 }
 0x269   : > { %10488 = vst [vmem:[#allocation43_spill] sm:$0xff] %v8520_v50  ;;  %v1910_v56 = vmul.f32 0.2, %v1563_v47  ;;  %v3726_v7 = vadd.f32 %v3725_v51, %v2972_v0  ;;  %2569 = vrot.lane.b32.xlu1 %v8520_v50, %s7311_s19  ;;  %v2976_v24 = vpop.f32.mrf.mxu1  ;;  %3973 = vmatprep.mubr.bf16.mxu0 %v10455_v58  ;;  %v2165_v51 = vmax.f32 %v1561_v14, %v1909_v4 }
 0x26a   : > { %v8536_v42 = vrot.slane %v4364_v35, %v10489_v15  ;;  %v3727_v23 = vpop.f32.mrf.mxu0  ;;  %v2215_v35 = vmax.f32 %v8488_v26, %v8527_v9  ;;  %v8550_v15 = vadd.f32 %v8363_v1, %v7597_v61  ;;  %v2217_v26 = vmax.f32 %v8508_v57, %v1961_v21 }
 0x26b   : > { %v2166_v0 = vmax.f32 %v1563_v47, %v1910_v56  ;;  %v4376_v50 = vadd.f32 %v8518_v52, %v3726_v7  ;;  %v3728_v45 = vadd.f32 %v3727_v23, %v2974_v38  ;;  %v8544_v59 = vpop.permute.xlu1 %2541  ;;  %v2978_v55 = vpop.f32.mrf.mxu1  ;;  %v7194_v56 = vld [vmem:[%s10339_s6 + $0x50] sm:$0xff]   ;;  %v2323_v60 = vmax.f32 %v2163_v53, %v2164_v11 }
 0x26c   : > { %v2675_v32 = vsel %vm2614_vm2, %v8139_v40, %v8544_v59  ;;  %v3729_v14 = vpop.f32.mrf.mxu0  ;;  %v7195_v40 = vld [vmem:[%s10339_s6 + $0x10] sm:$0xff]   ;;  %6731 = vmatprep.subr.bf16.mxu1 %v7194_v56  ;;  %v8597_v56 = vmax.f32 %v2215_v35, %v2216_v10  ;;  %v8616_v35 = vadd.f32 %v8414_v63, %v7597_v61  ;;  %v8629_v63 = vadd.f32 %v8429_v49, %v7603_v62 }
 0x26d   : > { %v2324_v7 = vmax.f32 %v2165_v51, %v2166_v0  ;;  %v4632_v41 = vmul.f32 0.2, %v4376_v50  ;;  %v4377_v4 = vadd.f32 %v8536_v42, %v3728_v45  ;;  %v3730_v47 = vadd.f32 %v3729_v14, %v2976_v24  ;;  %2573 = vrot.lane.b32.xlu1 %v7859_v36, %s7311_s19  ;;  %v2982_v1 = vpop.f32.mrf.mxu1  ;;  %6597 = vmatmul.mubr.msk.bf16.gmra.mxu1 %vm2809_vm3, %v2675_v32 }
 0x26e   : > { %v3731_v38 = vpop.f32.mrf.mxu0  ;;  %3230 = vmatprep.mubr.bf16.mxu1 %v10455_v58  ;;  %v2218_v45 = vmax.f32 %v8512_v19, %v1962_v37  ;;  %6732 = vmatpush3.bf16.msra.mxu1 %v7195_v40  ;;  %v8571_v0 = vmul.f32 0.2, %v8550_v15  ;;  %v10492_v32 = vmax.f32 %v8457_v54, %v8484_v3 }
 0x26f   : > { %v4633_v9 = vmul.f32 0.2, %v4377_v4  ;;  %v4378_v24 = vadd.f32 %v8518_v52, %v3730_v47  ;;  %v3732_v23 = vadd.f32 %v3731_v38, %v2978_v55  ;;  %v2984_v51 = vpop.f32.mrf.mxu1  ;;  %v4888_v53 = vmax.f32 %v4376_v50, %v4632_v41 }
 0x270   : > { %v3735_v21 = vpop.f32.mrf.mxu0  ;;  %3974 = vmatmul.mubr.bf16.gmra.mxu0 %v8028_v20  ;;  %v8578_v57 = vpack.c.bf16 %v2324_v7, %v2323_v60  ;;  %v10491_v50 = vmax.f32 %v8427_v6, %v8443_v16  ;;  %v8595_v14 = vmax.f32 %v10492_v32, %v2214_v44  ;;  %v8603_v41 = vpack.c.bf16 %v8469_v27, %v8467_v17 }
 0x271   : > { %v4889_v19 = vmax.f32 %v4377_v4, %v4633_v9  ;;  %v4634_v48 = vmul.f32 0.2, %v4378_v24  ;;  %v4379_v37 = vadd.f32 %v8536_v42, %v3732_v23  ;;  %v3736_v11 = vadd.f32 %v3735_v21, %v2982_v1  ;;  %2577 = vrot.lane.b32.xlu1 %v7899_v39, %s7311_s19  ;;  %v2986_v55 = vpop.f32.mrf.mxu1  ;;  %3983 = vmatprep.mubr.bf16.mxu0 %v10455_v58 }
 0x272   : > { %v8590_v20 = vmax.f32 %v10491_v50, %v10490_v30  ;;  %2571 = vrot.lane.b32.xlu0 %v8578_v57, %s7311_s19  ;;  %v3737_v7 = vpop.f32.mrf.mxu0  ;;  %v8605_v34 = vmax.f32 %v2217_v26, %v2218_v45  ;;  %v2219_v44 = vmax.f32 %v8550_v15, %v8571_v0  ;;  %v8622_v47 = vmul.f32 0.2, %v8575_v31  ;;  %v10494_v45 = vld [vmem:[#allocation7_spill] sm:$0xff] }
 0x273   : > { %v8607_v6 = vmax.f32 %v4888_v53, %v4889_v19  ;;  %v4635_v16 = vmul.f32 0.2, %v4379_v37  ;;  %v4380_v29 = vadd.f32 %v8518_v52, %v3736_v11  ;;  %v2988_v54 = vpop.f32.mrf.mxu1  ;;  %v8610_v3 = vpop.permute.xlu0 %2543  ;;  %v3738_v4 = vadd.f32 %v3737_v7, %v2984_v51  ;;  %v10516_v0 = vld [vmem:[#allocation15_spill] sm:$0xff] }
 0x274   : > { %v2677_v17 = vsel %vm2614_vm2, %v8158_v33, %v8610_v3  ;;  %v3739_v27 = vpop.f32.mrf.mxu0  ;;  %v4890_v1 = vmax.f32 %v4378_v24, %v4634_v48  ;;  %v8633_v33 = vadd.f32 %v8450_v28, %v7597_v61  ;;  %v8641_v24 = vadd.f32 %v8476_v25, %v7603_v62 }
 0x275   : > { %10493 = vst [vmem:[#allocation44_spill] sm:$0xff] %v8607_v6  ;;  %v4891_v40 = vmax.f32 %v4379_v37, %v4635_v16  ;;  %v3740_v10 = vadd.f32 %v3739_v27, %v2986_v55  ;;  %2581 = vrot.lane.b32.xlu1 %v7933_v2, %s7311_s19  ;;  %v2992_v26 = vpop.f32.mrf.mxu1  ;;  %6598 = vmatmul.mubr.msk.bf16.gmra.mxu1 %vm2809_vm3, %v2677_v17  ;;  %v4636_v60 = vmul.f32 0.2, %v4380_v29  ;;  %v1967_v19 = vmul.f32 0.2, %v8616_v35 }
 0x276   : > { %v4381_v38 = vadd.f32 %v8536_v42, %v3738_v4  ;;  %2575 = vrot.lane.b32.xlu0 %v10494_v45, %s7311_s19  ;;  %v3741_v9 = vpop.f32.mrf.mxu0  ;;  %3240 = vmatprep.mubr.bf16.mxu1 %v10455_v58  ;;  %v8648_v53 = vadd.f32 %v8382_v5, %v7597_v61  ;;  %v8652_v21 = vadd.f32 %v8392_v22, %v7603_v62  ;;  %v10496_v61 = vld [vmem:[#allocation10_spill] sm:$0xff]  ;;  %v1968_v62 = vmul.f32 0.2, %v8629_v63 }
 0x277   : > { %v8643_v23 = vmax.f32 %v4890_v1, %v4891_v40  ;;  %v4382_v49 = vadd.f32 %v8518_v52, %v3740_v10  ;;  %v3742_v51 = vadd.f32 %v3741_v9, %v2988_v54  ;;  %v2994_v28 = vpop.f32.mrf.mxu1  ;;  %v1969_v22 = vmul.f32 0.2, %v8633_v33 }
 0x278   : > { %v4637_v48 = vmul.f32 0.2, %v4381_v38  ;;  %v3745_v37 = vpop.f32.mrf.mxu0  ;;  %3984 = vmatmul.mubr.bf16.gmra.mxu0 %v8046_v13  ;;  %v4892_v50 = vmax.f32 %v4380_v29, %v4636_v60  ;;  %v10497_v13 = vld [vmem:[#allocation8_spill] sm:$0xff]  ;;  %v1970_v16 = vmul.f32 0.2, %v8641_v24  ;;  %v2220_v40 = vmax.f32 %v8575_v31, %v8622_v47 }
 0x279   : > { %10495 = vst [vmem:[#allocation7_spill] sm:$0xff] %v8643_v23  ;;  %v4638_v11 = vmul.f32 0.2, %v4382_v49  ;;  %v4383_v55 = vadd.f32 %v8536_v42, %v3742_v51  ;;  %v3746_v30 = vadd.f32 %v3745_v37, %v2992_v26  ;;  %2585 = vrot.lane.b32.xlu1 %v10496_v61, %s7311_s19  ;;  %v2996_v5 = vpop.f32.mrf.mxu1  ;;  %3993 = vmatprep.mubr.bf16.mxu0 %v10455_v58 }
 0x27a   : > { %v4893_v32 = vmax.f32 %v4381_v38, %v4637_v48  ;;  %2579 = vrot.lane.b32.xlu0 %v10497_v13, %s7311_s19  ;;  %v3747_v7 = vpop.f32.mrf.mxu0  ;;  %v2223_v37 = vmax.f32 %v8616_v35, %v1967_v19  ;;  %v1965_v35 = vmul.f32 0.2, %v8648_v53 }
 0x27b   : > { %v4639_v54 = vmul.f32 0.2, %v4383_v55  ;;  %v4384_v4 = vadd.f32 %v8518_v52, %v3746_v30  ;;  %v3748_v17 = vadd.f32 %v3747_v7, %v2994_v28  ;;  %v8668_v27 = vpop.permute.xlu1 %2545  ;;  %v2998_v1 = vpop.f32.mrf.mxu1  ;;  %v4894_v29 = vmax.f32 %v4382_v49, %v4638_v11 }
 0x27c   : > { %v8672_v10 = vmax.f32 %v4892_v50, %v4893_v32  ;;  %v2679_v26 = vsel %vm2614_vm2, %v8174_v8, %v8668_v27  ;;  %v3749_v60 = vpop.f32.mrf.mxu0  ;;  %v2224_v49 = vmax.f32 %v8629_v63, %v1968_v62  ;;  %v2225_v11 = vmax.f32 %v8633_v33, %v1969_v22  ;;  %v10499_v8 = vld [vmem:[#allocation9_spill] sm:$0xff] }
 0x27d   : > { %v4895_v38 = vmax.f32 %v4383_v55, %v4639_v54  ;;  %v4640_v9 = vmul.f32 0.2, %v4384_v4  ;;  %v4385_v51 = vadd.f32 %v8536_v42, %v3748_v17  ;;  %v3750_v48 = vadd.f32 %v3749_v60, %v2996_v5  ;;  %2598 = vrot.lane.b32.xlu1 %v8031_v12, %s7311_s19  ;;  %v3002_v28 = vpop.f32.mrf.mxu1  ;;  %6599 = vmatmul.mubr.msk.bf16.gmra.mxu1 %vm2809_vm3, %v2679_v26 }
 0x27e   : > { %10498 = vst [vmem:[#allocation10_spill] sm:$0xff] %v8672_v10  ;;  %2583 = vrot.lane.b32.xlu0 %v10499_v8, %s7311_s19  ;;  %v3751_v55 = vpop.f32.mrf.mxu0  ;;  %3250 = vmatprep.mubr.bf16.mxu1 %v10455_v58  ;;  %v2226_v30 = vmax.f32 %v8641_v24, %v1970_v16  ;;  %v1966_v63 = vmul.f32 0.2, %v8652_v21  ;;  %v2353_v17 = vmax.f32 %v2223_v37, %v2224_v49 }
 0x27f   : > { %v8688_v5 = vmax.f32 %v4894_v29, %v4895_v38  ;;  %v4641_v50 = vmul.f32 0.2, %v4385_v51  ;;  %v4386_v32 = vadd.f32 %v8518_v52, %v3750_v48  ;;  %v3004_v7 = vpop.f32.mrf.mxu1  ;;  %v4896_v19 = vmax.f32 %v4384_v4, %v4640_v9  ;;  %v10501_v4 = vld [vmem:[#allocation11_spill] sm:$0xff] }
 0x280   : > { %v3752_v33 = vadd.f32 %v3751_v55, %v2998_v1  ;;  %v3755_v62 = vpop.f32.mrf.mxu0  ;;  %3994 = vmatmul.mubr.bf16.gmra.mxu0 %v8064_v46  ;;  %v8704_v46 = vpack.c.bf16 %v8605_v34, %v8597_v56  ;;  %v2354_v60 = vmax.f32 %v2225_v11, %v2226_v30  ;;  %v2221_v37 = vmax.f32 %v8648_v53, %v1965_v35 }
 0x281   : > { %10500 = vst [vmem:[#allocation8_spill] sm:$0xff] %v8688_v5  ;;  %v4897_v22 = vmax.f32 %v4385_v51, %v4641_v50  ;;  %v3756_v54 = vadd.f32 %v3755_v62, %v3002_v28  ;;  %2602 = vrot.lane.b32.xlu1 %v8603_v41, %s7311_s19  ;;  %v3006_v24 = vpop.f32.mrf.mxu1  ;;  %4003 = vmatprep.mubr.bf16.mxu0 %v10455_v58  ;;  %v4642_v29 = vmul.f32 0.2, %v4386_v32 }
 0x282   : > { %v4387_v26 = vadd.f32 %v8536_v42, %v3752_v33  ;;  %2596 = vrot.lane.b32.xlu0 %v10501_v4, %s7311_s19  ;;  %v3757_v1 = vpop.f32.mrf.mxu0  ;;  %v2222_v49 = vmax.f32 %v8652_v21, %v1966_v63 }
 0x283   : > { %v8706_v38 = vmax.f32 %v4896_v19, %v4897_v22  ;;  %v4388_v9 = vadd.f32 %v8518_v52, %v3756_v54  ;;  %v3758_v51 = vadd.f32 %v3757_v1, %v3004_v7  ;;  %v3008_v48 = vpop.f32.mrf.mxu1  ;;  %v8709_v28 = vpop.permute.xlu0 %2547  ;;  %v4898_v19 = vmax.f32 %v4386_v32, %v4642_v29  ;;  %v10504_v29 = vld [vmem:[#allocation12_spill] sm:$0xff] }
 0x284   : > { %v4643_v55 = vmul.f32 0.2, %v4387_v26  ;;  %v2681_v50 = vsel %vm2614_vm2, %v8190_v43, %v8709_v28  ;;  %v3759_v56 = vpop.f32.mrf.mxu0  ;;  %v8724_v43 = vpack.c.bf16 %v8595_v14, %v8590_v20  ;;  %v8728_v22 = vpack.c.bf16 %v2354_v60, %v2353_v17 }
 0x285   : > { %10502 = vst [vmem:[#allocation9_spill] sm:$0xff] %v8706_v38  ;;  %v4644_v34 = vmul.f32 0.2, %v4388_v9  ;;  %v4389_v11 = vadd.f32 %v8536_v42, %v3758_v51  ;;  %v3760_v30 = vadd.f32 %v3759_v56, %v3006_v24  ;;  %2606 = vrot.lane.b32.xlu1 %v8704_v46, %s7311_s19  ;;  %v3012_v7 = vpop.f32.mrf.mxu1  ;;  %6600 = vmatmul.mubr.msk.bf16.gmra.mxu1 %vm2809_vm3, %v2681_v50 }
 0x286   : > { %v4899_v53 = vmax.f32 %v4387_v26, %v4643_v55  ;;  %2600 = vrot.lane.b32.xlu0 %v8049_v18, %s7311_s19  ;;  %v3761_v21 = vpop.f32.mrf.mxu0  ;;  %3260 = vmatprep.mubr.bf16.mxu1 %v10455_v58  ;;  %v2351_v32 = vmax.f32 %v2219_v44, %v2220_v40  ;;  %v2352_v54 = vmax.f32 %v2221_v37, %v2222_v49  ;;  %v10506_v37 = vld [vmem:[#allocation20_spill] sm:$0xff] }
 0x287   : > { %v4645_v35 = vmul.f32 0.2, %v4389_v11  ;;  %v4390_v63 = vadd.f32 %v8518_v52, %v3760_v30  ;;  %v3762_v33 = vadd.f32 %v3761_v21, %v3008_v48  ;;  %v3014_v62 = vpop.f32.mrf.mxu1  ;;  %v4900_v20 = vmax.f32 %v4388_v9, %v4644_v34 }
 0x288   : > { %v8736_v24 = vmax.f32 %v4898_v19, %v4899_v53  ;;  %v3765_v14 = vpop.f32.mrf.mxu0  ;;  %4004 = vmatmul.mubr.bf16.gmra.mxu0 %v10504_v29  ;;  %v8755_v50 = vpack.c.bf16 %v2352_v54, %v2351_v32  ;;  %v10508_v54 = vld [vmem:[#allocation13_spill] sm:$0xff] }
 0x289   : > { %v4901_v26 = vmax.f32 %v4389_v11, %v4645_v35  ;;  %v4646_v1 = vmul.f32 0.2, %v4390_v63  ;;  %v4391_v51 = vadd.f32 %v8536_v42, %v3762_v33  ;;  %v3766_v17 = vadd.f32 %v3765_v14, %v3012_v7  ;;  %2610 = vrot.lane.b32.xlu1 %v8728_v22, %s7311_s19  ;;  %v3016_v31 = vpop.f32.mrf.mxu1  ;;  %4013 = vmatprep.mubr.bf16.mxu0 %v10455_v58 }
 0x28a   : > { %10503 = vst [vmem:[#allocation11_spill] sm:$0xff] %v8736_v24  ;;  %2604 = vrot.lane.b32.xlu0 %v8724_v43, %s7311_s19  ;;  %v3767_v15 = vpop.f32.mrf.mxu0 }
 0x28b   : > { %v8747_v44 = vmax.f32 %v4900_v20, %v4901_v26  ;;  %v4647_v47 = vmul.f32 0.2, %v4391_v51  ;;  %v4392_v40 = vadd.f32 %v8518_v52, %v3766_v17  ;;  %v8750_v60 = vpop.permute.xlu1 %2549  ;;  %v3018_v9 = vpop.f32.mrf.mxu1  ;;  %v3768_v48 = vadd.f32 %v3767_v15, %v3014_v62 }
 0x28c   : > { %v2683_v49 = vsel %vm2614_vm2, %v10506_v37, %v8750_v60  ;;  %v3769_v55 = vpop.f32.mrf.mxu0  ;;  %v4902_v56 = vmax.f32 %v4390_v63, %v4646_v1 }
 0x28d   : > { %10505 = vst [vmem:[#allocation12_spill] sm:$0xff] %v8747_v44  ;;  %v4903_v34 = vmax.f32 %v4391_v51, %v4647_v47  ;;  %v3770_v11 = vadd.f32 %v3769_v55, %v3016_v31  ;;  %v3022_v30 = vpop.f32.mrf.mxu1  ;;  %6601 = vmatmul.mubr.msk.bf16.gmra.mxu1 %vm2809_vm3, %v2683_v49  ;;  %v4648_v7 = vmul.f32 0.2, %v4392_v40  ;;  %v4393_v19 = vadd.f32 %v8536_v42, %v3768_v48 }
 0x28e   : > { %2608 = vrot.lane.b32.xlu0 %v8755_v50, %s7311_s19  ;;  %v3771_v53 = vpop.f32.mrf.mxu0  ;;  %3270 = vmatprep.mubr.bf16.mxu1 %v10455_v58 }
 0x28f   : > { %v8762_v21 = vmax.f32 %v4902_v56, %v4903_v34  ;;  %v4394_v35 = vadd.f32 %v8518_v52, %v3770_v11  ;;  %v3772_v33 = vadd.f32 %v3771_v53, %v3018_v9  ;;  %v3024_v63 = vpop.f32.mrf.mxu1  ;;  %v4649_v62 = vmul.f32 0.2, %v4393_v19  ;;  %v10510_v56 = vld [vmem:[#allocation22_spill] sm:$0xff] }
 0x290   : > { %v3775_v32 = vpop.f32.mrf.mxu0  ;;  %4014 = vmatmul.mubr.bf16.gmra.mxu0 %v10508_v54  ;;  %v4904_v51 = vmax.f32 %v4392_v40, %v4648_v7 }
 0x291   : > { %10507 = vst [vmem:[#allocation20_spill] sm:$0xff] %v8762_v21  ;;  %v4650_v20 = vmul.f32 0.2, %v4394_v35  ;;  %v4395_v14 = vadd.f32 %v8536_v42, %v3772_v33  ;;  %v3776_v29 = vadd.f32 %v3775_v32, %v3022_v30  ;;  %v3026_v26 = vpop.f32.mrf.mxu1  ;;  %4023 = vmatprep.mubr.bf16.mxu0 %v10455_v58  ;;  %v4905_v17 = vmax.f32 %v4393_v19, %v4649_v62 }
 0x292   : > { %2612 = vrot.lane.b32.xlu0 %v10455_v58, %s7311_s19  ;;  %v3777_v31 = vpop.f32.mrf.mxu0  ;;  %s352_s19 = sand.u32 1, %s7300_s16  }
 0x293   : > { %v4651_v15 = vmul.f32 0.2, %v4395_v14  ;;  %v4396_v47 = vadd.f32 %v8518_v52, %v3776_v29  ;;  %v3778_v9 = vadd.f32 %v3777_v31, %v3024_v63  ;;  %v3028_v48 = vpop.f32.mrf.mxu1  ;;  %v8773_v37 = vpop.permute.xlu0 %2551  ;;  %v8775_v49 = vmax.f32 %v4904_v51, %v4905_v17  ;;  %v10512_v29 = vld [vmem:[#allocation14_spill] sm:$0xff]  ;;  %s353_s26 = scalar_lea.vmem [#allocation3], %s352_s19  ;;  %s6358_s12 = scalar_lea.sflag [#allocation4], %s352_s19 }
 0x294   : > { %v4906_v55 = vmax.f32 %v4394_v35, %v4650_v20  ;;  %v2685_v34 = vsel %vm2614_vm2, %v10510_v56, %v8773_v37  ;;  %v3779_v40 = vpop.f32.mrf.mxu0  ;;  %s6370_s27 = sshll.u32 %s353_s26, 4  ;;  %s6371_s27 = int_to_ptr.vmem [resolvable:$true] %s6370_s27 }
 0x295   : > { %10509 = vst [vmem:[#allocation13_spill] sm:$0xff] %v8775_v49  ;;  %v4907_v11 = vmax.f32 %v4395_v14, %v4651_v15  ;;  %v4652_v30 = vmul.f32 0.2, %v4396_v47  ;;  %v4397_v7 = vadd.f32 %v8536_v42, %v3778_v9  ;;  %v3780_v19 = vadd.f32 %v3779_v40, %v3026_v26  ;;  %v3032_v53 = vpop.f32.mrf.mxu1  ;;  %6602 = vmatmul.mubr.msk.bf16.gmra.mxu1 %vm2809_vm3, %v2685_v34  ;;  %s7248_s13 = scalar_lea.vmem %s6371_s27, 16  ;;  %p7255_p0 = scmp.lt.s32.totalorder %s6371_s27, %s7253_s9 }
 0x296   : > { %v3781_v33 = vpop.f32.mrf.mxu0  ;;  %3280 = vmatprep.mubr.bf16.mxu1 %v10455_v58  ;;  %p7249_p11 = scmp.ne.s32.totalorder %s6371_s27, %s7248_s13  ;;  %p7256_p1 = scmp.lt.s32.totalorder %s7254_s30, %s7248_s13 }
 0x297   : > { %v8783_v63 = vmax.f32 %v4906_v55, %v4907_v11  ;;  %v4653_v62 = vmul.f32 0.2, %v4397_v7  ;;  %v4398_v35 = vadd.f32 %v8518_v52, %v3780_v19  ;;  %v3034_v32 = vpop.f32.mrf.mxu1  ;;  %v3782_v54 = vadd.f32 %v3781_v33, %v3028_v48 }
 0x298   : > { %v3785_v20 = vpop.f32.mrf.mxu0  ;;  %4024 = vmatmul.mubr.bf16.gmra.mxu0 %v10512_v29  ;;  %v4908_v14 = vmax.f32 %v4396_v47, %v4652_v30  ;;  %v10514_v30 = vld [vmem:[#allocation24_spill] sm:$0xff]  ;;  %p7250_p12 = pnand %p7249_p11, %p7411_p5  ;;  %p7257_p2 = por %p7256_p1, %p7255_p0 }
 0x299   : > { %10511 = vst [vmem:[#allocation22_spill] sm:$0xff] %v8783_v63  ;;  %v4909_v51 = vmax.f32 %v4397_v7, %v4653_v62  ;;  %v3786_v17 = vadd.f32 %v3785_v20, %v3032_v53  ;;  %v3036_v26 = vpop.f32.mrf.mxu1  ;;  %4033 = vmatprep.mubr.bf16.mxu0 %v10455_v58  ;;  %v4654_v15 = vmul.f32 0.2, %v4398_v35  ;;  %v4399_v9 = vadd.f32 %v8536_v42, %v3782_v54 }
 0x29a   : > { %v3787_v55 = vpop.f32.mrf.mxu0  ;;  %p7251_p13 = pneg %p7250_p12 }
 0x29b   : > { %v8791_v56 = vmax.f32 %v4908_v14, %v4909_v51  ;;  %v4400_v48 = vadd.f32 %v8518_v52, %v3786_v17  ;;  %v3788_v34 = vadd.f32 %v3787_v55, %v3034_v32  ;;  %v8794_v40 = vpop.permute.xlu1 %2553  ;;  %v3038_v47 = vpop.f32.mrf.mxu1  ;;  %v4655_v11 = vmul.f32 0.2, %v4399_v9 }
 0x29c   : > { %v2687_v7 = vsel %vm2614_vm2, %v10514_v30, %v8794_v40  ;;  %v3789_v19 = vpop.f32.mrf.mxu0  ;;  %v4910_v20 = vmax.f32 %v4398_v35, %v4654_v15  ;;  %p7258_p3 = pnand %p7257_p2, %p7251_p13 }
 0x29d   : > { %10513 = vst [vmem:[#allocation14_spill] sm:$0xff] %v8791_v56  ;;  %v4656_v53 = vmul.f32 0.2, %v4400_v48  ;;  %v4401_v33 = vadd.f32 %v8536_v42, %v3788_v34  ;;  %v3790_v62 = vadd.f32 %v3789_v19, %v3036_v26  ;;  %v3042_v54 = vpop.f32.mrf.mxu1  ;;  %6603 = vmatmul.mubr.msk.bf16.gmra.mxu1 %vm2809_vm3, %v2687_v7  ;;  %v4911_v29 = vmax.f32 %v4399_v9, %v4655_v11 }
 0x29e   : > { %v3791_v14 = vpop.f32.mrf.mxu0  ;;  %3290 = vmatprep.mubr.bf16.mxu1 %v10455_v58 }
 0x29f   : > { %v4657_v32 = vmul.f32 0.2, %v4401_v33  ;;  %v4402_v51 = vadd.f32 %v8518_v52, %v3790_v62  ;;  %v3792_v17 = vadd.f32 %v3791_v14, %v3038_v47  ;;  %v3044_v55 = vpop.f32.mrf.mxu1  ;;  %v8803_v31 = vmax.f32 %v4910_v20, %v4911_v29 }
 0x2a0   : > { %v4912_v30 = vmax.f32 %v4400_v48, %v4656_v53  ;;  %v3795_v1 = vpop.f32.mrf.mxu0  ;;  %4034 = vmatmul.mubr.bf16.gmra.mxu0 %v10516_v0 }
 0x2a1   : > { %10515 = vst [vmem:[#allocation24_spill] sm:$0xff] %v8803_v31  ;;  %v4913_v26 = vmax.f32 %v4401_v33, %v4657_v32  ;;  %v4658_v34 = vmul.f32 0.2, %v4402_v51  ;;  %v4403_v7 = vadd.f32 %v8536_v42, %v3792_v17  ;;  %v3796_v35 = vadd.f32 %v3795_v1, %v3042_v54  ;;  %v3046_v15 = vpop.f32.mrf.mxu1  ;;  %4043 = vmatprep.mubr.bf16.mxu0 %v10455_v58  ;;  %v10518_v33 = vld [vmem:[#allocation26_spill] sm:$0xff] }
 0x2a2   : > { %v3797_v9 = vpop.f32.mrf.mxu0 }
 0x2a3   : > { %v8810_v47 = vmax.f32 %v4912_v30, %v4913_v26  ;;  %v4659_v19 = vmul.f32 0.2, %v4403_v7  ;;  %v4404_v48 = vadd.f32 %v8518_v52, %v3796_v35  ;;  %v3048_v53 = vpop.f32.mrf.mxu1  ;;  %v8813_v62 = vpop.permute.xlu0 %2555  ;;  %v3798_v0 = vadd.f32 %v3797_v9, %v3044_v55 }
 0x2a4   : > { %v2689_v1 = vsel %vm2614_vm2, %v10518_v33, %v8813_v62  ;;  %v3799_v54 = vpop.f32.mrf.mxu0  ;;  %v4914_v20 = vmax.f32 %v4402_v51, %v4658_v34  ;;  %v10520_v51 = vld [vmem:[#allocation16_spill] sm:$0xff] }
 0x2a5   : > { %10517 = vst [vmem:[#allocation15_spill] sm:$0xff] %v8810_v47  ;;  %v4915_v29 = vmax.f32 %v4403_v7, %v4659_v19  ;;  %v3800_v14 = vadd.f32 %v3799_v54, %v3046_v15  ;;  %v3052_v32 = vpop.f32.mrf.mxu1  ;;  %6604 = vmatmul.mubr.msk.bf16.gmra.mxu1 %vm2809_vm3, %v2689_v1  ;;  %v4660_v17 = vmul.f32 0.2, %v4404_v48  ;;  %v4405_v30 = vadd.f32 %v8536_v42, %v3798_v0 }
 0x2a6   : > { %v3801_v26 = vpop.f32.mrf.mxu0  ;;  %3300 = vmatprep.mubr.bf16.mxu1 %v10455_v58 }
 0x2a7   : > { %v8821_v35 = vmax.f32 %v4914_v20, %v4915_v29  ;;  %v4406_v55 = vadd.f32 %v8518_v52, %v3800_v14  ;;  %v3802_v9 = vadd.f32 %v3801_v26, %v3048_v53  ;;  %v3054_v11 = vpop.f32.mrf.mxu1  ;;  %v4661_v33 = vmul.f32 0.2, %v4405_v30 }
 0x2a8   : > { %v3805_v16 = vpop.f32.mrf.mxu0  ;;  %4044 = vmatmul.mubr.bf16.gmra.mxu0 %v10520_v51  ;;  %v4916_v1 = vmax.f32 %v4404_v48, %v4660_v17  ;;  %v7196_v48 = vld [vmem:[%s10339_s6 + $0x48] sm:$0xff]  }
 0x2a9   : > { %10519 = vst [vmem:[#allocation26_spill] sm:$0xff] %v8821_v35  ;;  %v4662_v34 = vmul.f32 0.2, %v4406_v55  ;;  %v4407_v7 = vadd.f32 %v8536_v42, %v3802_v9  ;;  %v3806_v15 = vadd.f32 %v3805_v16, %v3052_v32  ;;  %v3056_v19 = vpop.f32.mrf.mxu1  ;;  %4053 = vmatprep.mubr.bf16.mxu0 %v10455_v58  ;;  %v4917_v54 = vmax.f32 %v4405_v30, %v4661_v33  ;;  %v10522_v16 = vld [vmem:[#allocation28_spill] sm:$0xff] }
 0x2aa   : > { %v3807_v20 = vpop.f32.mrf.mxu0  ;;  %6733 = vmatprep.subr.bf16.mxu1 %v7196_v48 }
 0x2ab   : > { %v4663_v29 = vmul.f32 0.2, %v4407_v7  ;;  %v4408_v53 = vadd.f32 %v8518_v52, %v3806_v15  ;;  %v3808_v14 = vadd.f32 %v3807_v20, %v3054_v11  ;;  %v8830_v26 = vpop.permute.xlu1 %2557  ;;  %v3058_v51 = vpop.f32.mrf.mxu1  ;;  %v8832_v25 = vmax.f32 %v4916_v1, %v4917_v54 }
 0x2ac   : > { %v4918_v9 = vmax.f32 %v4406_v55, %v4662_v34  ;;  %v2691_v32 = vsel %vm2614_vm2, %v10522_v16, %v8830_v26  ;;  %v3809_v56 = vpop.f32.mrf.mxu0 }
 0x2ad   : > { %10521 = vst [vmem:[#allocation16_spill] sm:$0xff] %v8832_v25  ;;  %v4919_v17 = vmax.f32 %v4407_v7, %v4663_v29  ;;  %v4664_v30 = vmul.f32 0.2, %v4408_v53  ;;  %v4409_v33 = vadd.f32 %v8536_v42, %v3808_v14  ;;  %v3810_v11 = vadd.f32 %v3809_v56, %v3056_v19  ;;  %v3062_v15 = vpop.f32.mrf.mxu1  ;;  %6605 = vmatmul.mubr.msk.bf16.gmra.mxu1 %vm2809_vm3, %v2691_v32  ;;  %v7197_v7 = vld [vmem:[%s10339_s6 + $0x8] sm:$0xff]   ;;  %v10524_v19 = vld [vmem:[#allocation17_spill] sm:$0xff] }
 0x2ae   : > { %v3811_v1 = vpop.f32.mrf.mxu0  ;;  %3310 = vmatprep.mubr.bf16.mxu1 %v10455_v58  ;;  %6734 = vmatpush3.bf16.msra.mxu1 %v7197_v7 }
 0x2af   : > { %v8843_v55 = vmax.f32 %v4918_v9, %v4919_v17  ;;  %v4665_v34 = vmul.f32 0.2, %v4409_v33  ;;  %v4410_v54 = vadd.f32 %v8518_v52, %v3810_v11  ;;  %v3064_v20 = vpop.f32.mrf.mxu1  ;;  %v4920_v29 = vmax.f32 %v4408_v53, %v4664_v30 }
 0x2b0   : > { %v3812_v14 = vadd.f32 %v3811_v1, %v3058_v51  ;;  %v3815_v56 = vpop.f32.mrf.mxu0  ;;  %4054 = vmatmul.mubr.bf16.gmra.mxu0 %v10524_v19 }
 0x2b1   : > { %10523 = vst [vmem:[#allocation28_spill] sm:$0xff] %v8843_v55  ;;  %v4921_v16 = vmax.f32 %v4409_v33, %v4665_v34  ;;  %v3816_v32 = vadd.f32 %v3815_v56, %v3062_v15  ;;  %v3066_v0 = vpop.f32.mrf.mxu1  ;;  %4063 = vmatprep.mubr.bf16.mxu0 %v10455_v58  ;;  %v4666_v48 = vmul.f32 0.2, %v4410_v54  ;;  %v10525_v15 = vld [vmem:[#allocation30_spill] sm:$0xff] }
 0x2b2   : > { %v4411_v17 = vadd.f32 %v8536_v42, %v3812_v14  ;;  %v3817_v11 = vpop.f32.mrf.mxu0 }
 0x2b3   : > { %v4412_v47 = vadd.f32 %v8518_v52, %v3816_v32  ;;  %v3818_v53 = vadd.f32 %v3817_v11, %v3064_v20  ;;  %v3068_v51 = vpop.f32.mrf.mxu1  ;;  %v8855_v30 = vpop.permute.xlu0 %2559  ;;  %v8857_v1 = vmax.f32 %v4920_v29, %v4921_v16  ;;  %v4922_v14 = vmax.f32 %v4410_v54, %v4666_v48 }
 0x2b4   : > { %v4667_v33 = vmul.f32 0.2, %v4411_v17  ;;  %v2693_v34 = vsel %vm2614_vm2, %v10525_v15, %v8855_v30  ;;  %v3819_v7 = vpop.f32.mrf.mxu0  ;;  %v10526_v15 = vld [vmem:[#allocation18_spill] sm:$0xff] }
 0x2b5   : > { %v4413_v56 = vadd.f32 %v8536_v42, %v3818_v53  ;;  %v3820_v19 = vadd.f32 %v3819_v7, %v3066_v0  ;;  %v3072_v9 = vpop.f32.mrf.mxu1  ;;  %6606 = vmatmul.mubr.msk.bf16.gmra.mxu1 %vm2809_vm3, %v2693_v34  ;;  %v4668_v20 = vmul.f32 0.2, %v4412_v47 }
 0x2b6   : > { %v4923_v32 = vmax.f32 %v4411_v17, %v4667_v33  ;;  %v3821_v11 = vpop.f32.mrf.mxu0  ;;  %3320 = vmatprep.mubr.bf16.mxu1 %v10455_v58 }
 0x2b7   : > { %v4669_v29 = vmul.f32 0.2, %v4413_v56  ;;  %v4414_v16 = vadd.f32 %v8518_v52, %v3820_v19  ;;  %v3822_v25 = vadd.f32 %v3821_v11, %v3068_v51  ;;  %v3074_v55 = vpop.f32.mrf.mxu1  ;;  %v4924_v48 = vmax.f32 %v4412_v47, %v4668_v20 }
 0x2b8   : > { %v3825_v35 = vpop.f32.mrf.mxu0  ;;  %4064 = vmatmul.mubr.bf16.gmra.mxu0 %v10526_v15  ;;  %v8867_v31 = vmax.f32 %v4922_v14, %v4923_v32 }
 0x2b9   : > { %v4925_v0 = vmax.f32 %v4413_v56, %v4669_v29  ;;  %v4415_v53 = vadd.f32 %v8536_v42, %v3822_v25  ;;  %v3826_v34 = vadd.f32 %v3825_v35, %v3072_v9  ;;  %v3076_v54 = vpop.f32.mrf.mxu1  ;;  %4073 = vmatprep.mubr.bf16.mxu0 %v10455_v58  ;;  %v4670_v17 = vmul.f32 0.2, %v4414_v16  ;;  %v10527_v56 = vld [vmem:[#allocation32_spill] sm:$0xff] }
 0x2ba   : > { %v3827_v33 = vpop.f32.mrf.mxu0 }
 0x2bb   : > { %v4671_v51 = vmul.f32 0.2, %v4415_v53  ;;  %v4416_v19 = vadd.f32 %v8518_v52, %v3826_v34  ;;  %v3828_v11 = vadd.f32 %v3827_v33, %v3074_v55  ;;  %v8874_v15 = vpop.permute.xlu1 %2561  ;;  %v3078_v14 = vpop.f32.mrf.mxu1  ;;  %v8879_v9 = vmax.f32 %v4924_v48, %v4925_v0  ;;  %v10529_v0 = vld [vmem:[#allocation19_spill] sm:$0xff] }
 0x2bc   : > { %v2695_v25 = vsel %vm2614_vm2, %v10527_v56, %v8874_v15  ;;  %v3829_v35 = vpop.f32.mrf.mxu0  ;;  %v4926_v7 = vmax.f32 %v4414_v16, %v4670_v17 }
 0x2bd   : > { %10528 = vst [vmem:[#allocation17_spill] sm:$0xff] %v8879_v9  ;;  %v4927_v47 = vmax.f32 %v4415_v53, %v4671_v51  ;;  %v4417_v32 = vadd.f32 %v8536_v42, %v3828_v11  ;;  %v3830_v20 = vadd.f32 %v3829_v35, %v3076_v54  ;;  %v3082_v29 = vpop.f32.mrf.mxu1  ;;  %6607 = vmatmul.mubr.msk.bf16.gmra.mxu1 %vm2809_vm3, %v2695_v25  ;;  %v4672_v34 = vmul.f32 0.2, %v4416_v19 }
 0x2be   : > { %v3831_v55 = vpop.f32.mrf.mxu0  ;;  %3330 = vmatprep.mubr.bf16.mxu1 %v10455_v58 }
 0x2bf   : > { %v4673_v33 = vmul.f32 0.2, %v4417_v32  ;;  %v4418_v49 = vadd.f32 %v8518_v52, %v3830_v20  ;;  %v3832_v63 = vadd.f32 %v3831_v55, %v3078_v14  ;;  %v3084_v56 = vpop.f32.mrf.mxu1  ;;  %v8886_v53 = vmax.f32 %v4926_v7, %v4927_v47  ;;  %v10531_v47 = vld [vmem:[#allocation34_spill] sm:$0xff] }
 0x2c0   : > { %v3835_v44 = vpop.f32.mrf.mxu0  ;;  %4074 = vmatmul.mubr.bf16.gmra.mxu0 %v10529_v0  ;;  %v4928_v16 = vmax.f32 %v4416_v19, %v4672_v34 }
 0x2c1   : > { %10530 = vst [vmem:[#allocation30_spill] sm:$0xff] %v8886_v53  ;;  %v4929_v48 = vmax.f32 %v4417_v32, %v4673_v33  ;;  %v4419_v54 = vadd.f32 %v8536_v42, %v3832_v63  ;;  %v3836_v51 = vadd.f32 %v3835_v44, %v3082_v29  ;;  %v3086_v11 = vpop.f32.mrf.mxu1  ;;  %4083 = vmatprep.mubr.bf16.mxu0 %v10455_v58  ;;  %v4674_v17 = vmul.f32 0.2, %v4418_v49 }
 0x2c2   : > { %v3837_v25 = vpop.f32.mrf.mxu0 }
 0x2c3   : > { %v4675_v14 = vmul.f32 0.2, %v4419_v54  ;;  %v4420_v20 = vadd.f32 %v8518_v52, %v3836_v51  ;;  %v3838_v55 = vadd.f32 %v3837_v25, %v3084_v56  ;;  %v3088_v0 = vpop.f32.mrf.mxu1  ;;  %v8893_v7 = vpop.permute.xlu0 %2563  ;;  %v8898_v32 = vmax.f32 %v4928_v16, %v4929_v48  ;;  %v10533_v48 = vld [vmem:[#allocation21_spill] sm:$0xff] }
 0x2c4   : > { %v2697_v44 = vsel %vm2614_vm2, %v10531_v47, %v8893_v7  ;;  %v3839_v63 = vpop.f32.mrf.mxu0  ;;  %v4930_v35 = vmax.f32 %v4418_v49, %v4674_v17 }
 0x2c5   : > { %10532 = vst [vmem:[#allocation18_spill] sm:$0xff] %v8898_v32  ;;  %v4931_v19 = vmax.f32 %v4419_v54, %v4675_v14  ;;  %v4421_v29 = vadd.f32 %v8536_v42, %v3838_v55  ;;  %v3840_v34 = vadd.f32 %v3839_v63, %v3086_v11  ;;  %v3092_v33 = vpop.f32.mrf.mxu1  ;;  %6608 = vmatmul.mubr.msk.bf16.gmra.mxu1 %vm2809_vm3, %v2697_v44  ;;  %v4676_v51 = vmul.f32 0.2, %v4420_v20 }
 0x2c6   : > { %v3841_v56 = vpop.f32.mrf.mxu0  ;;  %3340 = vmatprep.mubr.bf16.mxu1 %v10455_v58 }
 0x2c7   : > { %v4677_v25 = vmul.f32 0.2, %v4421_v29  ;;  %v4422_v21 = vadd.f32 %v8518_v52, %v3840_v34  ;;  %v3842_v38 = vadd.f32 %v3841_v56, %v3088_v0  ;;  %v3094_v47 = vpop.f32.mrf.mxu1  ;;  %v8905_v54 = vmax.f32 %v4930_v35, %v4931_v19  ;;  %v10535_v19 = vld [vmem:[#allocation36_spill] sm:$0xff] }
 0x2c8   : > { %v3845_v24 = vpop.f32.mrf.mxu0  ;;  %4084 = vmatmul.mubr.bf16.gmra.mxu0 %v10533_v48  ;;  %v4932_v49 = vmax.f32 %v4420_v20, %v4676_v51 }
 0x2c9   : > { %10534 = vst [vmem:[#allocation32_spill] sm:$0xff] %v8905_v54  ;;  %v4933_v16 = vmax.f32 %v4421_v29, %v4677_v25  ;;  %v4423_v11 = vadd.f32 %v8536_v42, %v3842_v38  ;;  %v3846_v14 = vadd.f32 %v3845_v24, %v3092_v33  ;;  %v3096_v55 = vpop.f32.mrf.mxu1  ;;  %4093 = vmatprep.mubr.bf16.mxu0 %v10455_v58  ;;  %v4678_v17 = vmul.f32 0.2, %v4422_v21 }
 0x2ca   : > { %v3847_v44 = vpop.f32.mrf.mxu0 }
 0x2cb   : > { %v4679_v0 = vmul.f32 0.2, %v4423_v11  ;;  %v4424_v34 = vadd.f32 %v8518_v52, %v3846_v14  ;;  %v3848_v56 = vadd.f32 %v3847_v44, %v3094_v47  ;;  %v8912_v48 = vpop.permute.xlu1 %2565  ;;  %v3098_v35 = vpop.f32.mrf.mxu1  ;;  %v8917_v29 = vmax.f32 %v4932_v49, %v4933_v16  ;;  %v10537_v16 = vld [vmem:[#allocation23_spill] sm:$0xff] }
 0x2cc   : > { %v2699_v38 = vsel %vm2614_vm2, %v10535_v19, %v8912_v48  ;;  %v3849_v24 = vpop.f32.mrf.mxu0  ;;  %v4934_v63 = vmax.f32 %v4422_v21, %v4678_v17 }
 0x2cd   : > { %10536 = vst [vmem:[#allocation19_spill] sm:$0xff] %v8917_v29  ;;  %v4935_v20 = vmax.f32 %v4423_v11, %v4679_v0  ;;  %v4425_v33 = vadd.f32 %v8536_v42, %v3848_v56  ;;  %v3850_v51 = vadd.f32 %v3849_v24, %v3096_v55  ;;  %v3102_v25 = vpop.f32.mrf.mxu1  ;;  %6609 = vmatmul.mubr.msk.bf16.gmra.mxu1 %vm2809_vm3, %v2699_v38  ;;  %v4680_v14 = vmul.f32 0.2, %v4424_v34 }
 0x2ce   : > { %v3851_v47 = vpop.f32.mrf.mxu0  ;;  %3350 = vmatprep.mubr.bf16.mxu1 %v10455_v58 }
 0x2cf   : > { %v4681_v44 = vmul.f32 0.2, %v4425_v33  ;;  %v4426_v32 = vadd.f32 %v8518_v52, %v3850_v51  ;;  %v3852_v54 = vadd.f32 %v3851_v47, %v3098_v35  ;;  %v3104_v19 = vpop.f32.mrf.mxu1  ;;  %v8924_v11 = vmax.f32 %v4934_v63, %v4935_v20  ;;  %v10539_v20 = vld [vmem:[#allocation38_spill] sm:$0xff] }
 0x2d0   : > { %v3855_v10 = vpop.f32.mrf.mxu0  ;;  %4094 = vmatmul.mubr.bf16.gmra.mxu0 %v10537_v16  ;;  %v4936_v21 = vmax.f32 %v4424_v34, %v4680_v14 }
 0x2d1   : > { %10538 = vst [vmem:[#allocation34_spill] sm:$0xff] %v8924_v11  ;;  %v4937_v49 = vmax.f32 %v4425_v33, %v4681_v44  ;;  %v4427_v55 = vadd.f32 %v8536_v42, %v3852_v54  ;;  %v3856_v0 = vadd.f32 %v3855_v10, %v3102_v25  ;;  %v3106_v56 = vpop.f32.mrf.mxu1  ;;  %4103 = vmatprep.mubr.bf16.mxu0 %v10455_v58  ;;  %v4682_v17 = vmul.f32 0.2, %v4426_v32 }
 0x2d2   : > { %v3857_v38 = vpop.f32.mrf.mxu0 }
 0x2d3   : > { %v4683_v35 = vmul.f32 0.2, %v4427_v55  ;;  %v4428_v51 = vadd.f32 %v8518_v52, %v3856_v0  ;;  %v3858_v47 = vadd.f32 %v3857_v38, %v3104_v19  ;;  %v3108_v16 = vpop.f32.mrf.mxu1  ;;  %v8931_v63 = vpop.permute.xlu0 %2567  ;;  %v8936_v33 = vmax.f32 %v4936_v21, %v4937_v49  ;;  %v10541_v49 = vld [vmem:[#allocation25_spill] sm:$0xff] }
 0x2d4   : > { %v2701_v10 = vsel %vm2614_vm2, %v10539_v20, %v8931_v63  ;;  %v3859_v54 = vpop.f32.mrf.mxu0  ;;  %v4938_v24 = vmax.f32 %v4426_v32, %v4682_v17 }
 0x2d5   : > { %10540 = vst [vmem:[#allocation21_spill] sm:$0xff] %v8936_v33  ;;  %v4939_v34 = vmax.f32 %v4427_v55, %v4683_v35  ;;  %v4429_v25 = vadd.f32 %v8536_v42, %v3858_v47  ;;  %v3860_v14 = vadd.f32 %v3859_v54, %v3106_v56  ;;  %v3112_v44 = vpop.f32.mrf.mxu1  ;;  %6610 = vmatmul.mubr.msk.bf16.gmra.mxu1 %vm2809_vm3, %v2701_v10  ;;  %v4684_v0 = vmul.f32 0.2, %v4428_v51 }
 0x2d6   : > { %v3861_v19 = vpop.f32.mrf.mxu0  ;;  %3360 = vmatprep.mubr.bf16.mxu1 %v10455_v58 }
 0x2d7   : > { %v4685_v38 = vmul.f32 0.2, %v4429_v25  ;;  %v4430_v29 = vadd.f32 %v8518_v52, %v3860_v14  ;;  %v3862_v11 = vadd.f32 %v3861_v19, %v3108_v16  ;;  %v3114_v20 = vpop.f32.mrf.mxu1  ;;  %v8943_v55 = vmax.f32 %v4938_v24, %v4939_v34  ;;  %v10543_v34 = vld [vmem:[#allocation40_spill] sm:$0xff] }
 0x2d8   : > { %v3865_v5 = vpop.f32.mrf.mxu0  ;;  %4104 = vmatmul.mubr.bf16.gmra.mxu0 %v10541_v49  ;;  %v4940_v32 = vmax.f32 %v4428_v51, %v4684_v0 }
 0x2d9   : > { %10542 = vst [vmem:[#allocation36_spill] sm:$0xff] %v8943_v55  ;;  %v4941_v21 = vmax.f32 %v4429_v25, %v4685_v38  ;;  %v4431_v56 = vadd.f32 %v8536_v42, %v3862_v11  ;;  %v3866_v35 = vadd.f32 %v3865_v5, %v3112_v44  ;;  %v3116_v47 = vpop.f32.mrf.mxu1  ;;  %4113 = vmatprep.mubr.bf16.mxu0 %v10455_v58  ;;  %v4686_v17 = vmul.f32 0.2, %v4430_v29 }
 0x2da   : > { %v3867_v10 = vpop.f32.mrf.mxu0 }
 0x2db   : > { %v4687_v16 = vmul.f32 0.2, %v4431_v56  ;;  %v4432_v14 = vadd.f32 %v8518_v52, %v3866_v35  ;;  %v3868_v19 = vadd.f32 %v3867_v10, %v3114_v20  ;;  %v8950_v49 = vpop.permute.xlu1 %2569  ;;  %v3118_v24 = vpop.f32.mrf.mxu1  ;;  %v8955_v25 = vmax.f32 %v4940_v32, %v4941_v21  ;;  %v10545_v21 = vld [vmem:[#allocation27_spill] sm:$0xff] }
 0x2dc   : > { %v2703_v5 = vsel %vm2614_vm2, %v10543_v34, %v8950_v49  ;;  %v3869_v11 = vpop.f32.mrf.mxu0  ;;  %v4942_v54 = vmax.f32 %v4430_v29, %v4686_v17 }
 0x2dd   : > { %10544 = vst [vmem:[#allocation23_spill] sm:$0xff] %v8955_v25  ;;  %v4943_v51 = vmax.f32 %v4431_v56, %v4687_v16  ;;  %v4433_v44 = vadd.f32 %v8536_v42, %v3868_v19  ;;  %v3870_v0 = vadd.f32 %v3869_v11, %v3116_v47  ;;  %v3122_v38 = vpop.f32.mrf.mxu1  ;;  %6611 = vmatmul.mubr.msk.bf16.gmra.mxu1 %vm2809_vm3, %v2703_v5  ;;  %v4688_v35 = vmul.f32 0.2, %v4432_v14 }
 0x2de   : > { %v3871_v20 = vpop.f32.mrf.mxu0  ;;  %3370 = vmatprep.mubr.bf16.mxu1 %v10455_v58 }
 0x2df   : > { %v4689_v10 = vmul.f32 0.2, %v4433_v44  ;;  %v4434_v33 = vadd.f32 %v8518_v52, %v3870_v0  ;;  %v3872_v55 = vadd.f32 %v3871_v20, %v3118_v24  ;;  %v3124_v34 = vpop.f32.mrf.mxu1  ;;  %v8962_v56 = vmax.f32 %v4942_v54, %v4943_v51 }
 0x2e0   : > { %v3875_v9 = vpop.f32.mrf.mxu0  ;;  %4114 = vmatmul.mubr.bf16.gmra.mxu0 %v10545_v21  ;;  %v4944_v17 = vmax.f32 %v4432_v14, %v4688_v35  ;;  %v10548_v14 = vld [vmem:[#allocation42_spill] sm:$0xff] }
 0x2e1   : > { %10546 = vst [vmem:[#allocation38_spill] sm:$0xff] %v8962_v56  ;;  %v4945_v32 = vmax.f32 %v4433_v44, %v4689_v10  ;;  %v4690_v47 = vmul.f32 0.2, %v4434_v33  ;;  %v4435_v16 = vadd.f32 %v8536_v42, %v3872_v55  ;;  %v3876_v19 = vadd.f32 %v3875_v9, %v3122_v38  ;;  %v3126_v29 = vpop.f32.mrf.mxu1  ;;  %4123 = vmatprep.mubr.bf16.mxu0 %v10455_v58 }
 0x2e2   : > { %v3877_v5 = vpop.f32.mrf.mxu0 }
 0x2e3   : > { %v4691_v24 = vmul.f32 0.2, %v4435_v16  ;;  %v4436_v0 = vadd.f32 %v8518_v52, %v3876_v19  ;;  %v3878_v20 = vadd.f32 %v3877_v5, %v3124_v34  ;;  %v3128_v21 = vpop.f32.mrf.mxu1  ;;  %v4946_v54 = vmax.f32 %v4434_v33, %v4690_v47  ;;  %v10550_v5 = vld [vmem:[#allocation29_spill] sm:$0xff] }
 0x2e4   : > { %v8969_v51 = vpop.permute.xlu0 %2571  ;;  %v3879_v44 = vpop.f32.mrf.mxu0  ;;  %v8971_v10 = vmax.f32 %v4944_v17, %v4945_v32 }
 0x2e5   : > { %v4947_v9 = vmax.f32 %v4435_v16, %v4691_v24  ;;  %v4692_v55 = vmul.f32 0.2, %v4436_v0  ;;  %v4437_v38 = vadd.f32 %v8536_v42, %v3878_v20  ;;  %v2705_v35 = vsel %vm2614_vm2, %v10548_v14, %v8969_v51  ;;  %v3132_v11 = vpop.f32.mrf.mxu1  ;;  %v8983_v24 = vpop.permute.xlu1 %2573 }
 0x2e6   : > { %10547 = vst [vmem:[#allocation25_spill] sm:$0xff] %v8971_v10  ;;  %v3880_v25 = vadd.f32 %v3879_v44, %v3126_v29  ;;  %6612 = vmatmul.mubr.msk.bf16.gmra.mxu1 %vm2809_vm3, %v2705_v35  ;;  %v3881_v34 = vpop.f32.mrf.mxu0 }
 0x2e7   : > { %v4693_v19 = vmul.f32 0.2, %v4437_v38  ;;  %v3882_v33 = vadd.f32 %v3881_v34, %v3128_v21  ;;  %v3134_v47 = vpop.f32.mrf.mxu1  ;;  %3380 = vmatprep.mubr.bf16.mxu1 %v10455_v58  ;;  %v8979_v32 = vmax.f32 %v4946_v54, %v4947_v9  ;;  %v4948_v20 = vmax.f32 %v4436_v0, %v4692_v55  ;;  %v7198_v0 = vld [vmem:[%s10339_s6 + $0x40] sm:$0xff]  }
 0x2e8   : > { %v4438_v16 = vadd.f32 %v8518_v52, %v3880_v25  ;;  %v3885_v17 = vpop.f32.mrf.mxu0  ;;  %4124 = vmatmul.mubr.bf16.gmra.mxu0 %v10550_v5  ;;  %6735 = vmatprep.subr.bf16.mxu1 %v7198_v0 }
 0x2e9   : > { %10549 = vst [vmem:[#allocation40_spill] sm:$0xff] %v8979_v32  ;;  %v4949_v14 = vmax.f32 %v4437_v38, %v4693_v19  ;;  %v4439_v29 = vadd.f32 %v8536_v42, %v3882_v33  ;;  %v3886_v44 = vadd.f32 %v3885_v17, %v3132_v11  ;;  %v3136_v35 = vpop.f32.mrf.mxu1  ;;  %4133 = vmatprep.mubr.bf16.mxu0 %v10455_v58 }
 0x2ea   : > { %v4694_v21 = vmul.f32 0.2, %v4438_v16  ;;  %v3887_v34 = vpop.f32.mrf.mxu0  ;;  %v2707_v11 = vsel %vm2614_vm2, %v8544_v59, %v8983_v24 }
 0x2eb   : > { %v4695_v9 = vmul.f32 0.2, %v4439_v29  ;;  %v4440_v25 = vadd.f32 %v8518_v52, %v3886_v44  ;;  %v3888_v56 = vadd.f32 %v3887_v34, %v3134_v47  ;;  %v3138_v5 = vpop.f32.mrf.mxu1  ;;  %v8993_v55 = vmax.f32 %v4948_v20, %v4949_v14  ;;  %v7199_v47 = vld [vmem:[%s10339_s6] sm:$0xff]  }
 0x2ec   : > { %v3889_v38 = vpop.f32.mrf.mxu0  ;;  %v4950_v19 = vmax.f32 %v4438_v16, %v4694_v21  ;;  %6736 = vmatpush3.bf16.msra.mxu1 %v7199_v47  ;;  %v9008_v21 = vpop.permute.xlu0 %2575 }
 0x2ed   : > { %10551 = vst [vmem:[#allocation27_spill] sm:$0xff] %v8993_v55  ;;  %v4951_v33 = vmax.f32 %v4439_v29, %v4695_v9  ;;  %v4696_v17 = vmul.f32 0.2, %v4440_v25  ;;  %v4441_v54 = vadd.f32 %v8536_v42, %v3888_v56  ;;  %v3142_v10 = vpop.f32.mrf.mxu1  ;;  %v3890_v44 = vadd.f32 %v3889_v38, %v3136_v35  ;;  %v10553_v29 = vld [vmem:[#allocation31_spill] sm:$0xff] }
 0x2ee   : > { %6613 = vmatmul.mubr.msk.bf16.gmra.mxu1 %vm2809_vm3, %v2707_v11  ;;  %v3891_v20 = vpop.f32.mrf.mxu0 }
 0x2ef   : > { %v4697_v14 = vmul.f32 0.2, %v4441_v54  ;;  %v3892_v34 = vadd.f32 %v3891_v20, %v3138_v5  ;;  %v3144_v32 = vpop.f32.mrf.mxu1  ;;  %3390 = vmatprep.mubr.bf16.mxu1 %v10455_v58  ;;  %v9004_v59 = vmax.f32 %v4950_v19, %v4951_v33  ;;  %v4442_v56 = vadd.f32 %v8518_v52, %v3890_v44 }
 0x2f0   : > { %v3895_v16 = vpop.f32.mrf.mxu0  ;;  %4134 = vmatmul.mubr.bf16.gmra.mxu0 %v10553_v29  ;;  %v4952_v9 = vmax.f32 %v4440_v25, %v4696_v17 }
 0x2f1   : > { %10552 = vst [vmem:[#allocation42_spill] sm:$0xff] %v9004_v59  ;;  %v4953_v35 = vmax.f32 %v4441_v54, %v4697_v14  ;;  %v4443_v0 = vadd.f32 %v8536_v42, %v3892_v34  ;;  %v3896_v11 = vadd.f32 %v3895_v16, %v3142_v10  ;;  %v3146_v38 = vpop.f32.mrf.mxu1  ;;  %4143 = vmatprep.mubr.bf16.mxu0 %v10455_v58  ;;  %v4698_v5 = vmul.f32 0.2, %v4442_v56 }
 0x2f2   : > { %v3897_v20 = vpop.f32.mrf.mxu0  ;;  %v2709_v54 = vsel %vm2614_vm2, %v8610_v3, %v9008_v21 }
 0x2f3   : > { %v9014_v33 = vmax.f32 %v4952_v9, %v4953_v35  ;;  %v4699_v47 = vmul.f32 0.2, %v4443_v0  ;;  %v4444_v44 = vadd.f32 %v8518_v52, %v3896_v11  ;;  %v3898_v29 = vadd.f32 %v3897_v20, %v3144_v32  ;;  %v3148_v53 = vpop.f32.mrf.mxu1 }
 0x2f4   : > { %v3899_v10 = vpop.f32.mrf.mxu0  ;;  %v4954_v25 = vmax.f32 %v4442_v56, %v4698_v5  ;;  %v10556_v56 = vld [vmem:[#allocation33_spill] sm:$0xff] }
 0x2f5   : > { %10554 = vst [vmem:[#allocation29_spill] sm:$0xff] %v9014_v33  ;;  %v4955_v17 = vmax.f32 %v4443_v0, %v4699_v47  ;;  %v4700_v14 = vmul.f32 0.2, %v4444_v44  ;;  %v4445_v34 = vadd.f32 %v8536_v42, %v3898_v29  ;;  %v3152_v16 = vpop.f32.mrf.mxu1  ;;  %v3900_v6 = vadd.f32 %v3899_v10, %v3146_v38  ;;  %v9027_v0 = vpop.permute.xlu1 %2577 }
 0x2f6   : > { %6614 = vmatmul.mubr.msk.bf16.gmra.mxu1 %vm2809_vm3, %v2709_v54  ;;  %v3901_v9 = vpop.f32.mrf.mxu0  ;;  %v2711_v55 = vsel %vm2614_vm2, %v8668_v27, %v9027_v0 }
 0x2f7   : > { %v9022_v35 = vmax.f32 %v4954_v25, %v4955_v17  ;;  %v4701_v11 = vmul.f32 0.2, %v4445_v34  ;;  %v3902_v32 = vadd.f32 %v3901_v9, %v3148_v53  ;;  %v3154_v20 = vpop.f32.mrf.mxu1  ;;  %3400 = vmatprep.mubr.bf16.mxu1 %v10455_v58  ;;  %v4446_v3 = vadd.f32 %v8518_v52, %v3900_v6 }
 0x2f8   : > { %v3905_v19 = vpop.f32.mrf.mxu0  ;;  %4144 = vmatmul.mubr.bf16.gmra.mxu0 %v10556_v56  ;;  %v4956_v5 = vmax.f32 %v4444_v44, %v4700_v14 }
 0x2f9   : > { %10555 = vst [vmem:[#allocation31_spill] sm:$0xff] %v9022_v35  ;;  %v4957_v47 = vmax.f32 %v4445_v34, %v4701_v11  ;;  %v4447_v29 = vadd.f32 %v8536_v42, %v3902_v32  ;;  %v3156_v54 = vpop.f32.mrf.mxu1  ;;  %4153 = vmatprep.mubr.bf16.mxu0 %v10455_v58  ;;  %v4702_v53 = vmul.f32 0.2, %v4446_v3  ;;  %v3906_v10 = vadd.f32 %v3905_v19, %v3152_v16 }
 0x2fa   : > { %v3907_v25 = vpop.f32.mrf.mxu0 }
 0x2fb   : > { %v9033_v17 = vmax.f32 %v4956_v5, %v4957_v47  ;;  %v4703_v6 = vmul.f32 0.2, %v4447_v29  ;;  %v3908_v9 = vadd.f32 %v3907_v25, %v3154_v20  ;;  %v3158_v56 = vpop.f32.mrf.mxu1  ;;  %v4448_v44 = vadd.f32 %v8518_v52, %v3906_v10 }
 0x2fc   : > { %v3909_v14 = vpop.f32.mrf.mxu0  ;;  %v4958_v34 = vmax.f32 %v4446_v3, %v4702_v53  ;;  %v10559_v3 = vld [vmem:[#allocation35_spill] sm:$0xff] }
 0x2fd   : > { %10557 = vst [vmem:[#allocation33_spill] sm:$0xff] %v9033_v17  ;;  %v4959_v11 = vmax.f32 %v4447_v29, %v4703_v6  ;;  %v4449_v32 = vadd.f32 %v8536_v42, %v3908_v9  ;;  %v3910_v38 = vadd.f32 %v3909_v14, %v3156_v54  ;;  %v3162_v33 = vpop.f32.mrf.mxu1  ;;  %v4704_v19 = vmul.f32 0.2, %v4448_v44  ;;  %v9046_v29 = vpop.permute.xlu0 %2579 }
 0x2fe   : > { %6615 = vmatmul.mubr.msk.bf16.gmra.mxu1 %vm2809_vm3, %v2711_v55  ;;  %v3911_v16 = vpop.f32.mrf.mxu0 }
 0x2ff   : > { %v9041_v5 = vmax.f32 %v4958_v34, %v4959_v11  ;;  %v4705_v20 = vmul.f32 0.2, %v4449_v32  ;;  %v4450_v47 = vadd.f32 %v8518_v52, %v3910_v38  ;;  %v3912_v25 = vadd.f32 %v3911_v16, %v3158_v56  ;;  %v3164_v27 = vpop.f32.mrf.mxu1  ;;  %3410 = vmatprep.mubr.bf16.mxu1 %v10455_v58 }
 0x300   : > { %v3915_v10 = vpop.f32.mrf.mxu0  ;;  %4154 = vmatmul.mubr.bf16.gmra.mxu0 %v10559_v3  ;;  %v4960_v54 = vmax.f32 %v4448_v44, %v4704_v19  ;;  %v2713_v44 = vsel %vm2614_vm2, %v8709_v28, %v9046_v29 }
 0x301   : > { %10558 = vst [vmem:[#allocation45_spill] sm:$0xff] %v9041_v5  ;;  %v4961_v53 = vmax.f32 %v4449_v32, %v4705_v20  ;;  %v4706_v6 = vmul.f32 0.2, %v4450_v47  ;;  %v4451_v55 = vadd.f32 %v8536_v42, %v3912_v25  ;;  %v3166_v9 = vpop.f32.mrf.mxu1  ;;  %4163 = vmatprep.mubr.bf16.mxu0 %v10455_v58  ;;  %v3916_v14 = vadd.f32 %v3915_v10, %v3162_v33 }
 0x302   : > { %v3917_v34 = vpop.f32.mrf.mxu0 }
 0x303   : > { %v9052_v56 = vmax.f32 %v4960_v54, %v4961_v53  ;;  %v4707_v11 = vmul.f32 0.2, %v4451_v55  ;;  %v3918_v16 = vadd.f32 %v3917_v34, %v3164_v27  ;;  %v3168_v3 = vpop.f32.mrf.mxu1  ;;  %v4452_v32 = vadd.f32 %v8518_v52, %v3916_v14 }
 0x304   : > { %v3919_v19 = vpop.f32.mrf.mxu0  ;;  %v4962_v20 = vmax.f32 %v4450_v47, %v4706_v6  ;;  %v10562_v6 = vld [vmem:[#allocation37_spill] sm:$0xff] }
 0x305   : > { %10560 = vst [vmem:[#allocation35_spill] sm:$0xff] %v9052_v56  ;;  %v4963_v25 = vmax.f32 %v4451_v55, %v4707_v11  ;;  %v4453_v33 = vadd.f32 %v8536_v42, %v3918_v16  ;;  %v3920_v10 = vadd.f32 %v3919_v19, %v3166_v9  ;;  %v3172_v35 = vpop.f32.mrf.mxu1  ;;  %v4708_v59 = vmul.f32 0.2, %v4452_v32  ;;  %v9067_v19 = vpop.permute.xlu1 %2581 }
 0x306   : > { %6616 = vmatmul.mubr.msk.bf16.gmra.mxu1 %vm2809_vm3, %v2713_v44  ;;  %v3921_v54 = vpop.f32.mrf.mxu0 }
 0x307   : > { %v9060_v53 = vmax.f32 %v4962_v20, %v4963_v25  ;;  %v4709_v27 = vmul.f32 0.2, %v4453_v33  ;;  %v4454_v34 = vadd.f32 %v8518_v52, %v3920_v10  ;;  %v3922_v38 = vadd.f32 %v3921_v54, %v3168_v3  ;;  %v3174_v28 = vpop.f32.mrf.mxu1  ;;  %3420 = vmatprep.mubr.bf16.mxu1 %v10455_v58 }
 0x308   : > { %v4964_v14 = vmax.f32 %v4452_v32, %v4708_v59  ;;  %v3925_v47 = vpop.f32.mrf.mxu0  ;;  %4164 = vmatmul.mubr.bf16.gmra.mxu0 %v10562_v6 }
 0x309   : > { %10561 = vst [vmem:[#allocation46_spill] sm:$0xff] %v9060_v53  ;;  %v4965_v55 = vmax.f32 %v4453_v33, %v4709_v27  ;;  %v4710_v9 = vmul.f32 0.2, %v4454_v34  ;;  %v4455_v11 = vadd.f32 %v8536_v42, %v3922_v38  ;;  %v3926_v16 = vadd.f32 %v3925_v47, %v3172_v35  ;;  %v3176_v44 = vpop.f32.mrf.mxu1  ;;  %4173 = vmatprep.mubr.bf16.mxu0 %v10455_v58 }
 0x30a   : > { %v3927_v20 = vpop.f32.mrf.mxu0  ;;  %v2715_v35 = vsel %vm2614_vm2, %v8750_v60, %v9067_v19 }
 0x30b   : > { %v9071_v25 = vmax.f32 %v4964_v14, %v4965_v55  ;;  %v4711_v59 = vmul.f32 0.2, %v4455_v11  ;;  %v4456_v32 = vadd.f32 %v8518_v52, %v3926_v16  ;;  %v3178_v10 = vpop.f32.mrf.mxu1  ;;  %v3928_v33 = vadd.f32 %v3927_v20, %v3174_v28 }
 0x30c   : > { %v3929_v54 = vpop.f32.mrf.mxu0  ;;  %v4966_v38 = vmax.f32 %v4454_v34, %v4710_v9  ;;  %v10564_v34 = vld [vmem:[#allocation39_spill] sm:$0xff]  ;;  %v9084_v9 = vpop.permute.xlu0 %2583 }
 0x30d   : > { %10563 = vst [vmem:[#allocation37_spill] sm:$0xff] %v9071_v25  ;;  %v4967_v27 = vmax.f32 %v4455_v11, %v4711_v59  ;;  %v3930_v47 = vadd.f32 %v3929_v54, %v3176_v44  ;;  %v3182_v6 = vpop.f32.mrf.mxu1  ;;  %v4712_v17 = vmul.f32 0.2, %v4456_v32  ;;  %v4457_v5 = vadd.f32 %v8536_v42, %v3928_v33  ;;  %v10568_v25 = vld [vmem:[#allocation43_spill] sm:$0xff] }
 0x30e   : > { %6617 = vmatmul.mubr.msk.bf16.gmra.mxu1 %vm2809_vm3, %v2715_v35  ;;  %v3931_v14 = vpop.f32.mrf.mxu0  ;;  %v2717_v56 = vsel %vm2614_vm2, %v8773_v37, %v9084_v9 }
 0x30f   : > { %v9079_v55 = vmax.f32 %v4966_v38, %v4967_v27  ;;  %v4458_v16 = vadd.f32 %v8518_v52, %v3930_v47  ;;  %v3932_v28 = vadd.f32 %v3931_v14, %v3178_v10  ;;  %v3184_v20 = vpop.f32.mrf.mxu1  ;;  %3430 = vmatprep.mubr.bf16.mxu1 %v10455_v58  ;;  %v4713_v3 = vmul.f32 0.2, %v4457_v5 }
 0x310   : > { %v3935_v60 = vpop.f32.mrf.mxu0  ;;  %4174 = vmatmul.mubr.bf16.gmra.mxu0 %v10564_v34  ;;  %v4968_v10 = vmax.f32 %v4456_v32, %v4712_v17 }
 0x311   : > { %v4714_v11 = vmul.f32 0.2, %v4458_v16  ;;  %v4459_v44 = vadd.f32 %v8536_v42, %v3932_v28  ;;  %v3936_v59 = vadd.f32 %v3935_v60, %v3182_v6  ;;  %v3186_v33 = vpop.f32.mrf.mxu1  ;;  %4183 = vmatprep.mubr.bf16.mxu0 %v10455_v58  ;;  %v4969_v35 = vmax.f32 %v4457_v5, %v4713_v3 }
 0x312   : > { %v3937_v38 = vpop.f32.mrf.mxu0 }
 0x313   : > { %v4715_v27 = vmul.f32 0.2, %v4459_v44  ;;  %v4460_v47 = vadd.f32 %v8518_v52, %v3936_v59  ;;  %v3938_v14 = vadd.f32 %v3937_v38, %v3184_v20  ;;  %v3188_v34 = vpop.f32.mrf.mxu1  ;;  %v9094_v28 = vmax.f32 %v4968_v10, %v4969_v35 }
 0x314   : > { %v4970_v6 = vmax.f32 %v4458_v16, %v4714_v11  ;;  %v3939_v60 = vpop.f32.mrf.mxu0  ;;  %v10567_v11 = vld [vmem:[#allocation41_spill] sm:$0xff] }
 0x315   : > { %10565 = vst [vmem:[#allocation39_spill] sm:$0xff] %v9094_v28  ;;  %v4971_v53 = vmax.f32 %v4459_v44, %v4715_v27  ;;  %v4716_v23 = vmul.f32 0.2, %v4460_v47  ;;  %v4461_v54 = vadd.f32 %v8536_v42, %v3938_v14  ;;  %v3940_v17 = vadd.f32 %v3939_v60, %v3186_v33  ;;  %v3192_v5 = vpop.f32.mrf.mxu1 }
 0x316   : > { %6618 = vmatmul.mubr.msk.bf16.gmra.mxu1 %vm2809_vm3, %v2717_v56  ;;  %v3941_v3 = vpop.f32.mrf.mxu0 }
 0x317   : > { %v9098_v32 = vmax.f32 %v4970_v6, %v4971_v53  ;;  %v4717_v20 = vmul.f32 0.2, %v4461_v54  ;;  %v4462_v59 = vadd.f32 %v8518_v52, %v3940_v17  ;;  %v3194_v38 = vpop.f32.mrf.mxu1  ;;  %3440 = vmatprep.mubr.bf16.mxu1 %v10455_v58  ;;  %v3942_v37 = vadd.f32 %v3941_v3, %v3188_v34  ;;  %v9106_v53 = vpop.permute.xlu1 %2585 }
 0x318   : > { %v3945_v16 = vpop.f32.mrf.mxu0  ;;  %4184 = vmatmul.mubr.bf16.gmra.mxu0 %v10567_v11  ;;  %v4972_v44 = vmax.f32 %v4460_v47, %v4716_v23 }
 0x319   : > { %10566 = vst [vmem:[#allocation47_spill] sm:$0xff] %v9098_v32  ;;  %v4973_v10 = vmax.f32 %v4461_v54, %v4717_v20  ;;  %v3946_v35 = vadd.f32 %v3945_v16, %v3192_v5  ;;  %v3196_v33 = vpop.f32.mrf.mxu1  ;;  %4193 = vmatprep.mubr.bf16.mxu0 %v10455_v58  ;;  %v4718_v27 = vmul.f32 0.2, %v4462_v59  ;;  %v4463_v14 = vadd.f32 %v8536_v42, %v3942_v37 }
 0x31a   : > { %v3947_v6 = vpop.f32.mrf.mxu0  ;;  %v2719_v5 = vsel %vm2614_vm2, %v8794_v40, %v9106_v53 }
 0x31b   : > { %v9109_v60 = vmax.f32 %v4972_v44, %v4973_v10  ;;  %v4464_v34 = vadd.f32 %v8518_v52, %v3946_v35  ;;  %v3948_v17 = vadd.f32 %v3947_v6, %v3194_v38  ;;  %v3198_v23 = vpop.f32.mrf.mxu1  ;;  %v4719_v54 = vmul.f32 0.2, %v4463_v14 }
 0x31c   : > { %v3949_v47 = vpop.f32.mrf.mxu0  ;;  %v4974_v56 = vmax.f32 %v4462_v59, %v4718_v27 }
 0x31d   : > { %v4720_v3 = vmul.f32 0.2, %v4464_v34  ;;  %v4465_v20 = vadd.f32 %v8536_v42, %v3948_v17  ;;  %v3950_v16 = vadd.f32 %v3949_v47, %v3196_v33  ;;  %v3202_v11 = vpop.f32.mrf.mxu1  ;;  %v4975_v37 = vmax.f32 %v4463_v14, %v4719_v54  ;;  %v2597_v54 = vpop.permute.xlu0 %2596 }
 0x31e   : > { %6619 = vmatmul.mubr.msk.bf16.gmra.mxu1 %vm2809_vm3, %v2719_v5  ;;  %v3951_v44 = vpop.f32.mrf.mxu0 }
 0x31f   : > { %v4721_v10 = vmul.f32 0.2, %v4465_v20  ;;  %v4466_v38 = vadd.f32 %v8518_v52, %v3950_v16  ;;  %v3952_v35 = vadd.f32 %v3951_v44, %v3198_v23  ;;  %v3204_v6 = vpop.f32.mrf.mxu1  ;;  %3450 = vmatprep.mubr.bf16.mxu1 %v10455_v58  ;;  %v9119_v28 = vmax.f32 %v4974_v56, %v4975_v37 }
 0x320   : > { %v4976_v40 = vmax.f32 %v4464_v34, %v4720_v3  ;;  %v3955_v32 = vpop.f32.mrf.mxu0  ;;  %4194 = vmatmul.mubr.bf16.gmra.mxu0 %v10568_v25  ;;  %v2721_v16 = vsel %vm2614_vm2, %v8813_v62, %v2597_v54 }
 0x321   : > { %v4977_v33 = vmax.f32 %v4465_v20, %v4721_v10  ;;  %v4722_v17 = vmul.f32 0.2, %v4466_v38  ;;  %v4467_v59 = vadd.f32 %v8536_v42, %v3952_v35  ;;  %v3956_v27 = vadd.f32 %v3955_v32, %v3202_v11  ;;  %v3206_v14 = vpop.f32.mrf.mxu1  ;;  %4203 = vmatprep.mubr.bf16.mxu0 %v10455_v58 }
 0x322   : > { %v3957_v47 = vpop.f32.mrf.mxu0 }
 0x323   : > { %v9126_v5 = vmax.f32 %v4976_v40, %v4977_v33  ;;  %v4723_v56 = vmul.f32 0.2, %v4467_v59  ;;  %v4468_v34 = vadd.f32 %v8518_v52, %v3956_v27  ;;  %v3208_v3 = vpop.f32.mrf.mxu1  ;;  %v3958_v25 = vadd.f32 %v3957_v47, %v3204_v6 }
 0x324   : > { %v3959_v20 = vpop.f32.mrf.mxu0  ;;  %v4978_v32 = vmax.f32 %v4466_v38, %v4722_v17  ;;  %v2599_v38 = vpop.permute.xlu1 %2598 }
 0x325   : > { %v4979_v11 = vmax.f32 %v4467_v59, %v4723_v56  ;;  %v3960_v37 = vadd.f32 %v3959_v20, %v3206_v14  ;;  %v3212_v44 = vpop.f32.mrf.mxu1  ;;  %v4724_v10 = vmul.f32 0.2, %v4468_v34  ;;  %v4469_v35 = vadd.f32 %v8536_v42, %v3958_v25 }
 0x326   : > { %6620 = vmatmul.mubr.msk.bf16.gmra.mxu1 %vm2809_vm3, %v2721_v16  ;;  %v3961_v40 = vpop.f32.mrf.mxu0 }
 0x327   : > { %v9133_v33 = vmax.f32 %v4978_v32, %v4979_v11  ;;  %v4470_v27 = vadd.f32 %v8518_v52, %v3960_v37  ;;  %v3962_v23 = vadd.f32 %v3961_v40, %v3208_v3  ;;  %v3214_v6 = vpop.f32.mrf.mxu1  ;;  %3460 = vmatprep.mubr.bf16.mxu1 %v10455_v58  ;;  %v4725_v47 = vmul.f32 0.2, %v4469_v35 }
 0x328   : > { %v3965_v62 = vpop.f32.mrf.mxu0  ;;  %4204 = vmatmul.mubr.bf16.gmra.mxu0 %v8578_v57  ;;  %v4980_v25 = vmax.f32 %v4468_v34, %v4724_v10  ;;  %v2723_v57 = vsel %vm2614_vm2, %v8830_v26, %v2599_v38 }
 0x329   : > { %v4726_v17 = vmul.f32 0.2, %v4470_v27  ;;  %v4471_v59 = vadd.f32 %v8536_v42, %v3962_v23  ;;  %v3966_v14 = vadd.f32 %v3965_v62, %v3212_v44  ;;  %v3216_v54 = vpop.f32.mrf.mxu1  ;;  %4213 = vmatprep.mubr.bf16.mxu0 %v10455_v58  ;;  %v4981_v3 = vmax.f32 %v4469_v35, %v4725_v47  ;;  %v7200_v62 = vld [vmem:[%s10339_s6 + $0xf8] sm:$0xff]  }
 0x32a   : > { %v3967_v20 = vpop.f32.mrf.mxu0  ;;  %6785 = vmatprep.subr.bf16.mxu1 %v7200_v62 }
 0x32b   : > { %v4727_v16 = vmul.f32 0.2, %v4471_v59  ;;  %v4472_v32 = vadd.f32 %v8518_v52, %v3966_v14  ;;  %v3968_v11 = vadd.f32 %v3967_v20, %v3214_v6  ;;  %v3218_v37 = vpop.f32.mrf.mxu1  ;;  %v9145_v40 = vmax.f32 %v4980_v25, %v4981_v3 }
 0x32c   : > { %v4982_v23 = vmax.f32 %v4470_v27, %v4726_v17  ;;  %v3969_v44 = vpop.f32.mrf.mxu0 }
 0x32d   : > { %10569 = vst [vmem:[#allocation41_spill] sm:$0xff] %v9145_v40  ;;  %v4983_v56 = vmax.f32 %v4471_v59, %v4727_v16  ;;  %v4728_v34 = vmul.f32 0.2, %v4472_v32  ;;  %v4473_v10 = vadd.f32 %v8536_v42, %v3968_v11  ;;  %v3970_v35 = vadd.f32 %v3969_v44, %v3216_v54  ;;  %v3222_v47 = vpop.f32.mrf.mxu1  ;;  %v2601_v16 = vpop.permute.xlu0 %2600 }
 0x32e   : > { %6621 = vmatmul.mubr.msk.bf16.gmra.mxu1 %vm2809_vm3, %v2723_v57  ;;  %v3971_v6 = vpop.f32.mrf.mxu0 }
 0x32f   : > { %v9152_v14 = vmax.f32 %v4982_v23, %v4983_v56  ;;  %v4729_v26 = vmul.f32 0.2, %v4473_v10  ;;  %v4474_v27 = vadd.f32 %v8518_v52, %v3970_v35  ;;  %v3224_v38 = vpop.f32.mrf.mxu1  ;;  %3470 = vmatprep.mubr.bf16.mxu1 %v10455_v58  ;;  %v3972_v17 = vadd.f32 %v3971_v6, %v3218_v37 }
 0x330   : > { %v3975_v25 = vpop.f32.mrf.mxu0  ;;  %4214 = vmatmul.mubr.bf16.gmra.mxu0 %v7859_v36  ;;  %v4984_v59 = vmax.f32 %v4472_v32, %v4728_v34  ;;  %v2725_v34 = vsel %vm2614_vm2, %v8855_v30, %v2601_v16 }
 0x331   : > { %v4985_v3 = vmax.f32 %v4473_v10, %v4729_v26  ;;  %v3976_v54 = vadd.f32 %v3975_v25, %v3222_v47  ;;  %v3226_v20 = vpop.f32.mrf.mxu1  ;;  %4223 = vmatprep.mubr.bf16.mxu0 %v10455_v58  ;;  %v4730_v11 = vmul.f32 0.2, %v4474_v27  ;;  %v4475_v57 = vadd.f32 %v8536_v42, %v3972_v17 }
 0x332   : > { %v3977_v23 = vpop.f32.mrf.mxu0 }
 0x333   : > { %v4476_v44 = vadd.f32 %v8518_v52, %v3976_v54  ;;  %v3978_v37 = vadd.f32 %v3977_v23, %v3224_v38  ;;  %v3228_v62 = vpop.f32.mrf.mxu1  ;;  %v9162_v35 = vmax.f32 %v4984_v59, %v4985_v3  ;;  %v4731_v36 = vmul.f32 0.2, %v4475_v57 }
 0x334   : > { %v3979_v32 = vpop.f32.mrf.mxu0  ;;  %v4986_v26 = vmax.f32 %v4474_v27, %v4730_v11 }
 0x335   : > { %v4477_v10 = vadd.f32 %v8536_v42, %v3978_v37  ;;  %v3980_v47 = vadd.f32 %v3979_v32, %v3226_v20  ;;  %v3232_v6 = vpop.f32.mrf.mxu1  ;;  %v4987_v25 = vmax.f32 %v4475_v57, %v4731_v36  ;;  %v4732_v56 = vmul.f32 0.2, %v4476_v44  ;;  %v2603_v57 = vpop.permute.xlu1 %2602 }
 0x336   : > { %6622 = vmatmul.mubr.msk.bf16.gmra.mxu1 %vm2809_vm3, %v2725_v34  ;;  %v3981_v17 = vpop.f32.mrf.mxu0 }
 0x337   : > { %v4733_v54 = vmul.f32 0.2, %v4477_v10  ;;  %v4478_v38 = vadd.f32 %v8518_v52, %v3980_v47  ;;  %v3982_v59 = vadd.f32 %v3981_v17, %v3228_v62  ;;  %v3234_v3 = vpop.f32.mrf.mxu1  ;;  %3480 = vmatprep.mubr.bf16.mxu1 %v10455_v58  ;;  %v9171_v30 = vmax.f32 %v4986_v26, %v4987_v25 }
 0x338   : > { %v3985_v23 = vpop.f32.mrf.mxu0  ;;  %4224 = vmatmul.mubr.bf16.gmra.mxu0 %v10494_v45  ;;  %v4988_v37 = vmax.f32 %v4476_v44, %v4732_v56 }
 0x339   : > { %v4989_v20 = vmax.f32 %v4477_v10, %v4733_v54  ;;  %v4479_v27 = vadd.f32 %v8536_v42, %v3982_v59  ;;  %v3986_v16 = vadd.f32 %v3985_v23, %v3232_v6  ;;  %v3236_v11 = vpop.f32.mrf.mxu1  ;;  %4233 = vmatprep.mubr.bf16.mxu0 %v10455_v58  ;;  %v4734_v36 = vmul.f32 0.2, %v4478_v38 }
 0x33a   : > { %v3987_v32 = vpop.f32.mrf.mxu0  ;;  %v2727_v6 = vsel %vm2614_vm2, %v8874_v15, %v2603_v57 }
 0x33b   : > { %v4735_v34 = vmul.f32 0.2, %v4479_v27  ;;  %v4480_v47 = vadd.f32 %v8518_v52, %v3986_v16  ;;  %v3988_v45 = vadd.f32 %v3987_v32, %v3234_v3  ;;  %v3238_v26 = vpop.f32.mrf.mxu1  ;;  %v9178_v10 = vmax.f32 %v4988_v37, %v4989_v20  ;;  %v2605_v37 = vpop.permute.xlu0 %2604 }
 0x33c   : > { %v3989_v25 = vpop.f32.mrf.mxu0  ;;  %v4990_v59 = vmax.f32 %v4478_v38, %v4734_v36 }
 0x33d   : > { %v4991_v17 = vmax.f32 %v4479_v27, %v4735_v34  ;;  %v4481_v54 = vadd.f32 %v8536_v42, %v3988_v45  ;;  %v3990_v56 = vadd.f32 %v3989_v25, %v3236_v11  ;;  %v3242_v44 = vpop.f32.mrf.mxu1  ;;  %v4736_v23 = vmul.f32 0.2, %v4480_v47 }
 0x33e   : > { %6623 = vmatmul.mubr.msk.bf16.gmra.mxu1 %vm2809_vm3, %v2727_v6  ;;  %v3991_v62 = vpop.f32.mrf.mxu0 }
 0x33f   : > { %v4737_v40 = vmul.f32 0.2, %v4481_v54  ;;  %v4482_v3 = vadd.f32 %v8518_v52, %v3990_v56  ;;  %v3992_v16 = vadd.f32 %v3991_v62, %v3238_v26  ;;  %v3244_v32 = vpop.f32.mrf.mxu1  ;;  %3490 = vmatprep.mubr.bf16.mxu1 %v10455_v58  ;;  %v9187_v15 = vmax.f32 %v4990_v59, %v4991_v17 }
 0x340   : > { %v3995_v20 = vpop.f32.mrf.mxu0  ;;  %4234 = vmatmul.mubr.bf16.gmra.mxu0 %v7899_v39  ;;  %v4992_v36 = vmax.f32 %v4480_v47, %v4736_v23 }
 0x341   : > { %v4993_v27 = vmax.f32 %v4481_v54, %v4737_v40  ;;  %v4483_v11 = vadd.f32 %v8536_v42, %v3992_v16  ;;  %v3996_v38 = vadd.f32 %v3995_v20, %v3242_v44  ;;  %v3246_v57 = vpop.f32.mrf.mxu1  ;;  %4243 = vmatprep.mubr.bf16.mxu0 %v10455_v58  ;;  %v4738_v34 = vmul.f32 0.2, %v4482_v3 }
 0x342   : > { %v3997_v45 = vpop.f32.mrf.mxu0  ;;  %v2729_v54 = vsel %vm2614_vm2, %v8893_v7, %v2605_v37 }
 0x343   : > { %v4739_v26 = vmul.f32 0.2, %v4483_v11  ;;  %v4484_v25 = vadd.f32 %v8518_v52, %v3996_v38  ;;  %v3998_v39 = vadd.f32 %v3997_v45, %v3244_v32  ;;  %v3248_v6 = vpop.f32.mrf.mxu1  ;;  %v9194_v40 = vmax.f32 %v4992_v36, %v4993_v27  ;;  %v2607_v36 = vpop.permute.xlu1 %2606 }
 0x344   : > { %v3999_v17 = vpop.f32.mrf.mxu0  ;;  %v4994_v23 = vmax.f32 %v4482_v3, %v4738_v34 }
 0x345   : > { %v4995_v56 = vmax.f32 %v4483_v11, %v4739_v26  ;;  %v4485_v44 = vadd.f32 %v8536_v42, %v3998_v39  ;;  %v4000_v47 = vadd.f32 %v3999_v17, %v3246_v57  ;;  %v3252_v59 = vpop.f32.mrf.mxu1  ;;  %v4740_v16 = vmul.f32 0.2, %v4484_v25 }
 0x346   : > { %6624 = vmatmul.mubr.msk.bf16.gmra.mxu1 %vm2809_vm3, %v2729_v54  ;;  %v4001_v20 = vpop.f32.mrf.mxu0 }
 0x347   : > { %v4741_v62 = vmul.f32 0.2, %v4485_v44  ;;  %v4486_v32 = vadd.f32 %v8518_v52, %v4000_v47  ;;  %v4002_v38 = vadd.f32 %v4001_v20, %v3248_v6  ;;  %v3254_v45 = vpop.f32.mrf.mxu1  ;;  %3500 = vmatprep.mubr.bf16.mxu1 %v10455_v58  ;;  %v9203_v7 = vmax.f32 %v4994_v23, %v4995_v56 }
 0x348   : > { %v4005_v27 = vpop.f32.mrf.mxu0  ;;  %4244 = vmatmul.mubr.bf16.gmra.mxu0 %v10497_v13  ;;  %v4996_v34 = vmax.f32 %v4484_v25, %v4740_v16 }
 0x349   : > { %v4997_v11 = vmax.f32 %v4485_v44, %v4741_v62  ;;  %v4487_v57 = vadd.f32 %v8536_v42, %v4002_v38  ;;  %v4006_v3 = vadd.f32 %v4005_v27, %v3252_v59  ;;  %v3256_v37 = vpop.f32.mrf.mxu1  ;;  %4253 = vmatprep.mubr.bf16.mxu0 %v10455_v58  ;;  %v4742_v26 = vmul.f32 0.2, %v4486_v32 }
 0x34a   : > { %v4007_v39 = vpop.f32.mrf.mxu0  ;;  %v2731_v44 = vsel %vm2614_vm2, %v8912_v48, %v2607_v36 }
 0x34b   : > { %v4743_v17 = vmul.f32 0.2, %v4487_v57  ;;  %v4488_v54 = vadd.f32 %v8518_v52, %v4006_v3  ;;  %v4008_v13 = vadd.f32 %v4007_v39, %v3254_v45  ;;  %v3258_v56 = vpop.f32.mrf.mxu1  ;;  %v9210_v62 = vmax.f32 %v4996_v34, %v4997_v11  ;;  %v2609_v34 = vpop.permute.xlu0 %2608 }
 0x34c   : > { %v4009_v47 = vpop.f32.mrf.mxu0  ;;  %v4998_v20 = vmax.f32 %v4486_v32, %v4742_v26 }
 0x34d   : > { %v4999_v59 = vmax.f32 %v4487_v57, %v4743_v17  ;;  %v4489_v23 = vadd.f32 %v8536_v42, %v4008_v13  ;;  %v4010_v25 = vadd.f32 %v4009_v47, %v3256_v37  ;;  %v3262_v16 = vpop.f32.mrf.mxu1  ;;  %v4744_v38 = vmul.f32 0.2, %v4488_v54 }
 0x34e   : > { %6625 = vmatmul.mubr.msk.bf16.gmra.mxu1 %vm2809_vm3, %v2731_v44  ;;  %v4011_v27 = vpop.f32.mrf.mxu0 }
 0x34f   : > { %v4745_v6 = vmul.f32 0.2, %v4489_v23  ;;  %v4490_v45 = vadd.f32 %v8518_v52, %v4010_v25  ;;  %v4012_v3 = vadd.f32 %v4011_v27, %v3258_v56  ;;  %v3264_v39 = vpop.f32.mrf.mxu1  ;;  %3510 = vmatprep.mubr.bf16.mxu1 %v10455_v58  ;;  %v9219_v48 = vmax.f32 %v4998_v20, %v4999_v59 }
 0x350   : > { %v4015_v11 = vpop.f32.mrf.mxu0  ;;  %4254 = vmatmul.mubr.bf16.gmra.mxu0 %v7933_v2  ;;  %v5000_v26 = vmax.f32 %v4488_v54, %v4744_v38 }
 0x351   : > { %v5001_v57 = vmax.f32 %v4489_v23, %v4745_v6  ;;  %v4491_v37 = vadd.f32 %v8536_v42, %v4012_v3  ;;  %v4016_v32 = vadd.f32 %v4015_v11, %v3262_v16  ;;  %v3266_v36 = vpop.f32.mrf.mxu1  ;;  %4263 = vmatprep.mubr.bf16.mxu0 %v10455_v58  ;;  %v4746_v17 = vmul.f32 0.2, %v4490_v45 }
 0x352   : > { %v4017_v13 = vpop.f32.mrf.mxu0  ;;  %v2733_v23 = vsel %vm2614_vm2, %v8931_v63, %v2609_v34 }
 0x353   : > { %v4747_v47 = vmul.f32 0.2, %v4491_v37  ;;  %v4492_v44 = vadd.f32 %v8518_v52, %v4016_v32  ;;  %v4018_v2 = vadd.f32 %v4017_v13, %v3264_v39  ;;  %v3268_v59 = vpop.f32.mrf.mxu1  ;;  %v9226_v6 = vmax.f32 %v5000_v26, %v5001_v57  ;;  %v2611_v26 = vpop.permute.xlu1 %2610 }
 0x354   : > { %v4019_v25 = vpop.f32.mrf.mxu0  ;;  %v5002_v27 = vmax.f32 %v4490_v45, %v4746_v17 }
 0x355   : > { %v5003_v16 = vmax.f32 %v4491_v37, %v4747_v47  ;;  %v4493_v20 = vadd.f32 %v8536_v42, %v4018_v2  ;;  %v4020_v54 = vadd.f32 %v4019_v25, %v3266_v36  ;;  %v3272_v38 = vpop.f32.mrf.mxu1  ;;  %v4748_v3 = vmul.f32 0.2, %v4492_v44 }
 0x356   : > { %6626 = vmatmul.mubr.msk.bf16.gmra.mxu1 %vm2809_vm3, %v2733_v23  ;;  %v4021_v11 = vpop.f32.mrf.mxu0 }
 0x357   : > { %v4749_v56 = vmul.f32 0.2, %v4493_v20  ;;  %v4494_v39 = vadd.f32 %v8518_v52, %v4020_v54  ;;  %v4022_v32 = vadd.f32 %v4021_v11, %v3268_v59  ;;  %v3274_v13 = vpop.f32.mrf.mxu1  ;;  %3520 = vmatprep.mubr.bf16.mxu1 %v10455_v58  ;;  %v9235_v63 = vmax.f32 %v5002_v27, %v5003_v16 }
 0x358   : > { %v4025_v57 = vpop.f32.mrf.mxu0  ;;  %4264 = vmatmul.mubr.bf16.gmra.mxu0 %v10499_v8  ;;  %v5004_v17 = vmax.f32 %v4492_v44, %v4748_v3 }
 0x359   : > { %v5005_v37 = vmax.f32 %v4493_v20, %v4749_v56  ;;  %v4495_v36 = vadd.f32 %v8536_v42, %v4022_v32  ;;  %v4026_v45 = vadd.f32 %v4025_v57, %v3272_v38  ;;  %v3276_v34 = vpop.f32.mrf.mxu1  ;;  %4273 = vmatprep.mubr.bf16.mxu0 %v10455_v58  ;;  %v4750_v47 = vmul.f32 0.2, %v4494_v39 }
 0x35a   : > { %v4027_v2 = vpop.f32.mrf.mxu0  ;;  %v2735_v20 = vsel %vm2614_vm2, %v8950_v49, %v2611_v26 }
 0x35b   : > { %v4751_v25 = vmul.f32 0.2, %v4495_v36  ;;  %v4496_v23 = vadd.f32 %v8518_v52, %v4026_v45  ;;  %v4028_v8 = vadd.f32 %v4027_v2, %v3274_v13  ;;  %v3278_v16 = vpop.f32.mrf.mxu1  ;;  %v9242_v56 = vmax.f32 %v5004_v17, %v5005_v37  ;;  %v9255_v17 = vpop.permute.xlu0 %2612 }
 0x35c   : > { %v4029_v54 = vpop.f32.mrf.mxu0  ;;  %v5006_v11 = vmax.f32 %v4494_v39, %v4750_v47 }
 0x35d   : > { %v5007_v38 = vmax.f32 %v4495_v36, %v4751_v25  ;;  %v4497_v27 = vadd.f32 %v8536_v42, %v4028_v8  ;;  %v4030_v44 = vadd.f32 %v4029_v54, %v3276_v34  ;;  %v3282_v3 = vpop.f32.mrf.mxu1  ;;  %v4752_v32 = vmul.f32 0.2, %v4496_v23 }
 0x35e   : > { %6627 = vmatmul.mubr.msk.bf16.gmra.mxu1 %vm2809_vm3, %v2735_v20  ;;  %v4031_v57 = vpop.f32.mrf.mxu0 }
 0x35f   : > { %v4753_v59 = vmul.f32 0.2, %v4497_v27  ;;  %v4498_v13 = vadd.f32 %v8518_v52, %v4030_v44  ;;  %v4032_v45 = vadd.f32 %v4031_v57, %v3278_v16  ;;  %v3284_v2 = vpop.f32.mrf.mxu1  ;;  %3530 = vmatprep.mubr.bf16.mxu1 %v10455_v58  ;;  %v9251_v49 = vmax.f32 %v5006_v11, %v5007_v38 }
 0x360   : > { %v4035_v37 = vpop.f32.mrf.mxu0  ;;  %4274 = vmatmul.mubr.bf16.gmra.mxu0 %v10496_v61  ;;  %v5008_v47 = vmax.f32 %v4496_v23, %v4752_v32  ;;  %v2737_v23 = vsel %vm2614_vm2, %v8969_v51, %v9255_v17 }
 0x361   : > { %v5009_v36 = vmax.f32 %v4497_v27, %v4753_v59  ;;  %v4499_v34 = vadd.f32 %v8536_v42, %v4032_v45  ;;  %v4036_v39 = vadd.f32 %v4035_v37, %v3282_v3  ;;  %v3286_v26 = vpop.f32.mrf.mxu1  ;;  %4283 = vmatprep.mubr.bf16.mxu0 %v10455_v58  ;;  %v4754_v25 = vmul.f32 0.2, %v4498_v13 }
 0x362   : > { %v4037_v8 = vpop.f32.mrf.mxu0 }
 0x363   : > { %v4755_v54 = vmul.f32 0.2, %v4499_v34  ;;  %v4500_v61 = vadd.f32 %v8518_v52, %v4036_v39  ;;  %v4038_v20 = vadd.f32 %v4037_v8, %v3284_v2  ;;  %v3288_v38 = vpop.f32.mrf.mxu1  ;;  %v9260_v27 = vmax.f32 %v5008_v47, %v5009_v36 }
 0x364   : > { %v4039_v59 = vpop.f32.mrf.mxu0  ;;  %v5010_v32 = vmax.f32 %v4498_v13, %v4754_v25 }
 0x365   : > { %v5011_v44 = vmax.f32 %v4499_v34, %v4755_v54  ;;  %v4501_v3 = vadd.f32 %v8536_v42, %v4038_v20  ;;  %v4040_v11 = vadd.f32 %v4039_v59, %v3286_v26  ;;  %v3292_v57 = vpop.f32.mrf.mxu1  ;;  %v4756_v45 = vmul.f32 0.2, %v4500_v61 }
 0x366   : > { %6628 = vmatmul.mubr.msk.bf16.gmra.mxu1 %vm2809_vm3, %v2737_v23  ;;  %v4041_v37 = vpop.f32.mrf.mxu0 }
 0x367   : > { %v4757_v39 = vmul.f32 0.2, %v4501_v3  ;;  %v4502_v2 = vadd.f32 %v8518_v52, %v4040_v11  ;;  %v4042_v8 = vadd.f32 %v4041_v37, %v3288_v38  ;;  %v3294_v36 = vpop.f32.mrf.mxu1  ;;  %3540 = vmatprep.mubr.bf16.mxu1 %v10455_v58  ;;  %v9270_v26 = vmax.f32 %v5010_v32, %v5011_v44 }
 0x368   : > { %v4045_v34 = vpop.f32.mrf.mxu0  ;;  %4284 = vmatmul.mubr.bf16.gmra.mxu0 %v10501_v4  ;;  %v5012_v54 = vmax.f32 %v4500_v61, %v4756_v45 }
 0x369   : > { %v5013_v47 = vmax.f32 %v4501_v3, %v4757_v39  ;;  %v4503_v51 = vadd.f32 %v8536_v42, %v4042_v8  ;;  %v4046_v13 = vadd.f32 %v4045_v34, %v3292_v57  ;;  %v3296_v25 = vpop.f32.mrf.mxu1  ;;  %4293 = vmatprep.mubr.bf16.mxu0 %v10455_v58  ;;  %v4758_v20 = vmul.f32 0.2, %v4502_v2 }
 0x36a   : > { %v4047_v59 = vpop.f32.mrf.mxu0  ;;  %v2738_v3 = vsel %vm2614_vm2, %v8983_v24, %v9255_v17 }
 0x36b   : > { %v4759_v11 = vmul.f32 0.2, %v4503_v51  ;;  %v4504_v23 = vadd.f32 %v8518_v52, %v4046_v13  ;;  %v4048_v37 = vadd.f32 %v4047_v59, %v3294_v36  ;;  %v3298_v4 = vpop.f32.mrf.mxu1  ;;  %v9280_v57 = vmax.f32 %v5012_v54, %v5013_v47 }
 0x36c   : > { %v4049_v44 = vpop.f32.mrf.mxu0  ;;  %v5014_v34 = vmax.f32 %v4502_v2, %v4758_v20 }
 0x36d   : > { %v5015_v32 = vmax.f32 %v4503_v51, %v4759_v11  ;;  %v4760_v39 = vmul.f32 0.2, %v4504_v23  ;;  %v4505_v61 = vadd.f32 %v8536_v42, %v4048_v37  ;;  %v4050_v45 = vadd.f32 %v4049_v44, %v3296_v25  ;;  %v3302_v8 = vpop.f32.mrf.mxu1 }
 0x36e   : > { %6629 = vmatmul.mubr.msk.bf16.gmra.mxu1 %vm2809_vm3, %v2738_v3  ;;  %v4051_v38 = vpop.f32.mrf.mxu0 }
 0x36f   : > { %v4761_v13 = vmul.f32 0.2, %v4505_v61  ;;  %v4506_v36 = vadd.f32 %v8518_v52, %v4050_v45  ;;  %v4052_v59 = vadd.f32 %v4051_v38, %v3298_v4  ;;  %v3304_v16 = vpop.f32.mrf.mxu1  ;;  %3550 = vmatprep.mubr.bf16.mxu1 %v10455_v58  ;;  %v5016_v24 = vmax.f32 %v4504_v23, %v4760_v39 }
 0x370   : > { %v4055_v47 = vpop.f32.mrf.mxu0  ;;  %4294 = vmatmul.mubr.bf16.gmra.mxu0 %v8031_v12  ;;  %v9287_v51 = vmax.f32 %v5014_v34, %v5015_v32 }
 0x371   : > { %v5017_v54 = vmax.f32 %v4505_v61, %v4761_v13  ;;  %v4762_v25 = vmul.f32 0.2, %v4506_v36  ;;  %v4507_v2 = vadd.f32 %v8536_v42, %v4052_v59  ;;  %v4056_v20 = vadd.f32 %v4055_v47, %v3302_v8  ;;  %v3306_v11 = vpop.f32.mrf.mxu1  ;;  %4303 = vmatprep.mubr.bf16.mxu0 %v10455_v58 }
 0x372   : > { %v4057_v37 = vpop.f32.mrf.mxu0  ;;  %v2739_v8 = vsel %vm2614_vm2, %v9008_v21, %v9255_v17 }
 0x373   : > { %v9293_v4 = vmax.f32 %v5016_v24, %v5017_v54  ;;  %v4763_v23 = vmul.f32 0.2, %v4507_v2  ;;  %v4508_v44 = vadd.f32 %v8518_v52, %v4056_v20  ;;  %v3308_v12 = vpop.f32.mrf.mxu1  ;;  %v4058_v3 = vadd.f32 %v4057_v37, %v3304_v16 }
 0x374   : > { %v4059_v32 = vpop.f32.mrf.mxu0  ;;  %v5018_v39 = vmax.f32 %v4506_v36, %v4762_v25 }
 0x375   : > { %v5019_v61 = vmax.f32 %v4507_v2, %v4763_v23  ;;  %v4060_v45 = vadd.f32 %v4059_v32, %v3306_v11  ;;  %v3312_v34 = vpop.f32.mrf.mxu1  ;;  %v4764_v13 = vmul.f32 0.2, %v4508_v44  ;;  %v4509_v59 = vadd.f32 %v8536_v42, %v4058_v3 }
 0x376   : > { %6630 = vmatmul.mubr.msk.bf16.gmra.mxu1 %vm2809_vm3, %v2739_v8  ;;  %v4061_v24 = vpop.f32.mrf.mxu0 }
 0x377   : > { %v9301_v47 = vmax.f32 %v5018_v39, %v5019_v61  ;;  %v4510_v54 = vadd.f32 %v8518_v52, %v4060_v45  ;;  %v4062_v16 = vadd.f32 %v4061_v24, %v3308_v12  ;;  %v3314_v20 = vpop.f32.mrf.mxu1  ;;  %3560 = vmatprep.mubr.bf16.mxu1 %v10455_v58  ;;  %v4765_v36 = vmul.f32 0.2, %v4509_v59 }
 0x378   : > { %v4065_v25 = vpop.f32.mrf.mxu0  ;;  %4304 = vmatmul.mubr.bf16.gmra.mxu0 %v8049_v18  ;;  %v5020_v3 = vmax.f32 %v4508_v44, %v4764_v13 }
 0x379   : > { %v4766_v2 = vmul.f32 0.2, %v4510_v54  ;;  %v4511_v11 = vadd.f32 %v8536_v42, %v4062_v16  ;;  %v4066_v37 = vadd.f32 %v4065_v25, %v3312_v34  ;;  %v3316_v23 = vpop.f32.mrf.mxu1  ;;  %4313 = vmatprep.mubr.bf16.mxu0 %v10455_v58  ;;  %v5021_v32 = vmax.f32 %v4509_v59, %v4765_v36 }
 0x37a   : > { %v4067_v12 = vpop.f32.mrf.mxu0  ;;  %v2740_v16 = vsel %vm2614_vm2, %v9027_v0, %v9255_v17 }
 0x37b   : > { %v4767_v39 = vmul.f32 0.2, %v4511_v11  ;;  %v4512_v61 = vadd.f32 %v8518_v52, %v4066_v37  ;;  %v4068_v45 = vadd.f32 %v4067_v12, %v3314_v20  ;;  %v3318_v8 = vpop.f32.mrf.mxu1  ;;  %v9311_v24 = vmax.f32 %v5020_v3, %v5021_v32 }
 0x37c   : > { %v5022_v18 = vmax.f32 %v4510_v54, %v4766_v2  ;;  %v4069_v38 = vpop.f32.mrf.mxu0 }
 0x37d   : > { %v5023_v34 = vmax.f32 %v4511_v11, %v4767_v39  ;;  %v4768_v25 = vmul.f32 0.2, %v4512_v61  ;;  %v4513_v21 = vadd.f32 %v8536_v42, %v4068_v45  ;;  %v4070_v44 = vadd.f32 %v4069_v38, %v3316_v23  ;;  %v3322_v13 = vpop.f32.mrf.mxu1 }
 0x37e   : > { %6631 = vmatmul.mubr.msk.bf16.gmra.mxu1 %vm2809_vm3, %v2740_v16  ;;  %v4071_v59 = vpop.f32.mrf.mxu0 }
 0x37f   : > { %v9318_v36 = vmax.f32 %v5022_v18, %v5023_v34  ;;  %v4769_v20 = vmul.f32 0.2, %v4513_v21  ;;  %v4514_v37 = vadd.f32 %v8518_v52, %v4070_v44  ;;  %v3324_v54 = vpop.f32.mrf.mxu1  ;;  %3570 = vmatprep.mubr.bf16.mxu1 %v10455_v58  ;;  %v4072_v2 = vadd.f32 %v4071_v59, %v3318_v8 }
 0x380   : > { %v4075_v3 = vpop.f32.mrf.mxu0  ;;  %4314 = vmatmul.mubr.bf16.gmra.mxu0 %v8603_v41  ;;  %v5024_v0 = vmax.f32 %v4512_v61, %v4768_v25  ;;  %v2741_v59 = vsel %vm2614_vm2, %v9046_v29, %v9255_v17 }
 0x381   : > { %v5025_v11 = vmax.f32 %v4513_v21, %v4769_v20  ;;  %v4076_v32 = vadd.f32 %v4075_v3, %v3322_v13  ;;  %v3326_v38 = vpop.f32.mrf.mxu1  ;;  %4323 = vmatprep.mubr.bf16.mxu0 %v10455_v58  ;;  %v4770_v12 = vmul.f32 0.2, %v4514_v37  ;;  %v4515_v39 = vadd.f32 %v8536_v42, %v4072_v2 }
 0x382   : > { %v4077_v45 = vpop.f32.mrf.mxu0 }
 0x383   : > { %v9327_v18 = vmax.f32 %v5024_v0, %v5025_v11  ;;  %v4516_v8 = vadd.f32 %v8518_v52, %v4076_v32  ;;  %v4078_v16 = vadd.f32 %v4077_v45, %v3324_v54  ;;  %v3328_v34 = vpop.f32.mrf.mxu1  ;;  %v4771_v41 = vmul.f32 0.2, %v4515_v39 }
 0x384   : > { %v4079_v61 = vpop.f32.mrf.mxu0  ;;  %v5026_v20 = vmax.f32 %v4514_v37, %v4770_v12 }
 0x385   : > { %v4772_v21 = vmul.f32 0.2, %v4516_v8  ;;  %v4517_v25 = vadd.f32 %v8536_v42, %v4078_v16  ;;  %v4080_v44 = vadd.f32 %v4079_v61, %v3326_v38  ;;  %v3332_v13 = vpop.f32.mrf.mxu1  ;;  %v5027_v2 = vmax.f32 %v4515_v39, %v4771_v41 }
 0x386   : > { %6632 = vmatmul.mubr.msk.bf16.gmra.mxu1 %vm2809_vm3, %v2741_v59  ;;  %v4081_v3 = vpop.f32.mrf.mxu0 }
 0x387   : > { %v4773_v0 = vmul.f32 0.2, %v4517_v25  ;;  %v4518_v54 = vadd.f32 %v8518_v52, %v4080_v44  ;;  %v4082_v11 = vadd.f32 %v4081_v3, %v3328_v34  ;;  %v3334_v32 = vpop.f32.mrf.mxu1  ;;  %3580 = vmatprep.mubr.bf16.mxu1 %v10455_v58  ;;  %v9337_v45 = vmax.f32 %v5026_v20, %v5027_v2 }
 0x388   : > { %v5028_v38 = vmax.f32 %v4516_v8, %v4772_v21  ;;  %v4085_v16 = vpop.f32.mrf.mxu0  ;;  %4324 = vmatmul.mubr.bf16.gmra.mxu0 %v8724_v43 }
 0x389   : > { %v5029_v61 = vmax.f32 %v4517_v25, %v4773_v0  ;;  %v4774_v29 = vmul.f32 0.2, %v4518_v54  ;;  %v4519_v37 = vadd.f32 %v8536_v42, %v4082_v11  ;;  %v4086_v12 = vadd.f32 %v4085_v16, %v3332_v13  ;;  %v3336_v39 = vpop.f32.mrf.mxu1  ;;  %4333 = vmatprep.mubr.bf16.mxu0 %v10455_v58 }
 0x38a   : > { %v4087_v41 = vpop.f32.mrf.mxu0  ;;  %v2742_v13 = vsel %vm2614_vm2, %v9067_v19, %v9255_v17 }
 0x38b   : > { %v9344_v44 = vmax.f32 %v5028_v38, %v5029_v61  ;;  %v4775_v59 = vmul.f32 0.2, %v4519_v37  ;;  %v4520_v8 = vadd.f32 %v8518_v52, %v4086_v12  ;;  %v3338_v21 = vpop.f32.mrf.mxu1  ;;  %v4088_v20 = vadd.f32 %v4087_v41, %v3334_v32 }
 0x38c   : > { %v4089_v43 = vpop.f32.mrf.mxu0  ;;  %v5030_v25 = vmax.f32 %v4518_v54, %v4774_v29 }
 0x38d   : > { %10570 = vst [vmem:[#allocation43_spill] sm:$0xff] %v9344_v44  ;;  %v5031_v2 = vmax.f32 %v4519_v37, %v4775_v59  ;;  %v4090_v3 = vadd.f32 %v4089_v43, %v3336_v39  ;;  %v3342_v0 = vpop.f32.mrf.mxu1  ;;  %v4776_v11 = vmul.f32 0.2, %v4520_v8  ;;  %v4521_v16 = vadd.f32 %v8536_v42, %v4088_v20  ;;  %v10616_v44 = vld [vmem:[#allocation25_spill] sm:$0xff] }
 0x38e   : > { %6633 = vmatmul.mubr.msk.bf16.gmra.mxu1 %vm2809_vm3, %v2742_v13  ;;  %v4091_v38 = vpop.f32.mrf.mxu0 }
 0x38f   : > { %v9352_v61 = vmax.f32 %v5030_v25, %v5031_v2  ;;  %v4522_v12 = vadd.f32 %v8518_v52, %v4090_v3  ;;  %v4092_v32 = vadd.f32 %v4091_v38, %v3338_v21  ;;  %v3344_v41 = vpop.f32.mrf.mxu1  ;;  %3590 = vmatprep.mubr.bf16.mxu1 %v10455_v58  ;;  %v4777_v54 = vmul.f32 0.2, %v4521_v16 }
 0x390   : > { %v4095_v29 = vpop.f32.mrf.mxu0  ;;  %4334 = vmatmul.mubr.bf16.gmra.mxu0 %v8704_v46  ;;  %v5032_v43 = vmax.f32 %v4520_v8, %v4776_v11 }
 0x391   : > { %10571 = vst [vmem:[#allocation48_spill] sm:$0xff] %v9352_v61  ;;  %v4778_v37 = vmul.f32 0.2, %v4522_v12  ;;  %v4523_v19 = vadd.f32 %v8536_v42, %v4092_v32  ;;  %v4096_v39 = vadd.f32 %v4095_v29, %v3342_v0  ;;  %v3346_v59 = vpop.f32.mrf.mxu1  ;;  %4343 = vmatprep.mubr.bf16.mxu0 %v10455_v58  ;;  %v5033_v25 = vmax.f32 %v4521_v16, %v4777_v54 }
 0x392   : > { %v4097_v21 = vpop.f32.mrf.mxu0  ;;  %v2743_v0 = vsel %vm2614_vm2, %v9084_v9, %v9255_v17 }
 0x393   : > { %v4779_v2 = vmul.f32 0.2, %v4523_v19  ;;  %v4524_v3 = vadd.f32 %v8518_v52, %v4096_v39  ;;  %v4098_v13 = vadd.f32 %v4097_v21, %v3344_v41  ;;  %v3348_v38 = vpop.f32.mrf.mxu1  ;;  %v9362_v34 = vmax.f32 %v5032_v43, %v5033_v25 }
 0x394   : > { %v5034_v46 = vmax.f32 %v4522_v12, %v4778_v37  ;;  %v4099_v23 = vpop.f32.mrf.mxu0 }
 0x395   : > { %10572 = vst [vmem:[#allocation49_spill] sm:$0xff] %v9362_v34  ;;  %v5035_v32 = vmax.f32 %v4523_v19, %v4779_v2  ;;  %v4780_v29 = vmul.f32 0.2, %v4524_v3  ;;  %v4525_v20 = vadd.f32 %v8536_v42, %v4098_v13  ;;  %v4100_v8 = vadd.f32 %v4099_v23, %v3346_v59  ;;  %v3352_v11 = vpop.f32.mrf.mxu1 }
 0x396   : > { %6634 = vmatmul.mubr.msk.bf16.gmra.mxu1 %vm2809_vm3, %v2743_v0  ;;  %v4101_v16 = vpop.f32.mrf.mxu0 }
 0x397   : > { %v9369_v54 = vmax.f32 %v5034_v46, %v5035_v32  ;;  %v4781_v41 = vmul.f32 0.2, %v4525_v20  ;;  %v4526_v39 = vadd.f32 %v8518_v52, %v4100_v8  ;;  %v3354_v12 = vpop.f32.mrf.mxu1  ;;  %3600 = vmatprep.mubr.bf16.mxu1 %v10455_v58  ;;  %v4102_v37 = vadd.f32 %v4101_v16, %v3348_v38 }
 0x398   : > { %v4105_v43 = vpop.f32.mrf.mxu0  ;;  %4344 = vmatmul.mubr.bf16.gmra.mxu0 %v8755_v50  ;;  %v5036_v9 = vmax.f32 %v4524_v3, %v4780_v29 }
 0x399   : > { %10573 = vst [vmem:[#allocation50_spill] sm:$0xff] %v9369_v54  ;;  %v5037_v19 = vmax.f32 %v4525_v20, %v4781_v41  ;;  %v4106_v25 = vadd.f32 %v4105_v43, %v3352_v11  ;;  %v3356_v23 = vpop.f32.mrf.mxu1  ;;  %4353 = vmatprep.mubr.bf16.mxu0 %v10455_v58  ;;  %v4782_v21 = vmul.f32 0.2, %v4526_v39  ;;  %v4527_v2 = vadd.f32 %v8536_v42, %v4102_v37 }
 0x39a   : > { %v4107_v13 = vpop.f32.mrf.mxu0  ;;  %v2744_v11 = vsel %vm2614_vm2, %v9106_v53, %v9255_v17 }
 0x39b   : > { %v9378_v46 = vmax.f32 %v5036_v9, %v5037_v19  ;;  %v4528_v38 = vadd.f32 %v8518_v52, %v4106_v25  ;;  %v4108_v0 = vadd.f32 %v4107_v13, %v3354_v12  ;;  %v3358_v32 = vpop.f32.mrf.mxu1  ;;  %v4783_v50 = vmul.f32 0.2, %v4527_v2 }
 0x39c   : > { %v4109_v3 = vpop.f32.mrf.mxu0  ;;  %v5038_v16 = vmax.f32 %v4526_v39, %v4782_v21  ;;  %v10575_v19 = vpack.c.bf16 %v8867_v31, %v8857_v1 }
 0x39d   : > { %10574 = vst [vmem:[#allocation51_spill] sm:$0xff] %v9378_v46  ;;  %v4784_v20 = vmul.f32 0.2, %v4528_v38  ;;  %v4529_v29 = vadd.f32 %v8536_v42, %v4108_v0  ;;  %v4110_v8 = vadd.f32 %v4109_v3, %v3356_v23  ;;  %v3362_v58 = vpop.f32.mrf.mxu1  ;;  %v5039_v41 = vmax.f32 %v4527_v2, %v4783_v50  ;;  %v10605_v46 = vld [vmem:[#allocation22_spill] sm:$0xff] }
 0x39e   : > { %6635 = vmatmul.mubr.msk.bf16.gmra.mxu1 %vm2809_vm3, %v2744_v11  ;;  %v4111_v37 = vpop.f32.mrf.mxu0 }
 0x39f   : > { %v4785_v43 = vmul.f32 0.2, %v4529_v29  ;;  %v4530_v12 = vadd.f32 %v8518_v52, %v4110_v8  ;;  %v4112_v9 = vadd.f32 %v4111_v37, %v3358_v32  ;;  %5887 = vmatprep.mubr.bf16.mxu1 %v10575_v19  ;;  %v3364_v25 = vpop.f32.mrf.mxu1  ;;  %v9390_v23 = vmax.f32 %v5038_v16, %v5039_v41  ;;  %v7202_v16 = vld [vmem:[%s10339_s6 + $0xf0] sm:$0xff]  }
 0x3a0   : > { %v5040_v13 = vmax.f32 %v4528_v38, %v4784_v20  ;;  %v4115_v0 = vpop.f32.mrf.mxu0  ;;  %4354 = vmatmul.mubr.bf16.gmra.mxu0 %v8728_v22  ;;  %v7201_v22 = vld [vmem:[%s10339_s6 + $0xb8] sm:$0xff]  }
 0x3a1   : > { %10576 = vst [vmem:[#allocation52_spill] sm:$0xff] %v9390_v23  ;;  %v5041_v53 = vmax.f32 %v4529_v29, %v4785_v43  ;;  %v4786_v17 = vmul.f32 0.2, %v4530_v12  ;;  %v4531_v39 = vadd.f32 %v8536_v42, %v4112_v9  ;;  %v4116_v21 = vadd.f32 %v4115_v0, %v3362_v58  ;;  %v3366_v2 = vpop.f32.mrf.mxu1  ;;  %v10578_v9 = vld [vmem:[#allocation7_spill] sm:$0xff]  ;;  %v10579_v19 = vld [vmem:[#allocation44_spill] sm:$0xff]  ;;  %v10606_v23 = vld [vmem:[#allocation13_spill] sm:$0xff] }
 0x3a2   : > { %v4117_v50 = vpop.f32.mrf.mxu0 }
 0x3a3   : > { %v9396_v3 = vmax.f32 %v5040_v13, %v5041_v53  ;;  %v4787_v31 = vmul.f32 0.2, %v4531_v39  ;;  %v4532_v1 = vadd.f32 %v8518_v52, %v4116_v21  ;;  %v3368_v8 = vpop.f32.mrf.mxu1  ;;  %v4118_v38 = vadd.f32 %v4117_v50, %v3364_v25 }
 0x3a4   : > { %v4119_v20 = vpop.f32.mrf.mxu0  ;;  %v5042_v29 = vmax.f32 %v4530_v12, %v4786_v17  ;;  %v10580_v13 = vpack.c.bf16 %v10578_v9, %v10579_v19  ;;  %v10582_v17 = vld [vmem:[#allocation30_spill] sm:$0xff] }
 0x3a5   : > { %10577 = vst [vmem:[#allocation53_spill] sm:$0xff] %v9396_v3  ;;  %v5043_v11 = vmax.f32 %v4531_v39, %v4787_v31  ;;  %v4120_v58 = vadd.f32 %v4119_v20, %v3366_v2  ;;  %v4788_v41 = vmul.f32 0.2, %v4532_v1  ;;  %v4533_v37 = vadd.f32 %v8536_v42, %v4118_v38  ;;  %v10583_v39 = vld [vmem:[#allocation17_spill] sm:$0xff]  ;;  %v7203_v38 = vld [vmem:[%s10339_s6 + $0xb0] sm:$0xff]  }
 0x3a6   : > { %v3372_v43 = vpop.f32.mrf.mxu1  ;;  %5888 = vmatmul.mubr.bf16.vlgmr.msra.gmra.mxu1 %v10580_v13  ;;  %v4121_v25 = vpop.f32.mrf.mxu0  ;;  %v10584_v21 = vpack.c.bf16 %v10582_v17, %v10583_v39 }
 0x3a7   : > { %v9409_v0 = vmax.f32 %v5042_v29, %v5043_v11  ;;  %v4534_v53 = vadd.f32 %v8518_v52, %v4120_v58  ;;  %v4122_v12 = vadd.f32 %v4121_v25, %v3368_v8  ;;  %v4789_v2 = vmul.f32 0.2, %v4533_v37  ;;  %6786 = vmatpush3.bf16.msra.mxu1 %v7201_v22  ;;  %v7204_v8 = vld [vmem:[%s10339_s6 + $0xe8] sm:$0xff]  }
 0x3a8   : > { %5895 = vmatprep.mubr.bf16.mxu1 %v10584_v21  ;;  %v3374_v50 = vpop.f32.mrf.mxu1  ;;  %v4125_v31 = vpop.f32.mrf.mxu0  ;;  %6787 = vmatprep.subr.bf16.mxu1 %v7202_v16  ;;  %v5044_v58 = vmax.f32 %v4532_v1, %v4788_v41 }
 0x3a9   : > { %10581 = vst [vmem:[#allocation7_spill] sm:$0xff] %v9409_v0  ;;  %v4790_v20 = vmul.f32 0.2, %v4534_v53  ;;  %v4535_v9 = vadd.f32 %v8536_v42, %v4122_v12  ;;  %v4126_v29 = vadd.f32 %v4125_v31, %v3372_v43  ;;  %v5045_v22 = vmax.f32 %v4533_v37, %v4789_v2  ;;  %v7205_v31 = vld [vmem:[%s10339_s6 + $0xa8] sm:$0xff]   ;;  %v7206_v37 = vld [vmem:[%s10339_s6 + $0xe0] sm:$0xff]  }
 0x3aa   : > { %v3376_v19 = vpop.f32.mrf.mxu1  ;;  %v4127_v13 = vpop.f32.mrf.mxu0 }
 0x3ab   : > { %v4791_v25 = vmul.f32 0.2, %v4535_v9  ;;  %v4536_v17 = vadd.f32 %v8518_v52, %v4126_v29  ;;  %v4128_v39 = vadd.f32 %v4127_v13, %v3374_v50  ;;  %v9425_v21 = vmax.f32 %v5044_v58, %v5045_v22  ;;  %6788 = vmatpush3.bf16.msra.mxu1 %v7203_v38  ;;  %v10586_v50 = vld [vmem:[#allocation8_spill] sm:$0xff]  ;;  %v10591_v13 = vld [vmem:[#allocation18_spill] sm:$0xff] }
 0x3ac   : > { %v5046_v12 = vmax.f32 %v4534_v53, %v4790_v20  ;;  %v3378_v43 = vpop.f32.mrf.mxu1  ;;  %v4129_v16 = vpop.f32.mrf.mxu0  ;;  %6789 = vmatprep.subr.bf16.mxu1 %v7204_v8  ;;  %v10587_v53 = vld [vmem:[#allocation10_spill] sm:$0xff]  ;;  %v10590_v22 = vld [vmem:[#allocation32_spill] sm:$0xff] }
 0x3ad   : > { %10585 = vst [vmem:[#allocation44_spill] sm:$0xff] %v9425_v21  ;;  %v5047_v32 = vmax.f32 %v4535_v9, %v4791_v25  ;;  %v4792_v11 = vmul.f32 0.2, %v4536_v17  ;;  %v4537_v1 = vadd.f32 %v8536_v42, %v4128_v39  ;;  %v4130_v41 = vadd.f32 %v4129_v16, %v3376_v19  ;;  %v7207_v16 = vld [vmem:[%s10339_s6 + $0xa0] sm:$0xff]  }
 0x3ae   : > { %v3382_v2 = vpop.f32.mrf.mxu1  ;;  %v10588_v20 = vpack.c.bf16 %v10586_v50, %v10587_v53  ;;  %v4131_v38 = vpop.f32.mrf.mxu0  ;;  %v10592_v25 = vpack.c.bf16 %v10590_v22, %v10591_v13 }
 0x3af   : > { %v9437_v29 = vmax.f32 %v5046_v12, %v5047_v32  ;;  %v4793_v58 = vmul.f32 0.2, %v4537_v1  ;;  %v4538_v9 = vadd.f32 %v8518_v52, %v4130_v41  ;;  %v4132_v8 = vadd.f32 %v4131_v38, %v3378_v43  ;;  %6790 = vmatpush3.bf16.msra.mxu1 %v7205_v31  ;;  %v7208_v32 = vld [vmem:[%s10339_s6 + $0xd8] sm:$0xff]  }
 0x3b0   : > { %5896 = vmatmul.mubr.bf16.gmra.mxu1 %v10588_v20  ;;  %v3384_v19 = vpop.f32.mrf.mxu1  ;;  %v4135_v39 = vpop.f32.mrf.mxu0  ;;  %v5048_v50 = vmax.f32 %v4536_v17, %v4792_v11  ;;  %6791 = vmatprep.subr.bf16.mxu1 %v7206_v37  ;;  %v7209_v37 = vld [vmem:[%s10339_s6 + $0x98] sm:$0xff]  }
 0x3b1   : > { %10589 = vst [vmem:[#allocation30_spill] sm:$0xff] %v9437_v29  ;;  %5903 = vmatprep.mubr.bf16.mxu1 %v10592_v25  ;;  %v5049_v53 = vmax.f32 %v4537_v1, %v4793_v58  ;;  %v4136_v20 = vadd.f32 %v4135_v39, %v3382_v2  ;;  %v4794_v41 = vmul.f32 0.2, %v4538_v9  ;;  %v4539_v43 = vadd.f32 %v8536_v42, %v4132_v8  ;;  %v7210_v8 = vld [vmem:[%s10339_s6 + $0xd0] sm:$0xff]  }
 0x3b2   : > { %v3386_v38 = vpop.f32.mrf.mxu1  ;;  %v4137_v31 = vpop.f32.mrf.mxu0 }
 0x3b3   : > { %v4540_v22 = vadd.f32 %v8518_v52, %v4136_v20  ;;  %v4138_v13 = vadd.f32 %v4137_v31, %v3384_v19  ;;  %v9453_v25 = vmax.f32 %v5048_v50, %v5049_v53  ;;  %v4795_v11 = vmul.f32 0.2, %v4539_v43  ;;  %6792 = vmatpush3.bf16.msra.mxu1 %v7207_v16  ;;  %v10593_v20 = vld [vmem:[#allocation11_spill] sm:$0xff]  ;;  %v10594_v31 = vld [vmem:[#allocation9_spill] sm:$0xff] }
 0x3b4   : > { %v3388_v17 = vpop.f32.mrf.mxu1  ;;  %v4139_v1 = vpop.f32.mrf.mxu0  ;;  %6793 = vmatprep.subr.bf16.mxu1 %v7208_v32  ;;  %v5050_v39 = vmax.f32 %v4538_v9, %v4794_v41  ;;  %v10595_v12 = vpack.c.bf16 %v10593_v20, %v10594_v31  ;;  %v7211_v9 = vld [vmem:[%s10339_s6 + $0x90] sm:$0xff]  }
 0x3b5   : > { %v4541_v2 = vadd.f32 %v8536_v42, %v4138_v13  ;;  %v4140_v58 = vadd.f32 %v4139_v1, %v3386_v38  ;;  %v5051_v19 = vmax.f32 %v4539_v43, %v4795_v11  ;;  %v4796_v50 = vmul.f32 0.2, %v4540_v22  ;;  %v10596_v13 = vld [vmem:[#allocation34_spill] sm:$0xff]  ;;  %v10597_v38 = vld [vmem:[#allocation19_spill] sm:$0xff] }
 0x3b6   : > { %v3392_v53 = vpop.f32.mrf.mxu1  ;;  %v4141_v16 = vpop.f32.mrf.mxu0  ;;  %v10598_v32 = vpack.c.bf16 %v10596_v13, %v10597_v38 }
 0x3b7   : > { %v4797_v59 = vmul.f32 0.2, %v4541_v2  ;;  %v4542_v21 = vadd.f32 %v8518_v52, %v4140_v58  ;;  %v4142_v29 = vadd.f32 %v4141_v16, %v3388_v17  ;;  %6794 = vmatpush3.bf16.msra.mxu1 %v7209_v37  ;;  %v9472_v41 = vmax.f32 %v5050_v39, %v5051_v19  ;;  %v7212_v17 = vld [vmem:[%s10339_s6 + $0xc8] sm:$0xff]  }
 0x3b8   : > { %5904 = vmatmul.mubr.bf16.gmra.mxu1 %v10595_v12  ;;  %v3394_v1 = vpop.f32.mrf.mxu1  ;;  %v4145_v3 = vpop.f32.mrf.mxu0  ;;  %6795 = vmatprep.subr.bf16.mxu1 %v7210_v8  ;;  %v5052_v58 = vmax.f32 %v4540_v22, %v4796_v50 }
 0x3b9   : > { %5911 = vmatprep.mubr.bf16.mxu1 %v10598_v32  ;;  %v5053_v43 = vmax.f32 %v4541_v2, %v4797_v59  ;;  %v4543_v12 = vadd.f32 %v8536_v42, %v4142_v29  ;;  %v4146_v11 = vadd.f32 %v4145_v3, %v3392_v53  ;;  %v4798_v20 = vmul.f32 0.2, %v4542_v21  ;;  %v7213_v3 = vld [vmem:[%s10339_s6 + $0x88] sm:$0xff]   ;;  %v7214_v53 = vld [vmem:[%s10339_s6 + $0xc0] sm:$0xff]  }
 0x3ba   : > { %v3396_v31 = vpop.f32.mrf.mxu1  ;;  %v4147_v16 = vpop.f32.mrf.mxu0 }
 0x3bb   : > { %v4799_v13 = vmul.f32 0.2, %v4543_v12  ;;  %v4544_v39 = vadd.f32 %v8518_v52, %v4146_v11  ;;  %v4148_v19 = vadd.f32 %v4147_v16, %v3394_v1  ;;  %6796 = vmatpush3.bf16.msra.mxu1 %v7211_v9  ;;  %v9484_v29 = vmax.f32 %v5052_v58, %v5053_v43  ;;  %v10599_v11 = vld [vmem:[#allocation20_spill] sm:$0xff] }
 0x3bc   : > { %v3398_v59 = vpop.f32.mrf.mxu1  ;;  %v4149_v2 = vpop.f32.mrf.mxu0  ;;  %6797 = vmatprep.subr.bf16.mxu1 %v7212_v17  ;;  %v5054_v38 = vmax.f32 %v4542_v21, %v4798_v20  ;;  %v10600_v9 = vld [vmem:[#allocation12_spill] sm:$0xff]  ;;  %v7215_v21 = vld [vmem:[%s10339_s6 + $0x80] sm:$0xff]  }
 0x3bd   : > { %v5055_v22 = vmax.f32 %v4543_v12, %v4799_v13  ;;  %v4545_v8 = vadd.f32 %v8536_v42, %v4148_v19  ;;  %v4150_v50 = vadd.f32 %v4149_v2, %v3396_v31  ;;  %v4800_v32 = vmul.f32 0.2, %v4544_v39  ;;  %v10602_v58 = vld [vmem:[#allocation36_spill] sm:$0xff]  ;;  %v10603_v13 = vld [vmem:[#allocation21_spill] sm:$0xff] }
 0x3be   : > { %v3402_v1 = vpop.f32.mrf.mxu1  ;;  %v10601_v16 = vpack.c.bf16 %v10599_v11, %v10600_v9  ;;  %v4151_v37 = vpop.f32.mrf.mxu0  ;;  %v10604_v31 = vpack.c.bf16 %v10602_v58, %v10603_v13 }
 0x3bf   : > { %v4801_v0 = vmul.f32 0.2, %v4545_v8  ;;  %v4546_v43 = vadd.f32 %v8518_v52, %v4150_v50  ;;  %v4152_v12 = vadd.f32 %v4151_v37, %v3398_v59  ;;  %6798 = vmatpush3.bf16.msra.mxu1 %v7213_v3  ;;  %v9500_v20 = vmax.f32 %v5054_v38, %v5055_v22  ;;  %v7216_v37 = vld [vmem:[%s10339_s6 + $0x178] sm:$0xff]  }
 0x3c0   : > { %5912 = vmatmul.mubr.bf16.gmra.mxu1 %v10601_v16  ;;  %v3404_v17 = vpop.f32.mrf.mxu1  ;;  %v4155_v19 = vpop.f32.mrf.mxu0  ;;  %6799 = vmatprep.subr.bf16.mxu1 %v7214_v53  ;;  %v5056_v59 = vmax.f32 %v4544_v39, %v4800_v32  ;;  %v10607_v3 = vpack.c.bf16 %v10605_v46, %v10606_v23 }
 0x3c1   : > { %5919 = vmatprep.mubr.bf16.mxu1 %v10604_v31  ;;  %v5057_v2 = vmax.f32 %v4545_v8, %v4801_v0  ;;  %v4547_v11 = vadd.f32 %v8536_v42, %v4152_v12  ;;  %v4156_v9 = vadd.f32 %v4155_v19, %v3402_v1  ;;  %v4802_v50 = vmul.f32 0.2, %v4546_v43 }
 0x3c2   : > { %v3406_v16 = vpop.f32.mrf.mxu1  ;;  %v4157_v58 = vpop.f32.mrf.mxu0 }
 0x3c3   : > { %v4803_v13 = vmul.f32 0.2, %v4547_v11  ;;  %v4548_v22 = vadd.f32 %v8518_v52, %v4156_v9  ;;  %v4158_v38 = vadd.f32 %v4157_v58, %v3404_v17  ;;  %6800 = vmatpush3.bf16.msra.mxu1 %v7215_v21  ;;  %v9509_v1 = vmax.f32 %v5056_v59, %v5057_v2  ;;  %v10608_v21 = vld [vmem:[#allocation38_spill] sm:$0xff]  ;;  %v10609_v2 = vld [vmem:[#allocation23_spill] sm:$0xff] }
 0x3c4   : > { %v3408_v0 = vpop.f32.mrf.mxu1  ;;  %v4159_v8 = vpop.f32.mrf.mxu0  ;;  %6849 = vmatprep.subr.bf16.mxu1 %v7216_v37  ;;  %v5058_v39 = vmax.f32 %v4546_v43, %v4802_v50  ;;  %v10610_v59 = vpack.c.bf16 %v10608_v21, %v10609_v2 }
 0x3c5   : > { %v5059_v53 = vmax.f32 %v4547_v11, %v4803_v13  ;;  %v4549_v12 = vadd.f32 %v8536_v42, %v4158_v38  ;;  %v4160_v31 = vadd.f32 %v4159_v8, %v3406_v16  ;;  %v4804_v32 = vmul.f32 0.2, %v4548_v22 }
 0x3c6   : > { %v3412_v19 = vpop.f32.mrf.mxu1  ;;  %v4161_v34 = vpop.f32.mrf.mxu0 }
 0x3c7   : > { %v4805_v9 = vmul.f32 0.2, %v4549_v12  ;;  %v4550_v17 = vadd.f32 %v8518_v52, %v4160_v31  ;;  %v4162_v58 = vadd.f32 %v4161_v34, %v3408_v0  ;;  %v9519_v16 = vmax.f32 %v5058_v39, %v5059_v53 }
 0x3c8   : > { %5920 = vmatmul.mubr.bf16.gmra.mxu1 %v10607_v3  ;;  %v3414_v11 = vpop.f32.mrf.mxu1  ;;  %v4165_v13 = vpop.f32.mrf.mxu0  ;;  %v5060_v38 = vmax.f32 %v4548_v22, %v4804_v32 }
 0x3c9   : > { %5927 = vmatprep.mubr.bf16.mxu1 %v10610_v59  ;;  %v5061_v43 = vmax.f32 %v4549_v12, %v4805_v9  ;;  %v4551_v37 = vadd.f32 %v8536_v42, %v4162_v58  ;;  %v4166_v50 = vadd.f32 %v4165_v13, %v3412_v19  ;;  %v4806_v46 = vmul.f32 0.2, %v4550_v17  ;;  %v10612_v9 = vld [vmem:[#allocation24_spill] sm:$0xff]  ;;  %v10613_v58 = vld [vmem:[#allocation14_spill] sm:$0xff] }
 0x3ca   : > { %v3416_v23 = vpop.f32.mrf.mxu1  ;;  %v4167_v3 = vpop.f32.mrf.mxu0  ;;  %v10614_v13 = vpack.c.bf16 %v10612_v9, %v10613_v58 }
 0x3cb   : > { %v4807_v34 = vmul.f32 0.2, %v4551_v37  ;;  %v4552_v0 = vadd.f32 %v8518_v52, %v4166_v50  ;;  %v4168_v31 = vadd.f32 %v4167_v3, %v3414_v11  ;;  %v9525_v59 = vmax.f32 %v5060_v38, %v5061_v43  ;;  %v10615_v3 = vld [vmem:[#allocation40_spill] sm:$0xff] }
 0x3cc   : > { %v3418_v21 = vpop.f32.mrf.mxu1  ;;  %v4169_v2 = vpop.f32.mrf.mxu0  ;;  %v5062_v19 = vmax.f32 %v4550_v17, %v4806_v46  ;;  %v10617_v43 = vpack.c.bf16 %v10615_v3, %v10616_v44 }
 0x3cd   : > { %10611 = vst [vmem:[#allocation17_spill] sm:$0xff] %v9525_v59  ;;  %v5063_v53 = vmax.f32 %v4551_v37, %v4807_v34  ;;  %v4553_v12 = vadd.f32 %v8536_v42, %v4168_v31  ;;  %v4170_v39 = vadd.f32 %v4169_v2, %v3416_v23  ;;  %v4808_v22 = vmul.f32 0.2, %v4552_v0  ;;  %v10623_v59 = vld [vmem:[#allocation27_spill] sm:$0xff] }
 0x3ce   : > { %v3422_v32 = vpop.f32.mrf.mxu1  ;;  %v4171_v8 = vpop.f32.mrf.mxu0 }
 0x3cf   : > { %v4809_v54 = vmul.f32 0.2, %v4553_v12  ;;  %v4554_v50 = vadd.f32 %v8518_v52, %v4170_v39  ;;  %v4172_v11 = vadd.f32 %v4171_v8, %v3418_v21  ;;  %v9535_v34 = vmax.f32 %v5062_v19, %v5063_v53 }
 0x3d0   : > { %5928 = vmatmul.mubr.bf16.gmra.mxu1 %v10614_v13  ;;  %v3424_v37 = vpop.f32.mrf.mxu1  ;;  %v4175_v38 = vpop.f32.mrf.mxu0  ;;  %v5064_v31 = vmax.f32 %v4552_v0, %v4808_v22 }
 0x3d1   : > { %5935 = vmatprep.mubr.bf16.mxu1 %v10617_v43  ;;  %v5065_v17 = vmax.f32 %v4553_v12, %v4809_v54  ;;  %v4555_v46 = vadd.f32 %v8536_v42, %v4172_v11  ;;  %v4176_v23 = vadd.f32 %v4175_v38, %v3422_v32  ;;  %v4810_v2 = vmul.f32 0.2, %v4554_v50  ;;  %v10619_v32 = vld [vmem:[#allocation26_spill] sm:$0xff]  ;;  %v10620_v11 = vld [vmem:[#allocation15_spill] sm:$0xff] }
 0x3d2   : > { %v3426_v9 = vpop.f32.mrf.mxu1  ;;  %v4177_v58 = vpop.f32.mrf.mxu0  ;;  %v10621_v38 = vpack.c.bf16 %v10619_v32, %v10620_v11 }
 0x3d3   : > { %v4811_v8 = vmul.f32 0.2, %v4555_v46  ;;  %v4556_v21 = vadd.f32 %v8518_v52, %v4176_v23  ;;  %v4178_v44 = vadd.f32 %v4177_v58, %v3424_v37  ;;  %v9541_v43 = vmax.f32 %v5064_v31, %v5065_v17  ;;  %v10622_v58 = vld [vmem:[#allocation42_spill] sm:$0xff] }
 0x3d4   : > { %v3428_v13 = vpop.f32.mrf.mxu1  ;;  %v4179_v3 = vpop.f32.mrf.mxu0  ;;  %v5066_v19 = vmax.f32 %v4554_v50, %v4810_v2  ;;  %v10624_v17 = vpack.c.bf16 %v10622_v58, %v10623_v59 }
 0x3d5   : > { %10618 = vst [vmem:[#allocation8_spill] sm:$0xff] %v9541_v43  ;;  %v5067_v53 = vmax.f32 %v4555_v46, %v4811_v8  ;;  %v4557_v54 = vadd.f32 %v8536_v42, %v4178_v44  ;;  %v4180_v12 = vadd.f32 %v4179_v3, %v3426_v9  ;;  %v4812_v0 = vmul.f32 0.2, %v4556_v21 }
 0x3d6   : > { %v3432_v22 = vpop.f32.mrf.mxu1  ;;  %v4181_v39 = vpop.f32.mrf.mxu0 }
 0x3d7   : > { %v4813_v61 = vmul.f32 0.2, %v4557_v54  ;;  %v4558_v23 = vadd.f32 %v8518_v52, %v4180_v12  ;;  %v4182_v37 = vadd.f32 %v4181_v39, %v3428_v13  ;;  %v9551_v8 = vmax.f32 %v5066_v19, %v5067_v53 }
 0x3d8   : > { %5936 = vmatmul.mubr.bf16.gmra.mxu1 %v10621_v38  ;;  %v3434_v46 = vpop.f32.mrf.mxu1  ;;  %v4185_v31 = vpop.f32.mrf.mxu0  ;;  %v5068_v44 = vmax.f32 %v4556_v21, %v4812_v0 }
 0x3d9   : > { %5943 = vmatprep.mubr.bf16.mxu1 %v10624_v17  ;;  %v5069_v50 = vmax.f32 %v4557_v54, %v4813_v61  ;;  %v4559_v2 = vadd.f32 %v8536_v42, %v4182_v37  ;;  %v4186_v9 = vadd.f32 %v4185_v31, %v3432_v22  ;;  %v4814_v3 = vmul.f32 0.2, %v4558_v23  ;;  %v10626_v22 = vld [vmem:[#allocation28_spill] sm:$0xff] }
 0x3da   : > { %v3436_v32 = vpop.f32.mrf.mxu1  ;;  %v4187_v11 = vpop.f32.mrf.mxu0  ;;  %v10627_v37 = vld [vmem:[#allocation16_spill] sm:$0xff] }
 0x3db   : > { %v4815_v39 = vmul.f32 0.2, %v4559_v2  ;;  %v4560_v13 = vadd.f32 %v8518_v52, %v4186_v9  ;;  %v4188_v59 = vadd.f32 %v4187_v11, %v3434_v46  ;;  %v9557_v17 = vmax.f32 %v5068_v44, %v5069_v50 }
 0x3dc   : > { %v3438_v38 = vpop.f32.mrf.mxu1  ;;  %v4189_v58 = vpop.f32.mrf.mxu0  ;;  %v5070_v19 = vmax.f32 %v4558_v23, %v4814_v3  ;;  %v10628_v31 = vpack.c.bf16 %v10626_v22, %v10627_v37  ;;  %v10629_v50 = vpack.c.bf16 %v9171_v30, %v9162_v35  ;;  %v7217_v30 = vld [vmem:[%s10339_s6 + $0x138] sm:$0xff]  }
 0x3dd   : > { %10625 = vst [vmem:[#allocation10_spill] sm:$0xff] %v9557_v17  ;;  %v5071_v53 = vmax.f32 %v4559_v2, %v4815_v39  ;;  %v4561_v61 = vadd.f32 %v8536_v42, %v4188_v59  ;;  %v4190_v54 = vadd.f32 %v4189_v58, %v3436_v32  ;;  %v4816_v21 = vmul.f32 0.2, %v4560_v13 }
 0x3de   : > { %v3442_v0 = vpop.f32.mrf.mxu1  ;;  %v4191_v12 = vpop.f32.mrf.mxu0 }
 0x3df   : > { %v4817_v43 = vmul.f32 0.2, %v4561_v61  ;;  %v4562_v9 = vadd.f32 %v8518_v52, %v4190_v54  ;;  %v4192_v46 = vadd.f32 %v4191_v12, %v3438_v38  ;;  %v9567_v11 = vmax.f32 %v5070_v19, %v5071_v53 }
 0x3e0   : > { %5944 = vmatmul.mubr.bf16.gmra.mxu1 %v10628_v31  ;;  %v3444_v2 = vpop.f32.mrf.mxu1  ;;  %v4195_v44 = vpop.f32.mrf.mxu0  ;;  %v5072_v39 = vmax.f32 %v4560_v13, %v4816_v21  ;;  %v7218_v13 = vld [vmem:[%s10339_s6 + $0x170] sm:$0xff]  }
 0x3e1   : > { %5984 = vmatprep.mubr.bf16.mxu1 %v10629_v50  ;;  %v5073_v23 = vmax.f32 %v4561_v61, %v4817_v43  ;;  %v4563_v3 = vadd.f32 %v8536_v42, %v4192_v46  ;;  %v4196_v32 = vadd.f32 %v4195_v44, %v3442_v0  ;;  %v4818_v59 = vmul.f32 0.2, %v4562_v9  ;;  %v10630_v50 = vld [vmem:[#allocation31_spill] sm:$0xff] }
 0x3e2   : > { %v3446_v58 = vpop.f32.mrf.mxu1  ;;  %v4197_v22 = vpop.f32.mrf.mxu0 }
 0x3e3   : > { %v4819_v12 = vmul.f32 0.2, %v4563_v3  ;;  %v4564_v38 = vadd.f32 %v8518_v52, %v4196_v32  ;;  %v4198_v35 = vadd.f32 %v4197_v22, %v3444_v2  ;;  %v9579_v61 = vmax.f32 %v5072_v39, %v5073_v23  ;;  %v10631_v2 = vld [vmem:[#allocation29_spill] sm:$0xff] }
 0x3e4   : > { %v3448_v53 = vpop.f32.mrf.mxu1  ;;  %v4199_v43 = vpop.f32.mrf.mxu0  ;;  %v5074_v37 = vmax.f32 %v4562_v9, %v4818_v59  ;;  %v10632_v44 = vpack.c.bf16 %v10630_v50, %v10631_v2  ;;  %v10633_v23 = vpack.c.bf16 %v9187_v15, %v9178_v10  ;;  %v7219_v9 = vld [vmem:[%s10339_s6 + $0x130] sm:$0xff]   ;;  %v7220_v59 = vld [vmem:[%s10339_s6 + $0x168] sm:$0xff]  }
 0x3e5   : > { %v5075_v19 = vmax.f32 %v4563_v3, %v4819_v12  ;;  %v4565_v21 = vadd.f32 %v8536_v42, %v4198_v35  ;;  %v4200_v0 = vadd.f32 %v4199_v43, %v3446_v58  ;;  %v4820_v31 = vmul.f32 0.2, %v4564_v38 }
 0x3e6   : > { %v3452_v46 = vpop.f32.mrf.mxu1  ;;  %v4201_v32 = vpop.f32.mrf.mxu0 }
 0x3e7   : > { %v4821_v22 = vmul.f32 0.2, %v4565_v21  ;;  %v4566_v54 = vadd.f32 %v8518_v52, %v4200_v0  ;;  %v4202_v17 = vadd.f32 %v4201_v32, %v3448_v53  ;;  %v9595_v58 = vmax.f32 %v5074_v37, %v5075_v19  ;;  %v7221_v19 = vld [vmem:[%s10339_s6 + $0x128] sm:$0xff]  }
 0x3e8   : > { %5985 = vmatmul.mubr.bf16.vlgmr.msra.gmra.mxu1 %v10632_v44  ;;  %v3454_v3 = vpop.f32.mrf.mxu1  ;;  %v4205_v39 = vpop.f32.mrf.mxu0  ;;  %v5076_v10 = vmax.f32 %v4564_v38, %v4820_v31 }
 0x3e9   : > { %5992 = vmatprep.mubr.bf16.mxu1 %v10633_v23  ;;  %6850 = vmatpush3.bf16.msra.mxu1 %v7217_v30  ;;  %v5077_v12 = vmax.f32 %v4565_v21, %v4821_v22  ;;  %v4567_v35 = vadd.f32 %v8536_v42, %v4202_v17  ;;  %v4206_v53 = vadd.f32 %v4205_v39, %v3452_v46  ;;  %v4822_v15 = vmul.f32 0.2, %v4566_v54  ;;  %v7222_v17 = vld [vmem:[%s10339_s6 + $0x160] sm:$0xff]  }
 0x3ea   : > { %6851 = vmatprep.subr.bf16.mxu1 %v7218_v13  ;;  %v3456_v30 = vpop.f32.mrf.mxu1  ;;  %v4207_v43 = vpop.f32.mrf.mxu0 }
 0x3eb   : > { %v4823_v50 = vmul.f32 0.2, %v4567_v35  ;;  %v4568_v13 = vadd.f32 %v8518_v52, %v4206_v53  ;;  %v4208_v2 = vadd.f32 %v4207_v43, %v3454_v3  ;;  %v9607_v38 = vmax.f32 %v5076_v10, %v5077_v12  ;;  %v10635_v3 = vld [vmem:[#allocation33_spill] sm:$0xff] }
 0x3ec   : > { %v3458_v21 = vpop.f32.mrf.mxu1  ;;  %v4209_v37 = vpop.f32.mrf.mxu0  ;;  %v5078_v22 = vmax.f32 %v4566_v54, %v4822_v15  ;;  %v10637_v12 = vpack.c.bf16 %v9203_v7, %v9194_v40 }
 0x3ed   : > { %6852 = vmatpush3.bf16.msra.mxu1 %v7219_v9  ;;  %v5079_v31 = vmax.f32 %v4567_v35, %v4823_v50  ;;  %v4824_v46 = vmul.f32 0.2, %v4568_v13  ;;  %v4569_v44 = vadd.f32 %v8536_v42, %v4208_v2  ;;  %v4210_v32 = vadd.f32 %v4209_v37, %v3456_v30  ;;  %v10634_v9 = vld [vmem:[#allocation45_spill] sm:$0xff] }
 0x3ee   : > { %6853 = vmatprep.subr.bf16.mxu1 %v7220_v59  ;;  %v3462_v23 = vpop.f32.mrf.mxu1  ;;  %v10636_v39 = vpack.c.bf16 %v10634_v9, %v10635_v3  ;;  %v4211_v53 = vpop.f32.mrf.mxu0  ;;  %v7223_v35 = vld [vmem:[%s10339_s6 + $0x120] sm:$0xff]   ;;  %v7224_v30 = vld [vmem:[%s10339_s6 + $0x158] sm:$0xff]  }
 0x3ef   : > { %v4825_v43 = vmul.f32 0.2, %v4569_v44  ;;  %v4570_v59 = vadd.f32 %v8518_v52, %v4210_v32  ;;  %v4212_v0 = vadd.f32 %v4211_v53, %v3458_v21  ;;  %v5080_v54 = vmax.f32 %v4568_v13, %v4824_v46 }
 0x3f0   : > { %5993 = vmatmul.mubr.bf16.gmra.mxu1 %v10636_v39  ;;  %v3464_v10 = vpop.f32.mrf.mxu1  ;;  %v4215_v15 = vpop.f32.mrf.mxu0  ;;  %v9623_v50 = vmax.f32 %v5078_v22, %v5079_v31  ;;  %v7226_v39 = vld [vmem:[%s10339_s6 + $0x150] sm:$0xff]  }
 0x3f1   : > { %6000 = vmatprep.mubr.bf16.mxu1 %v10637_v12  ;;  %6854 = vmatpush3.bf16.msra.mxu1 %v7221_v19  ;;  %v5081_v2 = vmax.f32 %v4569_v44, %v4825_v43  ;;  %v4826_v21 = vmul.f32 0.2, %v4570_v59  ;;  %v4571_v40 = vadd.f32 %v8536_v42, %v4212_v0  ;;  %v4216_v7 = vadd.f32 %v4215_v15, %v3462_v23  ;;  %v7225_v0 = vld [vmem:[%s10339_s6 + $0x118] sm:$0xff]  }
 0x3f2   : > { %6855 = vmatprep.subr.bf16.mxu1 %v7222_v17  ;;  %v3466_v19 = vpop.f32.mrf.mxu1  ;;  %v4217_v37 = vpop.f32.mrf.mxu0 }
 0x3f3   : > { %v9628_v13 = vmax.f32 %v5080_v54, %v5081_v2  ;;  %v4827_v46 = vmul.f32 0.2, %v4571_v40  ;;  %v4572_v17 = vadd.f32 %v8518_v52, %v4216_v7  ;;  %v4218_v9 = vadd.f32 %v4217_v37, %v3464_v10  ;;  %v10639_v54 = vld [vmem:[#allocation35_spill] sm:$0xff] }
 0x3f4   : > { %v3468_v3 = vpop.f32.mrf.mxu1  ;;  %v4219_v31 = vpop.f32.mrf.mxu0  ;;  %v5082_v44 = vmax.f32 %v4570_v59, %v4826_v21  ;;  %v10641_v21 = vpack.c.bf16 %v9219_v48, %v9210_v62  ;;  %v7227_v37 = vld [vmem:[%s10339_s6 + $0x110] sm:$0xff]   ;;  %v7228_v62 = vld [vmem:[%s10339_s6 + $0x148] sm:$0xff]  }
 0x3f5   : > { %6856 = vmatpush3.bf16.msra.mxu1 %v7223_v35  ;;  %v5083_v22 = vmax.f32 %v4571_v40, %v4827_v46  ;;  %v4220_v23 = vadd.f32 %v4219_v31, %v3466_v19  ;;  %v4828_v53 = vmul.f32 0.2, %v4572_v17  ;;  %v4573_v43 = vadd.f32 %v8536_v42, %v4218_v9  ;;  %v10638_v35 = vld [vmem:[#allocation46_spill] sm:$0xff] }
 0x3f6   : > { %6857 = vmatprep.subr.bf16.mxu1 %v7224_v30  ;;  %v3472_v12 = vpop.f32.mrf.mxu1  ;;  %v10640_v10 = vpack.c.bf16 %v10638_v35, %v10639_v54  ;;  %v4221_v15 = vpop.f32.mrf.mxu0 }
 0x3f7   : > { %v9641_v30 = vmax.f32 %v5082_v44, %v5083_v22  ;;  %v4574_v2 = vadd.f32 %v8518_v52, %v4220_v23  ;;  %v4222_v59 = vadd.f32 %v4221_v15, %v3468_v3  ;;  %v4829_v40 = vmul.f32 0.2, %v4573_v43 }
 0x3f8   : > { %6001 = vmatmul.mubr.bf16.gmra.mxu1 %v10640_v10  ;;  %v3474_v7 = vpop.f32.mrf.mxu1  ;;  %v4225_v19 = vpop.f32.mrf.mxu0  ;;  %v5084_v48 = vmax.f32 %v4572_v17, %v4828_v53 }
 0x3f9   : > { %6008 = vmatprep.mubr.bf16.mxu1 %v10641_v21  ;;  %6858 = vmatpush3.bf16.msra.mxu1 %v7225_v0  ;;  %v4830_v9 = vmul.f32 0.2, %v4574_v2  ;;  %v4575_v31 = vadd.f32 %v8536_v42, %v4222_v59  ;;  %v4226_v44 = vadd.f32 %v4225_v19, %v3472_v12  ;;  %v5085_v3 = vmax.f32 %v4573_v43, %v4829_v40  ;;  %v7230_v43 = vld [vmem:[%s10339_s6 + $0x140] sm:$0xff]  }
 0x3fa   : > { %6859 = vmatprep.subr.bf16.mxu1 %v7226_v39  ;;  %v3476_v22 = vpop.f32.mrf.mxu1  ;;  %v4227_v0 = vpop.f32.mrf.mxu0  ;;  %v7229_v39 = vld [vmem:[%s10339_s6 + $0x108] sm:$0xff]  }
 0x3fb   : > { %v4831_v23 = vmul.f32 0.2, %v4575_v31  ;;  %v4576_v35 = vadd.f32 %v8518_v52, %v4226_v44  ;;  %v4228_v54 = vadd.f32 %v4227_v0, %v3474_v7  ;;  %v9657_v10 = vmax.f32 %v5084_v48, %v5085_v3  ;;  %v7231_v3 = vld [vmem:[%s10339_s6 + $0x100] sm:$0xff]  }
 0x3fc   : > { %v5086_v15 = vmax.f32 %v4574_v2, %v4830_v9  ;;  %v3478_v21 = vpop.f32.mrf.mxu1  ;;  %v4229_v46 = vpop.f32.mrf.mxu0  ;;  %v10642_v2 = vld [vmem:[#allocation37_spill] sm:$0xff]  ;;  %v10644_v44 = vpack.c.bf16 %v9235_v63, %v9226_v6 }
 0x3fd   : > { %6860 = vmatpush3.bf16.msra.mxu1 %v7227_v37  ;;  %v5087_v12 = vmax.f32 %v4575_v31, %v4831_v23  ;;  %v4832_v59 = vmul.f32 0.2, %v4576_v35  ;;  %v4577_v17 = vadd.f32 %v8536_v42, %v4228_v54  ;;  %v4230_v53 = vadd.f32 %v4229_v46, %v3476_v22  ;;  %v7232_v23 = vld [vmem:[%s10339_s6 + $0x1f8] sm:$0xff]  }
 0x3fe   : > { %6861 = vmatprep.subr.bf16.mxu1 %v7228_v62  ;;  %v3482_v40 = vpop.f32.mrf.mxu1  ;;  %v10643_v7 = vpack.c.bf16 %v9079_v55, %v10642_v2  ;;  %v4231_v19 = vpop.f32.mrf.mxu0 }
 0x3ff   : > { %v9669_v37 = vmax.f32 %v5086_v15, %v5087_v12  ;;  %v4833_v9 = vmul.f32 0.2, %v4577_v17  ;;  %v4578_v31 = vadd.f32 %v8518_v52, %v4230_v53  ;;  %v4232_v46 = vadd.f32 %v4231_v19, %v3478_v21 }
 0x400   : > { %6009 = vmatmul.mubr.bf16.gmra.mxu1 %v10643_v7  ;;  %v3484_v62 = vpop.f32.mrf.mxu1  ;;  %v4235_v48 = vpop.f32.mrf.mxu0  ;;  %v5088_v55 = vmax.f32 %v4576_v35, %v4832_v59 }
 0x401   : > { %6016 = vmatprep.mubr.bf16.mxu1 %v10644_v44  ;;  %6862 = vmatpush3.bf16.msra.mxu1 %v7229_v39  ;;  %v5089_v22 = vmax.f32 %v4577_v17, %v4833_v9  ;;  %v4236_v0 = vadd.f32 %v4235_v48, %v3482_v40  ;;  %v4834_v63 = vmul.f32 0.2, %v4578_v31  ;;  %v4579_v54 = vadd.f32 %v8536_v42, %v4232_v46  ;;  %v10645_v44 = vld [vmem:[#allocation47_spill] sm:$0xff] }
 0x402   : > { %6863 = vmatprep.subr.bf16.mxu1 %v7230_v43  ;;  %v3486_v15 = vpop.f32.mrf.mxu1  ;;  %v4237_v21 = vpop.f32.mrf.mxu0  ;;  %v10646_v46 = vld [vmem:[#allocation39_spill] sm:$0xff] }
 0x403   : > { %v9684_v39 = vmax.f32 %v5088_v55, %v5089_v22  ;;  %v4580_v12 = vadd.f32 %v8518_v52, %v4236_v0  ;;  %v4238_v35 = vadd.f32 %v4237_v21, %v3484_v62  ;;  %v4835_v59 = vmul.f32 0.2, %v4579_v54 }
 0x404   : > { %v3488_v17 = vpop.f32.mrf.mxu1  ;;  %v4239_v53 = vpop.f32.mrf.mxu0  ;;  %v5090_v7 = vmax.f32 %v4578_v31, %v4834_v63  ;;  %v10647_v48 = vpack.c.bf16 %v10645_v44, %v10646_v46 }
 0x405   : > { %6864 = vmatpush3.bf16.msra.mxu1 %v7231_v3  ;;  %v4836_v43 = vmul.f32 0.2, %v4580_v12  ;;  %v4581_v40 = vadd.f32 %v8536_v42, %v4238_v35  ;;  %v4240_v2 = vadd.f32 %v4239_v53, %v3486_v15  ;;  %v5091_v19 = vmax.f32 %v4579_v54, %v4835_v59 }
 0x406   : > { %6913 = vmatprep.subr.bf16.mxu1 %v7232_v23  ;;  %v3492_v9 = vpop.f32.mrf.mxu1  ;;  %v4241_v55 = vpop.f32.mrf.mxu0  ;;  %v10648_v3 = vpack.c.bf16 %v9251_v49, %v9242_v56 }
 0x407   : > { %v4837_v22 = vmul.f32 0.2, %v4581_v40  ;;  %v4582_v62 = vadd.f32 %v8518_v52, %v4240_v2  ;;  %v4242_v0 = vadd.f32 %v4241_v55, %v3488_v17  ;;  %v9695_v21 = vmax.f32 %v5090_v7, %v5091_v19  ;;  %v10681_v2 = vld [vmem:[#allocation10_spill] sm:$0xff] }
 0x408   : > { %6017 = vmatmul.mubr.bf16.gmra.mxu1 %v10647_v48  ;;  %v5092_v15 = vmax.f32 %v4580_v12, %v4836_v43  ;;  %v3494_v23 = vpop.f32.mrf.mxu1  ;;  %v4245_v31 = vpop.f32.mrf.mxu0 }
 0x409   : > { %6024 = vmatprep.mubr.bf16.mxu1 %v10648_v3  ;;  %v5093_v63 = vmax.f32 %v4581_v40, %v4837_v22  ;;  %v4838_v54 = vmul.f32 0.2, %v4582_v62  ;;  %v4583_v35 = vadd.f32 %v8536_v42, %v4242_v0  ;;  %v4246_v59 = vadd.f32 %v4245_v31, %v3492_v9 }
 0x40a   : > { %v3496_v53 = vpop.f32.mrf.mxu1  ;;  %v4247_v44 = vpop.f32.mrf.mxu0  ;;  %v10650_v22 = vpack.c.bf16 %v9119_v28, %v9109_v60 }
 0x40b   : > { %v9700_v17 = vmax.f32 %v5092_v15, %v5093_v63  ;;  %v4839_v46 = vmul.f32 0.2, %v4583_v35  ;;  %v4584_v56 = vadd.f32 %v8518_v52, %v4246_v59  ;;  %v4248_v49 = vadd.f32 %v4247_v44, %v3494_v23 }
 0x40c   : > { %v3498_v7 = vpop.f32.mrf.mxu1  ;;  %v4249_v12 = vpop.f32.mrf.mxu0  ;;  %v5094_v43 = vmax.f32 %v4582_v62, %v4838_v54  ;;  %v10652_v23 = vpack.c.bf16 %v9270_v26, %v9260_v27 }
 0x40d   : > { %10649 = vst [vmem:[#allocation32_spill] sm:$0xff] %v9700_v17  ;;  %v5095_v19 = vmax.f32 %v4583_v35, %v4839_v46  ;;  %v4250_v40 = vadd.f32 %v4249_v12, %v3496_v53  ;;  %v4840_v48 = vmul.f32 0.2, %v4584_v56  ;;  %v4585_v55 = vadd.f32 %v8536_v42, %v4248_v49  ;;  %v10689_v17 = vld [vmem:[#allocation53_spill] sm:$0xff] }
 0x40e   : > { %v3502_v9 = vpop.f32.mrf.mxu1  ;;  %v4251_v0 = vpop.f32.mrf.mxu0 }
 0x40f   : > { %v9707_v3 = vmax.f32 %v5094_v43, %v5095_v19  ;;  %v4586_v15 = vadd.f32 %v8518_v52, %v4250_v40  ;;  %v4252_v31 = vadd.f32 %v4251_v0, %v3498_v7  ;;  %v4841_v62 = vmul.f32 0.2, %v4585_v55 }
 0x410   : > { %6025 = vmatmul.mubr.bf16.gmra.mxu1 %v10650_v22  ;;  %v3504_v63 = vpop.f32.mrf.mxu1  ;;  %v4255_v54 = vpop.f32.mrf.mxu0  ;;  %v5096_v60 = vmax.f32 %v4584_v56, %v4840_v48  ;;  %v10654_v56 = vpack.c.bf16 %v9133_v33, %v9126_v5 }
 0x411   : > { %10651 = vst [vmem:[#allocation18_spill] sm:$0xff] %v9707_v3  ;;  %6032 = vmatprep.mubr.bf16.mxu1 %v10652_v23  ;;  %v4842_v35 = vmul.f32 0.2, %v4586_v15  ;;  %v4587_v59 = vadd.f32 %v8536_v42, %v4252_v31  ;;  %v4256_v53 = vadd.f32 %v4255_v54, %v3502_v9  ;;  %v5097_v44 = vmax.f32 %v4585_v55, %v4841_v62 }
 0x412   : > { %v3506_v46 = vpop.f32.mrf.mxu1  ;;  %v4257_v49 = vpop.f32.mrf.mxu0 }
 0x413   : > { %v4843_v12 = vmul.f32 0.2, %v4587_v59  ;;  %v4588_v7 = vadd.f32 %v8518_v52, %v4256_v53  ;;  %v4258_v43 = vadd.f32 %v4257_v49, %v3504_v63  ;;  %v9717_v27 = vmax.f32 %v5096_v60, %v5097_v44 }
 0x414   : > { %v5098_v26 = vmax.f32 %v4586_v15, %v4842_v35  ;;  %v3508_v19 = vpop.f32.mrf.mxu1  ;;  %v4259_v40 = vpop.f32.mrf.mxu0  ;;  %v10656_v15 = vpack.c.bf16 %v9287_v51, %v9280_v57 }
 0x415   : > { %10653 = vst [vmem:[#allocation11_spill] sm:$0xff] %v9717_v27  ;;  %v5099_v22 = vmax.f32 %v4587_v59, %v4843_v12  ;;  %v4844_v0 = vmul.f32 0.2, %v4588_v7  ;;  %v4589_v9 = vadd.f32 %v8536_v42, %v4258_v43  ;;  %v4260_v31 = vadd.f32 %v4259_v40, %v3506_v46 }
 0x416   : > { %v3512_v23 = vpop.f32.mrf.mxu1  ;;  %v4261_v48 = vpop.f32.mrf.mxu0 }
 0x417   : > { %v9723_v55 = vmax.f32 %v5098_v26, %v5099_v22  ;;  %v4845_v62 = vmul.f32 0.2, %v4589_v9  ;;  %v4590_v63 = vadd.f32 %v8518_v52, %v4260_v31  ;;  %v4262_v54 = vadd.f32 %v4261_v48, %v3508_v19 }
 0x418   : > { %6033 = vmatmul.mubr.bf16.gmra.mxu1 %v10654_v56  ;;  %v3514_v35 = vpop.f32.mrf.mxu1  ;;  %v4265_v59 = vpop.f32.mrf.mxu0  ;;  %v5100_v53 = vmax.f32 %v4588_v7, %v4844_v0  ;;  %v10658_v56 = vld [vmem:[#allocation41_spill] sm:$0xff] }
 0x419   : > { %10655 = vst [vmem:[#allocation9_spill] sm:$0xff] %v9723_v55  ;;  %6040 = vmatprep.mubr.bf16.mxu1 %v10656_v15  ;;  %v5101_v60 = vmax.f32 %v4589_v9, %v4845_v62  ;;  %v4266_v44 = vadd.f32 %v4265_v59, %v3512_v23  ;;  %v4846_v33 = vmul.f32 0.2, %v4590_v63  ;;  %v4591_v46 = vadd.f32 %v8536_v42, %v4262_v54  ;;  %v10688_v55 = vld [vmem:[#allocation7_spill] sm:$0xff] }
 0x41a   : > { %v3516_v49 = vpop.f32.mrf.mxu1  ;;  %v4267_v12 = vpop.f32.mrf.mxu0  ;;  %v10659_v48 = vpack.c.bf16 %v9152_v14, %v10658_v56  ;;  %v10690_v3 = vpack.c.bf16 %v10688_v55, %v10689_v17 }
 0x41b   : > { %v9732_v43 = vmax.f32 %v5100_v53, %v5101_v60  ;;  %v4592_v26 = vadd.f32 %v8518_v52, %v4266_v44  ;;  %v4268_v57 = vadd.f32 %v4267_v12, %v3514_v35  ;;  %v4847_v51 = vmul.f32 0.2, %v4591_v46 }
 0x41c   : > { %v3518_v19 = vpop.f32.mrf.mxu1  ;;  %v4269_v40 = vpop.f32.mrf.mxu0  ;;  %v5102_v9 = vmax.f32 %v4590_v63, %v4846_v33  ;;  %v10660_v35 = vpack.c.bf16 %v9472_v41, %v9453_v25 }
 0x41d   : > { %10657 = vst [vmem:[#allocation34_spill] sm:$0xff] %v9732_v43  ;;  %v4848_v22 = vmul.f32 0.2, %v4592_v26  ;;  %v4593_v7 = vadd.f32 %v8536_v42, %v4268_v57  ;;  %v4270_v0 = vadd.f32 %v4269_v40, %v3516_v49  ;;  %v5103_v31 = vmax.f32 %v4591_v46, %v4847_v51 }
 0x41e   : > { %v3522_v23 = vpop.f32.mrf.mxu1  ;;  %v4271_v62 = vpop.f32.mrf.mxu0 }
 0x41f   : > { %v4849_v15 = vmul.f32 0.2, %v4593_v7  ;;  %v4594_v54 = vadd.f32 %v8518_v52, %v4270_v0  ;;  %v4272_v59 = vadd.f32 %v4271_v62, %v3518_v19  ;;  %v9743_v53 = vmax.f32 %v5102_v9, %v5103_v31 }
 0x420   : > { %6041 = vmatmul.mubr.bf16.gmra.mxu1 %v10659_v48  ;;  %v5104_v60 = vmax.f32 %v4592_v26, %v4848_v22  ;;  %v3524_v44 = vpop.f32.mrf.mxu1  ;;  %v4275_v63 = vpop.f32.mrf.mxu0  ;;  %v7233_v22 = vld [vmem:[%s10339_s6 + $0x1b8] sm:$0xff]  }
 0x421   : > { %6081 = vmatprep.mubr.bf16.mxu1 %v10660_v35  ;;  %10661 = vst [vmem:[#allocation19_spill] sm:$0xff] %v9743_v53  ;;  %v5105_v33 = vmax.f32 %v4593_v7, %v4849_v15  ;;  %v4850_v46 = vmul.f32 0.2, %v4594_v54  ;;  %v4595_v49 = vadd.f32 %v8536_v42, %v4272_v59  ;;  %v4276_v14 = vadd.f32 %v4275_v63, %v3522_v23  ;;  %v7234_v23 = vld [vmem:[%s10339_s6 + $0x1f0] sm:$0xff]  }
 0x422   : > { %v3526_v12 = vpop.f32.mrf.mxu1  ;;  %v4277_v57 = vpop.f32.mrf.mxu0  ;;  %v10663_v15 = vpack.c.bf16 %v9301_v47, %v9293_v4  ;;  %v7235_v4 = vld [vmem:[%s10339_s6 + $0x1b0] sm:$0xff]  }
 0x423   : > { %v9748_v19 = vmax.f32 %v5104_v60, %v5105_v33  ;;  %v4851_v40 = vmul.f32 0.2, %v4595_v49  ;;  %v4596_v25 = vadd.f32 %v8518_v52, %v4276_v14  ;;  %v4278_v41 = vadd.f32 %v4277_v57, %v3524_v44  ;;  %v7236_v14 = vld [vmem:[%s10339_s6 + $0x1e8] sm:$0xff]  }
 0x424   : > { %v3528_v0 = vpop.f32.mrf.mxu1  ;;  %v4279_v26 = vpop.f32.mrf.mxu0  ;;  %v5106_v7 = vmax.f32 %v4594_v54, %v4850_v46  ;;  %v10665_v44 = vpack.c.bf16 %v9500_v20, %v9484_v29 }
 0x425   : > { %10662 = vst [vmem:[#allocation20_spill] sm:$0xff] %v9748_v19  ;;  %v5107_v9 = vmax.f32 %v4595_v49, %v4851_v40  ;;  %v4280_v31 = vadd.f32 %v4279_v26, %v3526_v12  ;;  %v4852_v56 = vmul.f32 0.2, %v4596_v25  ;;  %v4597_v48 = vadd.f32 %v8536_v42, %v4278_v41  ;;  %v10684_v19 = vld [vmem:[#allocation51_spill] sm:$0xff] }
 0x426   : > { %v9758_v62 = vpop.f32.mrf.mxu1  ;;  %v4281_v59 = vpop.f32.mrf.mxu0 }
 0x427   : > { %v9763_v35 = vmax.f32 %v5106_v7, %v5107_v9  ;;  %v4598_v54 = vadd.f32 %v8518_v52, %v4280_v31  ;;  %v4282_v60 = vadd.f32 %v4281_v59, %v3528_v0  ;;  %v4853_v63 = vmul.f32 0.2, %v4597_v48  ;;  %v7237_v7 = vld [vmem:[%s10339_s6 + $0x1a8] sm:$0xff]  }
 0x428   : > { %6082 = vmatmul.mubr.bf16.vlgmr.msra.gmra.mxu1 %v10663_v15  ;;  %v9769_v33 = vpop.f32.mrf.mxu1  ;;  %v9771_v46 = vpop.f32.mrf.mxu0  ;;  %v5108_v20 = vmax.f32 %v4596_v25, %v4852_v56  ;;  %v7238_v25 = vld [vmem:[%s10339_s6 + $0x1e0] sm:$0xff]   ;;  %v10667_v56 = vpack.c.bf16 %v9318_v36, %v9311_v24  ;;  %v10669_v59 = vpack.c.bf16 %v9519_v16, %v9509_v1  ;;  %v7240_v24 = vld [vmem:[%s10339_s6 + $0x1d8] sm:$0xff]  }
 0x429   : > { %10664 = vst [vmem:[#allocation12_spill] sm:$0xff] %v9763_v35  ;;  %6089 = vmatprep.mubr.bf16.mxu1 %v10665_v44  ;;  %6914 = vmatpush3.bf16.msra.mxu1 %v7233_v22  ;;  %v4854_v47 = vmul.f32 0.2, %v4598_v54  ;;  %v4599_v49 = vadd.f32 %v8536_v42, %v4282_v60  ;;  %v5109_v12 = vmax.f32 %v4597_v48, %v4853_v63  ;;  %v7239_v44 = vld [vmem:[%s10339_s6 + $0x1a0] sm:$0xff]   ;;  %v10676_v36 = vld [vmem:[#allocation8_spill] sm:$0xff] }
 0x42a   : > { %6915 = vmatprep.subr.bf16.mxu1 %v7234_v23  ;;  %v9782_v57 = vpop.f32.mrf.mxu1  ;;  %v9784_v40 = vpop.f32.mrf.mxu0  ;;  %v10677_v29 = vpack.c.bf16 %v9551_v8, %v10676_v36  ;;  %v10679_v36 = vld [vmem:[#allocation49_spill] sm:$0xff] }
 0x42b   : > { %v4855_v41 = vmul.f32 0.2, %v4599_v49  ;;  %v9786_v0 = vmax.f32 %v5108_v20, %v5109_v12  ;;  %v5110_v9 = vmax.f32 %v4598_v54, %v4854_v47  ;;  %v7241_v47 = vld [vmem:[%s10339_s6 + $0x198] sm:$0xff]   ;;  %v10670_v20 = vpack.c.bf16 %v9337_v45, %v9327_v18  ;;  %v7244_v18 = vld [vmem:[%s10339_s6 + $0x1c8] sm:$0xff]  }
 0x42c   : > { %v9788_v26 = vpop.f32.mrf.mxu1  ;;  %v9790_v22 = vpop.f32.mrf.mxu0 }
 0x42d   : > { %10666 = vst [vmem:[#allocation36_spill] sm:$0xff] %v9786_v0  ;;  %6916 = vmatpush3.bf16.msra.mxu1 %v7235_v4  ;;  %v5111_v31 = vmax.f32 %v4599_v49, %v4855_v41  ;;  %v7242_v49 = vld [vmem:[%s10339_s6 + $0x1d0] sm:$0xff]   ;;  %v10671_v41 = vld [vmem:[#allocation17_spill] sm:$0xff] }
 0x42e   : > { %6917 = vmatprep.subr.bf16.mxu1 %v7236_v14  ;;  %v9798_v23 = vpop.f32.mrf.mxu1  ;;  %v4291_v48 = vpop.f32.mrf.mxu0 }
 0x42f   : > { %v9803_v15 = vmax.f32 %v5110_v9, %v5111_v31  ;;  %v4292_v0 = vadd.f32 %v4291_v48, %v9788_v26  ;;  %v10683_v48 = vld [vmem:[#allocation52_spill] sm:$0xff] }
 0x430   : > { %6090 = vmatmul.mubr.bf16.gmra.mxu1 %v10667_v56  ;;  %v9808_v54 = vpop.f32.mrf.mxu1  ;;  %v9810_v60 = vpop.f32.mrf.mxu0  ;;  %v10685_v35 = vpack.c.bf16 %v10683_v48, %v10684_v19 }
 0x431   : > { %10668 = vst [vmem:[#allocation21_spill] sm:$0xff] %v9803_v15  ;;  %6097 = vmatprep.mubr.bf16.mxu1 %v10669_v59  ;;  %6918 = vmatpush3.bf16.msra.mxu1 %v7237_v7  ;;  %v10672_v7 = vpack.c.bf16 %v9535_v34, %v10671_v41 }
 0x432   : > { %6919 = vmatprep.subr.bf16.mxu1 %v7238_v25  ;;  %v9820_v63 = vpop.f32.mrf.mxu1  ;;  %v9822_v1 = vpop.f32.mrf.mxu0  ;;  %v7243_v25 = vld [vmem:[%s10339_s6 + $0x190] sm:$0xff]  }
 0x434   : > { %v3548_v16 = vpop.f32.mrf.mxu1  ;;  %v9824_v4 = vpop.f32.mrf.mxu0 }
 0x435   : > { %6920 = vmatpush3.bf16.msra.mxu1 %v7239_v44  ;;  %v7245_v44 = vld [vmem:[%s10339_s6 + $0x188] sm:$0xff]  }
 0x436   : > { %6921 = vmatprep.subr.bf16.mxu1 %v7240_v24  ;;  %v9832_v14 = vpop.f32.mrf.mxu1  ;;  %v4301_v12 = vpop.f32.mrf.mxu0  ;;  %v7246_v24 = vld [vmem:[%s10339_s6 + $0x1c0] sm:$0xff]  }
 0x438   : > { %6098 = vmatmul.mubr.bf16.gmra.mxu1 %v10670_v20  ;;  %v9840_v9 = vpop.f32.mrf.mxu1  ;;  %v9842_v31 = vpop.f32.mrf.mxu0  ;;  %v10674_v20 = vld [vmem:[#allocation43_spill] sm:$0xff] }
 0x439   : > { %6105 = vmatprep.mubr.bf16.mxu1 %v10672_v7  ;;  %6922 = vmatpush3.bf16.msra.mxu1 %v7241_v47 }
 0x43a   : > { %6923 = vmatprep.subr.bf16.mxu1 %v7242_v49  ;;  %v9850_v45 = vpop.f32.mrf.mxu1  ;;  %v9852_v56 = vpop.f32.mrf.mxu0  ;;  %v10673_v49 = vld [vmem:[#allocation48_spill] sm:$0xff] }
 0x43b   : > { %v10675_v41 = vpack.c.bf16 %v10673_v49, %v10674_v20 }
 0x43c   : > { %v9854_v34 = vpop.f32.mrf.mxu1  ;;  %v9856_v59 = vpop.f32.mrf.mxu0 }
 0x43d   : > { %6924 = vmatpush3.bf16.msra.mxu1 %v7243_v25 }
 0x43e   : > { %6925 = vmatprep.subr.bf16.mxu1 %v7244_v18  ;;  %v9864_v47 = vpop.f32.mrf.mxu1  ;;  %v4311_v7 = vpop.f32.mrf.mxu0  ;;  %v7247_v18 = vld [vmem:[%s10339_s6 + $0x180] sm:$0xff]  }
 0x440   : > { %6106 = vmatmul.mubr.bf16.gmra.mxu1 %v10675_v41  ;;  %v9872_v25 = vpop.f32.mrf.mxu1  ;;  %v9874_v51 = vpop.f32.mrf.mxu0 }
 0x441   : > { %6113 = vmatprep.mubr.bf16.mxu1 %v10677_v29  ;;  %6926 = vmatpush3.bf16.msra.mxu1 %v7245_v44  ;;  %v10678_v29 = vld [vmem:[#allocation50_spill] sm:$0xff] }
 0x442   : > { %6927 = vmatprep.subr.bf16.mxu1 %v7246_v24  ;;  %v9879_v5 = vpop.f32.mrf.mxu1  ;;  %v9881_v28 = vpop.f32.mrf.mxu0  ;;  %v10680_v41 = vpack.c.bf16 %v10678_v29, %v10679_v36  ;;  %v10682_v24 = vpack.c.bf16 %v9567_v11, %v10681_v2  ;;  %v4288_v29 = vadd.f32 %v9784_v40, %v9769_v33  ;;  %v4290_v36 = vadd.f32 %v9790_v22, %v9782_v57 }
 0x443   : > { %v4286_v11 = vadd.f32 %v9771_v46, %v9758_v62  ;;  %v10686_v62 = vpack.c.bf16 %v9595_v58, %v9579_v61  ;;  %v4302_v22 = vadd.f32 %v4301_v12, %v3548_v16 }
 0x444   : > { %v9883_v49 = vpop.f32.mrf.mxu1  ;;  %v9885_v20 = vpop.f32.mrf.mxu0  ;;  %v4601_v33 = vadd.f32 %v8536_v42, %v4288_v29  ;;  %v4602_v57 = vadd.f32 %v8518_v52, %v4290_v36  ;;  %v4298_v29 = vadd.f32 %v9822_v1, %v9808_v54  ;;  %v4300_v36 = vadd.f32 %v9824_v4, %v9820_v63 }
 0x445   : > { %6928 = vmatpush3.bf16.msra.mxu1 %v7247_v18  ;;  %v4600_v46 = vadd.f32 %v8518_v52, %v4286_v11  ;;  %v4607_v16 = vadd.f32 %v8536_v42, %v4302_v22 }
 0x446   : > { %v9887_v8 = vpop.f32.mrf.mxu1  ;;  %v9892_v44 = vpop.f32.mrf.mxu0  ;;  %v4858_v48 = vmul.f32 0.2, %v4602_v57  ;;  %v4605_v63 = vadd.f32 %v8536_v42, %v4298_v29  ;;  %v4606_v4 = vadd.f32 %v8518_v52, %v4300_v36 }
 0x447   : > { %v4856_v61 = vmul.f32 0.2, %v4600_v46  ;;  %v4863_v22 = vmul.f32 0.2, %v4607_v16 }
 0x448   : > { %6114 = vmatmul.mubr.bf16.gmra.mxu1 %v10680_v41  ;;  %v9897_v6 = vpop.f32.mrf.mxu1  ;;  %v9899_v32 = vpop.f32.mrf.mxu0  ;;  %v5114_v1 = vmax.f32 %v4602_v57, %v4858_v48  ;;  %v4861_v57 = vmul.f32 0.2, %v4605_v63 }
 0x449   : > { %6121 = vmatprep.mubr.bf16.mxu1 %v10682_v24  ;;  %v4603_v24 = vadd.f32 %v8536_v42, %v4292_v0 }
 0x44a   : > { %v9902_v15 = vpop.f32.mrf.mxu1  ;;  %v9904_v18 = vpop.f32.mrf.mxu0 }
 0x44b   : > { %v4859_v0 = vmul.f32 0.2, %v4603_v24 }
 0x44c   : > { %v9912_v2 = vpop.f32.mrf.mxu1  ;;  %v9914_v41 = vpop.f32.mrf.mxu0 }
 0x44d   : > { %v5115_v11 = vmax.f32 %v4603_v24, %v4859_v0  ;;  %v10691_v24 = vpack.c.bf16 %v9623_v50, %v9607_v38  ;;  %v4310_v38 = vadd.f32 %v9856_v59, %v9850_v45  ;;  %v5117_v59 = vmax.f32 %v4605_v63, %v4861_v57 }
 0x44e   : > { %v9917_v26 = vpop.f32.mrf.mxu1  ;;  %v9922_v43 = vpop.f32.mrf.mxu0  ;;  %v4320_v57 = vadd.f32 %v9885_v20, %v9879_v5 }
 0x44f   : > { %v5257_v17 = vmax.f32 %v5114_v1, %v5115_v11  ;;  %v10692_v11 = vld [vmem:[#allocation30_spill] sm:$0xff] }
 0x450   : > { %6122 = vmatmul.mubr.bf16.gmra.mxu1 %v10685_v35  ;;  %v9930_v40 = vpop.f32.mrf.mxu1  ;;  %v9932_v53 = vpop.f32.mrf.mxu0  ;;  %v4857_v35 = vmul.f32 0.2, %v4601_v33  ;;  %v4614_v20 = vadd.f32 %v8518_v52, %v4320_v57 }
 0x451   : > { %6129 = vmatprep.mubr.bf16.mxu1 %v10686_v62  ;;  %v4296_v62 = vadd.f32 %v9810_v60, %v9798_v23  ;;  %v5112_v23 = vmax.f32 %v4600_v46, %v4856_v61  ;;  %v4306_v46 = vadd.f32 %v9842_v31, %v9832_v14  ;;  %v4610_v14 = vadd.f32 %v8518_v52, %v4310_v38 }
 0x452   : > { %v9934_v19 = vpop.f32.mrf.mxu1  ;;  %v9945_v12 = vpop.f32.mrf.mxu0  ;;  %v5113_v54 = vmax.f32 %v4601_v33, %v4857_v35  ;;  %v4862_v35 = vmul.f32 0.2, %v4606_v4 }
 0x453   : > { %v4604_v0 = vadd.f32 %v8518_v52, %v4296_v62  ;;  %v10693_v62 = vld [vmem:[#allocation44_spill] sm:$0xff]  ;;  %v4608_v31 = vadd.f32 %v8518_v52, %v4306_v46  ;;  %v4866_v63 = vmul.f32 0.2, %v4610_v14 }
 0x454   : > { %v9940_v58 = vpop.f32.mrf.mxu1  ;;  %v9963_v55 = vpop.f32.mrf.mxu0  ;;  %v5256_v50 = vmax.f32 %v5112_v23, %v5113_v54  ;;  %v10694_v45 = vpack.c.bf16 %v10692_v11, %v10693_v62  ;;  %v5118_v54 = vmax.f32 %v4606_v4, %v4862_v35  ;;  %v4318_v4 = vadd.f32 %v9881_v28, %v9872_v25 }
 0x455   : > { %v4864_v38 = vmul.f32 0.2, %v4608_v31  ;;  %v10695_v28 = vpack.c.bf16 %v9641_v30, %v9628_v13  ;;  %v5122_v5 = vmax.f32 %v4610_v14, %v4866_v63  ;;  %v4870_v14 = vmul.f32 0.2, %v4614_v20 }
 0x456   : > { %v9947_v27 = vpop.f32.mrf.mxu1  ;;  %v9975_v36 = vpop.f32.mrf.mxu0  ;;  %v4613_v25 = vadd.f32 %v8536_v42, %v4318_v4 }
 0x457   : > { %10687 = vst [vmem:[#allocation22_spill] sm:$0xff] %v9947_v27  ;;  %v4312_v27 = vadd.f32 %v4311_v7, %v9854_v34  ;;  %v4860_v34 = vmul.f32 0.2, %v4604_v0  ;;  %v5119_v7 = vmax.f32 %v4607_v16, %v4863_v22 }
 0x458   : > { %6130 = vmatmul.mubr.bf16.gmra.mxu1 %v10690_v3  ;;  %v9957_v60 = vpop.f32.mrf.mxu1  ;;  %v4308_v3 = vadd.f32 %v9852_v56, %v9840_v9  ;;  %v5328_v9 = vpack.c.bf16 %v5257_v17, %v5256_v50  ;;  %v9988_v17 = vpop.f32.mrf.mxu0 }
 0x459   : > { %6137 = vmatprep.mubr.bf16.mxu1 %v10691_v24  ;;  %v4611_v29 = vadd.f32 %v8536_v42, %v4312_v27  ;;  %v5116_v27 = vmax.f32 %v4604_v0, %v4860_v34  ;;  %v4322_v24 = vadd.f32 %v9892_v44, %v9883_v49  ;;  %v5259_v23 = vmax.f32 %v5118_v54, %v5119_v7 }
 0x45a   : > { %v9965_v33 = vpop.f32.mrf.mxu1  ;;  %v4609_v56 = vadd.f32 %v8536_v42, %v4308_v3  ;;  %v4316_v0 = vadd.f32 %v9874_v51, %v9864_v47  ;;  %v10001_v7 = vpop.f32.mrf.mxu0  ;;  %v5120_v51 = vmax.f32 %v4608_v31, %v4864_v38  ;;  %v4869_v54 = vmul.f32 0.2, %v4613_v25 }
 0x45b   : > { %v4867_v1 = vmul.f32 0.2, %v4611_v29  ;;  %v5258_v35 = vmax.f32 %v5116_v27, %v5117_v59  ;;  %v4615_v44 = vadd.f32 %v8536_v42, %v4322_v24  ;;  %v4328_v27 = vadd.f32 %v9904_v18, %v9897_v6 }
 0x45c   : > { %v9971_v48 = vpop.f32.mrf.mxu1  ;;  %v4865_v22 = vmul.f32 0.2, %v4609_v56  ;;  %v4612_v47 = vadd.f32 %v8518_v52, %v4316_v0  ;;  %v10013_v59 = vpop.f32.mrf.mxu0  ;;  %v4330_v31 = vadd.f32 %v9914_v41, %v9902_v15  ;;  %v4326_v24 = vadd.f32 %v9899_v32, %v9887_v8 }
 0x45d   : > { %v5123_v49 = vmax.f32 %v4611_v29, %v4867_v1  ;;  %v5329_v46 = vpack.c.bf16 %v5259_v23, %v5258_v35  ;;  %v4871_v11 = vmul.f32 0.2, %v4615_v44  ;;  %v10696_v35 = vpack.c.bf16 %v9669_v37, %v9657_v10 }
 0x45e   : > { %v9977_v61 = vpop.f32.mrf.mxu1  ;;  %v5121_v34 = vmax.f32 %v4609_v56, %v4865_v22  ;;  %v4332_v56 = vadd.f32 %v9922_v43, %v9912_v2  ;;  %v4868_v1 = vmul.f32 0.2, %v4612_v47  ;;  %v4351_v4 = vpop.f32.mrf.mxu0  ;;  %v5125_v6 = vmax.f32 %v4613_v25, %v4869_v54 }
 0x45f   : > { %v5127_v2 = vmax.f32 %v4615_v44, %v4871_v11  ;;  %v5126_v18 = vmax.f32 %v4614_v20, %v4870_v14  ;;  %v4617_v15 = vadd.f32 %v8536_v42, %v4328_v27  ;;  %v4618_v41 = vadd.f32 %v8518_v52, %v4330_v31 }
 0x460   : > { %6138 = vmatmul.mubr.bf16.gmra.mxu1 %v10694_v45  ;;  %v9984_v16 = vpop.f32.mrf.mxu1  ;;  %v5261_v45 = vmax.f32 %v5122_v5, %v5123_v49  ;;  %v5260_v30 = vmax.f32 %v5120_v51, %v5121_v34  ;;  %v4619_v23 = vadd.f32 %v8536_v42, %v4332_v56  ;;  %v5124_v32 = vmax.f32 %v4612_v47, %v4868_v1  ;;  %v10036_v37 = vpop.f32.mrf.mxu0 }
 0x461   : > { %6178 = vmatprep.mubr.bf16.mxu1 %v5328_v9  ;;  %v4616_v8 = vadd.f32 %v8518_v52, %v4326_v24  ;;  %v4342_v49 = vadd.f32 %v9975_v36, %v9940_v58  ;;  %v4338_v10 = vadd.f32 %v9945_v12, %v9930_v40  ;;  %v4340_v5 = vadd.f32 %v9963_v55, %v9934_v19 }
 0x462   : > { %v9990_v3 = vpop.f32.mrf.mxu1  ;;  %v5330_v63 = vpack.c.bf16 %v5261_v45, %v5260_v30  ;;  %v4875_v0 = vmul.f32 0.2, %v4619_v23  ;;  %v5262_v25 = vmax.f32 %v5124_v32, %v5125_v6  ;;  %v4336_v51 = vadd.f32 %v9932_v53, %v9917_v26  ;;  %v4357_v11 = vpop.f32.mrf.mxu0 }
 0x463   : > { %v4872_v20 = vmul.f32 0.2, %v4616_v8  ;;  %v4623_v47 = vadd.f32 %v8536_v42, %v4342_v49  ;;  %v4621_v12 = vadd.f32 %v8536_v42, %v4338_v10  ;;  %v10697_v45 = vpack.c.bf16 %v9695_v21, %v9684_v39 }
 0x464   : > { %v9998_v50 = vpop.f32.mrf.mxu1  ;;  %v5131_v36 = vmax.f32 %v4619_v23, %v4875_v0  ;;  %v4620_v26 = vadd.f32 %v8518_v52, %v4336_v51  ;;  %v4352_v14 = vadd.f32 %v4351_v4, %v9971_v48  ;;  %v4359_v24 = vpop.f32.mrf.mxu0  ;;  %v4348_v21 = vadd.f32 %v10001_v7, %v9957_v60  ;;  %v10700_v60 = vld [vmem:[#allocation32_spill] sm:$0xff] }
 0x465   : > { %v5128_v53 = vmax.f32 %v4616_v8, %v4872_v20  ;;  %v4879_v54 = vmul.f32 0.2, %v4623_v47  ;;  %v4877_v1 = vmul.f32 0.2, %v4621_v12 }
 0x466   : > { %v6737_v9 = vpop.f32.mrf.mxu1  ;;  %v4627_v4 = vadd.f32 %v8536_v42, %v4352_v14  ;;  %v4361_v32 = vpop.f32.mrf.mxu0 }
 0x467   : > { %v5135_v48 = vmax.f32 %v4623_v47, %v4879_v54 }
 0x468   : > { %6179 = vmatmul.mubr.bf16.vlgmr.msra.gmra.mxu1 %v10695_v28  ;;  %v6738_v29 = vpop.f32.mrf.mxu1  ;;  %v4874_v28 = vmul.f32 0.2, %v4618_v41  ;;  %v4883_v10 = vmul.f32 0.2, %v4627_v4 }
 0x469   : > { %6186 = vmatprep.mubr.bf16.mxu1 %v5329_v46  ;;  %v10011_v62 = vadd.f32 %v6738_v29, %v6737_v9  ;;  %v5263_v46 = vmax.f32 %v5126_v18, %v5127_v2  ;;  %v4873_v9 = vmul.f32 0.2, %v4617_v15  ;;  %v4350_v2 = vadd.f32 %v10013_v59, %v9965_v33 }
 0x46a   : > { %v6740_v13 = vpop.f32.mrf.mxu1  ;;  %v5130_v55 = vmax.f32 %v4618_v41, %v4874_v28  ;;  %v5133_v41 = vmax.f32 %v4621_v12, %v4877_v1  ;;  %v4625_v59 = vadd.f32 %v8536_v42, %v4348_v21 }
 0x46b   : > { %v5331_v40 = vpack.c.bf16 %v5263_v46, %v5262_v25  ;;  %v5129_v19 = vmax.f32 %v4617_v15, %v4873_v9  ;;  %v4626_v0 = vadd.f32 %v8518_v52, %v4350_v2 }
 0x46c   : > { %v6741_v43 = vpop.f32.mrf.mxu1  ;;  %v5265_v31 = vmax.f32 %v5130_v55, %v5131_v36  ;;  %v4881_v20 = vmul.f32 0.2, %v4625_v59  ;;  %v4360_v36 = vadd.f32 %v4359_v24, %v9990_v3 }
 0x46d   : > { %v10022_v22 = vadd.f32 %v6741_v43, %v6740_v13  ;;  %v4622_v13 = vadd.f32 %v8518_v52, %v4340_v5  ;;  %v5264_v23 = vmax.f32 %v5128_v53, %v5129_v19  ;;  %v4882_v51 = vmul.f32 0.2, %v4626_v0  ;;  %v10703_v53 = vld [vmem:[#allocation11_spill] sm:$0xff] }
 0x46f   : > { %v4878_v39 = vmul.f32 0.2, %v4622_v13  ;;  %v5332_v15 = vpack.c.bf16 %v5265_v31, %v5264_v23 }
 0x470   : > { %v6743_v57 = vpop.f32.mrf.mxu1  ;;  %6187 = vmatmul.mubr.bf16.gmra.mxu1 %v10696_v35 }
 0x471   : > { %6194 = vmatprep.mubr.bf16.mxu1 %v5330_v63  ;;  %v4876_v63 = vmul.f32 0.2, %v4620_v26  ;;  %v5134_v33 = vmax.f32 %v4622_v13, %v4878_v39  ;;  %v10702_v13 = vld [vmem:[#allocation9_spill] sm:$0xff] }
 0x472   : > { %v6744_v38 = vpop.f32.mrf.mxu1 }
 0x473   : > { %v10032_v44 = vadd.f32 %v6744_v38, %v6743_v57  ;;  %v10698_v57 = vld [vmem:[#allocation22_spill] sm:$0xff]  ;;  %v5267_v28 = vmax.f32 %v5134_v33, %v5135_v48 }
 0x474   : > { %v6746_v34 = vpop.f32.mrf.mxu1  ;;  %v4346_v35 = vadd.f32 %v9988_v17, %v10698_v57  ;;  %v10699_v38 = vld [vmem:[#allocation18_spill] sm:$0xff]  ;;  %v5132_v17 = vmax.f32 %v4620_v26, %v4876_v63  ;;  %v10704_v26 = vpack.c.bf16 %v10702_v13, %v10703_v53 }
 0x475   : > { %v10701_v7 = vpack.c.bf16 %v10699_v38, %v10700_v60 }
 0x476   : > { %v6747_v58 = vpop.f32.mrf.mxu1  ;;  %v4624_v49 = vadd.f32 %v8518_v52, %v4346_v35  ;;  %v5266_v25 = vmax.f32 %v5132_v17, %v5133_v41  ;;  %v10705_v35 = vld [vmem:[#allocation19_spill] sm:$0xff]  ;;  %v10708_v17 = vld [vmem:[#allocation12_spill] sm:$0xff] }
 0x477   : > { %v10043_v29 = vadd.f32 %v6747_v58, %v6746_v34  ;;  %v4362_v34 = vadd.f32 %v4361_v32, %v9998_v50  ;;  %v4358_v58 = vadd.f32 %v4357_v11, %v9984_v16  ;;  %v5137_v16 = vmax.f32 %v4625_v59, %v4881_v20 }
 0x478   : > { %v6749_v56 = vpop.f32.mrf.mxu1  ;;  %6195 = vmatmul.mubr.bf16.gmra.mxu1 %v10697_v45  ;;  %v4880_v47 = vmul.f32 0.2, %v4624_v49  ;;  %v5333_v19 = vpack.c.bf16 %v5267_v28, %v5266_v25  ;;  %v5138_v11 = vmax.f32 %v4626_v0, %v4882_v51  ;;  %v10711_v51 = vld [vmem:[#allocation21_spill] sm:$0xff] }
 0x479   : > { %6202 = vmatprep.mubr.bf16.mxu1 %v5331_v40  ;;  %v4356_v40 = vadd.f32 %v10036_v37, %v9977_v61  ;;  %v4631_v45 = vadd.f32 %v8536_v42, %v4362_v34  ;;  %v4629_v3 = vadd.f32 %v8536_v42, %v4358_v58  ;;  %v10712_v58 = vld [vmem:[#allocation36_spill] sm:$0xff] }
 0x47a   : > { %v6750_v30 = vpop.f32.mrf.mxu1  ;;  %v5136_v37 = vmax.f32 %v4624_v49, %v4880_v47  ;;  %v10709_v49 = vld [vmem:[#allocation20_spill] sm:$0xff] }
 0x47b   : > { %v10052_v27 = vadd.f32 %v6750_v30, %v6749_v56  ;;  %v5139_v56 = vmax.f32 %v4627_v4, %v4883_v10  ;;  %v4630_v30 = vadd.f32 %v8518_v52, %v4360_v36  ;;  %v4628_v54 = vadd.f32 %v8518_v52, %v4356_v40 }
 0x47c   : > { %v6752_v43 = vpop.f32.mrf.mxu1  ;;  %v4887_v14 = vmul.f32 0.2, %v4631_v45  ;;  %v4885_v24 = vmul.f32 0.2, %v4629_v3  ;;  %v5268_v39 = vmax.f32 %v5136_v37, %v5137_v16  ;;  %v10713_v36 = vpack.c.bf16 %v10711_v51, %v10712_v58 }
 0x47d   : > { %v5269_v31 = vmax.f32 %v5138_v11, %v5139_v56  ;;  %v4884_v2 = vmul.f32 0.2, %v4628_v54 }
 0x47e   : > { %v6753_v6 = vpop.f32.mrf.mxu1  ;;  %v5143_v23 = vmax.f32 %v4631_v45, %v4887_v14  ;;  %v5141_v4 = vmax.f32 %v4629_v3, %v4885_v24 }
 0x47f   : > { %v10061_v18 = vadd.f32 %v6753_v6, %v6752_v43  ;;  %v4886_v43 = vmul.f32 0.2, %v4630_v30  ;;  %v5334_v42 = vpack.c.bf16 %v5269_v31, %v5268_v39  ;;  %v10706_v6 = vld [vmem:[#allocation34_spill] sm:$0xff]  ;;  %v5140_v41 = vmax.f32 %v4628_v54, %v4884_v2 }
 0x480   : > { %v6755_v8 = vpop.f32.mrf.mxu1  ;;  %6203 = vmatmul.mubr.bf16.gmra.mxu1 %v10701_v7  ;;  %v10707_v48 = vpack.c.bf16 %v10705_v35, %v10706_v6 }
 0x481   : > { %6210 = vmatprep.mubr.bf16.mxu1 %v5332_v15  ;;  %v5142_v15 = vmax.f32 %v4630_v30, %v4886_v43  ;;  %v5270_v60 = vmax.f32 %v5140_v41, %v5141_v4 }
 0x482   : > { %v6756_v46 = vpop.f32.mrf.mxu1 }
 0x483   : > { %v10070_v9 = vadd.f32 %v6756_v46, %v6755_v8  ;;  %v5271_v8 = vmax.f32 %v5142_v15, %v5143_v23  ;;  %v10710_v46 = vpack.c.bf16 %v10708_v17, %v10709_v49 }
 0x484   : > { %v6758_v5 = vpop.f32.mrf.mxu1 }
 0x485   : > { %v5335_v59 = vpack.c.bf16 %v5271_v8, %v5270_v60 }
 0x486   : > { %v6759_v12 = vpop.f32.mrf.mxu1 }
 0x487   : > { %v10077_v50 = vadd.f32 %v6759_v12, %v6758_v5 }
 0x488   : > { %v10079_v55 = vpop.f32.mrf.mxu1  ;;  %6211 = vmatmul.mubr.bf16.gmra.mxu1 %v10704_v26 }
 0x489   : > { %6218 = vmatprep.mubr.bf16.mxu1 %v5333_v19  ;;  %v10115_v19 = vld [vmem:[%s10340_s7] ss:$0 sm:$0xff] }
 0x48a   : > { %v10086_v61 = vpop.f32.mrf.mxu1  ;;  %v5890_v26 = vadd.f32 %v10011_v62, %v10115_v19  ;;  %v5893_v37 = vadd.f32 %v10022_v22, %v10115_v19  ;;  %v5898_v24 = vadd.f32 %v10032_v44, %v10115_v19  ;;  %v5901_v2 = vadd.f32 %v10043_v29, %v10115_v19 }
 0x48b   : > { %v5906_v35 = vadd.f32 %v10052_v27, %v10115_v19  ;;  %v5909_v15 = vadd.f32 %v10061_v18, %v10115_v19  ;;  %v6763_v17 = vadd.f32 %v10086_v61, %v10079_v55 }
 0x48c   : > { %v6764_v1 = vpop.f32.mrf.mxu1 }
 0x48e   : > { %v6765_v21 = vpop.f32.mrf.mxu1 }
 0x48f   : > { %v10089_v63 = vadd.f32 %v6765_v21, %v6764_v1 }
 0x490   : > { %v6767_v57 = vpop.f32.mrf.mxu1  ;;  %6219 = vmatmul.mubr.bf16.gmra.mxu1 %v10707_v48 }
 0x491   : > { %6226 = vmatprep.mubr.bf16.mxu1 %v5334_v42  ;;  %v5925_v58 = vadd.f32 %v10089_v63, %v10115_v19 }
 0x492   : > { %v6768_v52 = vpop.f32.mrf.mxu1 }
 0x493   : > { %v10094_v32 = vadd.f32 %v6768_v52, %v6767_v57 }
 0x494   : > { %v6770_v38 = vpop.f32.mrf.mxu1 }
 0x495   : > { %v5930_v61 = vadd.f32 %v10094_v32, %v10115_v19 }
 0x496   : > { %v6771_v7 = vpop.f32.mrf.mxu1 }
 0x497   : > { %v10096_v33 = vadd.f32 %v6771_v7, %v6770_v38  ;;  %v5914_v38 = vadd.f32 %v10070_v9, %v10115_v19 }
 0x498   : > { %v6773_v0 = vpop.f32.mrf.mxu1  ;;  %6227 = vmatmul.mubr.bf16.gmra.mxu1 %v10710_v46 }
 0x499   : > { %6234 = vmatprep.mubr.bf16.mxu1 %v5335_v59 }
 0x49a   : > { %v6774_v10 = vpop.f32.mrf.mxu1 }
 0x49b   : > { %v10101_v34 = vadd.f32 %v6774_v10, %v6773_v0  ;;  %v5917_v0 = vadd.f32 %v10077_v50, %v10115_v19 }
 0x49c   : > { %v6776_v28 = vpop.f32.mrf.mxu1 }
 0x49e   : > { %v6777_v5 = vpop.f32.mrf.mxu1 }
 0x49f   : > { %v10103_v25 = vadd.f32 %v6777_v5, %v6776_v28  ;;  %v5922_v28 = vadd.f32 %v6763_v17, %v10115_v19 }
 0x4a0   : > { %v6779_v20 = vpop.f32.mrf.mxu1  ;;  %6235 = vmatmul.mubr.bf16.gmra.mxu1 %v10713_v36 }
 0x4a2   : > { %v6780_v47 = vpop.f32.mrf.mxu1 }
 0x4a3   : > { %v10108_v40 = vadd.f32 %v6780_v47, %v6779_v20 }
 0x4a4   : > { %v6782_v12 = vpop.f32.mrf.mxu1 }
 0x4a6   : > { %v6783_v56 = vpop.f32.mrf.mxu1 }
 0x4a7   : > { %v10110_v45 = vadd.f32 %v6783_v56, %v6782_v12 }
 0x4a8   : > { %v6801_v13 = vpop.f32.mrf.mxu1 }
 0x4aa   : > { %v6802_v53 = vpop.f32.mrf.mxu1 }
 0x4ab   : > { %v6803_v16 = vadd.f32 %v6802_v53, %v6801_v13 }
 0x4ac   : > { %v6804_v11 = vpop.f32.mrf.mxu1 }
 0x4ad   : > { %v10119_v3 = vadd.f32 %v6803_v16, %v5890_v26  ;;  %v5933_v26 = vadd.f32 %v10096_v33, %v10115_v19 }
 0x4ae   : > { %v6805_v30 = vpop.f32.mrf.mxu1 }
 0x4af   : > { %v6806_v54 = vadd.f32 %v6805_v30, %v6804_v11 }
 0x4b0   : > { %v6807_v14 = vpop.f32.mrf.mxu1 }
 0x4b1   : > { %v10123_v31 = vadd.f32 %v6806_v54, %v5893_v37  ;;  %v5938_v37 = vadd.f32 %v10101_v34, %v10115_v19 }
 0x4b2   : > { %v6808_v1 = vpop.f32.mrf.mxu1 }
 0x4b3   : > { %v6809_v43 = vadd.f32 %v6808_v1, %v6807_v14 }
 0x4b4   : > { %v6810_v39 = vpop.f32.mrf.mxu1 }
 0x4b5   : > { %v10127_v21 = vadd.f32 %v6809_v43, %v5898_v24  ;;  %v5941_v24 = vadd.f32 %v10103_v25, %v10115_v19 }
 0x4b6   : > { %v6811_v62 = vpop.f32.mrf.mxu1 }
 0x4b7   : > { %v6812_v23 = vadd.f32 %v6811_v62, %v6810_v39 }
 0x4b8   : > { %v6813_v42 = vpop.f32.mrf.mxu1 }
 0x4b9   : > { %v10131_v57 = vadd.f32 %v6812_v23, %v5901_v2  ;;  %v5946_v2 = vadd.f32 %v10108_v40, %v10115_v19  ;;  %v7312_v40 = vmov 0.0  }
 0x4ba   : > { %v6814_v22 = vpop.f32.mrf.mxu1  ;;  %6994 = vmatprep.subr.mxu1 %v7312_v40  ;;  %7026 = vmatprep.mubr.msk.f32.mxu1 %vm7313_vm4, %v7312_v40 }
 0x4bb   : > { %v6815_v6 = vadd.f32 %v6814_v22, %v6813_v42 }
 0x4bc   : > { %v6816_v48 = vpop.f32.mrf.mxu1 }
 0x4bd   : > { %v10135_v4 = vadd.f32 %v6815_v6, %v5906_v35  ;;  %v5949_v35 = vadd.f32 %v10110_v45, %v10115_v19 }
 0x4be   : > { %v6817_v44 = vpop.f32.mrf.mxu1 }
 0x4bf   : > { %v6818_v52 = vadd.f32 %v6817_v44, %v6816_v48 }
 0x4c0   : > { %v6819_v41 = vpop.f32.mrf.mxu1 }
 0x4c1   : > { %v10139_v8 = vadd.f32 %v6818_v52, %v5909_v15 }
 0x4c2   : > { %v6820_v29 = vpop.f32.mrf.mxu1 }
 0x4c3   : > { %v6821_v60 = vadd.f32 %v6820_v29, %v6819_v41 }
 0x4c4   : > { %v6822_v7 = vpop.f32.mrf.mxu1 }
 0x4c5   : > { %v10143_v59 = vadd.f32 %v6821_v60, %v5914_v38 }
 0x4c6   : > { %v6823_v27 = vpop.f32.mrf.mxu1 }
 0x4c7   : > { %v6824_v18 = vadd.f32 %v6823_v27, %v6822_v7 }
 0x4c8   : > { %v6825_v49 = vpop.f32.mrf.mxu1 }
 0x4c9   : > { %v10149_v46 = vadd.f32 %v6824_v18, %v5917_v0 }
 0x4ca   : > { %v6826_v10 = vpop.f32.mrf.mxu1 }
 0x4cb   : > { %v6827_v5 = vadd.f32 %v6826_v10, %v6825_v49 }
 0x4cc   : > { %v6828_v9 = vpop.f32.mrf.mxu1 }
 0x4cd   : > { %v10152_v20 = vadd.f32 %v6827_v5, %v5922_v28 }
 0x4ce   : > { %v6829_v51 = vpop.f32.mrf.mxu1 }
 0x4cf   : > { %v6830_v36 = vadd.f32 %v6829_v51, %v6828_v9 }
 0x4d0   : > { %v6831_v50 = vpop.f32.mrf.mxu1 }
 0x4d1   : > { %v10156_v47 = vadd.f32 %v6830_v36, %v5925_v58 }
 0x4d2   : > { %v6832_v55 = vpop.f32.mrf.mxu1 }
 0x4d3   : > { %v6833_v12 = vadd.f32 %v6832_v55, %v6831_v50 }
 0x4d4   : > { %v6834_v56 = vpop.f32.mrf.mxu1 }
 0x4d5   : > { %v10160_v13 = vadd.f32 %v6833_v12, %v5930_v61 }
 0x4d6   : > { %v6835_v53 = vpop.f32.mrf.mxu1 }
 0x4d7   : > { %v6836_v16 = vadd.f32 %v6835_v53, %v6834_v56 }
 0x4d8   : > { %v6837_v11 = vpop.f32.mrf.mxu1 }
 0x4d9   : > { %v10164_v30 = vadd.f32 %v6836_v16, %v5933_v26 }
 0x4da   : > { %v6838_v63 = vpop.f32.mrf.mxu1 }
 0x4db   : > { %v6839_v54 = vadd.f32 %v6838_v63, %v6837_v11 }
 0x4dc   : > { %v6840_v14 = vpop.f32.mrf.mxu1 }
 0x4dd   : > { %v10168_v1 = vadd.f32 %v6839_v54, %v5938_v37 }
 0x4de   : > { %v6841_v32 = vpop.f32.mrf.mxu1 }
 0x4df   : > { %v6842_v43 = vadd.f32 %v6841_v32, %v6840_v14 }
 0x4e0   : > { %v6843_v39 = vpop.f32.mrf.mxu1 }
 0x4e1   : > { %v10172_v62 = vadd.f32 %v6842_v43, %v5941_v24 }
 0x4e2   : > { %v6844_v33 = vpop.f32.mrf.mxu1 }
 0x4e3   : > { %v6845_v23 = vadd.f32 %v6844_v33, %v6843_v39 }
 0x4e4   : > { %v6846_v42 = vpop.f32.mrf.mxu1 }
 0x4e5   : > { %v10176_v22 = vadd.f32 %v6845_v23, %v5946_v2 }
 0x4e6   : > { %v6847_v34 = vpop.f32.mrf.mxu1 }
 0x4e7   : > { %v6848_v6 = vadd.f32 %v6847_v34, %v6846_v42 }
 0x4e8   : > { %v6865_v48 = vpop.f32.mrf.mxu1 }
 0x4e9   : > { %v10180_v44 = vadd.f32 %v6848_v6, %v5949_v35 }
 0x4ea   : > { %v6866_v25 = vpop.f32.mrf.mxu1 }
 0x4eb   : > { %v6867_v15 = vadd.f32 %v6866_v25, %v6865_v48 }
 0x4ec   : > { %v6868_v52 = vpop.f32.mrf.mxu1 }
 0x4ed   : > { %v10183_v41 = vadd.f32 %v6867_v15, %v10119_v3 }
 0x4ee   : > { %v6869_v29 = vpop.f32.mrf.mxu1 }
 0x4ef   : > { %v6870_v38 = vadd.f32 %v6869_v29, %v6868_v52 }
 0x4f0   : > { %v6871_v60 = vpop.f32.mrf.mxu1 }
 0x4f1   : > { %v10187_v7 = vadd.f32 %v6870_v38, %v10123_v31 }
 0x4f2   : > { %v6872_v45 = vpop.f32.mrf.mxu1 }
 0x4f3   : > { %v6873_v19 = vadd.f32 %v6872_v45, %v6871_v60 }
 0x4f4   : > { %v6874_v27 = vpop.f32.mrf.mxu1 }
 0x4f5   : > { %v10190_v0 = vadd.f32 %v6873_v19, %v10127_v21 }
 0x4f6   : > { %v6875_v17 = vpop.f32.mrf.mxu1 }
 0x4f7   : > { %v6876_v18 = vadd.f32 %v6875_v17, %v6874_v27  ;;  %v6276_v27 = vld [vmem:[#allocation2] sm:$0x1] }
 0x4f8   : > { %v6877_v49 = vpop.f32.mrf.mxu1  ;;  %6279 = vperm.xlu1 %7076, %v6276_v27  }
 0x4f9   : > { %v10193_v3 = vadd.f32 %v6876_v18, %v10131_v57 }
 0x4fa   : > { %v6878_v10 = vpop.f32.mrf.mxu1 }
 0x4fb   : > { %v6879_v28 = vadd.f32 %v6878_v10, %v6877_v49 }
 0x4fc   : > { %v6880_v5 = vpop.f32.mrf.mxu1 }
 0x4fd   : > { %v10196_v9 = vadd.f32 %v6879_v28, %v10135_v4 }
 0x4fe   : > { %v6881_v31 = vpop.f32.mrf.mxu1 }
 0x4ff   : > { %v6882_v51 = vadd.f32 %v6881_v31, %v6880_v5 }
 0x500   : > { %v6883_v58 = vpop.f32.mrf.mxu1 }
 0x501   : > { %v10199_v36 = vadd.f32 %v6882_v51, %v10139_v8 }
 0x502   : > { %v6884_v21 = vpop.f32.mrf.mxu1 }
 0x503   : > { %v6885_v50 = vadd.f32 %v6884_v21, %v6883_v58 }
 0x504   : > { %v6886_v55 = vpop.f32.mrf.mxu1 }
 0x505   : > { %v10202_v61 = vadd.f32 %v6885_v50, %v10143_v59 }
 0x506   : > { %v6887_v57 = vpop.f32.mrf.mxu1 }
 0x507   : > { %v6888_v12 = vadd.f32 %v6887_v57, %v6886_v55 }
 0x508   : > { %v6889_v56 = vpop.f32.mrf.mxu1 }
 0x509   : > { %v10205_v53 = vadd.f32 %v6888_v12, %v10149_v46 }
 0x50a   : > { %v6890_v4 = vpop.f32.mrf.mxu1 }
 0x50b   : > { %v6891_v26 = vadd.f32 %v6890_v4, %v6889_v56 }
 0x50c   : > { %v6892_v16 = vpop.f32.mrf.mxu1 }
 0x50d   : > { %v10208_v11 = vadd.f32 %v6891_v26, %v10152_v20 }
 0x50e   : > { %v6893_v8 = vpop.f32.mrf.mxu1 }
 0x50f   : > { %v6894_v63 = vadd.f32 %v6893_v8, %v6892_v16 }
 0x510   : > { %v6895_v37 = vpop.f32.mrf.mxu1 }
 0x511   : > { %v10211_v54 = vadd.f32 %v6894_v63, %v10156_v47 }
 0x512   : > { %v6896_v59 = vpop.f32.mrf.mxu1 }
 0x513   : > { %v6897_v14 = vadd.f32 %v6896_v59, %v6895_v37 }
 0x514   : > { %v6898_v32 = vpop.f32.mrf.mxu1 }
 0x515   : > { %v10214_v24 = vadd.f32 %v6897_v14, %v10160_v13 }
 0x516   : > { %v6899_v46 = vpop.f32.mrf.mxu1 }
 0x517   : > { %v6900_v43 = vadd.f32 %v6899_v46, %v6898_v32 }
 0x518   : > { %v6901_v39 = vpop.f32.mrf.mxu1 }
 0x519   : > { %v10217_v33 = vadd.f32 %v6900_v43, %v10164_v30 }
 0x51a   : > { %v6902_v20 = vpop.f32.mrf.mxu1 }
 0x51b   : > { %v6903_v2 = vadd.f32 %v6902_v20, %v6901_v39 }
 0x51c   : > { %v6904_v23 = vpop.f32.mrf.mxu1 }
 0x51d   : > { %v10220_v42 = vadd.f32 %v6903_v2, %v10168_v1 }
 0x51e   : > { %v6905_v47 = vpop.f32.mrf.mxu1 }
 0x51f   : > { %v6906_v34 = vadd.f32 %v6905_v47, %v6904_v23 }
 0x520   : > { %v6907_v35 = vpop.f32.mrf.mxu1 }
 0x521   : > { %v10223_v6 = vadd.f32 %v6906_v34, %v10172_v62 }
 0x522   : > { %v6908_v13 = vpop.f32.mrf.mxu1 }
 0x523   : > { %v6909_v48 = vadd.f32 %v6908_v13, %v6907_v35 }
 0x524   : > { %v6910_v25 = vpop.f32.mrf.mxu1 }
 0x525   : > { %v6140_v15 = vadd.f32 %v6909_v48, %v10176_v22 }
 0x526   : > { %v6911_v52 = vpop.f32.mrf.mxu1 }
 0x527   : > { %v6912_v30 = vadd.f32 %v6911_v52, %v6910_v25 }
 0x528   : > { %v6929_v29 = vpop.f32.mrf.mxu1 }
 0x529   : > { %v6143_v38 = vadd.f32 %v6912_v30, %v10180_v44 }
 0x52a   : > { %v6930_v60 = vpop.f32.mrf.mxu1 }
 0x52b   : > { %v6931_v45 = vadd.f32 %v6930_v60, %v6929_v29 }
 0x52c   : > { %v6932_v1 = vpop.f32.mrf.mxu1 }
 0x52d   : > { %v10229_v19 = vadd.f32 %v6931_v45, %v10183_v41 }
 0x52e   : > { %v6933_v62 = vpop.f32.mrf.mxu1 }
 0x52f   : > { %v6934_v17 = vadd.f32 %v6933_v62, %v6932_v1 }
 0x530   : > { %v6935_v18 = vpop.f32.mrf.mxu1 }
 0x531   : > { %v10232_v22 = vadd.f32 %v6934_v17, %v10187_v7 }
 0x532   : > { %v6936_v49 = vpop.f32.mrf.mxu1 }
 0x533   : > { %v6937_v10 = vadd.f32 %v6936_v49, %v6935_v18 }
 0x534   : > { %v6938_v44 = vpop.f32.mrf.mxu1 }
 0x535   : > { %v10235_v28 = vadd.f32 %v6937_v10, %v10190_v0 }
 0x536   : > { %v6939_v5 = vpop.f32.mrf.mxu1 }
 0x537   : > { %v6940_v31 = vadd.f32 %v6939_v5, %v6938_v44 }
 0x538   : > { %v6941_v51 = vpop.f32.mrf.mxu1 }
 0x539   : > { %v10238_v41 = vadd.f32 %v6940_v31, %v10193_v3 }
 0x53a   : > { %v6942_v58 = vpop.f32.mrf.mxu1 }
 0x53b   : > { %v6943_v21 = vadd.f32 %v6942_v58, %v6941_v51 }
 0x53c   : > { %v6944_v50 = vpop.f32.mrf.mxu1 }
 0x53d   : > { %v10241_v55 = vadd.f32 %v6943_v21, %v10196_v9 }
 0x53e   : > { %v6945_v7 = vpop.f32.mrf.mxu1 }
 0x53f   : > { %v6946_v57 = vadd.f32 %v6945_v7, %v6944_v50 }
 0x540   : > { %v6947_v12 = vpop.f32.mrf.mxu1 }
 0x541   : > { %v10244_v56 = vadd.f32 %v6946_v57, %v10199_v36 }
 0x542   : > { %v6948_v0 = vpop.f32.mrf.mxu1 }
 0x543   : > { %v6949_v4 = vadd.f32 %v6948_v0, %v6947_v12 }
 0x544   : > { %v6950_v26 = vpop.f32.mrf.mxu1 }
 0x545   : > { %v10247_v16 = vadd.f32 %v6949_v4, %v10202_v61  ;;  %v6248_v4 = vmul.f32 0.2, %v10244_v56 }
 0x546   : > { %v6951_v3 = vpop.f32.mrf.mxu1 }
 0x547   : > { %v6952_v8 = vadd.f32 %v6951_v3, %v6950_v26  ;;  %v6249_v0 = vmul.f32 0.2, %v10247_v16  ;;  %v6247_v3 = vmul.f32 0.2, %v10241_v55 }
 0x548   : > { %v6953_v63 = vpop.f32.mrf.mxu1 }
 0x549   : > { %v10250_v37 = vadd.f32 %v6952_v8, %v10205_v53  ;;  %v6265_v26 = vmax.f32 %v10247_v16, %v6249_v0  ;;  %v6264_v8 = vmax.f32 %v10244_v56, %v6248_v4  ;;  %v6244_v56 = vmul.f32 0.2, %v10232_v22 }
 0x54a   : > { %v6954_v9 = vpop.f32.mrf.mxu1 }
 0x54b   : > { %v6250_v12 = vmul.f32 0.2, %v10250_v37 }
 0x54c   : > { %v6956_v59 = vpop.f32.mrf.mxu1 }
 0x54e   : > { %v6957_v14 = vpop.f32.mrf.mxu1 }
 0x550   : > { %v6959_v32 = vpop.f32.mrf.mxu1 }
 0x552   : > { %v6960_v46 = vpop.f32.mrf.mxu1 }
 0x553   : > { %v6961_v49 = vadd.f32 %v6960_v46, %v6959_v32  ;;  %v6275_v32 = vld [vmem:[%s10341_s8] sm:$0x1]  ;;  %v10714_v46 = vld [vmem:[#allocation6_spill] sm:$0xff] }
 0x554   : > { %v6962_v43 = vpop.f32.mrf.mxu1 }
 0x555   : > { %v6221_v44 = vadd.f32 %v6961_v49, %v10214_v24 }
 0x556   : > { %v6963_v36 = vpop.f32.mrf.mxu1 }
 0x557   : > { %v6964_v62 = vadd.f32 %v6963_v36, %v6962_v43  ;;  %v6253_v58 = vmul.f32 0.2, %v6221_v44 }
 0x558   : > { %v6965_v39 = vpop.f32.mrf.mxu1 }
 0x559   : > { %v6269_v7 = vmax.f32 %v6221_v44, %v6253_v58 }
 0x55a   : > { %v6966_v20 = vpop.f32.mrf.mxu1 }
 0x55b   : > { %v6967_v29 = vadd.f32 %v6966_v20, %v6965_v39 }
 0x55c   : > { %v6968_v2 = vpop.f32.mrf.mxu1 }
 0x55d   : > { %v6229_v27 = vadd.f32 %v6967_v29, %v10220_v42  ;;  %v6955_v42 = vadd.f32 %v6954_v9, %v6953_v63  ;;  %v6246_v63 = vmul.f32 0.2, %v10238_v41  ;;  %v6245_v9 = vmul.f32 0.2, %v10235_v28 }
 0x55e   : > { %v6969_v23 = vpop.f32.mrf.mxu1 }
 0x55f   : > { %v6970_v25 = vadd.f32 %v6969_v23, %v6968_v2  ;;  %v6262_v16 = vmax.f32 %v10238_v41, %v6246_v63 }
 0x560   : > { %v6971_v47 = vpop.f32.mrf.mxu1 }
 0x561   : > { %v6232_v60 = vadd.f32 %v6970_v25, %v10223_v6  ;;  %v6958_v6 = vadd.f32 %v6957_v14, %v6956_v59  ;;  %v6261_v59 = vmax.f32 %v10235_v28, %v6245_v9  ;;  %v6260_v14 = vmax.f32 %v10232_v22, %v6244_v56 }
 0x562   : > { %v6972_v61 = vpop.f32.mrf.mxu1 }
 0x563   : > { %v6973_v35 = vadd.f32 %v6972_v61, %v6971_v47  ;;  %v6256_v17 = vmul.f32 0.2, %v6232_v60  ;;  %v6216_v51 = vadd.f32 %v6958_v6, %v10211_v54 }
 0x564   : > { %v6974_v34 = vpop.f32.mrf.mxu1 }
 0x565   : > { %v6237_v53 = vadd.f32 %v6973_v35, %v6140_v15  ;;  %v6224_v15 = vadd.f32 %v6964_v62, %v10217_v33  ;;  %v6272_v10 = vmax.f32 %v6232_v60, %v6256_v17  ;;  %v6213_v33 = vadd.f32 %v6955_v42, %v10208_v11 }
 0x566   : > { %v6975_v13 = vpop.f32.mrf.mxu1  ;;  %v6252_v50 = vmul.f32 0.2, %v6216_v51  ;;  %v6266_v11 = vmax.f32 %v10250_v37, %v6250_v12  ;;  %v6263_v37 = vmax.f32 %v10241_v55, %v6247_v3  ;;  %v6243_v55 = vmul.f32 0.2, %v10229_v19 }
 0x567   : > { %v6976_v48 = vadd.f32 %v6975_v13, %v6974_v34  ;;  %v6257_v45 = vmul.f32 0.2, %v6237_v53  ;;  %v6254_v5 = vmul.f32 0.2, %v6224_v15  ;;  %v6251_v24 = vmul.f32 0.2, %v6213_v33 }
 0x568   : > { %v6268_v57 = vmax.f32 %v6216_v51, %v6252_v50  ;;  %v6259_v41 = vmax.f32 %v10229_v19, %v6243_v55 }
 0x569   : > { %v6240_v52 = vadd.f32 %v6976_v48, %v6143_v38  ;;  %v6273_v18 = vmax.f32 %v6237_v53, %v6257_v45  ;;  %v6255_v38 = vmul.f32 0.2, %v6229_v27  ;;  %v6270_v21 = vmax.f32 %v6224_v15, %v6254_v5 }
 0x56a   : > { %v6267_v54 = vmax.f32 %v6213_v33, %v6251_v24 }
 0x56b   : > { %v6258_v30 = vmul.f32 0.2, %v6240_v52  ;;  %v6271_v31 = vmax.f32 %v6229_v27, %v6255_v38 }
 0x56d   : > { %v6274_v1 = vmax.f32 %v6240_v52, %v6258_v30 }
 0x56f   : > { %6995 = vmatpush3.xpose.msra.mxu1 %v6274_v1 }
 0x570   : > { %6996 = vmatprep.subr.mxu1 %v7312_v40 }
 0x573   : > { %6997 = vmatpush3.xpose.msra.mxu1 %v6273_v18  ;;  %v6280_v28 = vpop.permute.xlu1 %6279 }
 0x574   : > { %6998 = vmatprep.subr.mxu1 %v7312_v40  ;;  %v6285_v43 = vrot.slane %v6280_v28, %v10714_v46 }
 0x577   : > { %6999 = vmatpush3.xpose.msra.mxu1 %v6272_v10 }
 0x578   : > { %7000 = vmatprep.subr.mxu1 %v7312_v40 }
 0x57b   : > { %7001 = vmatpush3.xpose.msra.mxu1 %v6271_v31 }
 0x57c   : > { %7002 = vmatprep.subr.mxu1 %v7312_v40 }
 0x57f   : > { %7003 = vmatpush3.xpose.msra.mxu1 %v6270_v21 }
 0x580   : > { %7004 = vmatprep.subr.mxu1 %v7312_v40 }
 0x583   : > { %7005 = vmatpush3.xpose.msra.mxu1 %v6269_v7 }
 0x584   : > { %7006 = vmatprep.subr.mxu1 %v7312_v40 }
 0x587   : > { %7007 = vmatpush3.xpose.msra.mxu1 %v6268_v57 }
 0x588   : > { %7008 = vmatprep.subr.mxu1 %v7312_v40 }
 0x58b   : > { %7009 = vmatpush3.xpose.msra.mxu1 %v6267_v54 }
 0x58c   : > { %7010 = vmatprep.subr.mxu1 %v7312_v40 }
 0x58f   : > { %7011 = vmatpush3.xpose.msra.mxu1 %v6266_v11 }
 0x590   : > { %7012 = vmatprep.subr.mxu1 %v7312_v40 }
 0x593   : > { %7013 = vmatpush3.xpose.msra.mxu1 %v6265_v26 }
 0x594   : > { %7014 = vmatprep.subr.mxu1 %v7312_v40 }
 0x597   : > { %7015 = vmatpush3.xpose.msra.mxu1 %v6264_v8 }
 0x598   : > { %7016 = vmatprep.subr.mxu1 %v7312_v40 }
 0x59b   : > { %7017 = vmatpush3.xpose.msra.mxu1 %v6263_v37 }
 0x59c   : > { %7018 = vmatprep.subr.mxu1 %v7312_v40 }
 0x59f   : > { %7019 = vmatpush3.xpose.msra.mxu1 %v6262_v16 }
 0x5a0   : > { %7020 = vmatprep.subr.mxu1 %v7312_v40 }
 0x5a3   : > { %7021 = vmatpush3.xpose.msra.mxu1 %v6261_v59 }
 0x5a4   : > { %7022 = vmatprep.subr.mxu1 %v7312_v40 }
 0x5a7   : > { %7023 = vmatpush3.xpose.msra.mxu1 %v6260_v14 }
 0x5a8   : > { %7024 = vmatprep.subr.mxu1 %v7312_v40 }
 0x5ab   : > { %7025 = vmatpush3.xpose.msra.mxu1 %v6259_v41 }
 0x5ae   : > { %7027 = vmatmul.mubr.f32.vlgmr.msra.gmra.mxu1 %v6275_v32 }
 0x66e   : > { %v6352_v22 = vpop.f32.mrf.mxu1 }
 0x66f   : > { %v6353_v36 = vadd.f32 %v6352_v22, %v6285_v43 }
 0x670   : > { %v7028_v40 = vpop.f32.mrf.mxu1 }
 0x671   : > { %6356 = vst [vmem:[%s353_s26] sm:$0x1] %v6353_v36 }
 0x672   : > { %7261 = shalt.err (!%p7258_p3)
}
 0x673   : > { %s7262_s21 = scalar_lea.hbm %s10298_s11, 16  ;;  %s7266_s26 = scalar_lea.hbm %s10343_s10, 32 }
 0x674   : > { %p7263_p4 = scmp.ne.s32.totalorder %s10298_s11, %s7262_s21  ;;  %p7267_p9 = scmp.lt.s32.totalorder %s10298_s11, %s10343_s10 }
 0x675   : > { %p7268_p10 = scmp.lt.s32.totalorder %s7266_s26, %s7262_s21 }
 0x676   : > { %p7264_p7 = pnand %p7263_p4, %p7411_p5 }
 0x677   : > { %p7269_p11 = por %p7268_p10, %p7267_p9 }
 0x678   : > { %p7265_p8 = pneg %p7264_p7 }
 0x67a   : > { %p7270_p12 = pnand %p7269_p11, %p7265_p8 }
 0x67c   : > { %7273 = shalt.err (!%p7270_p12)
}
 0x67d   : > { %7033 = dma.vmem_to_hbm [thread:$0]  (%p7411_p5), %s6371_s27, 16, %s10298_s11, %s6358_s12  }
 0x67e PF: > { %p7039_p13 = scmp.ge.s32.totalorder %s7308_s18, 2  ;;  %s6382_s13 = sand.u32 1, %s7296_s15  }
 0x67f   : > { %s6383_s14 = scalar_lea.sflag [#allocation4], %s6382_s13 }
 0x680   : > { %p7036_p0 = pnand %p7039_p13, %p7415_p6 }
 0x682   : > { %p7037_p1 = pneg %p7036_p0 }
 0x684   : > { %7291 = dma.done.wait (%p7037_p1), %s6383_s14, 16  }
 0x685   : > { %7293 = vsyncadd (%p7037_p1), %s6383_s14, 4294967280  ;;  %p22_p2 = scmp.ge.s32.totalorder %s7398_s20, 4   ;;  %s10715_s15 = smov %s7300_s16 }
 0x686   : > { %s10716_s16 = smov %s7304_s17  ;;  %s10717_s17 = smov %s7409_s23 }
 0x687   : > { %s10718_s18 = smov %s7398_s20  ;;  %24 = sbr.rel (!%p22_p2) target bundleno = 6 (0x6), region = 95 }
 0x68c   :  { %6387 = vsyncpa [#allocation4], 1 }
 0x68d   :  { %6389 = vsyncpa [#allocation4 + $0x1], 1 }

</bundles_post_ra>
